<compile_context>
chip_gen: v5e
topology: v5e:2x2
jax: 0.10.0
libtpu: 0.0.40
codegen_flags: <defaults>
</compile_context>

<pallas_src>
import functools

import jax
import jax.numpy as jnp
from jax.experimental import pallas as pl
from jax.experimental.pallas import tpu as pltpu

LATENT_DIM = 20
LATENT_PAD = 128          # latent lanes padded to a full vreg width inside the kernel
ENC_DIM = 64 * 7 * 7      # 3136
BN_EPS = 1e-5
TILE_M = 512              # rows per grid step for the fused matmul (8-aligned)


# --------------------------------------------------------------------------- kernels

def _matmul_affine_kernel(x_ref, w_ref, scale_ref, shift_ref, o_ref, *,
                          activation, apply_scale):
    """o = act((x @ w) [* scale] + shift); scale/shift broadcast over rows."""
    acc = jnp.dot(x_ref[...], w_ref[...], preferred_element_type=jnp.float32)
    if apply_scale:
        acc = acc * scale_ref[...]
    y = acc + shift_ref[...]
    if activation == "elu":
        # ELU(alpha=1): y if y > 0 else exp(y) - 1  (clamped exp arg for safety)
        y = jnp.where(y > 0.0, y, jnp.exp(jnp.minimum(y, 0.0)) - 1.0)
    elif activation == "sigmoid":
        y = 1.0 / (1.0 + jnp.exp(-y))
    o_ref[...] = y.astype(o_ref.dtype)


def _vmem_limit_bytes(tm, k, n, out_bytes):
    # ~2x double-buffered x/out tiles + the resident weight + affine rows + headroom.
    need = 2 * (tm * k * 2 + tm * n * out_bytes) + k * n * 2 + 8 * n + (4 << 20)
    return int(min(max(need, 16 << 20), 56 << 20))


def fused_matmul(x, w, scale, shift, *, activation=None, apply_scale=True,
                 out_dtype=jnp.bfloat16, tile_m=TILE_M):
    """[M, K] @ [K, N] fused with per-column affine + activation, tiled over M."""
    M, K = x.shape
    N = w.shape[1]
    # Full-dim block when M is small (always legal); otherwise an 8-aligned tile.
    TM = M if M <= tile_m else tile_m
    grid = (pl.cdiv(M, TM),)
    out_bytes = jnp.dtype(out_dtype).itemsize
    kernel = functools.partial(_matmul_affine_kernel,
                               activation=activation, apply_scale=apply_scale)
    cost = pl.CostEstimate(
        flops=2 * M * K * N,
        transcendentals=(M * N if activation else 0),
        bytes_accessed=2 * M * K + 2 * K * N + out_bytes * M * N + 8 * N,
    )
    return pl.pallas_call(
        kernel,
        out_shape=jax.ShapeDtypeStruct((M, N), out_dtype),
        grid_spec=pltpu.PrefetchScalarGridSpec(
            num_scalar_prefetch=0,
            grid=grid,
            in_specs=[
                pl.BlockSpec((TM, K), lambda i: (i, 0)),
                pl.BlockSpec((K, N), lambda i: (0, 0)),
                pl.BlockSpec((1, N), lambda i: (0, 0)),
                pl.BlockSpec((1, N), lambda i: (0, 0)),
            ],
            out_specs=pl.BlockSpec((TM, N), lambda i: (i, 0)),
        ),
        compiler_params=pltpu.CompilerParams(
            dimension_semantics=("parallel",),
            vmem_limit_bytes=_vmem_limit_bytes(TM, K, N, out_bytes),
        ),
        cost_estimate=cost,
    )(x.astype(jnp.bfloat16), w.astype(jnp.bfloat16),
      scale.reshape(1, N).astype(jnp.float32),
      shift.reshape(1, N).astype(jnp.float32))


def _latent_kernel(enc_ref, wh_ref, bh_ref, eps_ref, wd_ref, bd_ref,
                   mu_ref, lv_ref, dec_ref):
    """Fused: [mu | log_var] = enc @ Wh + bh ; z = mu + eps*exp(.5*lv) ; dec = z @ Wd + bd."""
    lp = mu_ref.shape[1]
    heads = jnp.dot(enc_ref[...], wh_ref[...],
                    preferred_element_type=jnp.float32) + bh_ref[...]
    mu = heads[:, :lp]
    log_var = heads[:, lp:]
    z = mu + eps_ref[...] * jnp.exp(0.5 * log_var)       # padded lanes stay exactly 0
    dec = jnp.dot(z.astype(wd_ref.dtype), wd_ref[...],
                  preferred_element_type=jnp.float32) + bd_ref[...]
    mu_ref[...] = mu
    lv_ref[...] = log_var
    dec_ref[...] = dec.astype(dec_ref.dtype)


def latent_fused(enc, w_heads, b_heads, eps_pad, w_dec, b_dec):
    """Single ungridded call for the tiny latent section (B rows)."""
    B = enc.shape[0]
    vmem = pl.BlockSpec(memory_space=pltpu.MemorySpace.VMEM)
    cost = pl.CostEstimate(
        flops=2 * B * ENC_DIM * 2 * LATENT_PAD + 2 * B * LATENT_PAD * ENC_DIM,
        transcendentals=B * LATENT_PAD,
        bytes_accessed=2 * B * ENC_DIM * 2 + 2 * ENC_DIM * 2 * LATENT_PAD
                       + 2 * LATENT_PAD * ENC_DIM + 4 * B * 3 * LATENT_PAD,
    )
    return pl.pallas_call(
        _latent_kernel,
        out_shape=(jax.ShapeDtypeStruct((B, LATENT_PAD), jnp.float32),
                   jax.ShapeDtypeStruct((B, LATENT_PAD), jnp.float32),
                   jax.ShapeDtypeStruct((B, ENC_DIM), jnp.bfloat16)),
        in_specs=[vmem] * 6,
        out_specs=[vmem, vmem, vmem],
        cost_estimate=cost,
    )(enc, w_heads, b_heads, eps_pad, w_dec, b_dec)


# --------------------------------------------------------------------------- glue

def im2col_nhwc(x, k, stride, pad):
    """x: [B,H,W,C] -> patches [B*Ho*Wo, k*k*C]; per-row order (kh, kw, C)."""
    B, H, W, C = x.shape
    xp = jnp.pad(x, ((0, 0), (pad, pad), (pad, pad), (0, 0)))
    Ho = (H + 2 * pad - k) // stride + 1
    Wo = (W + 2 * pad - k) // stride + 1
    cols = []
    for ki in range(k):
        for kj in range(k):
            cols.append(xp[:, ki:ki + stride * Ho:stride, kj:kj + stride * Wo:stride, :])
    cols = jnp.stack(cols, axis=3)                       # [B, Ho, Wo, k*k, C]
    return cols.reshape(B * Ho * Wo, k * k * C), Ho, Wo


def deconv_patches(x):
    """x: [B,H,W,C] -> [B*H*W, 4*C]; per-row order (di, dj, C) with zero halo."""
    B, H, W, C = x.shape
    xp = jnp.pad(x, ((0, 0), (0, 1), (0, 1), (0, 0)))
    cols = []
    for di in (0, 1):
        for dj in (0, 1):
            cols.append(xp[:, di:di + H, dj:dj + W, :])
    cols = jnp.stack(cols, axis=3)                       # [B, H, W, 4, C]
    return cols.reshape(B * H * W, 4 * C)


def conv_w_to_mat(w):
    """PyTorch Conv2d weight [O, C, kh, kw] -> matmul weight [kh*kw*C, O] (NHWC patches)."""
    return jnp.transpose(w, (2, 3, 1, 0)).reshape(-1, w.shape[0])


def deconv_phase_weight(w):
    """PyTorch ConvTranspose2d weight [Cin, Cout, 3, 3] (stride 2, pad 1, out_pad 1) ->
    phase matmul weight [4*Cin, 4*Cout].  Rows: (di, dj, cin) of the 2x2 input patch;
    cols: (a, b, cout) of the 2x2 output parity block.  out[2m+a, 2n+b] is exact."""
    cin, cout = w.shape[0], w.shape[1]
    tap = {(0, 0): 1, (0, 1): None, (1, 0): 2, (1, 1): 0}   # (phase, offset) -> kernel idx
    rows = []
    for di in (0, 1):
        for dj in (0, 1):
            cols = []
            for a in (0, 1):
                for b in (0, 1):
                    kh, kw = tap[(a, di)], tap[(b, dj)]
                    if kh is None or kw is None:
                        cols.append(jnp.zeros((cin, cout), w.dtype))
                    else:
                        cols.append(w[:, :, kh, kw])
                    del kh, kw
            rows.append(jnp.concatenate(cols, axis=1))        # [Cin, 4*Cout]
    return jnp.concatenate(rows, axis=0)                      # [4*Cin, 4*Cout]


def bn_fold(bias, gamma, beta, mean, var):
    """Fold conv bias + eval-mode BatchNorm into per-channel (scale, shift)."""
    scale = gamma / jnp.sqrt(var + BN_EPS)
    shift = (bias - mean) * scale + beta
    return scale, shift


# --------------------------------------------------------------------------- params

def init_params(key):
    ks = iter(jax.random.split(key, 32))

    def nrm(shape, s=0.05):
        return (jax.random.normal(next(ks), shape) * s).astype(jnp.float32)

    p = {}
    # encoder
    p["conv1_w"] = nrm((32, 1, 3, 3));   p["conv1_b"] = nrm((32,))
    p["bn1_g"] = 1.0 + nrm((32,), 0.1);  p["bn1_b"] = nrm((32,), 0.1)
    p["bn1_m"] = nrm((32,), 0.1);        p["bn1_v"] = 1.0 + jnp.abs(nrm((32,), 0.1))
    p["conv2_w"] = nrm((64, 32, 3, 3));  p["conv2_b"] = nrm((64,))
    p["bn2_g"] = 1.0 + nrm((64,), 0.1);  p["bn2_b"] = nrm((64,), 0.1)
    p["bn2_m"] = nrm((64,), 0.1);        p["bn2_v"] = 1.0 + jnp.abs(nrm((64,), 0.1))
    # heads (stored [in, out] for x @ W; row order is NHWC-flatten of the 7x7x64 map)
    p["fc_mu_w"] = nrm((ENC_DIM, LATENT_DIM));  p["fc_mu_b"] = nrm((LATENT_DIM,))
    p["fc_lv_w"] = nrm((ENC_DIM, LATENT_DIM));  p["fc_lv_b"] = nrm((LATENT_DIM,))
    p["fc_dec_w"] = nrm((LATENT_DIM, ENC_DIM)); p["fc_dec_b"] = nrm((ENC_DIM,))
    # decoder (ConvTranspose2d weights: [Cin, Cout, k, k])
    p["deconv1_w"] = nrm((64, 32, 3, 3)); p["deconv1_b"] = nrm((32,))
    p["bn3_g"] = 1.0 + nrm((32,), 0.1);   p["bn3_b"] = nrm((32,), 0.1)
    p["bn3_m"] = nrm((32,), 0.1);         p["bn3_v"] = 1.0 + jnp.abs(nrm((32,), 0.1))
    p["deconv2_w"] = nrm((32, 1, 3, 3));  p["deconv2_b"] = nrm((1,))
    return p


def prepare_params(p):
    """One-time weight prep: bf16 matmul weights, folded BN affines, phase/deconv
    weights, and the zero-padded fused latent-section weights."""
    q = {}
    s1, b1 = bn_fold(p["conv1_b"], p["bn1_g"], p["bn1_b"], p["bn1_m"], p["bn1_v"])
    q["conv1_w"] = conv_w_to_mat(p["conv1_w"]).astype(jnp.bfloat16)       # [9, 32]
    q["conv1_scale"], q["conv1_shift"] = s1, b1
    s2, b2 = bn_fold(p["conv2_b"], p["bn2_g"], p["bn2_b"], p["bn2_m"], p["bn2_v"])
    q["conv2_w"] = conv_w_to_mat(p["conv2_w"]).astype(jnp.bfloat16)       # [288, 64]
    q["conv2_scale"], q["conv2_shift"] = s2, b2
    # latent section, padded to LATENT_PAD lanes (zero pad keeps math exact)
    wh = jnp.zeros((ENC_DIM, 2 * LATENT_PAD), jnp.float32)
    wh = wh.at[:, :LATENT_DIM].set(p["fc_mu_w"])
    wh = wh.at[:, LATENT_PAD:LATENT_PAD + LATENT_DIM].set(p["fc_lv_w"])
    bh = jnp.zeros((1, 2 * LATENT_PAD), jnp.float32)
    bh = bh.at[0, :LATENT_DIM].set(p["fc_mu_b"])
    bh = bh.at[0, LATENT_PAD:LATENT_PAD + LATENT_DIM].set(p["fc_lv_b"])
    wd = jnp.zeros((LATENT_PAD, ENC_DIM), jnp.float32).at[:LATENT_DIM, :].set(p["fc_dec_w"])
    q["w_heads"] = wh.astype(jnp.bfloat16)
    q["b_heads"] = bh
    q["w_dec"] = wd.astype(jnp.bfloat16)
    q["b_dec"] = p["fc_dec_b"].reshape(1, ENC_DIM)
    # deconv1 (64 -> 32): phase weight [256, 128], BN affine tiled over the 4 phases
    s3, b3 = bn_fold(p["deconv1_b"], p["bn3_g"], p["bn3_b"], p["bn3_m"], p["bn3_v"])
    q["deconv1_w"] = deconv_phase_weight(p["deconv1_w"]).astype(jnp.bfloat16)
    q["deconv1_scale"] = jnp.tile(s3, 4)
    q["deconv1_shift"] = jnp.tile(b3, 4)
    # deconv2 (32 -> 1): phase weight [128, 4], bias tiled over the 4 phases
    q["deconv2_w"] = deconv_phase_weight(p["deconv2_w"]).astype(jnp.bfloat16)
    q["deconv2_shift"] = jnp.tile(p["deconv2_b"], 4)
    return q


# --------------------------------------------------------------------------- forward

def cnn_vae_forward(q, x, eps):
    """x: [B, 1, 28, 28] float32 (NCHW).  Returns (reconstructed, mu, log_var)."""
    B = x.shape[0]
    h = jnp.transpose(x, (0, 2, 3, 1))                     # NCHW -> NHWC, once

    # encoder conv1: 1->32, stride 2, pad 1 (28 -> 14), BN + ELU   (Dropout = identity)
    cols, Ho, Wo = im2col_nhwc(h, 3, 2, 1)                 # [B*196, 9]
    h = fused_matmul(cols, q["conv1_w"], q["conv1_scale"], q["conv1_shift"],
                     activation="elu", out_dtype=jnp.bfloat16)
    h = h.reshape(B, Ho, Wo, 32)

    # encoder conv2: 32->64, stride 2, pad 1 (14 -> 7), BN + ELU
    cols, Ho, Wo = im2col_nhwc(h, 3, 2, 1)                 # [B*49, 288]
    h = fused_matmul(cols, q["conv2_w"], q["conv2_scale"], q["conv2_shift"],
                     activation="elu", out_dtype=jnp.bfloat16)
    encoded = h.reshape(B, ENC_DIM)                        # NHWC flatten (weights match)

    # latent section: mu | log_var, reparameterize, decoder-input linear — one kernel
    eps_pad = jnp.zeros((B, LATENT_PAD), jnp.float32).at[:, :LATENT_DIM].set(eps)
    mu_p, lv_p, dec = latent_fused(encoded, q["w_heads"], q["b_heads"], eps_pad,
                                   q["w_dec"], q["b_dec"])
    mu, log_var = mu_p[:, :LATENT_DIM], lv_p[:, :LATENT_DIM]
    h = dec.reshape(B, 7, 7, 64)

    # deconv1: 64->32, stride 2, pad 1, out_pad 1 (7 -> 14), BN + ELU  (phase-decomposed)
    pc = deconv_patches(h)                                 # [B*49, 256]
    y = fused_matmul(pc, q["deconv1_w"], q["deconv1_scale"], q["deconv1_shift"],
                     activation="elu", out_dtype=jnp.bfloat16)          # [B*49, 128]
    h = y.reshape(B, 7, 7, 2, 2, 32).transpose(0, 1, 3, 2, 4, 5).reshape(B, 14, 14, 32)

    # deconv2: 32->1, stride 2, pad 1, out_pad 1 (14 -> 28), Sigmoid  (phase-decomposed)
    pc = deconv_patches(h)                                 # [B*196, 128]
    y = fused_matmul(pc, q["deconv2_w"], jnp.ones((4,), jnp.float32), q["deconv2_shift"],
                     activation="sigmoid", apply_scale=False,
                     out_dtype=jnp.float32)                              # [B*196, 4]
    rec = y.reshape(B, 14, 14, 2, 2, 1).transpose(0, 1, 3, 2, 4, 5).reshape(B, 28, 28, 1)
    reconstructed = jnp.transpose(rec, (0, 3, 1, 2))       # back to NCHW [B,1,28,28]

    return reconstructed, mu, log_var


# --------------------------------------------------------------------------- main

if __name__ == "__main__":
    key = jax.random.PRNGKey(0)
    k_params, k_x, k_eps = jax.random.split(key, 3)

    B = 2
    x = jax.random.normal(k_x, (B, 1, 28, 28), jnp.float32)
    eps = jax.random.normal(k_eps, (B, LATENT_DIM), jnp.float32)

    params = init_params(k_params)
    prepped = prepare_params(params)

    fwd = jax.jit(cnn_vae_forward)
    reconstructed, mu, log_var = fwd(prepped, x, eps)
    jax.block_until_ready((reconstructed, mu, log_var))

    assert reconstructed.shape == (B, 1, 28, 28)
    assert mu.shape == (B, LATENT_DIM) and log_var.shape == (B, LATENT_DIM)
    assert bool(jnp.all(jnp.isfinite(reconstructed)))
    assert bool(jnp.all((reconstructed >= 0.0) & (reconstructed <= 1.0)))
    print("KERNEL_OK")
</pallas_src>

<mosaic_0001>
module attributes {stable_mosaic.version = 11 : i64} {
  func.func @_matmul_affine_kernel(%arg0: i32, %arg1: memref<392x9xbf16, #tpu.memory_space<vmem>>, %arg2: memref<9x32xbf16, #tpu.memory_space<vmem>>, %arg3: memref<1x32xf32, #tpu.memory_space<vmem>>, %arg4: memref<1x32xf32, #tpu.memory_space<vmem>>, %arg5: memref<392x32xbf16, #tpu.memory_space<vmem>>) attributes {dimension_semantics = [#tpu.dimension_semantics<parallel>], iteration_bounds = array<i64: 1>, scalar_prefetch = 0 : i64, scratch_operands = 0 : i64, tpu.core_type = #tpu.core_type<tc>, window_params = [{transform_indices = @transform_0, window_bounds = array<i64: 392, 9>}, {pipeline_mode = #tpu.pipeline_mode<synchronous>, transform_indices = @transform_1, window_bounds = array<i64: 9, 32>}, {pipeline_mode = #tpu.pipeline_mode<synchronous>, transform_indices = @transform_2, window_bounds = array<i64: 1, 32>}, {pipeline_mode = #tpu.pipeline_mode<synchronous>, transform_indices = @transform_3, window_bounds = array<i64: 1, 32>}, {transform_indices = @transform_4, window_bounds = array<i64: 392, 32>}]} {
    %c0 = arith.constant 0 : index
    %c0_0 = arith.constant 0 : index
    %0 = vector.load %arg1[%c0, %c0_0] : memref<392x9xbf16, #tpu.memory_space<vmem>>, vector<392x9xbf16>
    %c0_1 = arith.constant 0 : index
    %c0_2 = arith.constant 0 : index
    %1 = vector.load %arg2[%c0_1, %c0_2] : memref<9x32xbf16, #tpu.memory_space<vmem>>, vector<9x32xbf16>
    %cst = arith.constant dense<0.000000e+00> : vector<392x32xf32>
    %2 = tpu.matmul %0, %1, %cst {dimension_numbers = #tpu.dot_dimension_numbers<[1], [0], [0], [1], [0, 0, 1, 1], [], []>} : vector<392x9xbf16>, vector<9x32xbf16>, vector<392x32xf32> -> vector<392x32xf32>
    %c0_3 = arith.constant 0 : index
    %c0_4 = arith.constant 0 : index
    %3 = vector.load %arg3[%c0_3, %c0_4] : memref<1x32xf32, #tpu.memory_space<vmem>>, vector<1x32xf32>
    %4 = vector.broadcast %3 : vector<1x32xf32> to vector<392x32xf32>
    %5 = arith.mulf %2, %4 : vector<392x32xf32>
    %c0_5 = arith.constant 0 : index
    %c0_6 = arith.constant 0 : index
    %6 = vector.load %arg4[%c0_5, %c0_6] : memref<1x32xf32, #tpu.memory_space<vmem>>, vector<1x32xf32>
    %7 = vector.broadcast %6 : vector<1x32xf32> to vector<392x32xf32>
    %8 = arith.addf %5, %7 : vector<392x32xf32>
    %cst_7 = arith.constant 0.000000e+00 : f32
    %9 = vector.broadcast %cst_7 : f32 to vector<392x32xf32>
    %10 = arith.cmpf ogt, %8, %9 : vector<392x32xf32>
    %cst_8 = arith.constant 0.000000e+00 : f32
    %11 = vector.broadcast %cst_8 : f32 to vector<392x32xf32>
    %12 = arith.minimumf %8, %11 : vector<392x32xf32>
    %13 = math.exp %12 : vector<392x32xf32>
    %cst_9 = arith.constant 1.000000e+00 : f32
    %14 = vector.broadcast %cst_9 : f32 to vector<392x32xf32>
    %15 = arith.subf %13, %14 : vector<392x32xf32>
    %16 = arith.select %10, %8, %15 : vector<392x32xi1>, vector<392x32xf32>
    %17 = arith.truncf %16 : vector<392x32xf32> to vector<392x32xbf16>
    %c0_10 = arith.constant 0 : index
    %c0_11 = arith.constant 0 : index
    %18 = vector.load %arg5[%c0_10, %c0_11] : memref<392x32xbf16, #tpu.memory_space<vmem>>, vector<392x32xbf16>
    tpu.vector_store %arg5[%c0_10, %c0_11], %17 {strides = array<i32>} : memref<392x32xbf16, #tpu.memory_space<vmem>>, vector<392x32xbf16>,
    return
  }
  func.func @transform_0(%arg0: i32) -> (i32, i32) {
    %c0_i32 = arith.constant 0 : i32
    %c0_i32_0 = arith.constant 0 : i32
    return %arg0, %c0_i32 : i32, i32
  }
  func.func @transform_1(%arg0: i32) -> (i32, i32) {
    %c0_i32 = arith.constant 0 : i32
    %c0_i32_0 = arith.constant 0 : i32
    %c0_i32_1 = arith.constant 0 : i32
    return %c0_i32, %c0_i32_0 : i32, i32
  }
  func.func @transform_2(%arg0: i32) -> (i32, i32) {
    %c0_i32 = arith.constant 0 : i32
    %c0_i32_0 = arith.constant 0 : i32
    %c0_i32_1 = arith.constant 0 : i32
    return %c0_i32, %c0_i32_0 : i32, i32
  }
  func.func @transform_3(%arg0: i32) -> (i32, i32) {
    %c0_i32 = arith.constant 0 : i32
    %c0_i32_0 = arith.constant 0 : i32
    %c0_i32_1 = arith.constant 0 : i32
    return %c0_i32, %c0_i32_0 : i32, i32
  }
  func.func @transform_4(%arg0: i32) -> (i32, i32) {
    %c0_i32 = arith.constant 0 : i32
    %c0_i32_0 = arith.constant 0 : i32
    return %arg0, %c0_i32 : i32, i32
  }
}

module attributes {stable_mosaic.version = 11 : i64} {
  func.func @_matmul_affine_kernel(%arg0: i32, %arg1: memref<98x288xbf16, #tpu.memory_space<vmem>>, %arg2: memref<288x64xbf16, #tpu.memory_space<vmem>>, %arg3: memref<1x64xf32, #tpu.memory_space<vmem>>, %arg4: memref<1x64xf32, #tpu.memory_space<vmem>>, %arg5: memref<98x64xbf16, #tpu.memory_space<vmem>>) attributes {dimension_semantics = [#tpu.dimension_semantics<parallel>], iteration_bounds = array<i64: 1>, scalar_prefetch = 0 : i64, scratch_operands = 0 : i64, tpu.core_type = #tpu.core_type<tc>, window_params = [{transform_indices = @transform_0, window_bounds = array<i64: 98, 288>}, {pipeline_mode = #tpu.pipeline_mode<synchronous>, transform_indices = @transform_1, window_bounds = array<i64: 288, 64>}, {pipeline_mode = #tpu.pipeline_mode<synchronous>, transform_indices = @transform_2, window_bounds = array<i64: 1, 64>}, {pipeline_mode = #tpu.pipeline_mode<synchronous>, transform_indices = @transform_3, window_bounds = array<i64: 1, 64>}, {transform_indices = @transform_4, window_bounds = array<i64: 98, 64>}]} {
    %c0 = arith.constant 0 : index
    %c0_0 = arith.constant 0 : index
    %0 = vector.load %arg1[%c0, %c0_0] : memref<98x288xbf16, #tpu.memory_space<vmem>>, vector<98x288xbf16>
    %c0_1 = arith.constant 0 : index
    %c0_2 = arith.constant 0 : index
    %1 = vector.load %arg2[%c0_1, %c0_2] : memref<288x64xbf16, #tpu.memory_space<vmem>>, vector<288x64xbf16>
    %cst = arith.constant dense<0.000000e+00> : vector<98x64xf32>
    %2 = tpu.matmul %0, %1, %cst {dimension_numbers = #tpu.dot_dimension_numbers<[1], [0], [0], [1], [0, 0, 1, 1], [], []>} : vector<98x288xbf16>, vector<288x64xbf16>, vector<98x64xf32> -> vector<98x64xf32>
    %c0_3 = arith.constant 0 : index
    %c0_4 = arith.constant 0 : index
    %3 = vector.load %arg3[%c0_3, %c0_4] : memref<1x64xf32, #tpu.memory_space<vmem>>, vector<1x64xf32>
    %4 = vector.broadcast %3 : vector<1x64xf32> to vector<98x64xf32>
    %5 = arith.mulf %2, %4 : vector<98x64xf32>
    %c0_5 = arith.constant 0 : index
    %c0_6 = arith.constant 0 : index
    %6 = vector.load %arg4[%c0_5, %c0_6] : memref<1x64xf32, #tpu.memory_space<vmem>>, vector<1x64xf32>
    %7 = vector.broadcast %6 : vector<1x64xf32> to vector<98x64xf32>
    %8 = arith.addf %5, %7 : vector<98x64xf32>
    %cst_7 = arith.constant 0.000000e+00 : f32
    %9 = vector.broadcast %cst_7 : f32 to vector<98x64xf32>
    %10 = arith.cmpf ogt, %8, %9 : vector<98x64xf32>
    %cst_8 = arith.constant 0.000000e+00 : f32
    %11 = vector.broadcast %cst_8 : f32 to vector<98x64xf32>
    %12 = arith.minimumf %8, %11 : vector<98x64xf32>
    %13 = math.exp %12 : vector<98x64xf32>
    %cst_9 = arith.constant 1.000000e+00 : f32
    %14 = vector.broadcast %cst_9 : f32 to vector<98x64xf32>
    %15 = arith.subf %13, %14 : vector<98x64xf32>
    %16 = arith.select %10, %8, %15 : vector<98x64xi1>, vector<98x64xf32>
    %17 = arith.truncf %16 : vector<98x64xf32> to vector<98x64xbf16>
    %c0_10 = arith.constant 0 : index
    %c0_11 = arith.constant 0 : index
    %18 = vector.load %arg5[%c0_10, %c0_11] : memref<98x64xbf16, #tpu.memory_space<vmem>>, vector<98x64xbf16>
    tpu.vector_store %arg5[%c0_10, %c0_11], %17 {strides = array<i32>} : memref<98x64xbf16, #tpu.memory_space<vmem>>, vector<98x64xbf16>,
    return
  }
  func.func @transform_0(%arg0: i32) -> (i32, i32) {
    %c0_i32 = arith.constant 0 : i32
    %c0_i32_0 = arith.constant 0 : i32
    return %arg0, %c0_i32 : i32, i32
  }
  func.func @transform_1(%arg0: i32) -> (i32, i32) {
    %c0_i32 = arith.constant 0 : i32
    %c0_i32_0 = arith.constant 0 : i32
    %c0_i32_1 = arith.constant 0 : i32
    return %c0_i32, %c0_i32_0 : i32, i32
  }
  func.func @transform_2(%arg0: i32) -> (i32, i32) {
    %c0_i32 = arith.constant 0 : i32
    %c0_i32_0 = arith.constant 0 : i32
    %c0_i32_1 = arith.constant 0 : i32
    return %c0_i32, %c0_i32_0 : i32, i32
  }
  func.func @transform_3(%arg0: i32) -> (i32, i32) {
    %c0_i32 = arith.constant 0 : i32
    %c0_i32_0 = arith.constant 0 : i32
    %c0_i32_1 = arith.constant 0 : i32
    return %c0_i32, %c0_i32_0 : i32, i32
  }
  func.func @transform_4(%arg0: i32) -> (i32, i32) {
    %c0_i32 = arith.constant 0 : i32
    %c0_i32_0 = arith.constant 0 : i32
    return %arg0, %c0_i32 : i32, i32
  }
}

module attributes {stable_mosaic.version = 11 : i64} {
  func.func @_latent_kernel(%arg0: memref<2x3136xbf16, #tpu.memory_space<vmem>>, %arg1: memref<3136x256xbf16, #tpu.memory_space<vmem>>, %arg2: memref<1x256xf32, #tpu.memory_space<vmem>>, %arg3: memref<2x128xf32, #tpu.memory_space<vmem>>, %arg4: memref<128x3136xbf16, #tpu.memory_space<vmem>>, %arg5: memref<1x3136xf32, #tpu.memory_space<vmem>>, %arg6: memref<2x128xf32, #tpu.memory_space<vmem>>, %arg7: memref<2x128xf32, #tpu.memory_space<vmem>>, %arg8: memref<2x3136xbf16, #tpu.memory_space<vmem>>) attributes {dimension_semantics = [], scalar_prefetch = 0 : i64, scratch_operands = 0 : i64, tpu.core_type = #tpu.core_type<tc>} {
    %c0 = arith.constant 0 : index
    %c0_0 = arith.constant 0 : index
    %0 = vector.load %arg0[%c0, %c0_0] : memref<2x3136xbf16, #tpu.memory_space<vmem>>, vector<2x3136xbf16>
    %c0_1 = arith.constant 0 : index
    %c0_2 = arith.constant 0 : index
    %1 = vector.load %arg1[%c0_1, %c0_2] : memref<3136x256xbf16, #tpu.memory_space<vmem>>, vector<3136x256xbf16>
    %cst = arith.constant dense<0.000000e+00> : vector<2x256xf32>
    %2 = tpu.matmul %0, %1, %cst {dimension_numbers = #tpu.dot_dimension_numbers<[1], [0], [0], [1], [0, 0, 1, 1], [], []>} : vector<2x3136xbf16>, vector<3136x256xbf16>, vector<2x256xf32> -> vector<2x256xf32>
    %c0_3 = arith.constant 0 : index
    %c0_4 = arith.constant 0 : index
    %3 = vector.load %arg2[%c0_3, %c0_4] : memref<1x256xf32, #tpu.memory_space<vmem>>, vector<1x256xf32>
    %4 = vector.broadcast %3 : vector<1x256xf32> to vector<2x256xf32>
    %5 = arith.addf %2, %4 : vector<2x256xf32>
    %6 = vector.extract_strided_slice %5 {offsets = [0, 0], sizes = [2, 128], strides = [1, 1]} : vector<2x256xf32> to vector<2x128xf32>
    %7 = vector.extract_strided_slice %5 {offsets = [0, 128], sizes = [2, 128], strides = [1, 1]} : vector<2x256xf32> to vector<2x128xf32>
    %c0_5 = arith.constant 0 : index
    %c0_6 = arith.constant 0 : index
    %8 = vector.load %arg3[%c0_5, %c0_6] : memref<2x128xf32, #tpu.memory_space<vmem>>, vector<2x128xf32>
    %cst_7 = arith.constant 5.000000e-01 : f32
    %9 = vector.broadcast %cst_7 : f32 to vector<2x128xf32>
    %10 = arith.mulf %9, %7 : vector<2x128xf32>
    %11 = math.exp %10 : vector<2x128xf32>
    %12 = arith.mulf %8, %11 : vector<2x128xf32>
    %13 = arith.addf %6, %12 : vector<2x128xf32>
    %14 = arith.truncf %13 : vector<2x128xf32> to vector<2x128xbf16>
    %c0_8 = arith.constant 0 : index
    %c0_9 = arith.constant 0 : index
    %15 = vector.load %arg4[%c0_8, %c0_9] : memref<128x3136xbf16, #tpu.memory_space<vmem>>, vector<128x3136xbf16>
    %cst_10 = arith.constant dense<0.000000e+00> : vector<2x3136xf32>
    %16 = tpu.matmul %14, %15, %cst_10 {dimension_numbers = #tpu.dot_dimension_numbers<[1], [0], [0], [1], [0, 0, 1, 1], [], []>} : vector<2x128xbf16>, vector<128x3136xbf16>, vector<2x3136xf32> -> vector<2x3136xf32>
    %c0_11 = arith.constant 0 : index
    %c0_12 = arith.constant 0 : index
    %17 = vector.load %arg5[%c0_11, %c0_12] : memref<1x3136xf32, #tpu.memory_space<vmem>>, vector<1x3136xf32>
    %18 = vector.broadcast %17 : vector<1x3136xf32> to vector<2x3136xf32>
    %19 = arith.addf %16, %18 : vector<2x3136xf32>
    %c0_13 = arith.constant 0 : index
    %c0_14 = arith.constant 0 : index
    %20 = vector.load %arg6[%c0_13, %c0_14] : memref<2x128xf32, #tpu.memory_space<vmem>>, vector<2x128xf32>
    tpu.vector_store %arg6[%c0_13, %c0_14], %6 {strides = array<i32>} : memref<2x128xf32, #tpu.memory_space<vmem>>, vector<2x128xf32>,
    %c0_15 = arith.constant 0 : index
    %c0_16 = arith.constant 0 : index
    %21 = vector.load %arg7[%c0_15, %c0_16] : memref<2x128xf32, #tpu.memory_space<vmem>>, vector<2x128xf32>
    tpu.vector_store %arg7[%c0_15, %c0_16], %7 {strides = array<i32>} : memref<2x128xf32, #tpu.memory_space<vmem>>, vector<2x128xf32>,
    %22 = arith.truncf %19 : vector<2x3136xf32> to vector<2x3136xbf16>
    %c0_17 = arith.constant 0 : index
    %c0_18 = arith.constant 0 : index
    %23 = vector.load %arg8[%c0_17, %c0_18] : memref<2x3136xbf16, #tpu.memory_space<vmem>>, vector<2x3136xbf16>
    tpu.vector_store %arg8[%c0_17, %c0_18], %22 {strides = array<i32>} : memref<2x3136xbf16, #tpu.memory_space<vmem>>, vector<2x3136xbf16>,
    return
  }
}

module attributes {stable_mosaic.version = 11 : i64} {
  func.func @_matmul_affine_kernel(%arg0: i32, %arg1: memref<98x256xbf16, #tpu.memory_space<vmem>>, %arg2: memref<256x128xbf16, #tpu.memory_space<vmem>>, %arg3: memref<1x128xf32, #tpu.memory_space<vmem>>, %arg4: memref<1x128xf32, #tpu.memory_space<vmem>>, %arg5: memref<98x128xbf16, #tpu.memory_space<vmem>>) attributes {dimension_semantics = [#tpu.dimension_semantics<parallel>], iteration_bounds = array<i64: 1>, scalar_prefetch = 0 : i64, scratch_operands = 0 : i64, tpu.core_type = #tpu.core_type<tc>, window_params = [{transform_indices = @transform_0, window_bounds = array<i64: 98, 256>}, {pipeline_mode = #tpu.pipeline_mode<synchronous>, transform_indices = @transform_1, window_bounds = array<i64: 256, 128>}, {pipeline_mode = #tpu.pipeline_mode<synchronous>, transform_indices = @transform_2, window_bounds = array<i64: 1, 128>}, {pipeline_mode = #tpu.pipeline_mode<synchronous>, transform_indices = @transform_3, window_bounds = array<i64: 1, 128>}, {transform_indices = @transform_4, window_bounds = array<i64: 98, 128>}]} {
    %c0 = arith.constant 0 : index
    %c0_0 = arith.constant 0 : index
    %0 = vector.load %arg1[%c0, %c0_0] : memref<98x256xbf16, #tpu.memory_space<vmem>>, vector<98x256xbf16>
    %c0_1 = arith.constant 0 : index
    %c0_2 = arith.constant 0 : index
    %1 = vector.load %arg2[%c0_1, %c0_2] : memref<256x128xbf16, #tpu.memory_space<vmem>>, vector<256x128xbf16>
    %cst = arith.constant dense<0.000000e+00> : vector<98x128xf32>
    %2 = tpu.matmul %0, %1, %cst {dimension_numbers = #tpu.dot_dimension_numbers<[1], [0], [0], [1], [0, 0, 1, 1], [], []>} : vector<98x256xbf16>, vector<256x128xbf16>, vector<98x128xf32> -> vector<98x128xf32>
    %c0_3 = arith.constant 0 : index
    %c0_4 = arith.constant 0 : index
    %3 = vector.load %arg3[%c0_3, %c0_4] : memref<1x128xf32, #tpu.memory_space<vmem>>, vector<1x128xf32>
    %4 = vector.broadcast %3 : vector<1x128xf32> to vector<98x128xf32>
    %5 = arith.mulf %2, %4 : vector<98x128xf32>
    %c0_5 = arith.constant 0 : index
    %c0_6 = arith.constant 0 : index
    %6 = vector.load %arg4[%c0_5, %c0_6] : memref<1x128xf32, #tpu.memory_space<vmem>>, vector<1x128xf32>
    %7 = vector.broadcast %6 : vector<1x128xf32> to vector<98x128xf32>
    %8 = arith.addf %5, %7 : vector<98x128xf32>
    %cst_7 = arith.constant 0.000000e+00 : f32
    %9 = vector.broadcast %cst_7 : f32 to vector<98x128xf32>
    %10 = arith.cmpf ogt, %8, %9 : vector<98x128xf32>
    %cst_8 = arith.constant 0.000000e+00 : f32
    %11 = vector.broadcast %cst_8 : f32 to vector<98x128xf32>
    %12 = arith.minimumf %8, %11 : vector<98x128xf32>
    %13 = math.exp %12 : vector<98x128xf32>
    %cst_9 = arith.constant 1.000000e+00 : f32
    %14 = vector.broadcast %cst_9 : f32 to vector<98x128xf32>
    %15 = arith.subf %13, %14 : vector<98x128xf32>
    %16 = arith.select %10, %8, %15 : vector<98x128xi1>, vector<98x128xf32>
    %17 = arith.truncf %16 : vector<98x128xf32> to vector<98x128xbf16>
    %c0_10 = arith.constant 0 : index
    %c0_11 = arith.constant 0 : index
    %18 = vector.load %arg5[%c0_10, %c0_11] : memref<98x128xbf16, #tpu.memory_space<vmem>>, vector<98x128xbf16>
    tpu.vector_store %arg5[%c0_10, %c0_11], %17 {strides = array<i32>} : memref<98x128xbf16, #tpu.memory_space<vmem>>, vector<98x128xbf16>,
    return
  }
  func.func @transform_0(%arg0: i32) -> (i32, i32) {
    %c0_i32 = arith.constant 0 : i32
    %c0_i32_0 = arith.constant 0 : i32
    return %arg0, %c0_i32 : i32, i32
  }
  func.func @transform_1(%arg0: i32) -> (i32, i32) {
    %c0_i32 = arith.constant 0 : i32
    %c0_i32_0 = arith.constant 0 : i32
    %c0_i32_1 = arith.constant 0 : i32
    return %c0_i32, %c0_i32_0 : i32, i32
  }
  func.func @transform_2(%arg0: i32) -> (i32, i32) {
    %c0_i32 = arith.constant 0 : i32
    %c0_i32_0 = arith.constant 0 : i32
    %c0_i32_1 = arith.constant 0 : i32
    return %c0_i32, %c0_i32_0 : i32, i32
  }
  func.func @transform_3(%arg0: i32) -> (i32, i32) {
    %c0_i32 = arith.constant 0 : i32
    %c0_i32_0 = arith.constant 0 : i32
    %c0_i32_1 = arith.constant 0 : i32
    return %c0_i32, %c0_i32_0 : i32, i32
  }
  func.func @transform_4(%arg0: i32) -> (i32, i32) {
    %c0_i32 = arith.constant 0 : i32
    %c0_i32_0 = arith.constant 0 : i32
    return %arg0, %c0_i32 : i32, i32
  }
}

module attributes {stable_mosaic.version = 11 : i64} {
  func.func @_matmul_affine_kernel(%arg0: i32, %arg1: memref<392x128xbf16, #tpu.memory_space<vmem>>, %arg2: memref<128x4xbf16, #tpu.memory_space<vmem>>, %arg3: memref<1x4xf32, #tpu.memory_space<vmem>>, %arg4: memref<1x4xf32, #tpu.memory_space<vmem>>, %arg5: memref<392x4xf32, #tpu.memory_space<vmem>>) attributes {dimension_semantics = [#tpu.dimension_semantics<parallel>], iteration_bounds = array<i64: 1>, scalar_prefetch = 0 : i64, scratch_operands = 0 : i64, tpu.core_type = #tpu.core_type<tc>, window_params = [{transform_indices = @transform_0, window_bounds = array<i64: 392, 128>}, {pipeline_mode = #tpu.pipeline_mode<synchronous>, transform_indices = @transform_1, window_bounds = array<i64: 128, 4>}, {pipeline_mode = #tpu.pipeline_mode<synchronous>, transform_indices = @transform_2, window_bounds = array<i64: 1, 4>}, {pipeline_mode = #tpu.pipeline_mode<synchronous>, transform_indices = @transform_3, window_bounds = array<i64: 1, 4>}, {transform_indices = @transform_4, window_bounds = array<i64: 392, 4>}]} {
    %c0 = arith.constant 0 : index
    %c0_0 = arith.constant 0 : index
    %0 = vector.load %arg1[%c0, %c0_0] : memref<392x128xbf16, #tpu.memory_space<vmem>>, vector<392x128xbf16>
    %c0_1 = arith.constant 0 : index
    %c0_2 = arith.constant 0 : index
    %1 = vector.load %arg2[%c0_1, %c0_2] : memref<128x4xbf16, #tpu.memory_space<vmem>>, vector<128x4xbf16>
    %cst = arith.constant dense<0.000000e+00> : vector<392x4xf32>
    %2 = tpu.matmul %0, %1, %cst {dimension_numbers = #tpu.dot_dimension_numbers<[1], [0], [0], [1], [0, 0, 1, 1], [], []>} : vector<392x128xbf16>, vector<128x4xbf16>, vector<392x4xf32> -> vector<392x4xf32>
    %c0_3 = arith.constant 0 : index
    %c0_4 = arith.constant 0 : index
    %3 = vector.load %arg4[%c0_3, %c0_4] : memref<1x4xf32, #tpu.memory_space<vmem>>, vector<1x4xf32>
    %4 = vector.broadcast %3 : vector<1x4xf32> to vector<392x4xf32>
    %5 = arith.addf %2, %4 : vector<392x4xf32>
    %cst_5 = arith.constant 0.000000e+00 : f32
    %6 = vector.broadcast %cst_5 : f32 to vector<392x4xf32>
    %7 = arith.subf %6, %5 : vector<392x4xf32>
    %8 = math.exp %7 : vector<392x4xf32>
    %cst_6 = arith.constant 1.000000e+00 : f32
    %9 = vector.broadcast %cst_6 : f32 to vector<392x4xf32>
    %10 = arith.addf %9, %8 : vector<392x4xf32>
    %cst_7 = arith.constant 1.000000e+00 : f32
    %11 = vector.broadcast %cst_7 : f32 to vector<392x4xf32>
    %12 = arith.divf %11, %10 : vector<392x4xf32>
    %c0_8 = arith.constant 0 : index
    %c0_9 = arith.constant 0 : index
    %13 = vector.load %arg5[%c0_8, %c0_9] : memref<392x4xf32, #tpu.memory_space<vmem>>, vector<392x4xf32>
    tpu.vector_store %arg5[%c0_8, %c0_9], %12 {strides = array<i32>} : memref<392x4xf32, #tpu.memory_space<vmem>>, vector<392x4xf32>,
    return
  }
  func.func @transform_0(%arg0: i32) -> (i32, i32) {
    %c0_i32 = arith.constant 0 : i32
    %c0_i32_0 = arith.constant 0 : i32
    return %arg0, %c0_i32 : i32, i32
  }
  func.func @transform_1(%arg0: i32) -> (i32, i32) {
    %c0_i32 = arith.constant 0 : i32
    %c0_i32_0 = arith.constant 0 : i32
    %c0_i32_1 = arith.constant 0 : i32
    return %c0_i32, %c0_i32_0 : i32, i32
  }
  func.func @transform_2(%arg0: i32) -> (i32, i32) {
    %c0_i32 = arith.constant 0 : i32
    %c0_i32_0 = arith.constant 0 : i32
    %c0_i32_1 = arith.constant 0 : i32
    return %c0_i32, %c0_i32_0 : i32, i32
  }
  func.func @transform_3(%arg0: i32) -> (i32, i32) {
    %c0_i32 = arith.constant 0 : i32
    %c0_i32_0 = arith.constant 0 : i32
    %c0_i32_1 = arith.constant 0 : i32
    return %c0_i32, %c0_i32_0 : i32, i32
  }
  func.func @transform_4(%arg0: i32) -> (i32, i32) {
    %c0_i32 = arith.constant 0 : i32
    %c0_i32_0 = arith.constant 0 : i32
    return %arg0, %c0_i32 : i32, i32
  }
}

</mosaic_0001>

<bundles_post_ra>
// kernel: cnn_vae_forward.5
= control target key start
LH: loop header
LB: loop body
LE: loop exit
PB: predicated region body
PF: predicated region fallthrough
CT: control target
= control target key end

     0   :  { %9 = vsyncpa [#allocation3], 0  ;;  %s2079_s0 = inlined_call_operand.vmem [shape: bf16[392,9], index: 0, kind: input, shape index: {}]   ;;  %s2080_s1 = inlined_call_operand.hbm [shape: bf16[9,32], index: 1, kind: input, shape index: {}]   ;;  %s2081_s2 = inlined_call_operand.hbm [shape: f32[1,32], index: 2, kind: input, shape index: {}]   ;;  %s2082_s3 = inlined_call_operand.hbm [shape: f32[1,32], index: 3, kind: input, shape index: {}]   ;;  %s2083_s4 = inlined_call_operand.vmem [shape: bf16[392,32], index: 4, kind: output, shape index: {}]  }
   0x1   :  { %10 = vsyncpa [#allocation5], 0  ;;  %s31_s17 = sshll.u32 %s2081_s2, 4  ;;  %s1347_s18 = smov [#allocation4]   ;;  %s32_s17 = int_to_ptr.hbm [resolvable:$true] %s31_s17 }
   0x2   :  { %s33_s19 = sshll.u32 %s1347_s18, 4  ;;  %s17_s22 = sshll.u32 %s2080_s1, 4  ;;  %s34_s19 = int_to_ptr.vmem [resolvable:$true] %s33_s19  ;;  %s18_s22 = int_to_ptr.hbm [resolvable:$true] %s17_s22 }
   0x3   :  { %36 = dma.hbm_to_vmem [thread:$0]  %s32_s17, 16, %s34_s19, [#allocation5]  }
   0x4   :  { %s1348_s23 = smov [#allocation2]   ;;  %s1349_s25 = smov 64  }
   0x5   :  { %s19_s24 = sshll.u32 %s1348_s23, 4  ;;  %s1350_s26 = smov 4   ;;  %s20_s24 = int_to_ptr.vmem [resolvable:$true] %s19_s24 }
   0x6   :  { %25 = dma.hbm_to_vmem [thread:$0]  %s18_s22, 128, %s20_s24, [#allocation3], %s1349_s25, %s1349_s25, %s1350_s26  }
   0x7   :  { %s42_s2 = sshll.u32 %s2082_s3, 4  ;;  %s1351_s29 = smov [#allocation6]   ;;  %s43_s2 = int_to_ptr.hbm [resolvable:$true] %s42_s2 }
   0x8   :  { %s44_s30 = sshll.u32 %s1351_s29, 4  ;;  %s45_s30 = int_to_ptr.vmem [resolvable:$true] %s44_s30 }
   0x9   :  { %47 = dma.hbm_to_vmem [thread:$0]  %s43_s2, 16, %s45_s30, [#allocation5]  }
   0xa   :  { %1343 = dma.done.wait [#allocation3], 128  }
   0xb   :  { %1344 = vsyncadd [#allocation3], 4294967168 }
   0xc   :  { %1345 = dma.done.wait [#allocation5], 32  }
   0xd   :  { %1346 = vsyncadd [#allocation5], 4294967264  ;;  %vm316_vm0 = vcmask 1043456   ;;  %vm317_vm1 = vcmask 1044480   ;;  %v1352_v0 = vmov 65535   ;;  %v1135_v7 = vld [vmem:[%s2079_s0] sm:$0xff] }
   0xe   :  { %v318_v1 = vsel %vm316_vm0, 4294967295, %v1352_v0  ;;  %v1059_v2 = vld [vmem:[#allocation2] sm:$0xf]  ;;  %v1159_v3 = vld [vmem:[#allocation2] sm:$0x10]  ;;  %v1142_v8 = vld [vmem:[%s2079_s0 + $0x38] sm:$0xff] }
   0xf   :  { %v319_v4 = vsel %vm317_vm1, %v318_v1, 0  ;;  %v1060_v5 = vor.u32 %v1159_v3, %v1059_v2  ;;  %vm240_vm2 = vcmask 72704   ;;  %v1149_v9 = vld [vmem:[%s2079_s0 + $0x70] sm:$0xff]  ;;  %v1156_v10 = vld [vmem:[%s2079_s0 + $0xa8] sm:$0xff]  ;;  %v1143_v12 = vld [vmem:[%s2079_s0 + $0x40] sm:$0xff]  ;;  %vm905_vm3 = vcmask 257024  }
  0x10   :  { %v1136_v11 = vld [vmem:[%s2079_s0 + $0x8] sm:$0xff]  ;;  %v1150_v13 = vld [vmem:[%s2079_s0 + $0x78] sm:$0xff]  ;;  %v1157_v14 = vld [vmem:[%s2079_s0 + $0xb0] sm:$0xff] }
  0x11   :  { %v321_v6 = vand.u32 %v1060_v5, %v319_v4  ;;  %v1137_v15 = vld [vmem:[%s2079_s0 + $0x10] sm:$0xff]  ;;  %v1144_v16 = vld [vmem:[%s2079_s0 + $0x48] sm:$0xff]  ;;  %v1151_v17 = vld [vmem:[%s2079_s0 + $0x80] sm:$0xff] }
  0x12   :  { %v1158_v18 = vld [vmem:[%s2079_s0 + $0xb8] sm:$0xff]  ;;  %v1145_v20 = vld [vmem:[%s2079_s0 + $0x50] sm:$0xff]  ;;  %v1152_v21 = vld [vmem:[%s2079_s0 + $0x88] sm:$0xff] }
  0x13   :  { %330 = vmatpush.bf16.msra.mxu0 %v321_v6  ;;  %1160 = vmatpush.bf16.msra.mxu1 %v321_v6  ;;  %v1138_v19 = vld [vmem:[%s2079_s0 + $0x18] sm:$0xff]  ;;  %v109_v22 = vld [vmem:[%s2079_s0 + $0xc0] sm:$0xf]  ;;  %v1153_v27 = vld [vmem:[%s2079_s0 + $0x90] sm:$0xff] }
  0x14   :  { %1161 = vmatpush.bf16.msra.mxu2 %v321_v6  ;;  %1162 = vmatpush.bf16.msra.mxu3 %v321_v6  ;;  %v209_v23 = vunpack.c.l.b16 %v109_v22  ;;  %v1139_v25 = vld [vmem:[%s2079_s0 + $0x20] sm:$0xff]  ;;  %v1146_v26 = vld [vmem:[%s2079_s0 + $0x58] sm:$0xff]  ;;  %v1140_v28 = vld [vmem:[%s2079_s0 + $0x28] sm:$0xff] }
  0x15   :  { %v1147_v29 = vld [vmem:[%s2079_s0 + $0x60] sm:$0xff]  ;;  %v1154_v30 = vld [vmem:[%s2079_s0 + $0x98] sm:$0xff]  ;;  %v1141_v31 = vld [vmem:[%s2079_s0 + $0x30] sm:$0xff] }
  0x16   :  { %1061 = vmatmul.msk.bf16.vlgmr.msra.gmra.mxu0 %vm240_vm2, %v1135_v7  ;;  %1068 = vmatmul.msk.bf16.vlgmr.msra.gmra.mxu1 %vm240_vm2, %v1142_v8  ;;  %v234_v24 = vpack.c.b16 %v209_v23, %v209_v23  ;;  %v1148_v32 = vld [vmem:[%s2079_s0 + $0x68] sm:$0xff]  ;;  %v1155_v33 = vld [vmem:[%s2079_s0 + $0xa0] sm:$0xff] }
  0x17   :  { %1075 = vmatmul.msk.bf16.vlgmr.msra.gmra.mxu2 %vm240_vm2, %v1149_v9  ;;  %1082 = vmatmul.msk.bf16.vlgmr.msra.gmra.mxu3 %vm240_vm2, %v1156_v10  ;;  %v1487_v34 = vld [vmem:[#allocation4] ss:$0 sm:$0xff]  ;;  %v1489_v35 = vld [vmem:[#allocation6] ss:$0 sm:$0xff] }
  0x26   :  { %1062 = vmatmul.msk.bf16.gmra.mxu0 %vm240_vm2, %v1136_v11  ;;  %1069 = vmatmul.msk.bf16.gmra.mxu1 %vm240_vm2, %v1143_v12 }
  0x27   :  { %1076 = vmatmul.msk.bf16.gmra.mxu2 %vm240_vm2, %v1150_v13  ;;  %1083 = vmatmul.msk.bf16.gmra.mxu3 %vm240_vm2, %v1157_v14 }
  0x36   :  { %1063 = vmatmul.msk.bf16.gmra.mxu0 %vm240_vm2, %v1137_v15  ;;  %1070 = vmatmul.msk.bf16.gmra.mxu1 %vm240_vm2, %v1144_v16 }
  0x37   :  { %1077 = vmatmul.msk.bf16.gmra.mxu2 %vm240_vm2, %v1151_v17  ;;  %1084 = vmatmul.msk.bf16.gmra.mxu3 %vm240_vm2, %v1158_v18 }
  0x46   :  { %1064 = vmatmul.msk.bf16.gmra.mxu0 %vm240_vm2, %v1138_v19  ;;  %1071 = vmatmul.msk.bf16.gmra.mxu1 %vm240_vm2, %v1145_v20 }
  0x47   :  { %1078 = vmatmul.msk.bf16.gmra.mxu2 %vm240_vm2, %v1152_v21  ;;  %1085 = vmatmul.msk.bf16.gmra.mxu3 %vm240_vm2, %v234_v24 }
  0x56   :  { %1065 = vmatmul.msk.bf16.gmra.mxu0 %vm240_vm2, %v1139_v25  ;;  %1072 = vmatmul.msk.bf16.gmra.mxu1 %vm240_vm2, %v1146_v26 }
  0x57   :  { %1079 = vmatmul.msk.bf16.gmra.mxu2 %vm240_vm2, %v1153_v27 }
  0x66   :  { %1066 = vmatmul.msk.bf16.gmra.mxu0 %vm240_vm2, %v1140_v28  ;;  %1073 = vmatmul.msk.bf16.gmra.mxu1 %vm240_vm2, %v1147_v29 }
  0x67   :  { %1080 = vmatmul.msk.bf16.gmra.mxu2 %vm240_vm2, %v1154_v30 }
  0x76   :  { %1067 = vmatmul.msk.bf16.gmra.mxu0 %vm240_vm2, %v1141_v31  ;;  %1074 = vmatmul.msk.bf16.gmra.mxu1 %vm240_vm2, %v1148_v32 }
  0x77   :  { %1081 = vmatmul.msk.bf16.gmra.mxu2 %vm240_vm2, %v1155_v33 }
  0x93   :  { %v332_v36 = vpop.f32.mrf.mxu0  ;;  %v367_v37 = vpop.f32.mrf.mxu1 }
  0x94   :  { %v460_v38 = vmul.f32 %v1487_v34, %v332_v36  ;;  %v474_v39 = vmul.f32 %v1487_v34, %v367_v37 }
  0x96   :  { %v513_v40 = vadd.f32 %v1489_v35, %v460_v38  ;;  %v527_v41 = vadd.f32 %v1489_v35, %v474_v39 }
  0x98   :  { %v611_v42 = vmin.f32 %v513_v40, 0.0  ;;  %v625_v43 = vmin.f32 %v527_v41, 0.0  ;;  %vm562_vm4 = vcmp.gt.f32.partialorder %v513_v40, 0.0  ;;  %vm576_vm5 = vcmp.gt.f32.partialorder %v527_v41, 0.0 }
  0x9a   :  { %v660_v44 = vmul.f32 1.442695, %v611_v42  ;;  %v688_v45 = vmul.f32 1.442695, %v625_v43  ;;  %v402_v46 = vpop.f32.mrf.mxu2  ;;  %v437_v58 = vpop.f32.mrf.mxu3 }
  0x9b   :  { %v488_v47 = vmul.f32 %v1487_v34, %v402_v46  ;;  %v334_v48 = vpop.f32.mrf.mxu0  ;;  %v369_v49 = vpop.f32.mrf.mxu1  ;;  %v502_v16 = vmul.f32 %v1487_v34, %v437_v58 }
  0x9c   :  { %1171 = vpow2.f32 %v660_v44  ;;  %v461_v50 = vmul.f32 %v1487_v34, %v334_v48  ;;  %v475_v51 = vmul.f32 %v1487_v34, %v369_v49 }
  0x9d   :  { %1173 = vpow2.f32 %v688_v45  ;;  %v541_v52 = vadd.f32 %v1489_v35, %v488_v47  ;;  %v1533_v21 = vadd.f32 %v1489_v35, %v502_v16 }
  0x9e   :  { %v1500_v53 = vadd.f32 %v1489_v35, %v461_v50  ;;  %v1503_v54 = vadd.f32 %v1489_v35, %v475_v51 }
  0x9f   :  { %v639_v55 = vmin.f32 %v541_v52, 0.0  ;;  %vm590_vm6 = vcmp.gt.f32.partialorder %v541_v52, 0.0  ;;  %v653_v33 = vmin.f32 %v1533_v21, 0.0  ;;  %vm604_vm12 = vcmp.gt.f32.partialorder %v1533_v21, 0.0 }
  0xa0   :  { %v612_v56 = vmin.f32 %v1500_v53, 0.0  ;;  %v626_v57 = vmin.f32 %v1503_v54, 0.0  ;;  %vm563_vm7 = vcmp.gt.f32.partialorder %v1500_v53, 0.0  ;;  %vm577_vm8 = vcmp.gt.f32.partialorder %v1503_v54, 0.0 }
  0xa1   :  { %v716_v59 = vmul.f32 1.442695, %v639_v55  ;;  %v744_v48 = vmul.f32 1.442695, %v653_v33 }
  0xa2   :  { %v1172_v60 = vpop.eup %1171  ;;  %v662_v61 = vmul.f32 1.442695, %v612_v56  ;;  %v690_v62 = vmul.f32 1.442695, %v626_v57  ;;  %v404_v63 = vpop.f32.mrf.mxu2 }
  0xa3   :  { %v1174_v0 = vpop.eup %1173  ;;  %v1086_v1 = vadd.f32 -1.0, %v1172_v60  ;;  %1175 = vpow2.f32 %v716_v59  ;;  %v489_v2 = vmul.f32 %v1487_v34, %v404_v63  ;;  %v337_v3 = vpop.f32.mrf.mxu0 }
  0xa4   :  { %v372_v4 = vpop.f32.mrf.mxu1  ;;  %v1100_v5 = vadd.f32 -1.0, %v1174_v0  ;;  %1177 = vpow2.f32 %v662_v61  ;;  %v462_v6 = vmul.f32 %v1487_v34, %v337_v3  ;;  %v439_v27 = vpop.f32.mrf.mxu3 }
  0xa5   :  { %v476_v7 = vmul.f32 %v1487_v34, %v372_v4  ;;  %v807_v8 = vsel %vm562_vm4, %v513_v40, %v1086_v1  ;;  %1179 = vpow2.f32 %v690_v62  ;;  %v1511_v9 = vadd.f32 %v1489_v35, %v489_v2 }
  0xa6   :  { %v856_v10 = vpack.c.bf16 %v807_v8, %v807_v8  ;;  %v821_v11 = vsel %vm576_vm5, %v527_v41, %v1100_v5  ;;  %v1514_v12 = vadd.f32 %v1489_v35, %v462_v6  ;;  %v503_v49 = vmul.f32 %v1487_v34, %v439_v27 }
  0xa7   :  { %v1517_v13 = vadd.f32 %v1489_v35, %v476_v7  ;;  %v870_v14 = vpack.c.bf16 %v821_v11, %v821_v11  ;;  %v640_v15 = vmin.f32 %v1511_v9, 0.0  ;;  %vm591_vm9 = vcmp.gt.f32.partialorder %v1511_v9, 0.0 }
  0xa8   :  { %906 = vst.msk [vmem:[%s2083_s4] sm:$0xf] %vm905_vm3, %v856_v10  ;;  %v613_v17 = vmin.f32 %v1514_v12, 0.0  ;;  %vm564_vm10 = vcmp.gt.f32.partialorder %v1514_v12, 0.0  ;;  %v1577_v0 = vadd.f32 %v1489_v35, %v503_v49 }
  0xa9   :  { %v627_v18 = vmin.f32 %v1517_v13, 0.0  ;;  %v1176_v19 = vpop.eup %1175  ;;  %920 = vst.msk [vmem:[%s2083_s4 + $0x38] sm:$0xf] %vm905_vm3, %v870_v14  ;;  %v718_v20 = vmul.f32 1.442695, %v640_v15  ;;  %vm578_vm11 = vcmp.gt.f32.partialorder %v1517_v13, 0.0 }
  0xaa   :  { %v1178_v22 = vpop.eup %1177  ;;  %v1114_v23 = vadd.f32 -1.0, %v1176_v19  ;;  %v664_v24 = vmul.f32 1.442695, %v613_v17  ;;  %v407_v26 = vpop.f32.mrf.mxu2  ;;  %v654_v27 = vmin.f32 %v1577_v0, 0.0  ;;  %vm605_vm1 = vcmp.gt.f32.partialorder %v1577_v0, 0.0 }
  0xab   :  { %v692_v25 = vmul.f32 1.442695, %v627_v18  ;;  %v1180_v28 = vpop.eup %1179  ;;  %v1087_v29 = vadd.f32 -1.0, %v1178_v22  ;;  %1181 = vpow2.f32 %v718_v20  ;;  %v490_v30 = vmul.f32 %v1487_v34, %v407_v26  ;;  %v339_v31 = vpop.f32.mrf.mxu0 }
  0xac   :  { %v374_v32 = vpop.f32.mrf.mxu1  ;;  %v835_v36 = vsel %vm590_vm6, %v541_v52, %v1114_v23  ;;  %v1101_v37 = vadd.f32 -1.0, %v1180_v28  ;;  %1183 = vpow2.f32 %v664_v24  ;;  %v463_v38 = vmul.f32 %v1487_v34, %v339_v31  ;;  %v1582_v4 = vpop.f32.mrf.mxu3 }
  0xad   :  { %v884_v39 = vpack.c.bf16 %v835_v36, %v835_v36  ;;  %v808_v40 = vsel %vm563_vm7, %v1500_v53, %v1087_v29  ;;  %1185 = vpow2.f32 %v692_v25  ;;  %v1544_v41 = vadd.f32 %v1489_v35, %v490_v30 }
  0xae   :  { %v857_v42 = vpack.c.bf16 %v808_v40, %v808_v40  ;;  %v822_v43 = vsel %vm577_vm8, %v1503_v54, %v1101_v37  ;;  %v1550_v44 = vadd.f32 %v1489_v35, %v463_v38  ;;  %v477_v45 = vmul.f32 %v1487_v34, %v374_v32 }
  0xaf   :  { %934 = vst.msk [vmem:[%s2083_s4 + $0x70] sm:$0xf] %vm905_vm3, %v884_v39  ;;  %v871_v46 = vpack.c.bf16 %v822_v43, %v822_v43  ;;  %v641_v47 = vmin.f32 %v1544_v41, 0.0  ;;  %1187 = vpow2.f32 %v744_v48  ;;  %vm592_vm13 = vcmp.gt.f32.partialorder %v1544_v41, 0.0 }
  0xb0   :  { %907 = vst.msk [vmem:[%s2083_s4 + $0x4] sm:$0xf] %vm905_vm3, %v857_v42  ;;  %v614_v50 = vmin.f32 %v1550_v44, 0.0  ;;  %v1565_v51 = vadd.f32 %v1489_v35, %v477_v45  ;;  %vm565_vm14 = vcmp.gt.f32.partialorder %v1550_v44, 0.0  ;;  %v746_v49 = vmul.f32 1.442695, %v654_v27 }
  0xb1   :  { %v1182_v52 = vpop.eup %1181  ;;  %921 = vst.msk [vmem:[%s2083_s4 + $0x3c] sm:$0xf] %vm905_vm3, %v871_v46  ;;  %v720_v53 = vmul.f32 1.442695, %v641_v47 }
  0xb2   :  { %v1184_v54 = vpop.eup %1183  ;;  %v1115_v55 = vadd.f32 -1.0, %v1182_v52  ;;  %v666_v56 = vmul.f32 1.442695, %v614_v50  ;;  %v628_v57 = vmin.f32 %v1565_v51, 0.0  ;;  %v409_v58 = vpop.f32.mrf.mxu2  ;;  %vm579_vm15 = vcmp.gt.f32.partialorder %v1565_v51, 0.0 }
  0xb3   :  { %v1186_v59 = vpop.eup %1185  ;;  %v1088_v60 = vadd.f32 -1.0, %v1184_v54  ;;  %1189 = vpow2.f32 %v720_v53  ;;  %v491_v61 = vmul.f32 %v1487_v34, %v409_v58  ;;  %v342_v62 = vpop.f32.mrf.mxu0  ;;  %v504_v58 = vmul.f32 %v1487_v34, %v1582_v4 }
  0xb4   :  { %v377_v63 = vpop.f32.mrf.mxu1  ;;  %v836_v1 = vsel %vm591_vm9, %v1511_v9, %v1115_v55  ;;  %v1102_v2 = vadd.f32 -1.0, %v1186_v59  ;;  %1191 = vpow2.f32 %v666_v56  ;;  %v694_v3 = vmul.f32 1.442695, %v628_v57 }
  0xb5   :  { %v885_v5 = vpack.c.bf16 %v836_v1, %v836_v1  ;;  %v809_v6 = vsel %vm564_vm10, %v1514_v12, %v1088_v60  ;;  %v1588_v7 = vadd.f32 %v1489_v35, %v491_v61  ;;  %v464_v8 = vmul.f32 %v1487_v34, %v342_v62  ;;  %v1188_v14 = vpop.eup %1187 }
  0xb6   :  { %v858_v10 = vpack.c.bf16 %v809_v6, %v809_v6  ;;  %v823_v9 = vsel %vm578_vm11, %v1517_v13, %v1102_v2  ;;  %1193 = vpow2.f32 %v694_v3  ;;  %v478_v11 = vmul.f32 %v1487_v34, %v377_v63 }
  0xb7   :  { %935 = vst.msk [vmem:[%s2083_s4 + $0x74] sm:$0xf] %vm905_vm3, %v885_v5  ;;  %v872_v12 = vpack.c.bf16 %v823_v9, %v823_v9  ;;  %v642_v15 = vmin.f32 %v1588_v7, 0.0  ;;  %v1601_v16 = vadd.f32 %v1489_v35, %v464_v8  ;;  %v1128_v17 = vadd.f32 -1.0, %v1188_v14 }
  0xb8   :  { %908 = vst.msk [vmem:[%s2083_s4 + $0x8] sm:$0xf] %vm905_vm3, %v858_v10  ;;  %v1611_v13 = vadd.f32 %v1489_v35, %v478_v11  ;;  %vm593_vm0 = vcmp.gt.f32.partialorder %v1588_v7, 0.0 }
  0xb9   :  { %v1190_v18 = vpop.eup %1189  ;;  %922 = vst.msk [vmem:[%s2083_s4 + $0x40] sm:$0xf] %vm905_vm3, %v872_v12  ;;  %v722_v19 = vmul.f32 1.442695, %v642_v15  ;;  %v615_v20 = vmin.f32 %v1601_v16, 0.0  ;;  %v849_v26 = vsel %vm604_vm12, %v1533_v21, %v1128_v17  ;;  %vm566_vm2 = vcmp.gt.f32.partialorder %v1601_v16, 0.0 }
  0xba   :  { %v1192_v22 = vpop.eup %1191  ;;  %v1116_v23 = vadd.f32 -1.0, %v1190_v18  ;;  %v629_v24 = vmin.f32 %v1611_v13, 0.0  ;;  %v412_v25 = vpop.f32.mrf.mxu2  ;;  %v898_v48 = vpack.c.bf16 %v849_v26, %v849_v26  ;;  %vm580_vm4 = vcmp.gt.f32.partialorder %v1611_v13, 0.0 }
  0xbb   :  { %v1089_v28 = vadd.f32 -1.0, %v1192_v22  ;;  %1195 = vpow2.f32 %v722_v19  ;;  %v668_v29 = vmul.f32 1.442695, %v615_v20  ;;  %v492_v30 = vmul.f32 %v1487_v34, %v412_v25  ;;  %v344_v31 = vpop.f32.mrf.mxu0 }
  0xbc   :  { %v379_v32 = vpop.f32.mrf.mxu1  ;;  %v1194_v33 = vpop.eup %1193  ;;  %v837_v36 = vsel %vm592_vm13, %v1544_v41, %v1116_v23  ;;  %v696_v37 = vmul.f32 1.442695, %v629_v24  ;;  %v465_v38 = vmul.f32 %v1487_v34, %v344_v31  ;;  %948 = vst.msk [vmem:[%s2083_s4 + $0xa8] sm:$0xf] %vm905_vm3, %v898_v48 }
  0xbd   :  { %v479_v39 = vmul.f32 %v1487_v34, %v379_v32  ;;  %v886_v21 = vpack.c.bf16 %v837_v36, %v837_v36  ;;  %v810_v40 = vsel %vm565_vm14, %v1550_v44, %v1089_v28  ;;  %v1103_v42 = vadd.f32 -1.0, %v1194_v33  ;;  %v444_v41 = vpop.f32.mrf.mxu3 }
  0xbe   :  { %1197 = vpow2.f32 %v668_v29  ;;  %v859_v43 = vpack.c.bf16 %v810_v40, %v810_v40  ;;  %v1632_v45 = vadd.f32 %v1489_v35, %v492_v30  ;;  %v1635_v46 = vadd.f32 %v1489_v35, %v465_v38 }
  0xbf   :  { %1199 = vpow2.f32 %v696_v37  ;;  %936 = vst.msk [vmem:[%s2083_s4 + $0x78] sm:$0xf] %vm905_vm3, %v886_v21  ;;  %v824_v44 = vsel %vm579_vm15, %v1565_v51, %v1103_v42  ;;  %v1645_v47 = vadd.f32 %v1489_v35, %v479_v39  ;;  %v505_v2 = vmul.f32 %v1487_v34, %v444_v41 }
  0xc0   :  { %909 = vst.msk [vmem:[%s2083_s4 + $0xc] sm:$0xf] %vm905_vm3, %v859_v43  ;;  %v873_v50 = vpack.c.bf16 %v824_v44, %v824_v44  ;;  %v643_v52 = vmin.f32 %v1632_v45, 0.0  ;;  %v616_v51 = vmin.f32 %v1635_v46, 0.0  ;;  %1201 = vpow2.f32 %v746_v49 }
  0xc1   :  { %v1196_v53 = vpop.eup %1195  ;;  %v630_v54 = vmin.f32 %v1645_v47, 0.0  ;;  %vm594_vm5 = vcmp.gt.f32.partialorder %v1632_v45, 0.0  ;;  %vm567_vm6 = vcmp.gt.f32.partialorder %v1635_v46, 0.0  ;;  %vm581_vm7 = vcmp.gt.f32.partialorder %v1645_v47, 0.0 }
  0xc2   :  { %923 = vst.msk [vmem:[%s2083_s4 + $0x44] sm:$0xf] %vm905_vm3, %v873_v50  ;;  %v1117_v55 = vadd.f32 -1.0, %v1196_v53  ;;  %v724_v56 = vmul.f32 1.442695, %v643_v52  ;;  %v414_v57 = vpop.f32.mrf.mxu2  ;;  %v1709_v28 = vadd.f32 %v1489_v35, %v504_v58  ;;  %v1712_v29 = vadd.f32 %v1489_v35, %v505_v2 }
  0xc3   :  { %v670_v60 = vmul.f32 1.442695, %v616_v51  ;;  %v698_v61 = vmul.f32 1.442695, %v630_v54  ;;  %v493_v62 = vmul.f32 %v1487_v34, %v414_v57  ;;  %v347_v63 = vpop.f32.mrf.mxu0 }
  0xc4   :  { %v1198_v59 = vpop.eup %1197  ;;  %v382_v1 = vpop.f32.mrf.mxu1  ;;  %v838_v5 = vsel %vm593_vm0, %v1588_v7, %v1117_v55  ;;  %1203 = vpow2.f32 %v724_v56  ;;  %v466_v8 = vmul.f32 %v1487_v34, %v347_v63  ;;  %v655_v54 = vmin.f32 %v1709_v28, 0.0 }
  0xc5   :  { %v1200_v3 = vpop.eup %1199  ;;  %v1090_v6 = vadd.f32 -1.0, %v1198_v59  ;;  %v887_v10 = vpack.c.bf16 %v838_v5, %v838_v5  ;;  %1205 = vpow2.f32 %v670_v60  ;;  %v1675_v9 = vadd.f32 %v1489_v35, %v493_v62  ;;  %v447_v22 = vpop.f32.mrf.mxu3 }
  0xc6   :  { %v1104_v4 = vadd.f32 -1.0, %v1200_v3  ;;  %1207 = vpow2.f32 %v698_v61  ;;  %v1681_v14 = vadd.f32 %v1489_v35, %v466_v8  ;;  %v480_v7 = vmul.f32 %v1487_v34, %v382_v1  ;;  %v1202_v12 = vpop.eup %1201 }
  0xc7   :  { %v811_v11 = vsel %vm566_vm2, %v1601_v16, %v1090_v6  ;;  %937 = vst.msk [vmem:[%s2083_s4 + $0x7c] sm:$0xf] %vm905_vm3, %v887_v10  ;;  %v644_v16 = vmin.f32 %v1675_v9, 0.0  ;;  %v1129_v23 = vadd.f32 -1.0, %v1202_v12  ;;  %vm595_vm8 = vcmp.gt.f32.partialorder %v1675_v9, 0.0 }
  0xc8   :  { %v860_v15 = vpack.c.bf16 %v811_v11, %v811_v11  ;;  %v825_v17 = vsel %vm580_vm4, %v1611_v13, %v1104_v4  ;;  %v617_v19 = vmin.f32 %v1681_v14, 0.0  ;;  %v1696_v20 = vadd.f32 %v1489_v35, %v480_v7 }
  0xc9   :  { %v874_v18 = vpack.c.bf16 %v825_v17, %v825_v17  ;;  %v726_v13 = vmul.f32 1.442695, %v644_v16  ;;  %v850_v32 = vsel %vm605_vm1, %v1577_v0, %v1129_v23  ;;  %vm568_vm9 = vcmp.gt.f32.partialorder %v1681_v14, 0.0 }
  0xca   :  { %910 = vst.msk [vmem:[%s2083_s4 + $0x10] sm:$0xf] %vm905_vm3, %v860_v15  ;;  %v1204_v24 = vpop.eup %1203  ;;  %v672_v25 = vmul.f32 1.442695, %v617_v19  ;;  %v631_v26 = vmin.f32 %v1696_v20, 0.0  ;;  %v417_v27 = vpop.f32.mrf.mxu2  ;;  %v899_v40 = vpack.c.bf16 %v850_v32, %v850_v32  ;;  %vm582_vm10 = vcmp.gt.f32.partialorder %v1696_v20, 0.0 }
  0xcb   :  { %924 = vst.msk [vmem:[%s2083_s4 + $0x48] sm:$0xf] %vm905_vm3, %v874_v18  ;;  %v1206_v30 = vpop.eup %1205  ;;  %v1118_v31 = vadd.f32 -1.0, %v1204_v24  ;;  %1209 = vpow2.f32 %v726_v13  ;;  %v494_v33 = vmul.f32 %v1487_v34, %v417_v27  ;;  %v349_v36 = vpop.f32.mrf.mxu0  ;;  %v656_v60 = vmin.f32 %v1712_v29, 0.0 }
  0xcc   :  { %v384_v37 = vpop.f32.mrf.mxu1  ;;  %v1208_v38 = vpop.eup %1207  ;;  %v1091_v39 = vadd.f32 -1.0, %v1206_v30  ;;  %1211 = vpow2.f32 %v672_v25  ;;  %v700_v21 = vmul.f32 1.442695, %v631_v26  ;;  %v467_v44 = vmul.f32 %v1487_v34, %v349_v36  ;;  %949 = vst.msk [vmem:[%s2083_s4 + $0xac] sm:$0xf] %vm905_vm3, %v899_v40 }
  0xcd   :  { %v839_v42 = vsel %vm594_vm5, %v1632_v45, %v1118_v31  ;;  %v1105_v43 = vadd.f32 -1.0, %v1208_v38  ;;  %v1722_v41 = vadd.f32 %v1489_v35, %v494_v33  ;;  %v481_v49 = vmul.f32 %v1487_v34, %v384_v37  ;;  %v1762_v62 = vpop.f32.mrf.mxu3 }
  0xce   :  { %v888_v0 = vpack.c.bf16 %v839_v42, %v839_v42  ;;  %v812_v48 = vsel %vm567_vm6, %v1635_v46, %v1091_v39  ;;  %1213 = vpow2.f32 %v700_v21  ;;  %v1743_v53 = vadd.f32 %v1489_v35, %v467_v44 }
  0xcf   :  { %v861_v45 = vpack.c.bf16 %v812_v48, %v812_v48  ;;  %v826_v50 = vsel %vm581_vm7, %v1645_v47, %v1105_v43  ;;  %v645_v52 = vmin.f32 %v1722_v41, 0.0  ;;  %v1746_v51 = vadd.f32 %v1489_v35, %v481_v49 }
  0xd0   :  { %938 = vst.msk [vmem:[%s2083_s4 + $0x80] sm:$0xf] %vm905_vm3, %v888_v0  ;;  %v875_v46 = vpack.c.bf16 %v826_v50, %v826_v50  ;;  %v618_v58 = vmin.f32 %v1743_v53, 0.0  ;;  %v506_v61 = vmul.f32 %v1487_v34, %v447_v22  ;;  %v748_v2 = vmul.f32 1.442695, %v655_v54 }
  0xd1   :  { %v1210_v55 = vpop.eup %1209  ;;  %911 = vst.msk [vmem:[%s2083_s4 + $0x14] sm:$0xf] %vm905_vm3, %v861_v45  ;;  %v728_v47 = vmul.f32 1.442695, %v645_v52  ;;  %v632_v1 = vmin.f32 %v1746_v51, 0.0  ;;  %vm606_vm11 = vcmp.gt.f32.partialorder %v1709_v28, 0.0 }
  0xd2   :  { %v1212_v56 = vpop.eup %1211  ;;  %925 = vst.msk [vmem:[%s2083_s4 + $0x4c] sm:$0xf] %vm905_vm3, %v875_v46  ;;  %v1119_v57 = vadd.f32 -1.0, %v1210_v55  ;;  %v419_v59 = vpop.f32.mrf.mxu2  ;;  %v674_v10 = vmul.f32 1.442695, %v618_v58  ;;  %vm596_vm12 = vcmp.gt.f32.partialorder %v1722_v41, 0.0  ;;  %v1805_v31 = vadd.f32 %v1489_v35, %v506_v61 }
  0xd3   :  { %v1092_v63 = vadd.f32 -1.0, %v1212_v56  ;;  %1215 = vpow2.f32 %v728_v47  ;;  %v352_v3 = vpop.f32.mrf.mxu0  ;;  %v495_v4 = vmul.f32 %v1487_v34, %v419_v59  ;;  %v702_v17 = vmul.f32 1.442695, %v632_v1 }
  0xd4   :  { %v387_v5 = vpop.f32.mrf.mxu1  ;;  %v1214_v6 = vpop.eup %1213  ;;  %v840_v8 = vsel %vm595_vm8, %v1675_v9, %v1119_v57  ;;  %v468_v11 = vmul.f32 %v1487_v34, %v352_v3  ;;  %1217 = vpow2.f32 %v674_v10  ;;  %v750_v22 = vmul.f32 1.442695, %v656_v60 }
  0xd5   :  { %v889_v7 = vpack.c.bf16 %v840_v8, %v840_v8  ;;  %v813_v12 = vsel %vm568_vm9, %v1681_v14, %v1092_v63  ;;  %v1106_v15 = vadd.f32 -1.0, %v1214_v6  ;;  %v1775_v18 = vadd.f32 %v1489_v35, %v495_v4  ;;  %v1807_v32 = vpop.f32.mrf.mxu3 }
  0xd6   :  { %v862_v16 = vpack.c.bf16 %v813_v12, %v813_v12  ;;  %v1778_v9 = vadd.f32 %v1489_v35, %v468_v11  ;;  %1219 = vpow2.f32 %v702_v17  ;;  %v482_v19 = vmul.f32 %v1487_v34, %v387_v5 }
  0xd7   :  { %939 = vst.msk [vmem:[%s2083_s4 + $0x84] sm:$0xf] %vm905_vm3, %v889_v7  ;;  %v827_v14 = vsel %vm582_vm10, %v1696_v20, %v1106_v15  ;;  %1221 = vpow2.f32 %v748_v2  ;;  %v646_v23 = vmin.f32 %v1775_v18, 0.0  ;;  %vm607_vm13 = vcmp.gt.f32.partialorder %v1712_v29, 0.0 }
  0xd8   :  { %912 = vst.msk [vmem:[%s2083_s4 + $0x18] sm:$0xf] %vm905_vm3, %v862_v16  ;;  %v876_v13 = vpack.c.bf16 %v827_v14, %v827_v14  ;;  %v619_v25 = vmin.f32 %v1778_v9, 0.0  ;;  %v1796_v20 = vadd.f32 %v1489_v35, %v482_v19  ;;  %1223 = vpow2.f32 %v750_v22 }
  0xd9   :  { %v1216_v24 = vpop.eup %1215  ;;  %vm569_vm14 = vcmp.gt.f32.partialorder %v1743_v53, 0.0  ;;  %v730_v27 = vmul.f32 1.442695, %v646_v23  ;;  %vm583_vm15 = vcmp.gt.f32.partialorder %v1746_v51, 0.0  ;;  %vm597_vm0 = vcmp.gt.f32.partialorder %v1775_v18, 0.0 }
  0xda   :  { %926 = vst.msk [vmem:[%s2083_s4 + $0x50] sm:$0xf] %vm905_vm3, %v876_v13  ;;  %v1120_v26 = vadd.f32 -1.0, %v1216_v24  ;;  %v422_v30 = vpop.f32.mrf.mxu2  ;;  %v676_v33 = vmul.f32 1.442695, %v619_v25  ;;  %v633_v36 = vmin.f32 %v1796_v20, 0.0  ;;  %v1218_v21 = vpop.eup %1217  ;;  %v507_v59 = vmul.f32 %v1487_v34, %v1762_v62 }
  0xdb   :  { %v496_v37 = vmul.f32 %v1487_v34, %v422_v30  ;;  %v354_v38 = vpop.f32.mrf.mxu0  ;;  %1225 = vpow2.f32 %v730_v27  ;;  %v1093_v48 = vadd.f32 -1.0, %v1218_v21  ;;  %vm570_vm1 = vcmp.gt.f32.partialorder %v1778_v9, 0.0 }
  0xdc   :  { %v389_v39 = vpop.f32.mrf.mxu1  ;;  %v841_v40 = vsel %vm596_vm12, %v1722_v41, %v1120_v26  ;;  %v469_v42 = vmul.f32 %v1487_v34, %v354_v38  ;;  %v1220_v44 = vpop.eup %1219  ;;  %1227 = vpow2.f32 %v676_v33  ;;  %v704_v49 = vmul.f32 1.442695, %v633_v36 }
  0xdd   :  { %v483_v43 = vmul.f32 %v1487_v34, %v389_v39  ;;  %v890_v0 = vpack.c.bf16 %v841_v40, %v841_v40  ;;  %v1222_v45 = vpop.eup %1221  ;;  %v1107_v50 = vadd.f32 -1.0, %v1220_v44  ;;  %v1820_v52 = vadd.f32 %v1489_v35, %v496_v37  ;;  %v454_v3 = vpop.f32.mrf.mxu3 }
  0xde   :  { %v1823_v41 = vadd.f32 %v1489_v35, %v469_v42  ;;  %v1224_v46 = vpop.eup %1223  ;;  %v814_v54 = vsel %vm569_vm14, %v1743_v53, %v1093_v48  ;;  %v1130_v55 = vadd.f32 -1.0, %v1222_v45  ;;  %1229 = vpow2.f32 %v704_v49 }
  0xdf   :  { %940 = vst.msk [vmem:[%s2083_s4 + $0x88] sm:$0xf] %vm905_vm3, %v890_v0  ;;  %v1833_v47 = vadd.f32 %v1489_v35, %v483_v43  ;;  %v863_v56 = vpack.c.bf16 %v814_v54, %v814_v54  ;;  %v828_v57 = vsel %vm583_vm15, %v1746_v51, %v1107_v50  ;;  %v1131_v58 = vadd.f32 -1.0, %v1224_v46 }
  0xe0   :  { %v877_v60 = vpack.c.bf16 %v828_v57, %v828_v57  ;;  %v851_v61 = vsel %vm606_vm11, %v1709_v28, %v1130_v55  ;;  %v647_v53 = vmin.f32 %v1820_v52, 0.0  ;;  %v657_v63 = vmin.f32 %v1805_v31, 0.0 }
  0xe1   :  { %v1226_v1 = vpop.eup %1225  ;;  %913 = vst.msk [vmem:[%s2083_s4 + $0x1c] sm:$0xf] %vm905_vm3, %v863_v56  ;;  %v900_v51 = vpack.c.bf16 %v851_v61, %v851_v61  ;;  %vm584_vm2 = vcmp.gt.f32.partialorder %v1796_v20, 0.0  ;;  %v852_v62 = vsel %vm607_vm13, %v1712_v29, %v1131_v58  ;;  %v620_v2 = vmin.f32 %v1823_v41, 0.0 }
  0xe2   :  { %v424_v28 = vpop.f32.mrf.mxu2  ;;  %v1228_v5 = vpop.eup %1227  ;;  %927 = vst.msk [vmem:[%s2083_s4 + $0x54] sm:$0xf] %vm905_vm3, %v877_v60  ;;  %v1121_v6 = vadd.f32 -1.0, %v1226_v1  ;;  %v901_v8 = vpack.c.bf16 %v852_v62, %v852_v62  ;;  %v732_v10 = vmul.f32 1.442695, %v647_v53  ;;  %v634_v4 = vmin.f32 %v1833_v47, 0.0 }
  0xe3   :  { %v357_v11 = vpop.f32.mrf.mxu0  ;;  %950 = vst.msk [vmem:[%s2083_s4 + $0xb0] sm:$0xf] %vm905_vm3, %v900_v51  ;;  %v1094_v29 = vadd.f32 -1.0, %v1228_v5  ;;  %v678_v12 = vmul.f32 1.442695, %v620_v2  ;;  %v497_v15 = vmul.f32 %v1487_v34, %v424_v28  ;;  %v1890_v30 = vadd.f32 %v1489_v35, %v507_v59 }
  0xe4   :  { %v392_v7 = vpop.f32.mrf.mxu1  ;;  %v470_v17 = vmul.f32 %v1487_v34, %v357_v11  ;;  %v1230_v16 = vpop.eup %1229  ;;  %v842_v14 = vsel %vm597_vm0, %v1775_v18, %v1121_v6  ;;  %951 = vst.msk [vmem:[%s2083_s4 + $0xb4] sm:$0xf] %vm905_vm3, %v901_v8  ;;  %1231 = vpow2.f32 %v732_v10  ;;  %v706_v19 = vmul.f32 1.442695, %v634_v4 }
  0xe5   :  { %v752_v22 = vmul.f32 1.442695, %v657_v63  ;;  %v891_v13 = vpack.c.bf16 %v842_v14, %v842_v14  ;;  %v815_v23 = vsel %vm570_vm1, %v1778_v9, %v1094_v29  ;;  %v1108_v24 = vadd.f32 -1.0, %v1230_v16 }
  0xe6   :  { %1233 = vpow2.f32 %v678_v12  ;;  %v864_v25 = vpack.c.bf16 %v815_v23, %v815_v23  ;;  %v1876_v26 = vadd.f32 %v1489_v35, %v497_v15  ;;  %v1879_v18 = vadd.f32 %v1489_v35, %v470_v17 }
  0xe7   :  { %1235 = vpow2.f32 %v706_v19  ;;  %941 = vst.msk [vmem:[%s2083_s4 + $0x8c] sm:$0xf] %vm905_vm3, %v891_v13  ;;  %v829_v27 = vsel %vm584_vm2, %v1796_v20, %v1108_v24  ;;  %v484_v9 = vmul.f32 %v1487_v34, %v392_v7  ;;  %vm608_vm4 = vcmp.gt.f32.partialorder %v1805_v31, 0.0 }
  0xe8   :  { %1237 = vpow2.f32 %v752_v22  ;;  %914 = vst.msk [vmem:[%s2083_s4 + $0x20] sm:$0xf] %vm905_vm3, %v864_v25  ;;  %v878_v33 = vpack.c.bf16 %v829_v27, %v829_v27  ;;  %v648_v36 = vmin.f32 %v1876_v26, 0.0  ;;  %v621_v37 = vmin.f32 %v1879_v18, 0.0 }
  0xe9   :  { %v1900_v20 = vadd.f32 %v1489_v35, %v484_v9  ;;  %v658_v38 = vmin.f32 %v1890_v30, 0.0  ;;  %vm598_vm5 = vcmp.gt.f32.partialorder %v1820_v52, 0.0  ;;  %vm571_vm6 = vcmp.gt.f32.partialorder %v1823_v41, 0.0 }
  0xea   :  { %v427_v39 = vpop.f32.mrf.mxu2  ;;  %v1232_v21 = vpop.eup %1231  ;;  %928 = vst.msk [vmem:[%s2083_s4 + $0x58] sm:$0xf] %vm905_vm3, %v878_v33  ;;  %v734_v40 = vmul.f32 1.442695, %v648_v36  ;;  %vm585_vm7 = vcmp.gt.f32.partialorder %v1833_v47, 0.0  ;;  %v508_v51 = vmul.f32 %v1487_v34, %v1807_v32  ;;  %vm599_vm8 = vcmp.gt.f32.partialorder %v1876_v26, 0.0 }
  0xeb   :  { %v498_v42 = vmul.f32 %v1487_v34, %v427_v39  ;;  %v359_v43 = vpop.f32.mrf.mxu0  ;;  %v1122_v48 = vadd.f32 -1.0, %v1232_v21  ;;  %v680_v49 = vmul.f32 1.442695, %v621_v37  ;;  %v635_v45 = vmin.f32 %v1900_v20, 0.0 }
  0xec   :  { %v394_v44 = vpop.f32.mrf.mxu1  ;;  %v1234_v0 = vpop.eup %1233  ;;  %1239 = vpow2.f32 %v734_v40  ;;  %v754_v54 = vmul.f32 1.442695, %v658_v38  ;;  %v471_v2 = vmul.f32 %v1487_v34, %v359_v43  ;;  %vm572_vm9 = vcmp.gt.f32.partialorder %v1879_v18, 0.0 }
  0xed   :  { %v1236_v50 = vpop.eup %1235  ;;  %v1095_v46 = vadd.f32 -1.0, %v1234_v0  ;;  %v1913_v55 = vadd.f32 %v1489_v35, %v498_v42  ;;  %v843_v57 = vsel %vm598_vm5, %v1820_v52, %v1122_v48  ;;  %1241 = vpow2.f32 %v680_v49 }
  0xee   :  { %v1238_v56 = vpop.eup %1237  ;;  %v1109_v58 = vadd.f32 -1.0, %v1236_v50  ;;  %v708_v59 = vmul.f32 1.442695, %v635_v45  ;;  %v892_v60 = vpack.c.bf16 %v843_v57, %v843_v57  ;;  %1243 = vpow2.f32 %v754_v54 }
  0xef   :  { %v816_v61 = vsel %vm571_vm6, %v1823_v41, %v1095_v46  ;;  %v1132_v53 = vadd.f32 -1.0, %v1238_v56  ;;  %v649_v62 = vmin.f32 %v1913_v55, 0.0  ;;  %vm586_vm10 = vcmp.gt.f32.partialorder %v1900_v20, 0.0 }
  0xf0   :  { %v865_v63 = vpack.c.bf16 %v816_v61, %v816_v61  ;;  %v830_v1 = vsel %vm585_vm7, %v1833_v47, %v1109_v58  ;;  %1245 = vpow2.f32 %v708_v59  ;;  %942 = vst.msk [vmem:[%s2083_s4 + $0x90] sm:$0xf] %vm905_vm3, %v892_v60  ;;  %v485_v47 = vmul.f32 %v1487_v34, %v394_v44 }
  0xf1   :  { %v879_v52 = vpack.c.bf16 %v830_v1, %v830_v1  ;;  %v853_v41 = vsel %vm608_vm4, %v1805_v31, %v1132_v53  ;;  %vm609_vm11 = vcmp.gt.f32.partialorder %v1890_v30, 0.0  ;;  %v736_v31 = vmul.f32 1.442695, %v649_v62  ;;  %v1269_v62 = vld [vmem:[#allocation4] ss:$0 sm:$0xff] }
  0xf2   :  { %915 = vst.msk [vmem:[%s2083_s4 + $0x24] sm:$0xf] %vm905_vm3, %v865_v63  ;;  %v902_v32 = vpack.c.bf16 %v853_v41, %v853_v41  ;;  %v429_v28 = vpop.f32.mrf.mxu2  ;;  %v1240_v3 = vpop.eup %1239  ;;  %v1949_v5 = vadd.f32 %v1489_v35, %v471_v2  ;;  %v1956_v11 = vadd.f32 %v1489_v35, %v485_v47  ;;  %v1960_v29 = vadd.f32 %v1489_v35, %v508_v51 }
  0xf3   :  { %929 = vst.msk [vmem:[%s2083_s4 + $0x5c] sm:$0xf] %vm905_vm3, %v879_v52  ;;  %v362_v6 = vpop.f32.mrf.mxu0  ;;  %v1242_v10 = vpop.eup %1241  ;;  %v1123_v4 = vadd.f32 -1.0, %v1240_v3  ;;  %v499_v7 = vmul.f32 %v1487_v34, %v429_v28  ;;  %1247 = vpow2.f32 %v736_v31  ;;  %vm600_vm12 = vcmp.gt.f32.partialorder %v1913_v55, 0.0 }
  0xf4   :  { %v397_v8 = vpop.f32.mrf.mxu1  ;;  %952 = vst.msk [vmem:[%s2083_s4 + $0xb8] sm:$0xf] %vm905_vm3, %v902_v32  ;;  %v1244_v12 = vpop.eup %1243  ;;  %v1096_v15 = vadd.f32 -1.0, %v1242_v10  ;;  %v622_v17 = vmin.f32 %v1949_v5, 0.0  ;;  %v472_v16 = vmul.f32 %v1487_v34, %v362_v6  ;;  %v636_v13 = vmin.f32 %v1956_v11, 0.0 }
  0xf5   :  { %v844_v19 = vsel %vm599_vm8, %v1876_v26, %v1123_v4  ;;  %v1133_v22 = vadd.f32 -1.0, %v1244_v12  ;;  %v486_v23 = vmul.f32 %v1487_v34, %v397_v8  ;;  %v1976_v26 = vadd.f32 %v1489_v35, %v499_v7  ;;  %v1270_v10 = vld [vmem:[#allocation6] ss:$0 sm:$0xff] }
  0xf6   :  { %v1246_v14 = vpop.eup %1245  ;;  %v893_v24 = vpack.c.bf16 %v844_v19, %v844_v19  ;;  %v817_v25 = vsel %vm572_vm9, %v1879_v18, %v1096_v15  ;;  %v682_v9 = vmul.f32 1.442695, %v622_v17  ;;  %v710_v37 = vmul.f32 1.442695, %v636_v13 }
  0xf7   :  { %v1110_v27 = vadd.f32 -1.0, %v1246_v14  ;;  %v866_v33 = vpack.c.bf16 %v817_v25, %v817_v25  ;;  %v854_v36 = vsel %vm609_vm11, %v1890_v30, %v1133_v22  ;;  %v1986_v39 = vadd.f32 %v1489_v35, %v472_v16 }
  0xf8   :  { %943 = vst.msk [vmem:[%s2083_s4 + $0x94] sm:$0xf] %vm905_vm3, %v893_v24  ;;  %v903_v38 = vpack.c.bf16 %v854_v36, %v854_v36  ;;  %1249 = vpow2.f32 %v682_v9  ;;  %v650_v21 = vmin.f32 %v1976_v26, 0.0  ;;  %v1999_v43 = vadd.f32 %v1489_v35, %v486_v23 }
  0xf9   :  { %v831_v18 = vsel %vm586_vm10, %v1900_v20, %v1110_v27  ;;  %916 = vst.msk [vmem:[%s2083_s4 + $0x28] sm:$0xf] %vm905_vm3, %v866_v33  ;;  %1251 = vpow2.f32 %v710_v37  ;;  %v1248_v42 = vpop.eup %1247  ;;  %v623_v20 = vmin.f32 %v1986_v39, 0.0  ;;  %v659_v49 = vmin.f32 %v1960_v29, 0.0 }
  0xfa   :  { %v880_v30 = vpack.c.bf16 %v831_v18, %v831_v18  ;;  %v432_v40 = vpop.f32.mrf.mxu2  ;;  %953 = vst.msk [vmem:[%s2083_s4 + $0xbc] sm:$0xf] %vm905_vm3, %v903_v38  ;;  %v1124_v0 = vadd.f32 -1.0, %v1248_v42  ;;  %v738_v48 = vmul.f32 1.442695, %v650_v21  ;;  %v637_v46 = vmin.f32 %v1999_v43, 0.0 }
  0xfb   :  { %v364_v44 = vpop.f32.mrf.mxu0  ;;  %v500_v45 = vmul.f32 %v1487_v34, %v432_v40  ;;  %v684_v50 = vmul.f32 1.442695, %v623_v20  ;;  %v756_v57 = vmul.f32 1.442695, %v659_v49  ;;  %vm573_vm13 = vcmp.gt.f32.partialorder %v1949_v5, 0.0 }
  0xfc   :  { %930 = vst.msk [vmem:[%s2083_s4 + $0x60] sm:$0xf] %vm905_vm3, %v880_v30  ;;  %v473_v54 = vmul.f32 %v1487_v34, %v364_v44  ;;  %v845_v56 = vsel %vm600_vm12, %v1913_v55, %v1124_v0  ;;  %1253 = vpow2.f32 %v738_v48  ;;  %v712_v61 = vmul.f32 1.442695, %v637_v46  ;;  %v399_v63 = vpop.f32.mrf.mxu1 }
  0xfd   :  { %v2012_v58 = vadd.f32 %v1489_v35, %v500_v45  ;;  %v894_v60 = vpack.c.bf16 %v845_v56, %v845_v56  ;;  %1255 = vpow2.f32 %v684_v50  ;;  %vm587_vm14 = vcmp.gt.f32.partialorder %v1956_v11, 0.0 }
  0xfe   :  { %v1250_v59 = vpop.eup %1249  ;;  %v2015_v53 = vadd.f32 %v1489_v35, %v473_v54  ;;  %1257 = vpow2.f32 %v756_v57  ;;  %v487_v2 = vmul.f32 %v1269_v62, %v399_v63  ;;  %vm601_vm15 = vcmp.gt.f32.partialorder %v1976_v26, 0.0 }
  0xff   :  { %v1252_v1 = vpop.eup %1251  ;;  %v1097_v51 = vadd.f32 -1.0, %v1250_v59  ;;  %v651_v34 = vmin.f32 %v2012_v58, 0.0  ;;  %944 = vst.msk [vmem:[%s2083_s4 + $0x98] sm:$0xf] %vm905_vm3, %v894_v60  ;;  %1259 = vpow2.f32 %v712_v61  ;;  %vm610_vm0 = vcmp.gt.f32.partialorder %v1960_v29, 0.0 }
 0x100   :  { %v1111_v55 = vadd.f32 -1.0, %v1252_v1  ;;  %v624_v52 = vmin.f32 %v2015_v53, 0.0  ;;  %v540_v4 = vadd.f32 %v1270_v10, %v487_v2  ;;  %vm574_vm1 = vcmp.gt.f32.partialorder %v1986_v39, 0.0 }
 0x101   :  { %v818_v35 = vsel %vm573_vm13, %v1949_v5, %v1097_v51  ;;  %v740_v41 = vmul.f32 1.442695, %v651_v34  ;;  %vm588_vm2 = vcmp.gt.f32.partialorder %v1999_v43, 0.0  ;;  %vm602_vm4 = vcmp.gt.f32.partialorder %v2012_v58, 0.0 }
 0x102   :  { %v434_v32 = vpop.f32.mrf.mxu2  ;;  %v867_v47 = vpack.c.bf16 %v818_v35, %v818_v35  ;;  %v832_v28 = vsel %vm587_vm14, %v1956_v11, %v1111_v55  ;;  %v686_v3 = vmul.f32 1.442695, %v624_v52  ;;  %v1254_v6 = vpop.eup %1253  ;;  %v638_v17 = vmin.f32 %v540_v4, 0.0 }
 0x103   :  { %v501_v31 = vmul.f32 %v1269_v62, %v434_v32  ;;  %v881_v8 = vpack.c.bf16 %v832_v28, %v832_v28  ;;  %1261 = vpow2.f32 %v740_v41  ;;  %v1256_v7 = vpop.eup %1255  ;;  %v1125_v5 = vadd.f32 -1.0, %v1254_v6 }
 0x104   :  { %917 = vst.msk [vmem:[%s2083_s4 + $0x2c] sm:$0xf] %vm905_vm3, %v867_v47  ;;  %1263 = vpow2.f32 %v686_v3  ;;  %v1258_v15 = vpop.eup %1257  ;;  %v1098_v11 = vadd.f32 -1.0, %v1256_v7  ;;  %v714_v25 = vmul.f32 1.442695, %v638_v17  ;;  %vm575_vm5 = vcmp.gt.f32.partialorder %v2015_v53, 0.0 }
 0x105   :  { %v554_v12 = vadd.f32 %v1270_v10, %v501_v31  ;;  %931 = vst.msk [vmem:[%s2083_s4 + $0x64] sm:$0xf] %vm905_vm3, %v881_v8  ;;  %v1260_v16 = vpop.eup %1259  ;;  %v846_v14 = vsel %vm601_vm15, %v1976_v26, %v1125_v5  ;;  %v1134_v19 = vadd.f32 -1.0, %v1258_v15  ;;  %vm589_vm6 = vcmp.gt.f32.partialorder %v540_v4, 0.0 }
 0x106   :  { %v895_v13 = vpack.c.bf16 %v846_v14, %v846_v14  ;;  %v819_v23 = vsel %vm574_vm1, %v1986_v39, %v1098_v11  ;;  %v1112_v24 = vadd.f32 -1.0, %v1260_v16  ;;  %1265 = vpow2.f32 %v714_v25 }
 0x107   :  { %v652_v22 = vmin.f32 %v554_v12, 0.0  ;;  %v868_v27 = vpack.c.bf16 %v819_v23, %v819_v23  ;;  %v855_v9 = vsel %vm610_vm0, %v1960_v29, %v1134_v19  ;;  %vm603_vm7 = vcmp.gt.f32.partialorder %v554_v12, 0.0 }
 0x108   :  { %945 = vst.msk [vmem:[%s2083_s4 + $0x9c] sm:$0xf] %vm905_vm3, %v895_v13  ;;  %v833_v37 = vsel %vm588_vm2, %v1999_v43, %v1112_v24  ;;  %v904_v26 = vpack.c.bf16 %v855_v9, %v855_v9 }
 0x109   :  { %v742_v33 = vmul.f32 1.442695, %v652_v22  ;;  %v1262_v36 = vpop.eup %1261  ;;  %918 = vst.msk [vmem:[%s2083_s4 + $0x30] sm:$0xf] %vm905_vm3, %v868_v27  ;;  %v882_v38 = vpack.c.bf16 %v833_v37, %v833_v37 }
 0x10a   :  { %v1264_v18 = vpop.eup %1263  ;;  %v1126_v39 = vadd.f32 -1.0, %v1262_v36  ;;  %954 = vst.msk [vmem:[%s2083_s4 + $0xc0] sm:$0xf] %vm905_vm3, %v904_v26 }
 0x10b   :  { %1267 = vpow2.f32 %v742_v33  ;;  %v1099_v29 = vadd.f32 -1.0, %v1264_v18  ;;  %932 = vst.msk [vmem:[%s2083_s4 + $0x68] sm:$0xf] %vm905_vm3, %v882_v38 }
 0x10c   :  { %v847_v30 = vsel %vm602_vm4, %v2012_v58, %v1126_v39  ;;  %v1266_v20 = vpop.eup %1265 }
 0x10d   :  { %v896_v21 = vpack.c.bf16 %v847_v30, %v847_v30  ;;  %v820_v40 = vsel %vm575_vm5, %v2015_v53, %v1099_v29  ;;  %v1113_v44 = vadd.f32 -1.0, %v1266_v20 }
 0x10e   :  { %v869_v42 = vpack.c.bf16 %v820_v40, %v820_v40 }
 0x10f   :  { %946 = vst.msk [vmem:[%s2083_s4 + $0xa0] sm:$0xf] %vm905_vm3, %v896_v21  ;;  %v834_v48 = vsel %vm589_vm6, %v540_v4, %v1113_v44 }
 0x110   :  { %919 = vst.msk [vmem:[%s2083_s4 + $0x34] sm:$0xf] %vm905_vm3, %v869_v42  ;;  %v883_v49 = vpack.c.bf16 %v834_v48, %v834_v48 }
 0x111   :  { %v1268_v43 = vpop.eup %1267 }
 0x112   :  { %v1127_v0 = vadd.f32 -1.0, %v1268_v43  ;;  %933 = vst.msk [vmem:[%s2083_s4 + $0x6c] sm:$0xf] %vm905_vm3, %v883_v49 }
 0x114   :  { %v848_v45 = vsel %vm603_vm7, %v554_v12, %v1127_v0 }
 0x115   :  { %v897_v50 = vpack.c.bf16 %v848_v45, %v848_v45 }
 0x117   :  { %947 = vst.msk [vmem:[%s2083_s4 + $0xa4] sm:$0xf] %vm905_vm3, %v897_v50 }
 0x118   :  { %959 = vsyncpa [#allocation3], 1 }
 0x119   :  { %960 = vsyncpa [#allocation5], 1 }

// kernel: cnn_vae_forward.6
= control target key start
LH: loop header
LB: loop body
LE: loop exit
PB: predicated region body
PF: predicated region fallthrough
CT: control target
= control target key end

     0   :  { %vm288_vm0 = vcmask 261120   ;;  %vm564_vm2 = vcmask 519168   ;;  %vm577_vm15 = vcmask 516096   ;;  %s1131_s1 = inlined_call_operand.vmem [shape: bf16[288,64], index: 1, kind: input, shape index: {}]   ;;  %s1132_s0 = inlined_call_operand.vmem [shape: bf16[98,288], index: 0, kind: input, shape index: {}]   ;;  %s1133_s2 = inlined_call_operand.vmem [shape: f32[1,64], index: 2, kind: input, shape index: {}]   ;;  %s1134_s3 = inlined_call_operand.vmem [shape: f32[1,64], index: 3, kind: input, shape index: {}]   ;;  %s1135_s4 = inlined_call_operand.vmem [shape: bf16[98,64], index: 4, kind: output, shape index: {}]  }
   0x1   :  { %v772_v0 = vld [vmem:[%s1131_s1 + $0x38] sm:$0xff]  ;;  %v782_v2 = vld [vmem:[%s1131_s1 + $0x88] sm:$0xff]  ;;  %v771_v3 = vld [vmem:[%s1131_s1 + $0x30] sm:$0xff] }
   0x2   :  { %v858_v1 = vld [vmem:[%s1131_s1 + $0x78] sm:$0xff]  ;;  %310 = vmatpush.bf16.msra.mxu0 %v772_v0  ;;  %783 = vmatpush.bf16.msra.mxu3 %v772_v0  ;;  %v869_v4 = vld [vmem:[%s1131_s1 + $0x70] sm:$0xff]  ;;  %v781_v5 = vld [vmem:[%s1131_s1 + $0x80] sm:$0xff] }
   0x3   :  { %353 = vmatpush.bf16.msra.mxu1 %v858_v1  ;;  %402 = vmatpush.bf16.msra.mxu2 %v782_v2  ;;  %v593_v6 = vld [vmem:[%s1132_s0 + $0x8] sm:$0xf]  ;;  %v749_v7 = vld [vmem:[%s1132_s0 + $0x10] sm:$0xf0]  ;;  %v769_v11 = vld [vmem:[%s1131_s1 + $0x20] sm:$0xff] }
   0x4   :  { %v594_v8 = vor.u32 %v749_v7, %v593_v6  ;;  %v770_v9 = vld [vmem:[%s1131_s1 + $0x28] sm:$0xff]  ;;  %v777_v12 = vld [vmem:[%s1131_s1 + $0x60] sm:$0xff]  ;;  %v768_v13 = vld [vmem:[%s1131_s1 + $0x18] sm:$0xff] }
   0x5   :  { %v778_v10 = vld [vmem:[%s1131_s1 + $0x68] sm:$0xff]  ;;  %v776_v14 = vld [vmem:[%s1131_s1 + $0x58] sm:$0xff]  ;;  %v767_v15 = vld [vmem:[%s1131_s1 + $0x10] sm:$0xff] }
   0x6   :  { %311 = vmatpush.bf16.msra.mxu0 %v771_v3  ;;  %784 = vmatpush.bf16.msra.mxu3 %v771_v3  ;;  %v775_v16 = vld [vmem:[%s1131_s1 + $0x50] sm:$0xff]  ;;  %v605_v17 = vld [vmem:[%s1132_s0 + $0x20] sm:$0xf]  ;;  %v752_v18 = vld [vmem:[%s1132_s0 + $0x28] sm:$0xf0] }
   0x7   :  { %354 = vmatpush.bf16.msra.mxu1 %v869_v4  ;;  %403 = vmatpush.bf16.msra.mxu2 %v781_v5  ;;  %v606_v19 = vor.u32 %v752_v18, %v605_v17  ;;  %v766_v20 = vld [vmem:[%s1131_s1 + $0x8] sm:$0xff]  ;;  %v765_v22 = vld [vmem:[%s1131_s1] sm:$0xff]  ;;  %v645_v26 = vld [vmem:[%s1132_s0 + $0x78] sm:$0xf] }
   0x8   :  { %v774_v21 = vld [vmem:[%s1131_s1 + $0x48] sm:$0xff]  ;;  %v773_v23 = vld [vmem:[%s1131_s1 + $0x40] sm:$0xff]  ;;  %v587_v29 = vld [vmem:[%s1132_s0 + $0xc] sm:$0xf0] }
   0x9   :  { %v585_v24 = vld [vmem:[%s1132_s0] sm:$0xf]  ;;  %v748_v25 = vld [vmem:[%s1132_s0 + $0x8] sm:$0xf0]  ;;  %v763_v27 = vld [vmem:[%s1132_s0 + $0x80] sm:$0xf0] }
   0xa   :  { %727 = vmatmul.msk.bf16.vlgmr.msra.gmra.mxu2 %vm288_vm0, %v594_v8  ;;  %312 = vmatpush.bf16.msra.mxu0 %v770_v9  ;;  %v747_v28 = vld [vmem:[%s1132_s0 + $0x4] sm:$0xf]  ;;  %v586_v30 = vor.u32 %v748_v25, %v585_v24  ;;  %v646_v31 = vor.u32 %v763_v27, %v645_v26  ;;  %v617_v33 = vld [vmem:[%s1132_s0 + $0x38] sm:$0xf]  ;;  %v42_v36 = vld [vmem:[%s1132_s0 + $0x90] sm:$0x11] }
   0xb   :  { %785 = vmatpush.bf16.msra.mxu3 %v770_v9  ;;  %355 = vmatpush.bf16.msra.mxu1 %v778_v10  ;;  %v590_v32 = vor.u32 %v747_v28, %v587_v29  ;;  %v755_v34 = vld [vmem:[%s1132_s0 + $0x40] sm:$0xf0]  ;;  %v597_v37 = vld [vmem:[%s1132_s0 + $0x18] sm:$0xf]  ;;  %v142_v39 = vunpack.c.l.b16 %v42_v36  ;;  %v750_v40 = vld [vmem:[%s1132_s0 + $0x1c] sm:$0xf]  ;;  %v143_v62 = vunpack.c.h.b16 %v42_v36 }
   0xc   :  { %v618_v35 = vor.u32 %v755_v34, %v617_v33  ;;  %v751_v38 = vld [vmem:[%s1132_s0 + $0x20] sm:$0xf0]  ;;  %v599_v41 = vld [vmem:[%s1132_s0 + $0x24] sm:$0xf0]  ;;  %v629_v45 = vld [vmem:[%s1132_s0 + $0x50] sm:$0xf] }
   0xd   :  { %v598_v42 = vor.u32 %v751_v38, %v597_v37  ;;  %v163_v43 = vpack.c.b16 %v142_v39, %v142_v39  ;;  %v602_v44 = vor.u32 %v750_v40, %v599_v41  ;;  %v758_v46 = vld [vmem:[%s1132_s0 + $0x58] sm:$0xf0]  ;;  %v609_v48 = vld [vmem:[%s1132_s0 + $0x30] sm:$0xf]  ;;  %v753_v50 = vld [vmem:[%s1132_s0 + $0x34] sm:$0xf]  ;;  %v164_v3 = vpack.c.b16 %v143_v62, %v143_v62 }
   0xe   :  { %313 = vmatpush.bf16.msra.mxu0 %v769_v11  ;;  %v630_v47 = vor.u32 %v758_v46, %v629_v45  ;;  %v754_v49 = vld [vmem:[%s1132_s0 + $0x38] sm:$0xf0]  ;;  %v611_v51 = vld [vmem:[%s1132_s0 + $0x3c] sm:$0xf0]  ;;  %v647_v53 = vld [vmem:[%s1132_s0 + $0x84] sm:$0xf0] }
   0xf   :  { %786 = vmatpush.bf16.msra.mxu3 %v769_v11  ;;  %356 = vmatpush.bf16.msra.mxu1 %v777_v12  ;;  %v762_v52 = vld [vmem:[%s1132_s0 + $0x7c] sm:$0xf]  ;;  %v610_v54 = vor.u32 %v754_v49, %v609_v48  ;;  %v614_v55 = vor.u32 %v753_v50, %v611_v51  ;;  %v641_v57 = vld [vmem:[%s1132_s0 + $0x68] sm:$0xf]  ;;  %v761_v58 = vld [vmem:[%s1132_s0 + $0x70] sm:$0xf0] }
  0x10   :  { %v650_v56 = vor.u32 %v762_v52, %v647_v53  ;;  %v642_v59 = vor.u32 %v761_v58, %v641_v57  ;;  %v621_v60 = vld [vmem:[%s1132_s0 + $0x48] sm:$0xf]  ;;  %v757_v61 = vld [vmem:[%s1132_s0 + $0x50] sm:$0xf0]  ;;  %v756_v63 = vld [vmem:[%s1132_s0 + $0x4c] sm:$0xf] }
  0x11   :  { %v623_v0 = vld [vmem:[%s1132_s0 + $0x54] sm:$0xf0]  ;;  %v764_v5 = vld [vmem:[%s1132_s0 + $0x88] sm:$0xf0]  ;;  %v633_v7 = vld [vmem:[%s1132_s0 + $0x60] sm:$0xf] }
  0x12   :  { %314 = vmatpush.bf16.msra.mxu0 %v768_v13  ;;  %v626_v2 = vor.u32 %v756_v63, %v623_v0  ;;  %v760_v8 = vld [vmem:[%s1132_s0 + $0x68] sm:$0xf0]  ;;  %v759_v9 = vld [vmem:[%s1132_s0 + $0x64] sm:$0xf]  ;;  %v1043_v24 = vld [vmem:[%s1134_s3] ss:$0 sm:$0xff] }
  0x13   :  { %787 = vmatpush.bf16.msra.mxu3 %v768_v13  ;;  %357 = vmatpush.bf16.msra.mxu1 %v776_v14  ;;  %v634_v11 = vor.u32 %v760_v8, %v633_v7  ;;  %v43_v13 = vld [vmem:[%s1132_s0 + $0x98] sm:$0x1] }
  0x16   :  { %315 = vmatpush.bf16.msra.mxu0 %v767_v15 }
  0x17   :  { %788 = vmatpush.bf16.msra.mxu3 %v767_v15  ;;  %358 = vmatpush.bf16.msra.mxu1 %v775_v16 }
  0x1a   :  { %728 = vmatmul.msk.bf16.gmra.mxu2 %vm288_vm0, %v606_v19  ;;  %316 = vmatpush.bf16.msra.mxu0 %v766_v20 }
  0x1b   :  { %789 = vmatpush.bf16.msra.mxu3 %v766_v20  ;;  %359 = vmatpush.bf16.msra.mxu1 %v774_v21 }
  0x1e   :  { %317 = vmatpush.bf16.msra.mxu0 %v765_v22 }
  0x1f   :  { %790 = vmatpush.bf16.msra.mxu3 %v765_v22  ;;  %360 = vmatpush.bf16.msra.mxu1 %v773_v23  ;;  %v1038_v22 = vld [vmem:[%s1133_s2] ss:$0 sm:$0xff] }
  0x21   :  { %318 = vmatmul.bf16.vlgmr.msra.gmra.mxu0 %v586_v30 }
  0x22   :  { %343 = vmatmul.bf16.vlgmr.msra.gmra.mxu3 %v646_v31  ;;  %361 = vmatmul.bf16.vlgmr.msra.gmra.mxu1 %v590_v32 }
  0x23   :  { %791 = vmatpush.bf16.msrb.mxu3 %v858_v1  ;;  %v622_v1 = vor.u32 %v757_v61, %v621_v60 }
  0x27   :  { %792 = vmatpush.bf16.msrb.mxu3 %v869_v4  ;;  %v653_v4 = vld [vmem:[%s1132_s0 + $0x80] sm:$0xf] }
  0x28   :  { %v654_v6 = vor.u32 %v764_v5, %v653_v4 }
  0x2a   :  { %729 = vmatmul.msk.bf16.gmra.mxu2 %vm288_vm0, %v618_v35 }
  0x2b   :  { %793 = vmatpush.bf16.msrb.mxu3 %v778_v10  ;;  %v635_v10 = vld [vmem:[%s1132_s0 + $0x6c] sm:$0xf0] }
  0x2f   :  { %794 = vmatpush.bf16.msrb.mxu3 %v777_v12  ;;  %v638_v12 = vor.u32 %v759_v9, %v635_v10 }
  0x31   :  { %323 = vmatmul.bf16.gmra.mxu0 %v598_v42 }
  0x32   :  { %348 = vmatmul.bf16.gmra.mxu3 %v163_v43  ;;  %366 = vmatmul.bf16.gmra.mxu1 %v602_v44 }
  0x33   :  { %795 = vmatpush.bf16.msrb.mxu3 %v776_v14  ;;  %v144_v14 = vunpack.c.l.b16 %v43_v13 }
  0x35   :  { %v165_v15 = vpack.c.b16 %v144_v14, %v144_v14 }
  0x37   :  { %796 = vmatpush.bf16.msrb.mxu3 %v775_v16 }
  0x3a   :  { %730 = vmatmul.msk.bf16.gmra.mxu2 %vm288_vm0, %v630_v47 }
  0x3b   :  { %797 = vmatpush.bf16.msrb.mxu3 %v774_v21 }
  0x3f   :  { %798 = vmatpush.bf16.msrb.mxu3 %v773_v23 }
  0x41   :  { %328 = vmatmul.bf16.gmra.mxu0 %v610_v54 }
  0x42   :  { %371 = vmatmul.bf16.gmra.mxu1 %v614_v55  ;;  %386 = vmatmul.bf16.vlgmr.msrb.gmra.mxu3 %v650_v56 }
  0x4a   :  { %731 = vmatmul.msk.bf16.gmra.mxu2 %vm288_vm0, %v642_v59 }
  0x51   :  { %333 = vmatmul.bf16.gmra.mxu0 %v622_v1 }
  0x52   :  { %376 = vmatmul.bf16.gmra.mxu1 %v626_v2  ;;  %391 = vmatmul.bf16.gmra.mxu3 %v164_v3 }
  0x5a   :  { %732 = vmatmul.msk.bf16.gmra.mxu2 %vm288_vm0, %v654_v6 }
  0x61   :  { %338 = vmatmul.bf16.gmra.mxu0 %v634_v11 }
  0x62   :  { %381 = vmatmul.bf16.gmra.mxu1 %v638_v12 }
  0x6a   :  { %733 = vmatmul.msk.bf16.gmra.mxu2 %vm288_vm0, %v165_v15 }
  0x8d   :  { %v405_v16 = vpop.f32.mrf.mxu2 }
  0x95   :  { %v407_v17 = vpop.f32.mrf.mxu2 }
  0x9d   :  { %v410_v18 = vpop.f32.mrf.mxu2 }
  0x9e   :  { %v319_v19 = vpop.f32.mrf.mxu0 }
  0x9f   :  { %v362_v20 = vpop.f32.mrf.mxu1 }
  0xa0   :  { %v363_v21 = vadd.f32 %v362_v20, %v319_v19 }
  0xa2   :  { %v406_v23 = vadd.f32 %v405_v16, %v363_v21 }
  0xa4   :  { %v443_v25 = vmul.f32 %v1038_v22, %v406_v23 }
  0xa5   :  { %v1046_v26 = vpop.f32.mrf.mxu3  ;;  %v412_v27 = vpop.f32.mrf.mxu2 }
  0xa6   :  { %v460_v28 = vadd.f32 %v1043_v24, %v443_v25  ;;  %v321_v29 = vpop.f32.mrf.mxu0 }
  0xa7   :  { %v364_v30 = vpop.f32.mrf.mxu1 }
  0xa8   :  { %v486_v31 = vmin.f32 %v460_v28, 0.0  ;;  %v365_v32 = vadd.f32 %v364_v30, %v321_v29  ;;  %vm473_vm1 = vcmp.gt.f32.partialorder %v460_v28, 0.0 }
  0xaa   :  { %v499_v33 = vmul.f32 1.442695, %v486_v31  ;;  %v408_v34 = vadd.f32 %v407_v17, %v365_v32 }
  0xac   :  { %801 = vpow2.f32 %v499_v33  ;;  %v444_v35 = vmul.f32 %v1038_v22, %v408_v34 }
  0xad   :  { %v1050_v36 = vpop.f32.mrf.mxu3  ;;  %v415_v37 = vpop.f32.mrf.mxu2 }
  0xae   :  { %v461_v38 = vadd.f32 %v1043_v24, %v444_v35  ;;  %v324_v39 = vpop.f32.mrf.mxu0 }
  0xaf   :  { %v367_v40 = vpop.f32.mrf.mxu1 }
  0xb0   :  { %v487_v41 = vmin.f32 %v461_v38, 0.0  ;;  %v368_v42 = vadd.f32 %v367_v40, %v324_v39  ;;  %vm474_vm3 = vcmp.gt.f32.partialorder %v461_v38, 0.0 }
  0xb2   :  { %v802_v43 = vpop.eup %801  ;;  %v501_v44 = vmul.f32 1.442695, %v487_v41  ;;  %v411_v45 = vadd.f32 %v410_v18, %v368_v42 }
  0xb3   :  { %v734_v46 = vadd.f32 -1.0, %v802_v43 }
  0xb4   :  { %803 = vpow2.f32 %v501_v44  ;;  %v445_v47 = vmul.f32 %v1038_v22, %v411_v45 }
  0xb5   :  { %v538_v48 = vsel %vm473_vm1, %v460_v28, %v734_v46  ;;  %v1054_v49 = vpop.f32.mrf.mxu3  ;;  %v417_v50 = vpop.f32.mrf.mxu2 }
  0xb6   :  { %v551_v51 = vpack.c.bf16 %v538_v48, %v538_v48  ;;  %v462_v52 = vadd.f32 %v1043_v24, %v445_v47  ;;  %v326_v53 = vpop.f32.mrf.mxu0 }
  0xb7   :  { %v369_v54 = vpop.f32.mrf.mxu1 }
  0xb8   :  { %565 = vst.msk [vmem:[%s1135_s4] sm:$0xf] %vm564_vm2, %v551_v51  ;;  %v488_v55 = vmin.f32 %v462_v52, 0.0  ;;  %v370_v56 = vadd.f32 %v369_v54, %v326_v53  ;;  %vm475_vm4 = vcmp.gt.f32.partialorder %v462_v52, 0.0 }
  0xba   :  { %v804_v57 = vpop.eup %803  ;;  %v503_v58 = vmul.f32 1.442695, %v488_v55  ;;  %v413_v59 = vadd.f32 %v412_v27, %v370_v56 }
  0xbb   :  { %v735_v60 = vadd.f32 -1.0, %v804_v57 }
  0xbc   :  { %805 = vpow2.f32 %v503_v58  ;;  %v446_v61 = vmul.f32 %v1038_v22, %v413_v59 }
  0xbd   :  { %v539_v62 = vsel %vm474_vm3, %v461_v38, %v735_v60  ;;  %v351_v63 = vpop.f32.mrf.mxu3  ;;  %v420_v0 = vpop.f32.mrf.mxu2 }
  0xbe   :  { %v552_v1 = vpack.c.bf16 %v539_v62, %v539_v62  ;;  %v463_v2 = vadd.f32 %v1043_v24, %v446_v61  ;;  %v329_v3 = vpop.f32.mrf.mxu0 }
  0xbf   :  { %v372_v4 = vpop.f32.mrf.mxu1 }
  0xc0   :  { %566 = vst.msk [vmem:[%s1135_s4 + $0x4] sm:$0xf] %vm564_vm2, %v552_v1  ;;  %v489_v5 = vmin.f32 %v463_v2, 0.0  ;;  %v373_v6 = vadd.f32 %v372_v4, %v329_v3  ;;  %vm476_vm5 = vcmp.gt.f32.partialorder %v463_v2, 0.0 }
  0xc2   :  { %v806_v7 = vpop.eup %805  ;;  %v505_v8 = vmul.f32 1.442695, %v489_v5  ;;  %v416_v9 = vadd.f32 %v415_v37, %v373_v6 }
  0xc3   :  { %v736_v10 = vadd.f32 -1.0, %v806_v7 }
  0xc4   :  { %807 = vpow2.f32 %v505_v8  ;;  %v447_v11 = vmul.f32 %v1038_v22, %v416_v9 }
  0xc5   :  { %v540_v12 = vsel %vm475_vm4, %v462_v52, %v736_v10  ;;  %v387_v13 = vpop.f32.mrf.mxu3  ;;  %v422_v14 = vpop.f32.mrf.mxu2 }
  0xc6   :  { %v553_v15 = vpack.c.bf16 %v540_v12, %v540_v12  ;;  %v464_v16 = vadd.f32 %v1043_v24, %v447_v11  ;;  %v331_v17 = vpop.f32.mrf.mxu0  ;;  %v388_v58 = vadd.f32 %v387_v13, %v1046_v26 }
  0xc7   :  { %v374_v18 = vpop.f32.mrf.mxu1 }
  0xc8   :  { %567 = vst.msk [vmem:[%s1135_s4 + $0x8] sm:$0xf] %vm564_vm2, %v553_v15  ;;  %v490_v19 = vmin.f32 %v464_v16, 0.0  ;;  %v375_v20 = vadd.f32 %v374_v18, %v331_v17  ;;  %vm477_vm6 = vcmp.gt.f32.partialorder %v464_v16, 0.0 }
  0xca   :  { %v808_v21 = vpop.eup %807  ;;  %v507_v23 = vmul.f32 1.442695, %v490_v19  ;;  %v418_v25 = vadd.f32 %v417_v50, %v375_v20 }
  0xcb   :  { %v737_v27 = vadd.f32 -1.0, %v808_v21 }
  0xcc   :  { %809 = vpow2.f32 %v507_v23  ;;  %v448_v28 = vmul.f32 %v1038_v22, %v418_v25 }
  0xcd   :  { %v541_v29 = vsel %vm476_vm5, %v463_v2, %v737_v27  ;;  %v389_v30 = vpop.f32.mrf.mxu3  ;;  %v425_v31 = vpop.f32.mrf.mxu2 }
  0xce   :  { %v554_v32 = vpack.c.bf16 %v541_v29, %v541_v29  ;;  %v465_v33 = vadd.f32 %v1043_v24, %v448_v28  ;;  %v334_v34 = vpop.f32.mrf.mxu0  ;;  %v390_v10 = vadd.f32 %v389_v30, %v1050_v36 }
  0xcf   :  { %v377_v35 = vpop.f32.mrf.mxu1 }
  0xd0   :  { %568 = vst.msk [vmem:[%s1135_s4 + $0xc] sm:$0xf] %vm564_vm2, %v554_v32  ;;  %v491_v37 = vmin.f32 %v465_v33, 0.0  ;;  %v378_v38 = vadd.f32 %v377_v35, %v334_v34  ;;  %vm478_vm7 = vcmp.gt.f32.partialorder %v465_v33, 0.0 }
  0xd2   :  { %v810_v39 = vpop.eup %809  ;;  %v509_v40 = vmul.f32 1.442695, %v491_v37  ;;  %v421_v41 = vadd.f32 %v420_v0, %v378_v38 }
  0xd3   :  { %v738_v42 = vadd.f32 -1.0, %v810_v39 }
  0xd4   :  { %811 = vpow2.f32 %v509_v40  ;;  %v449_v43 = vmul.f32 %v1038_v22, %v421_v41 }
  0xd5   :  { %v542_v44 = vsel %vm477_vm6, %v464_v16, %v738_v42  ;;  %v392_v45 = vpop.f32.mrf.mxu3  ;;  %v427_v46 = vpop.f32.mrf.mxu2 }
  0xd6   :  { %v555_v47 = vpack.c.bf16 %v542_v44, %v542_v44  ;;  %v466_v48 = vadd.f32 %v1043_v24, %v449_v43  ;;  %v336_v50 = vpop.f32.mrf.mxu0  ;;  %v393_v32 = vadd.f32 %v392_v45, %v1054_v49 }
  0xd7   :  { %v379_v51 = vpop.f32.mrf.mxu1 }
  0xd8   :  { %569 = vst.msk [vmem:[%s1135_s4 + $0x10] sm:$0xf] %vm564_vm2, %v555_v47  ;;  %v492_v52 = vmin.f32 %v466_v48, 0.0  ;;  %v380_v53 = vadd.f32 %v379_v51, %v336_v50  ;;  %vm479_vm8 = vcmp.gt.f32.partialorder %v466_v48, 0.0 }
  0xda   :  { %v812_v54 = vpop.eup %811  ;;  %v511_v55 = vmul.f32 1.442695, %v492_v52  ;;  %v423_v56 = vadd.f32 %v422_v14, %v380_v53 }
  0xdb   :  { %v739_v57 = vadd.f32 -1.0, %v812_v54 }
  0xdc   :  { %813 = vpow2.f32 %v511_v55  ;;  %v450_v59 = vmul.f32 %v1038_v22, %v423_v56 }
  0xdd   :  { %v543_v60 = vsel %vm478_vm7, %v465_v33, %v739_v57  ;;  %v430_v61 = vpop.f32.mrf.mxu2  ;;  %v394_v62 = vpop.f32.mrf.mxu3 }
  0xde   :  { %v556_v63 = vpack.c.bf16 %v543_v60, %v543_v60  ;;  %v467_v0 = vadd.f32 %v1043_v24, %v450_v59  ;;  %v431_v1 = vadd.f32 %v430_v61, %v388_v58  ;;  %v339_v2 = vpop.f32.mrf.mxu0 }
  0xdf   :  { %v382_v3 = vpop.f32.mrf.mxu1 }
  0xe0   :  { %570 = vst.msk [vmem:[%s1135_s4 + $0x14] sm:$0xf] %vm564_vm2, %v556_v63  ;;  %v493_v4 = vmin.f32 %v467_v0, 0.0  ;;  %v453_v26 = vmul.f32 %v1038_v22, %v431_v1  ;;  %v383_v5 = vadd.f32 %v382_v3, %v339_v2  ;;  %vm480_vm9 = vcmp.gt.f32.partialorder %v467_v0, 0.0 }
  0xe2   :  { %v814_v6 = vpop.eup %813  ;;  %v513_v7 = vmul.f32 1.442695, %v493_v4  ;;  %v470_v8 = vadd.f32 %v1043_v24, %v453_v26  ;;  %v426_v9 = vadd.f32 %v425_v31, %v383_v5 }
  0xe3   :  { %v740_v11 = vadd.f32 -1.0, %v814_v6 }
  0xe4   :  { %815 = vpow2.f32 %v513_v7  ;;  %v496_v12 = vmin.f32 %v470_v8, 0.0  ;;  %v451_v13 = vmul.f32 %v1038_v22, %v426_v9  ;;  %vm483_vm10 = vcmp.gt.f32.partialorder %v470_v8, 0.0 }
  0xe5   :  { %v544_v14 = vsel %vm479_vm8, %v466_v48, %v740_v11  ;;  %v432_v15 = vpop.f32.mrf.mxu2 }
  0xe6   :  { %v557_v16 = vpack.c.bf16 %v544_v14, %v544_v14  ;;  %v519_v17 = vmul.f32 1.442695, %v496_v12  ;;  %v468_v18 = vadd.f32 %v1043_v24, %v451_v13  ;;  %v433_v19 = vadd.f32 %v432_v15, %v390_v10  ;;  %v341_v20 = vpop.f32.mrf.mxu0 }
  0xe7   :  { %v384_v21 = vpop.f32.mrf.mxu1 }
  0xe8   :  { %571 = vst.msk [vmem:[%s1135_s4 + $0x18] sm:$0xf] %vm564_vm2, %v557_v16  ;;  %817 = vpow2.f32 %v519_v17  ;;  %v494_v36 = vmin.f32 %v468_v18, 0.0  ;;  %v454_v23 = vmul.f32 %v1038_v22, %v433_v19  ;;  %v385_v25 = vadd.f32 %v384_v21, %v341_v20 }
  0xe9   :  { %vm481_vm11 = vcmp.gt.f32.partialorder %v468_v18, 0.0 }
  0xea   :  { %v816_v27 = vpop.eup %815  ;;  %v515_v28 = vmul.f32 1.442695, %v494_v36  ;;  %v471_v29 = vadd.f32 %v1043_v24, %v454_v23  ;;  %v428_v31 = vadd.f32 %v427_v46, %v385_v25 }
  0xeb   :  { %v741_v30 = vadd.f32 -1.0, %v816_v27 }
  0xec   :  { %819 = vpow2.f32 %v515_v28  ;;  %v497_v33 = vmin.f32 %v471_v29, 0.0  ;;  %v452_v35 = vmul.f32 %v1038_v22, %v428_v31  ;;  %vm484_vm12 = vcmp.gt.f32.partialorder %v471_v29, 0.0 }
  0xed   :  { %v545_v34 = vsel %vm480_vm9, %v467_v0, %v741_v30  ;;  %v435_v37 = vpop.f32.mrf.mxu2 }
  0xee   :  { %v818_v38 = vpop.eup %817  ;;  %v558_v39 = vpack.c.bf16 %v545_v34, %v545_v34  ;;  %v521_v40 = vmul.f32 1.442695, %v497_v33  ;;  %v436_v41 = vadd.f32 %v435_v37, %v393_v32  ;;  %v469_v43 = vadd.f32 %v1043_v24, %v452_v35 }
  0xef   :  { %v744_v42 = vadd.f32 -1.0, %v818_v38 }
  0xf0   :  { %572 = vst.msk [vmem:[%s1135_s4 + $0x1c] sm:$0xf] %vm564_vm2, %v558_v39  ;;  %821 = vpow2.f32 %v521_v40  ;;  %v455_v49 = vmul.f32 %v1038_v22, %v436_v41  ;;  %v495_v45 = vmin.f32 %v469_v43, 0.0  ;;  %vm482_vm13 = vcmp.gt.f32.partialorder %v469_v43, 0.0 }
  0xf1   :  { %v548_v44 = vsel %vm483_vm10, %v470_v8, %v744_v42 }
  0xf2   :  { %v820_v46 = vpop.eup %819  ;;  %v561_v47 = vpack.c.bf16 %v548_v44, %v548_v44  ;;  %v472_v48 = vadd.f32 %v1043_v24, %v455_v49  ;;  %v517_v51 = vmul.f32 1.442695, %v495_v45 }
  0xf3   :  { %v742_v50 = vadd.f32 -1.0, %v820_v46 }
  0xf4   :  { %575 = vst.msk [vmem:[%s1135_s4 + $0x28] sm:$0xf] %vm564_vm2, %v561_v47  ;;  %v498_v52 = vmin.f32 %v472_v48, 0.0  ;;  %823 = vpow2.f32 %v517_v51  ;;  %vm485_vm14 = vcmp.gt.f32.partialorder %v472_v48, 0.0 }
  0xf5   :  { %v546_v53 = vsel %vm481_vm11, %v468_v18, %v742_v50  ;;  %v437_v54 = vpop.f32.mrf.mxu2 }
  0xf6   :  { %v822_v55 = vpop.eup %821  ;;  %v559_v22 = vpack.c.bf16 %v546_v53, %v546_v53  ;;  %v523_v56 = vmul.f32 1.442695, %v498_v52 }
  0xf7   :  { %v745_v57 = vadd.f32 -1.0, %v822_v55 }
  0xf8   :  { %573 = vst.msk [vmem:[%s1135_s4 + $0x20] sm:$0xf] %vm564_vm2, %v559_v22  ;;  %825 = vpow2.f32 %v523_v56 }
  0xf9   :  { %v549_v24 = vsel %vm484_vm12, %v471_v29, %v745_v57 }
  0xfa   :  { %v562_v58 = vpack.c.bf16 %v549_v24, %v549_v24  ;;  %v824_v59 = vpop.eup %823 }
  0xfb   :  { %v743_v60 = vadd.f32 -1.0, %v824_v59 }
  0xfc   :  { %576 = vst.msk [vmem:[%s1135_s4 + $0x2c] sm:$0xf] %vm564_vm2, %v562_v58 }
  0xfd   :  { %v547_v62 = vsel %vm482_vm13, %v469_v43, %v743_v60 }
  0xfe   :  { %v826_v61 = vpop.eup %825  ;;  %v560_v63 = vpack.c.bf16 %v547_v62, %v547_v62 }
  0xff   :  { %v746_v0 = vadd.f32 -1.0, %v826_v61 }
 0x100   :  { %574 = vst.msk [vmem:[%s1135_s4 + $0x24] sm:$0xf] %vm564_vm2, %v560_v63 }
 0x101   :  { %v550_v1 = vsel %vm485_vm14, %v472_v48, %v746_v0 }
 0x102   :  { %v563_v2 = vpack.c.bf16 %v550_v1, %v550_v1 }
 0x104   :  { %578 = vst.msk [vmem:[%s1135_s4 + $0x30] sm:$0x1] %vm577_vm15, %v563_v2 }

// kernel: cnn_vae_forward.8
= control target key start
LH: loop header
LB: loop body
LE: loop exit
PB: predicated region body
PF: predicated region fallthrough
CT: control target
= control target key end

     0   :  { %s911_s1 = inlined_call_operand.vmem [shape: bf16[256,128], index: 1, kind: input, shape index: {}]   ;;  %s912_s0 = inlined_call_operand.vmem [shape: bf16[98,256], index: 0, kind: input, shape index: {}]   ;;  %s913_s2 = inlined_call_operand.vmem [shape: f32[1,128], index: 2, kind: input, shape index: {}]   ;;  %s914_s3 = inlined_call_operand.vmem [shape: f32[1,128], index: 3, kind: input, shape index: {}]   ;;  %s915_s4 = inlined_call_operand.vmem [shape: bf16[98,128], index: 4, kind: output, shape index: {}]  }
   0x1   :  { %v597_v0 = vld [vmem:[%s911_s1 + $0x38] sm:$0xff]  ;;  %v596_v2 = vld [vmem:[%s911_s1 + $0x30] sm:$0xff]  ;;  %v595_v4 = vld [vmem:[%s911_s1 + $0x28] sm:$0xff] }
   0x2   :  { %v605_v1 = vld [vmem:[%s911_s1 + $0x78] sm:$0xff]  ;;  %225 = vmatpush.bf16.msra.mxu0 %v597_v0  ;;  %641 = vmatpush.bf16.msra.mxu2 %v597_v0  ;;  %v604_v3 = vld [vmem:[%s911_s1 + $0x70] sm:$0xff]  ;;  %v603_v5 = vld [vmem:[%s911_s1 + $0x68] sm:$0xff] }
   0x3   :  { %268 = vmatpush.bf16.msra.mxu1 %v605_v1  ;;  %649 = vmatpush.bf16.msra.mxu3 %v605_v1  ;;  %v594_v6 = vld [vmem:[%s911_s1 + $0x20] sm:$0xff]  ;;  %v593_v8 = vld [vmem:[%s911_s1 + $0x18] sm:$0xff]  ;;  %v592_v10 = vld [vmem:[%s911_s1 + $0x10] sm:$0xff] }
   0x4   :  { %v602_v7 = vld [vmem:[%s911_s1 + $0x60] sm:$0xff]  ;;  %v601_v9 = vld [vmem:[%s911_s1 + $0x58] sm:$0xff]  ;;  %v600_v11 = vld [vmem:[%s911_s1 + $0x50] sm:$0xff] }
   0x5   :  { %v591_v12 = vld [vmem:[%s911_s1 + $0x8] sm:$0xff]  ;;  %v590_v14 = vld [vmem:[%s911_s1] sm:$0xff]  ;;  %v479_v18 = vld [vmem:[%s912_s0 + $0x30] sm:$0xf] }
   0x6   :  { %226 = vmatpush.bf16.msra.mxu0 %v596_v2  ;;  %642 = vmatpush.bf16.msra.mxu2 %v596_v2  ;;  %v599_v13 = vld [vmem:[%s911_s1 + $0x48] sm:$0xff]  ;;  %v598_v15 = vld [vmem:[%s911_s1 + $0x40] sm:$0xff]  ;;  %v585_v19 = vld [vmem:[%s912_s0 + $0x34] sm:$0xf0] }
   0x7   :  { %269 = vmatpush.bf16.msra.mxu1 %v604_v3  ;;  %650 = vmatpush.bf16.msra.mxu3 %v604_v3  ;;  %v455_v16 = vld [vmem:[%s912_s0] sm:$0xf]  ;;  %v579_v17 = vld [vmem:[%s912_s0 + $0x4] sm:$0xf0]  ;;  %v578_v20 = vld [vmem:[%s912_s0 + $0x4] sm:$0xf]  ;;  %v480_v25 = vor.u32 %v585_v19, %v479_v18 }
   0x8   :  { %v457_v21 = vld [vmem:[%s912_s0 + $0x8] sm:$0xf0]  ;;  %v586_v22 = vld [vmem:[%s912_s0 + $0x44] sm:$0xf]  ;;  %v456_v24 = vor.u32 %v579_v17, %v455_v16  ;;  %v463_v28 = vld [vmem:[%s912_s0 + $0x10] sm:$0xf] }
   0x9   :  { %v489_v23 = vld [vmem:[%s912_s0 + $0x48] sm:$0xf0]  ;;  %v460_v26 = vor.u32 %v578_v20, %v457_v21  ;;  %v581_v29 = vld [vmem:[%s912_s0 + $0x14] sm:$0xf0]  ;;  %v487_v30 = vld [vmem:[%s912_s0 + $0x40] sm:$0xf] }
   0xa   :  { %227 = vmatpush.bf16.msra.mxu0 %v595_v4  ;;  %643 = vmatpush.bf16.msra.mxu2 %v595_v4  ;;  %v492_v27 = vor.u32 %v586_v22, %v489_v23  ;;  %v587_v31 = vld [vmem:[%s912_s0 + $0x44] sm:$0xf0]  ;;  %v580_v32 = vld [vmem:[%s912_s0 + $0x14] sm:$0xf]  ;;  %v465_v33 = vld [vmem:[%s912_s0 + $0x18] sm:$0xf0]  ;;  %v464_v36 = vor.u32 %v581_v29, %v463_v28 }
   0xb   :  { %270 = vmatpush.bf16.msra.mxu1 %v603_v5  ;;  %651 = vmatpush.bf16.msra.mxu3 %v603_v5  ;;  %v588_v34 = vld [vmem:[%s912_s0 + $0x54] sm:$0xf]  ;;  %v497_v35 = vld [vmem:[%s912_s0 + $0x58] sm:$0xf0]  ;;  %v488_v37 = vor.u32 %v587_v31, %v487_v30  ;;  %v468_v38 = vor.u32 %v580_v32, %v465_v33  ;;  %v29_v40 = vld [vmem:[%s912_s0 + $0x60] sm:$0x11] }
   0xc   :  { %v500_v39 = vor.u32 %v588_v34, %v497_v35  ;;  %v471_v41 = vld [vmem:[%s912_s0 + $0x20] sm:$0xf]  ;;  %v583_v42 = vld [vmem:[%s912_s0 + $0x24] sm:$0xf0]  ;;  %v495_v43 = vld [vmem:[%s912_s0 + $0x50] sm:$0xf]  ;;  %v100_v45 = vunpack.c.h.b16 %v29_v40  ;;  %v99_v52 = vunpack.c.l.b16 %v29_v40 }
   0xd   :  { %v589_v44 = vld [vmem:[%s912_s0 + $0x54] sm:$0xf0]  ;;  %v582_v46 = vld [vmem:[%s912_s0 + $0x24] sm:$0xf]  ;;  %v473_v47 = vld [vmem:[%s912_s0 + $0x28] sm:$0xf0]  ;;  %v472_v48 = vor.u32 %v583_v42, %v471_v41 }
   0xe   :  { %228 = vmatpush.bf16.msra.mxu0 %v594_v6  ;;  %644 = vmatpush.bf16.msra.mxu2 %v594_v6  ;;  %v496_v49 = vor.u32 %v589_v44, %v495_v43  ;;  %v476_v50 = vor.u32 %v582_v46, %v473_v47  ;;  %v114_v51 = vpack.c.b16 %v100_v45, %v100_v45  ;;  %v584_v53 = vld [vmem:[%s912_s0 + $0x34] sm:$0xf]  ;;  %v481_v54 = vld [vmem:[%s912_s0 + $0x38] sm:$0xf0]  ;;  %v836_v58 = vld [vmem:[%s913_s2] ss:$0 sm:$0xff] }
   0xf   :  { %271 = vmatpush.bf16.msra.mxu1 %v602_v7  ;;  %652 = vmatpush.bf16.msra.mxu3 %v602_v7  ;;  %v113_v55 = vpack.c.b16 %v99_v52, %v99_v52  ;;  %v484_v56 = vor.u32 %v584_v53, %v481_v54  ;;  %v841_v61 = vld [vmem:[%s914_s3] ss:$0 sm:$0xff] }
  0x12   :  { %229 = vmatpush.bf16.msra.mxu0 %v593_v8  ;;  %645 = vmatpush.bf16.msra.mxu2 %v593_v8 }
  0x13   :  { %272 = vmatpush.bf16.msra.mxu1 %v601_v9  ;;  %653 = vmatpush.bf16.msra.mxu3 %v601_v9 }
  0x16   :  { %230 = vmatpush.bf16.msra.mxu0 %v592_v10  ;;  %646 = vmatpush.bf16.msra.mxu2 %v592_v10 }
  0x17   :  { %273 = vmatpush.bf16.msra.mxu1 %v600_v11  ;;  %654 = vmatpush.bf16.msra.mxu3 %v600_v11 }
  0x1a   :  { %231 = vmatpush.bf16.msra.mxu0 %v591_v12  ;;  %647 = vmatpush.bf16.msra.mxu2 %v591_v12 }
  0x1b   :  { %274 = vmatpush.bf16.msra.mxu1 %v599_v13  ;;  %655 = vmatpush.bf16.msra.mxu3 %v599_v13 }
  0x1e   :  { %232 = vmatpush.bf16.msra.mxu0 %v590_v14  ;;  %648 = vmatpush.bf16.msra.mxu2 %v590_v14 }
  0x1f   :  { %275 = vmatpush.bf16.msra.mxu1 %v598_v15  ;;  %656 = vmatpush.bf16.msra.mxu3 %v598_v15 }
  0x21   :  { %233 = vmatmul.bf16.vlgmr.msra.gmra.mxu0 %v456_v24  ;;  %248 = vmatmul.bf16.vlgmr.msra.gmra.mxu2 %v480_v25 }
  0x22   :  { %276 = vmatmul.bf16.vlgmr.msra.gmra.mxu1 %v460_v26  ;;  %296 = vmatmul.bf16.vlgmr.msra.gmra.mxu3 %v492_v27 }
  0x31   :  { %238 = vmatmul.bf16.gmra.mxu0 %v464_v36  ;;  %253 = vmatmul.bf16.gmra.mxu2 %v488_v37 }
  0x32   :  { %281 = vmatmul.bf16.gmra.mxu1 %v468_v38  ;;  %301 = vmatmul.bf16.gmra.mxu3 %v500_v39 }
  0x41   :  { %243 = vmatmul.bf16.gmra.mxu0 %v472_v48  ;;  %258 = vmatmul.bf16.gmra.mxu2 %v496_v49 }
  0x42   :  { %286 = vmatmul.bf16.gmra.mxu1 %v476_v50  ;;  %306 = vmatmul.bf16.gmra.mxu3 %v114_v51 }
  0x51   :  { %263 = vmatmul.bf16.gmra.mxu2 %v113_v55 }
  0x52   :  { %291 = vmatmul.bf16.gmra.mxu1 %v484_v56 }
  0x9e   :  { %v234_v57 = vpop.f32.mrf.mxu0 }
  0x9f   :  { %v277_v59 = vpop.f32.mrf.mxu1 }
  0xa0   :  { %v278_v60 = vadd.f32 %v277_v59, %v234_v57 }
  0xa2   :  { %v315_v62 = vmul.f32 %v836_v58, %v278_v60 }
  0xa4   :  { %v332_v63 = vadd.f32 %v841_v61, %v315_v62  ;;  %v845_v0 = vpop.f32.mrf.mxu2 }
  0xa5   :  { %v297_v1 = vpop.f32.mrf.mxu3 }
  0xa6   :  { %v358_v2 = vmin.f32 %v332_v63, 0.0  ;;  %v236_v3 = vpop.f32.mrf.mxu0  ;;  %vm345_vm0 = vcmp.gt.f32.partialorder %v332_v63, 0.0 }
  0xa7   :  { %v279_v4 = vpop.f32.mrf.mxu1 }
  0xa8   :  { %v280_v5 = vadd.f32 %v279_v4, %v236_v3  ;;  %v371_v6 = vmul.f32 1.442695, %v358_v2 }
  0xaa   :  { %v316_v7 = vmul.f32 %v836_v58, %v280_v5  ;;  %659 = vpow2.f32 %v371_v6 }
  0xac   :  { %v333_v8 = vadd.f32 %v841_v61, %v316_v7  ;;  %v849_v9 = vpop.f32.mrf.mxu2 }
  0xad   :  { %v299_v10 = vpop.f32.mrf.mxu3 }
  0xae   :  { %v359_v11 = vmin.f32 %v333_v8, 0.0  ;;  %v239_v12 = vpop.f32.mrf.mxu0  ;;  %vm346_vm1 = vcmp.gt.f32.partialorder %v333_v8, 0.0 }
  0xaf   :  { %v282_v13 = vpop.f32.mrf.mxu1 }
  0xb0   :  { %v373_v14 = vmul.f32 1.442695, %v359_v11  ;;  %v283_v15 = vadd.f32 %v282_v13, %v239_v12  ;;  %v660_v17 = vpop.eup %659 }
  0xb1   :  { %v565_v24 = vadd.f32 -1.0, %v660_v17 }
  0xb2   :  { %661 = vpow2.f32 %v373_v14  ;;  %v317_v16 = vmul.f32 %v836_v58, %v283_v15 }
  0xb3   :  { %v410_v33 = vsel %vm345_vm0, %v332_v63, %v565_v24 }
  0xb4   :  { %v334_v18 = vadd.f32 %v841_v61, %v317_v16  ;;  %v254_v19 = vpop.f32.mrf.mxu2 }
  0xb5   :  { %v298_v20 = vadd.f32 %v297_v1, %v254_v19  ;;  %v302_v21 = vpop.f32.mrf.mxu3 }
  0xb6   :  { %v360_v22 = vmin.f32 %v334_v18, 0.0  ;;  %v241_v23 = vpop.f32.mrf.mxu0  ;;  %vm347_vm2 = vcmp.gt.f32.partialorder %v334_v18, 0.0 }
  0xb7   :  { %v323_v25 = vmul.f32 %v836_v58, %v298_v20  ;;  %v284_v26 = vpop.f32.mrf.mxu1 }
  0xb8   :  { %v662_v27 = vpop.eup %661  ;;  %v285_v28 = vadd.f32 %v284_v26, %v241_v23  ;;  %v375_v31 = vmul.f32 1.442695, %v360_v22 }
  0xb9   :  { %v566_v29 = vadd.f32 -1.0, %v662_v27  ;;  %v855_v30 = vadd.f32 %v841_v61, %v323_v25 }
  0xba   :  { %v318_v32 = vmul.f32 %v836_v58, %v285_v28  ;;  %663 = vpow2.f32 %v375_v31 }
  0xbb   :  { %v411_v34 = vsel %vm346_vm1, %v333_v8, %v566_v29  ;;  %v366_v35 = vmin.f32 %v855_v30, 0.0  ;;  %vm353_vm4 = vcmp.gt.f32.partialorder %v855_v30, 0.0 }
  0xbc   :  { %v609_v36 = vpack.c.bf16 %v411_v34, %v410_v33  ;;  %v335_v37 = vadd.f32 %v841_v61, %v318_v32  ;;  %v256_v38 = vpop.f32.mrf.mxu2 }
  0xbd   :  { %v300_v39 = vadd.f32 %v299_v10, %v256_v38  ;;  %v304_v40 = vpop.f32.mrf.mxu3  ;;  %v387_v43 = vmul.f32 1.442695, %v366_v35 }
  0xbe   :  { %610 = vst [vmem:[%s915_s4] sm:$0xff] %v609_v36   ;;  %v361_v41 = vmin.f32 %v335_v37, 0.0  ;;  %v244_v42 = vpop.f32.mrf.mxu0  ;;  %vm348_vm3 = vcmp.gt.f32.partialorder %v335_v37, 0.0 }
  0xbf   :  { %v324_v44 = vmul.f32 %v836_v58, %v300_v39  ;;  %v287_v45 = vpop.f32.mrf.mxu1 }
  0xc0   :  { %v377_v46 = vmul.f32 1.442695, %v361_v41  ;;  %v288_v47 = vadd.f32 %v287_v45, %v244_v42  ;;  %v664_v51 = vpop.eup %663 }
  0xc1   :  { %v341_v48 = vadd.f32 %v841_v61, %v324_v44  ;;  %v567_v60 = vadd.f32 -1.0, %v664_v51 }
  0xc2   :  { %665 = vpow2.f32 %v377_v46  ;;  %v319_v49 = vmul.f32 %v836_v58, %v288_v47 }
  0xc3   :  { %667 = vpow2.f32 %v387_v43  ;;  %v367_v50 = vmin.f32 %v341_v48, 0.0  ;;  %v412_v8 = vsel %vm347_vm2, %v334_v18, %v567_v60  ;;  %vm354_vm5 = vcmp.gt.f32.partialorder %v341_v48, 0.0 }
  0xc4   :  { %v867_v52 = vadd.f32 %v841_v61, %v319_v49  ;;  %v259_v53 = vpop.f32.mrf.mxu2 }
  0xc5   :  { %v389_v54 = vmul.f32 1.442695, %v367_v50  ;;  %v303_v55 = vadd.f32 %v302_v21, %v259_v53  ;;  %v307_v56 = vpop.f32.mrf.mxu3 }
  0xc6   :  { %v362_v57 = vmin.f32 %v867_v52, 0.0  ;;  %v246_v59 = vpop.f32.mrf.mxu0  ;;  %vm349_vm6 = vcmp.gt.f32.partialorder %v867_v52, 0.0 }
  0xc7   :  { %669 = vpow2.f32 %v389_v54  ;;  %v325_v62 = vmul.f32 %v836_v58, %v303_v55  ;;  %v289_v63 = vpop.f32.mrf.mxu1 }
  0xc8   :  { %v666_v1 = vpop.eup %665  ;;  %v290_v2 = vadd.f32 %v289_v63, %v246_v59  ;;  %v379_v6 = vmul.f32 1.442695, %v362_v57 }
  0xc9   :  { %v668_v3 = vpop.eup %667  ;;  %v568_v4 = vadd.f32 -1.0, %v666_v1  ;;  %v872_v5 = vadd.f32 %v841_v61, %v325_v62 }
  0xca   :  { %v320_v7 = vmul.f32 %v836_v58, %v290_v2  ;;  %v573_v12 = vadd.f32 -1.0, %v668_v3  ;;  %671 = vpow2.f32 %v379_v6 }
  0xcb   :  { %v413_v10 = vsel %vm348_vm3, %v335_v37, %v568_v4  ;;  %v368_v11 = vmin.f32 %v872_v5, 0.0  ;;  %vm355_vm8 = vcmp.gt.f32.partialorder %v872_v5, 0.0 }
  0xcc   :  { %v614_v13 = vpack.c.bf16 %v413_v10, %v412_v8  ;;  %v337_v14 = vadd.f32 %v841_v61, %v320_v7  ;;  %v261_v15 = vpop.f32.mrf.mxu2  ;;  %v418_v24 = vsel %vm353_vm4, %v855_v30, %v573_v12 }
  0xcd   :  { %v670_v16 = vpop.eup %669  ;;  %v305_v17 = vadd.f32 %v304_v40, %v261_v15  ;;  %v309_v19 = vpop.f32.mrf.mxu3  ;;  %v391_v18 = vmul.f32 1.442695, %v368_v11 }
  0xce   :  { %636 = vst [vmem:[%s915_s4 + $0x8] sm:$0xff] %v614_v13   ;;  %v574_v20 = vadd.f32 -1.0, %v670_v16  ;;  %v363_v21 = vmin.f32 %v337_v14, 0.0  ;;  %vm350_vm7 = vcmp.gt.f32.partialorder %v337_v14, 0.0 }
  0xcf   :  { %v326_v22 = vmul.f32 %v836_v58, %v305_v17  ;;  %v292_v23 = vpop.f32.mrf.mxu1 }
  0xd0   :  { %v419_v25 = vsel %vm354_vm5, %v341_v48, %v574_v20  ;;  %v381_v26 = vmul.f32 1.442695, %v363_v21  ;;  %v293_v27 = vadd.f32 %v292_v23, %v845_v0  ;;  %v672_v33 = vpop.eup %671 }
  0xd1   :  { %v629_v28 = vpack.c.bf16 %v419_v25, %v418_v24  ;;  %v343_v29 = vadd.f32 %v841_v61, %v326_v22  ;;  %v569_v0 = vadd.f32 -1.0, %v672_v33 }
  0xd2   :  { %673 = vpow2.f32 %v381_v26  ;;  %v321_v31 = vmul.f32 %v836_v58, %v293_v27 }
  0xd3   :  { %639 = vst [vmem:[%s915_s4 + $0x20] sm:$0xff] %v629_v28   ;;  %675 = vpow2.f32 %v391_v18  ;;  %v369_v32 = vmin.f32 %v343_v29, 0.0  ;;  %v414_v47 = vsel %vm349_vm6, %v867_v52, %v569_v0  ;;  %vm356_vm9 = vcmp.gt.f32.partialorder %v343_v29, 0.0 }
  0xd4   :  { %v338_v34 = vadd.f32 %v841_v61, %v321_v31  ;;  %v264_v30 = vpop.f32.mrf.mxu2 }
  0xd5   :  { %v393_v35 = vmul.f32 1.442695, %v369_v32  ;;  %v308_v36 = vadd.f32 %v307_v56, %v264_v30 }
  0xd6   :  { %v364_v37 = vmin.f32 %v338_v34, 0.0  ;;  %vm351_vm11 = vcmp.gt.f32.partialorder %v338_v34, 0.0 }
  0xd7   :  { %677 = vpow2.f32 %v393_v35  ;;  %v327_v38 = vmul.f32 %v836_v58, %v308_v36  ;;  %v294_v39 = vpop.f32.mrf.mxu1 }
  0xd8   :  { %v674_v40 = vpop.eup %673  ;;  %v295_v41 = vadd.f32 %v294_v39, %v849_v9  ;;  %v383_v45 = vmul.f32 1.442695, %v364_v37 }
  0xd9   :  { %v676_v42 = vpop.eup %675  ;;  %v570_v43 = vadd.f32 -1.0, %v674_v40  ;;  %v344_v44 = vadd.f32 %v841_v61, %v327_v38 }
  0xda   :  { %v322_v46 = vmul.f32 %v836_v58, %v295_v41  ;;  %v575_v50 = vadd.f32 -1.0, %v676_v42  ;;  %679 = vpow2.f32 %v383_v45 }
  0xdb   :  { %v415_v48 = vsel %vm350_vm7, %v337_v14, %v570_v43  ;;  %v370_v49 = vmin.f32 %v344_v44, 0.0  ;;  %vm357_vm10 = vcmp.gt.f32.partialorder %v344_v44, 0.0 }
  0xdc   :  { %v619_v51 = vpack.c.bf16 %v415_v48, %v414_v47  ;;  %v339_v53 = vadd.f32 %v841_v61, %v322_v46  ;;  %v266_v54 = vpop.f32.mrf.mxu2  ;;  %v420_v58 = vsel %vm355_vm8, %v872_v5, %v575_v50 }
  0xdd   :  { %v678_v9 = vpop.eup %677  ;;  %v395_v55 = vmul.f32 1.442695, %v370_v49 }
  0xde   :  { %637 = vst [vmem:[%s915_s4 + $0x10] sm:$0xff] %v619_v51   ;;  %v576_v56 = vadd.f32 -1.0, %v678_v9  ;;  %v365_v57 = vmin.f32 %v339_v53, 0.0  ;;  %vm352_vm12 = vcmp.gt.f32.partialorder %v339_v53, 0.0 }
  0xdf   :  { %681 = vpow2.f32 %v395_v55 }
  0xe0   :  { %v421_v52 = vsel %vm356_vm9, %v343_v29, %v576_v56  ;;  %v385_v59 = vmul.f32 1.442695, %v365_v57  ;;  %v680_v61 = vpop.eup %679 }
  0xe1   :  { %v634_v60 = vpack.c.bf16 %v421_v52, %v420_v58  ;;  %v571_v1 = vadd.f32 -1.0, %v680_v61 }
  0xe2   :  { %683 = vpow2.f32 %v385_v59 }
  0xe3   :  { %640 = vst [vmem:[%s915_s4 + $0x28] sm:$0xff] %v634_v60   ;;  %v416_v5 = vsel %vm351_vm11, %v338_v34, %v571_v1 }
  0xe5   :  { %v682_v62 = vpop.eup %681 }
  0xe6   :  { %v577_v63 = vadd.f32 -1.0, %v682_v62 }
  0xe8   :  { %v684_v2 = vpop.eup %683  ;;  %v422_v3 = vsel %vm357_vm10, %v344_v44, %v577_v63 }
  0xe9   :  { %v435_v4 = vpack.c.bf16 %v422_v3, %v422_v3  ;;  %v572_v6 = vadd.f32 -1.0, %v684_v2 }
  0xeb   :  { %448 = vst [vmem:[%s915_s4 + $0x30] sm:$0x1] %v435_v4  ;;  %v417_v7 = vsel %vm352_vm12, %v339_v53, %v572_v6 }
  0xec   :  { %v624_v8 = vpack.c.bf16 %v417_v7, %v416_v5 }
  0xee   :  { %638 = vst [vmem:[%s915_s4 + $0x18] sm:$0xff] %v624_v8  }

// kernel: cnn_vae_forward.7
= control target key start
LH: loop header
LB: loop body
LE: loop exit
PB: predicated region body
PF: predicated region fallthrough
CT: control target
= control target key end

     0   :  { %14 = vsyncpa [#allocation3], 0  ;;  %s11739_s0 = inlined_call_operand.vmem [shape: bf16[2,3136], index: 0, kind: input, shape index: {}]   ;;  %s11740_s1 = inlined_call_operand.vmem [shape: bf16[3136,256], index: 1, kind: input, shape index: {}]   ;;  %s11741_s2 = inlined_call_operand.vmem [shape: f32[1,256], index: 2, kind: input, shape index: {}]   ;;  %s11742_s3 = inlined_call_operand.vmem [shape: f32[2,128], index: 3, kind: input, shape index: {}]   ;;  %s11743_s4 = inlined_call_operand.vmem [shape: bf16[128,3136], index: 4, kind: input, shape index: {}]   ;;  %s11744_s5 = inlined_call_operand.vmem [shape: f32[1,3136], index: 5, kind: input, shape index: {}]   ;;  %s11745_s6 = inlined_call_operand.hbm [shape: f32[2,128], index: 6, kind: output, shape index: {0}]   ;;  %s11746_s7 = inlined_call_operand.hbm [shape: f32[2,128], index: 7, kind: output, shape index: {1}]   ;;  %s11747_s8 = inlined_call_operand.vmem [shape: bf16[2,3136], index: 8, kind: output, shape index: {2}]  }
   0x1   :  { %v4915_v0 = vld [vmem:[%s11740_s1 + $0x70] sm:$0xf]  ;;  %v7242_v1 = vld [vmem:[%s11740_s1 + $0x74] sm:$0xf0]  ;;  %v4907_v11 = vld [vmem:[%s11740_s1 + $0x60] sm:$0xf] }
   0x2   :  { %v4979_v2 = vld [vmem:[%s11740_s1 + $0xf0] sm:$0xf]  ;;  %v4916_v3 = vor.u32 %v7242_v1, %v4915_v0  ;;  %v7258_v4 = vld [vmem:[%s11740_s1 + $0xf4] sm:$0xf0]  ;;  %v7240_v13 = vld [vmem:[%s11740_s1 + $0x64] sm:$0xf0] }
   0x3   :  { %v5043_v5 = vld [vmem:[%s11740_s1 + $0x170] sm:$0xf]  ;;  %v7274_v6 = vld [vmem:[%s11740_s1 + $0x174] sm:$0xf0]  ;;  %v4980_v7 = vor.u32 %v7258_v4, %v4979_v2  ;;  %v4971_v14 = vld [vmem:[%s11740_s1 + $0xe0] sm:$0xf]  ;;  %v4908_v16 = vor.u32 %v7240_v13, %v4907_v11 }
   0x4   :  { %v5044_v8 = vor.u32 %v7274_v6, %v5043_v5  ;;  %v5107_v9 = vld [vmem:[%s11740_s1 + $0x1f0] sm:$0xf]  ;;  %v7290_v10 = vld [vmem:[%s11740_s1 + $0x1f4] sm:$0xf0]  ;;  %2451 = vmatpush.bf16.msra.mxu0 %v4916_v3  ;;  %v7256_v15 = vld [vmem:[%s11740_s1 + $0xe4] sm:$0xf0] }
   0x5   :  { %v5108_v12 = vor.u32 %v7290_v10, %v5107_v9  ;;  %2464 = vmatpush.bf16.msra.mxu1 %v4980_v7  ;;  %v4972_v17 = vor.u32 %v7256_v15, %v4971_v14  ;;  %v5035_v18 = vld [vmem:[%s11740_s1 + $0x160] sm:$0xf]  ;;  %v7272_v19 = vld [vmem:[%s11740_s1 + $0x164] sm:$0xf0]  ;;  %v4899_v23 = vld [vmem:[%s11740_s1 + $0x50] sm:$0xf] }
   0x6   :  { %2477 = vmatpush.bf16.msra.mxu2 %v5044_v8  ;;  %v5099_v20 = vld [vmem:[%s11740_s1 + $0x1e0] sm:$0xf]  ;;  %v5036_v21 = vor.u32 %v7272_v19, %v5035_v18  ;;  %v7288_v22 = vld [vmem:[%s11740_s1 + $0x1e4] sm:$0xf0]  ;;  %v7238_v24 = vld [vmem:[%s11740_s1 + $0x54] sm:$0xf0] }
   0x7   :  { %2490 = vmatpush.bf16.msra.mxu3 %v5108_v12  ;;  %v5100_v25 = vor.u32 %v7288_v22, %v5099_v20  ;;  %v4963_v26 = vld [vmem:[%s11740_s1 + $0xd0] sm:$0xf]  ;;  %v7254_v27 = vld [vmem:[%s11740_s1 + $0xd4] sm:$0xf0]  ;;  %v4900_v29 = vor.u32 %v7238_v24, %v4899_v23  ;;  %v4891_v35 = vld [vmem:[%s11740_s1 + $0x40] sm:$0xf] }
   0x8   :  { %v5027_v28 = vld [vmem:[%s11740_s1 + $0x150] sm:$0xf]  ;;  %2452 = vmatpush.bf16.msra.mxu0 %v4908_v16  ;;  %v7270_v30 = vld [vmem:[%s11740_s1 + $0x154] sm:$0xf0]  ;;  %v4964_v33 = vor.u32 %v7254_v27, %v4963_v26  ;;  %v7236_v36 = vld [vmem:[%s11740_s1 + $0x44] sm:$0xf0] }
   0x9   :  { %v5091_v31 = vld [vmem:[%s11740_s1 + $0x1d0] sm:$0xf]  ;;  %v7286_v32 = vld [vmem:[%s11740_s1 + $0x1d4] sm:$0xf0]  ;;  %2465 = vmatpush.bf16.msra.mxu1 %v4972_v17  ;;  %v5028_v34 = vor.u32 %v7270_v30, %v5027_v28  ;;  %v4955_v37 = vld [vmem:[%s11740_s1 + $0xc0] sm:$0xf]  ;;  %v4892_v44 = vor.u32 %v7236_v36, %v4891_v35 }
   0xa   :  { %2478 = vmatpush.bf16.msra.mxu2 %v5036_v21  ;;  %v5092_v38 = vor.u32 %v7286_v32, %v5091_v31  ;;  %v7252_v39 = vld [vmem:[%s11740_s1 + $0xc4] sm:$0xf0]  ;;  %v5019_v40 = vld [vmem:[%s11740_s1 + $0x140] sm:$0xf]  ;;  %v4883_v47 = vld [vmem:[%s11740_s1 + $0x30] sm:$0xf] }
   0xb   :  { %2491 = vmatpush.bf16.msra.mxu3 %v5100_v25  ;;  %v7268_v41 = vld [vmem:[%s11740_s1 + $0x144] sm:$0xf0]  ;;  %v5083_v42 = vld [vmem:[%s11740_s1 + $0x1c0] sm:$0xf]  ;;  %v4956_v45 = vor.u32 %v7252_v39, %v4955_v37  ;;  %v7234_v48 = vld [vmem:[%s11740_s1 + $0x34] sm:$0xf0] }
   0xc   :  { %v7284_v43 = vld [vmem:[%s11740_s1 + $0x1c4] sm:$0xf0]  ;;  %2453 = vmatpush.bf16.msra.mxu0 %v4900_v29  ;;  %v5020_v46 = vor.u32 %v7268_v41, %v5019_v40  ;;  %v4947_v49 = vld [vmem:[%s11740_s1 + $0xb0] sm:$0xf]  ;;  %v7250_v51 = vld [vmem:[%s11740_s1 + $0xb4] sm:$0xf0]  ;;  %v4884_v56 = vor.u32 %v7234_v48, %v4883_v47 }
   0xd   :  { %2466 = vmatpush.bf16.msra.mxu1 %v4964_v33  ;;  %v5084_v50 = vor.u32 %v7284_v43, %v5083_v42  ;;  %v5011_v52 = vld [vmem:[%s11740_s1 + $0x130] sm:$0xf]  ;;  %v7266_v53 = vld [vmem:[%s11740_s1 + $0x134] sm:$0xf0]  ;;  %v4948_v57 = vor.u32 %v7250_v51, %v4947_v49  ;;  %v4875_v59 = vld [vmem:[%s11740_s1 + $0x20] sm:$0xf] }
   0xe   :  { %2479 = vmatpush.bf16.msra.mxu2 %v5028_v34  ;;  %v5075_v54 = vld [vmem:[%s11740_s1 + $0x1b0] sm:$0xf]  ;;  %v7282_v55 = vld [vmem:[%s11740_s1 + $0x1b4] sm:$0xf0]  ;;  %v5012_v58 = vor.u32 %v7266_v53, %v5011_v52  ;;  %v7232_v60 = vld [vmem:[%s11740_s1 + $0x24] sm:$0xf0] }
   0xf   :  { %2492 = vmatpush.bf16.msra.mxu3 %v5092_v38  ;;  %v4939_v61 = vld [vmem:[%s11740_s1 + $0xa0] sm:$0xf]  ;;  %v5076_v62 = vor.u32 %v7282_v55, %v5075_v54  ;;  %v7248_v63 = vld [vmem:[%s11740_s1 + $0xa4] sm:$0xf0]  ;;  %v4876_v4 = vor.u32 %v7232_v60, %v4875_v59  ;;  %v4867_v7 = vld [vmem:[%s11740_s1 + $0x10] sm:$0xf] }
  0x10   :  { %2454 = vmatpush.bf16.msra.mxu0 %v4892_v44  ;;  %v5003_v0 = vld [vmem:[%s11740_s1 + $0x120] sm:$0xf]  ;;  %v7264_v1 = vld [vmem:[%s11740_s1 + $0x124] sm:$0xf0]  ;;  %v4940_v5 = vor.u32 %v7248_v63, %v4939_v61  ;;  %v7230_v8 = vld [vmem:[%s11740_s1 + $0x14] sm:$0xf0] }
  0x11   :  { %2467 = vmatpush.bf16.msra.mxu1 %v4956_v45  ;;  %v5067_v2 = vld [vmem:[%s11740_s1 + $0x1a0] sm:$0xf]  ;;  %v7280_v3 = vld [vmem:[%s11740_s1 + $0x1a4] sm:$0xf0]  ;;  %v5004_v6 = vor.u32 %v7264_v1, %v5003_v0  ;;  %v4931_v9 = vld [vmem:[%s11740_s1 + $0x90] sm:$0xf]  ;;  %v4868_v16 = vor.u32 %v7230_v8, %v4867_v7 }
  0x12   :  { %2480 = vmatpush.bf16.msra.mxu2 %v5020_v46  ;;  %v5068_v10 = vor.u32 %v7280_v3, %v5067_v2  ;;  %v7246_v11 = vld [vmem:[%s11740_s1 + $0x94] sm:$0xf0]  ;;  %v4995_v12 = vld [vmem:[%s11740_s1 + $0x110] sm:$0xf]  ;;  %v4859_v17 = vld [vmem:[%s11740_s1] sm:$0xf] }
  0x13   :  { %2493 = vmatpush.bf16.msra.mxu3 %v5084_v50  ;;  %v7262_v13 = vld [vmem:[%s11740_s1 + $0x114] sm:$0xf0]  ;;  %v5059_v14 = vld [vmem:[%s11740_s1 + $0x190] sm:$0xf]  ;;  %v7228_v18 = vld [vmem:[%s11740_s1 + $0x4] sm:$0xf0]  ;;  %v4932_v19 = vor.u32 %v7246_v11, %v4931_v9 }
  0x14   :  { %2455 = vmatpush.bf16.msra.mxu0 %v4884_v56  ;;  %v7278_v15 = vld [vmem:[%s11740_s1 + $0x194] sm:$0xf0]  ;;  %v4996_v20 = vor.u32 %v7262_v13, %v4995_v12  ;;  %v4923_v21 = vld [vmem:[%s11740_s1 + $0x80] sm:$0xf]  ;;  %v7244_v22 = vld [vmem:[%s11740_s1 + $0x84] sm:$0xf0]  ;;  %v4860_v31 = vor.u32 %v7228_v18, %v4859_v17 }
  0x15   :  { %2468 = vmatpush.bf16.msra.mxu1 %v4948_v57  ;;  %v4987_v23 = vld [vmem:[%s11740_s1 + $0x100] sm:$0xf]  ;;  %v5060_v24 = vor.u32 %v7278_v15, %v5059_v14  ;;  %v7260_v25 = vld [vmem:[%s11740_s1 + $0x104] sm:$0xf0]  ;;  %v5171_v28 = vld [vmem:[%s11740_s1 + $0x270] sm:$0xf]  ;;  %v4924_v35 = vor.u32 %v7244_v22, %v4923_v21 }
  0x16   :  { %2481 = vmatpush.bf16.msra.mxu2 %v5012_v58  ;;  %v5051_v26 = vld [vmem:[%s11740_s1 + $0x180] sm:$0xf]  ;;  %v7276_v27 = vld [vmem:[%s11740_s1 + $0x184] sm:$0xf0]  ;;  %v7306_v29 = vld [vmem:[%s11740_s1 + $0x274] sm:$0xf0]  ;;  %v4988_v36 = vor.u32 %v7260_v25, %v4987_v23 }
  0x17   :  { %2494 = vmatpush.bf16.msra.mxu3 %v5076_v62  ;;  %v5235_v30 = vld [vmem:[%s11740_s1 + $0x2f0] sm:$0xf]  ;;  %v7322_v32 = vld [vmem:[%s11740_s1 + $0x2f4] sm:$0xf0]  ;;  %v5052_v39 = vor.u32 %v7276_v27, %v5051_v26  ;;  %v5172_v40 = vor.u32 %v7306_v29, %v5171_v28  ;;  %v5163_v43 = vld [vmem:[%s11740_s1 + $0x260] sm:$0xf] }
  0x18   :  { %2456 = vmatpush.bf16.msra.mxu0 %v4876_v4  ;;  %v5299_v33 = vld [vmem:[%s11740_s1 + $0x370] sm:$0xf]  ;;  %v7338_v34 = vld [vmem:[%s11740_s1 + $0x374] sm:$0xf0]  ;;  %v5236_v41 = vor.u32 %v7322_v32, %v5235_v30  ;;  %v7304_v44 = vld [vmem:[%s11740_s1 + $0x264] sm:$0xf0] }
  0x19   :  { %2469 = vmatpush.bf16.msra.mxu1 %v4940_v5  ;;  %v5363_v37 = vld [vmem:[%s11740_s1 + $0x3f0] sm:$0xf]  ;;  %v7354_v38 = vld [vmem:[%s11740_s1 + $0x3f4] sm:$0xf0]  ;;  %v5300_v42 = vor.u32 %v7338_v34, %v5299_v33  ;;  %v5227_v45 = vld [vmem:[%s11740_s1 + $0x2e0] sm:$0xf]  ;;  %v5164_v52 = vor.u32 %v7304_v44, %v5163_v43 }
  0x1a   :  { %2482 = vmatpush.bf16.msra.mxu2 %v5004_v6  ;;  %v5364_v46 = vor.u32 %v7354_v38, %v5363_v37  ;;  %v7320_v47 = vld [vmem:[%s11740_s1 + $0x2e4] sm:$0xf0]  ;;  %v5291_v48 = vld [vmem:[%s11740_s1 + $0x360] sm:$0xf]  ;;  %v5155_v53 = vld [vmem:[%s11740_s1 + $0x250] sm:$0xf] }
  0x1b   :  { %2495 = vmatpush.bf16.msra.mxu3 %v5068_v10  ;;  %v7336_v49 = vld [vmem:[%s11740_s1 + $0x364] sm:$0xf0]  ;;  %v5355_v50 = vld [vmem:[%s11740_s1 + $0x3e0] sm:$0xf]  ;;  %v7302_v54 = vld [vmem:[%s11740_s1 + $0x254] sm:$0xf0]  ;;  %v5228_v55 = vor.u32 %v7320_v47, %v5227_v45 }
  0x1c   :  { %2457 = vmatpush.bf16.msra.mxu0 %v4868_v16  ;;  %v7352_v51 = vld [vmem:[%s11740_s1 + $0x3e4] sm:$0xf0]  ;;  %v5292_v56 = vor.u32 %v7336_v49, %v5291_v48  ;;  %v5219_v57 = vld [vmem:[%s11740_s1 + $0x2d0] sm:$0xf]  ;;  %v7318_v58 = vld [vmem:[%s11740_s1 + $0x2d4] sm:$0xf0]  ;;  %v5156_v1 = vor.u32 %v7302_v54, %v5155_v53 }
  0x1d   :  { %2470 = vmatpush.bf16.msra.mxu1 %v4932_v19  ;;  %v29_v59 = vld [vmem:[%s11739_s0] sm:$0xff]  ;;  %v5356_v60 = vor.u32 %v7352_v51, %v5355_v50  ;;  %v5283_v61 = vld [vmem:[%s11740_s1 + $0x350] sm:$0xf]  ;;  %v7334_v62 = vld [vmem:[%s11740_s1 + $0x354] sm:$0xf0]  ;;  %v5220_v2 = vor.u32 %v7318_v58, %v5219_v57 }
  0x1e   :  { %2483 = vmatpush.bf16.msra.mxu2 %v4996_v20  ;;  %432 = vst [vmem:[#allocation1] ss:$9 sm:$0xff] %v29_v59  ;;  %v5347_v63 = vld [vmem:[%s11740_s1 + $0x3d0] sm:$0xf]  ;;  %v7350_v0 = vld [vmem:[%s11740_s1 + $0x3d4] sm:$0xf0]  ;;  %v5284_v3 = vor.u32 %v7334_v62, %v5283_v61 }
  0x1f   :  { %2496 = vmatpush.bf16.msra.mxu3 %v5060_v24  ;;  %v5147_v4 = vld [vmem:[%s11740_s1 + $0x240] sm:$0xf]  ;;  %v7300_v5 = vld [vmem:[%s11740_s1 + $0x244] sm:$0xf0]  ;;  %v5348_v7 = vor.u32 %v7350_v0, %v5347_v63  ;;  %v5139_v13 = vld [vmem:[%s11740_s1 + $0x230] sm:$0xf] }
  0x20   :  { %2458 = vmatpush.bf16.msra.mxu0 %v4860_v31  ;;  %v5211_v6 = vld [vmem:[%s11740_s1 + $0x2c0] sm:$0xf]  ;;  %v7316_v8 = vld [vmem:[%s11740_s1 + $0x2c4] sm:$0xf0]  ;;  %v5148_v14 = vor.u32 %v7300_v5, %v5147_v4  ;;  %v7298_v15 = vld [vmem:[%s11740_s1 + $0x234] sm:$0xf0] }
  0x21   :  { %2471 = vmatpush.bf16.msra.mxu1 %v4924_v35  ;;  %v5275_v9 = vld [vmem:[%s11740_s1 + $0x340] sm:$0xf]  ;;  %v7332_v10 = vld [vmem:[%s11740_s1 + $0x344] sm:$0xf0]  ;;  %v5203_v16 = vld [vmem:[%s11740_s1 + $0x2b0] sm:$0xf]  ;;  %v5212_v18 = vor.u32 %v7316_v8, %v5211_v6  ;;  %v5140_v29 = vor.u32 %v7298_v15, %v5139_v13 }
  0x22   :  { %2484 = vmatpush.bf16.msra.mxu2 %v4988_v36  ;;  %v5339_v11 = vld [vmem:[%s11740_s1 + $0x3c0] sm:$0xf]  ;;  %v7348_v12 = vld [vmem:[%s11740_s1 + $0x3c4] sm:$0xf0]  ;;  %v7314_v17 = vld [vmem:[%s11740_s1 + $0x2b4] sm:$0xf0]  ;;  %v5276_v19 = vor.u32 %v7332_v10, %v5275_v9 }
  0x23   :  { %2497 = vmatpush.bf16.msra.mxu3 %v5052_v39  ;;  %v5340_v23 = vor.u32 %v7348_v12, %v5339_v11  ;;  %v5267_v24 = vld [vmem:[%s11740_s1 + $0x330] sm:$0xf]  ;;  %v7330_v25 = vld [vmem:[%s11740_s1 + $0x334] sm:$0xf0]  ;;  %v5131_v30 = vld [vmem:[%s11740_s1 + $0x220] sm:$0xf]  ;;  %v5204_v31 = vor.u32 %v7314_v17, %v5203_v16 }
  0x24   :  { %2503 = vmatpush.bf16.msrb.mxu0 %v5172_v40  ;;  %v5331_v27 = vld [vmem:[%s11740_s1 + $0x3b0] sm:$0xf]  ;;  %v7346_v28 = vld [vmem:[%s11740_s1 + $0x3b4] sm:$0xf0]  ;;  %v5268_v32 = vor.u32 %v7330_v25, %v5267_v24  ;;  %v7296_v33 = vld [vmem:[%s11740_s1 + $0x224] sm:$0xf0] }
  0x25   :  { %2516 = vmatpush.bf16.msrb.mxu1 %v5236_v41  ;;  %v8228_v20 = vld [vmem:[#allocation1 + $0x12] sm:$0xff]  ;;  %v8230_v21 = vld [vmem:[#allocation1] sm:$0xff]  ;;  %v8241_v26 = vld [vmem:[#allocation1 + $0x9] sm:$0xff]  ;;  %v5332_v36 = vor.u32 %v7346_v28, %v5331_v27  ;;  %v5132_v43 = vor.u32 %v7296_v33, %v5131_v30 }
  0x26   :  { %2529 = vmatpush.bf16.msrb.mxu2 %v5300_v42  ;;  %v8232_v22 = vld [vmem:[#allocation1 + $0x1b] sm:$0xff]  ;;  %2459 = vmatmul.bf16.vlgmr.msra.gmra.mxu0 %v8230_v21  ;;  %v7312_v35 = vld [vmem:[%s11740_s1 + $0x2a4] sm:$0xf0]  ;;  %v5123_v41 = vld [vmem:[%s11740_s1 + $0x210] sm:$0xf] }
  0x27   :  { %2542 = vmatpush.bf16.msrb.mxu3 %v5364_v46  ;;  %2485 = vmatmul.bf16.vlgmr.msra.gmra.mxu2 %v8228_v20  ;;  %v5195_v34 = vld [vmem:[%s11740_s1 + $0x2a0] sm:$0xf]  ;;  %v7328_v38 = vld [vmem:[%s11740_s1 + $0x324] sm:$0xf0]  ;;  %v7294_v42 = vld [vmem:[%s11740_s1 + $0x214] sm:$0xf0] }
  0x28   :  { %2504 = vmatpush.bf16.msrb.mxu0 %v5164_v52  ;;  %2498 = vmatmul.bf16.vlgmr.msra.gmra.mxu3 %v8232_v22  ;;  %v5259_v37 = vld [vmem:[%s11740_s1 + $0x320] sm:$0xf]  ;;  %v7344_v40 = vld [vmem:[%s11740_s1 + $0x3a4] sm:$0xf0]  ;;  %v5187_v44 = vld [vmem:[%s11740_s1 + $0x290] sm:$0xf]  ;;  %v5196_v47 = vor.u32 %v7312_v35, %v5195_v34  ;;  %v5124_v58 = vor.u32 %v7294_v42, %v5123_v41 }
  0x29   :  { %2517 = vmatpush.bf16.msrb.mxu1 %v5228_v55  ;;  %v5323_v39 = vld [vmem:[%s11740_s1 + $0x3a0] sm:$0xf]  ;;  %v7310_v45 = vld [vmem:[%s11740_s1 + $0x294] sm:$0xf0]  ;;  %v5251_v46 = vld [vmem:[%s11740_s1 + $0x310] sm:$0xf]  ;;  %v5260_v48 = vor.u32 %v7328_v38, %v5259_v37 }
  0x2a   :  { %2530 = vmatpush.bf16.msrb.mxu2 %v5292_v56  ;;  %2472 = vmatmul.bf16.vlgmr.msra.gmra.mxu1 %v8241_v26  ;;  %v7326_v49 = vld [vmem:[%s11740_s1 + $0x314] sm:$0xf0]  ;;  %v8296_v51 = vld [vmem:[#allocation1 + $0x24] sm:$0xff]  ;;  %v5324_v52 = vor.u32 %v7344_v40, %v5323_v39  ;;  %v8303_v55 = vld [vmem:[#allocation1 + $0x2d] sm:$0xff]  ;;  %v5188_v61 = vor.u32 %v7310_v45, %v5187_v44 }
  0x2b   :  { %2543 = vmatpush.bf16.msrb.mxu3 %v5356_v60  ;;  %v8294_v50 = vld [vmem:[#allocation1 + $0x36] sm:$0xff]  ;;  %v8298_v53 = vld [vmem:[#allocation1 + $0x3f] sm:$0xff]  ;;  %v30_v54 = vld [vmem:[%s11739_s0 + $0x8] sm:$0xff]  ;;  %v5252_v62 = vor.u32 %v7326_v49, %v5251_v46 }
  0x2c   :  { %2505 = vmatpush.bf16.msrb.mxu0 %v5156_v1  ;;  %v5315_v56 = vld [vmem:[%s11740_s1 + $0x390] sm:$0xf]  ;;  %v7342_v57 = vld [vmem:[%s11740_s1 + $0x394] sm:$0xf0]  ;;  %442 = vst [vmem:[#allocation1] ss:$9 sm:$0xff] %v30_v54 }
  0x2d   :  { %2518 = vmatpush.bf16.msrb.mxu1 %v5220_v2  ;;  %v5115_v59 = vld [vmem:[%s11740_s1 + $0x200] sm:$0xf]  ;;  %v7292_v60 = vld [vmem:[%s11740_s1 + $0x204] sm:$0xf0]  ;;  %v5316_v2 = vor.u32 %v7342_v57, %v5315_v56  ;;  %v5427_v6 = vld [vmem:[%s11740_s1 + $0x470] sm:$0xf] }
  0x2e   :  { %2531 = vmatpush.bf16.msrb.mxu2 %v5284_v3  ;;  %v5179_v63 = vld [vmem:[%s11740_s1 + $0x280] sm:$0xf]  ;;  %v7308_v0 = vld [vmem:[%s11740_s1 + $0x284] sm:$0xf0]  ;;  %v5491_v8 = vld [vmem:[%s11740_s1 + $0x4f0] sm:$0xf]  ;;  %v5116_v9 = vor.u32 %v7292_v60, %v5115_v59 }
  0x2f   :  { %2544 = vmatpush.bf16.msrb.mxu3 %v5348_v7  ;;  %v5243_v1 = vld [vmem:[%s11740_s1 + $0x300] sm:$0xf]  ;;  %v7324_v3 = vld [vmem:[%s11740_s1 + $0x304] sm:$0xf0]  ;;  %v7370_v7 = vld [vmem:[%s11740_s1 + $0x474] sm:$0xf0]  ;;  %v5180_v13 = vor.u32 %v7308_v0, %v5179_v63 }
  0x30   :  { %2506 = vmatpush.bf16.msrb.mxu0 %v5148_v14  ;;  %v5307_v4 = vld [vmem:[%s11740_s1 + $0x380] sm:$0xf]  ;;  %v7340_v5 = vld [vmem:[%s11740_s1 + $0x384] sm:$0xf0]  ;;  %v7386_v10 = vld [vmem:[%s11740_s1 + $0x4f4] sm:$0xf0]  ;;  %v5244_v14 = vor.u32 %v7324_v3, %v5243_v1 }
  0x31   :  { %2519 = vmatpush.bf16.msrb.mxu1 %v5212_v18  ;;  %v5555_v11 = vld [vmem:[%s11740_s1 + $0x570] sm:$0xf]  ;;  %v7402_v12 = vld [vmem:[%s11740_s1 + $0x574] sm:$0xf0]  ;;  %v5308_v17 = vor.u32 %v7340_v5, %v5307_v4  ;;  %v5428_v18 = vor.u32 %v7370_v7, %v5427_v6  ;;  %v5419_v24 = vld [vmem:[%s11740_s1 + $0x460] sm:$0xf] }
  0x32   :  { %2532 = vmatpush.bf16.msrb.mxu2 %v5276_v19  ;;  %v5619_v15 = vld [vmem:[%s11740_s1 + $0x5f0] sm:$0xf]  ;;  %v7418_v16 = vld [vmem:[%s11740_s1 + $0x5f4] sm:$0xf0]  ;;  %v5492_v19 = vor.u32 %v7386_v10, %v5491_v8  ;;  %v7368_v25 = vld [vmem:[%s11740_s1 + $0x464] sm:$0xf0] }
  0x33   :  { %2545 = vmatpush.bf16.msrb.mxu3 %v5340_v23  ;;  %v5556_v23 = vor.u32 %v7402_v12, %v5555_v11  ;;  %v5483_v27 = vld [vmem:[%s11740_s1 + $0x4e0] sm:$0xf]  ;;  %v5620_v28 = vor.u32 %v7418_v16, %v5619_v15  ;;  %v7416_v33 = vld [vmem:[%s11740_s1 + $0x5e4] sm:$0xf0]  ;;  %v5420_v34 = vor.u32 %v7368_v25, %v5419_v24  ;;  %v5411_v37 = vld [vmem:[%s11740_s1 + $0x450] sm:$0xf] }
  0x34   :  { %2507 = vmatpush.bf16.msrb.mxu0 %v5140_v29  ;;  %v7384_v29 = vld [vmem:[%s11740_s1 + $0x4e4] sm:$0xf0]  ;;  %v5547_v30 = vld [vmem:[%s11740_s1 + $0x560] sm:$0xf]  ;;  %v7366_v38 = vld [vmem:[%s11740_s1 + $0x454] sm:$0xf0] }
  0x35   :  { %2520 = vmatpush.bf16.msrb.mxu1 %v5204_v31  ;;  %v7400_v31 = vld [vmem:[%s11740_s1 + $0x564] sm:$0xf0]  ;;  %v5484_v35 = vor.u32 %v7384_v29, %v5483_v27  ;;  %v5475_v39 = vld [vmem:[%s11740_s1 + $0x4d0] sm:$0xf]  ;;  %v7382_v41 = vld [vmem:[%s11740_s1 + $0x4d4] sm:$0xf0]  ;;  %v5412_v46 = vor.u32 %v7366_v38, %v5411_v37 }
  0x36   :  { %2533 = vmatpush.bf16.msrb.mxu2 %v5268_v32  ;;  %v5611_v32 = vld [vmem:[%s11740_s1 + $0x5e0] sm:$0xf]  ;;  %v5539_v42 = vld [vmem:[%s11740_s1 + $0x550] sm:$0xf]  ;;  %v7414_v45 = vld [vmem:[%s11740_s1 + $0x5d4] sm:$0xf0] }
  0x37   :  { %2546 = vmatpush.bf16.msrb.mxu3 %v5332_v36  ;;  %v5548_v36 = vor.u32 %v7400_v31, %v5547_v30  ;;  %v5612_v40 = vor.u32 %v7416_v33, %v5611_v32  ;;  %v5603_v44 = vld [vmem:[%s11740_s1 + $0x5d0] sm:$0xf]  ;;  %v5403_v49 = vld [vmem:[%s11740_s1 + $0x440] sm:$0xf]  ;;  %v7380_v57 = vld [vmem:[%s11740_s1 + $0x4c4] sm:$0xf0] }
  0x38   :  { %2508 = vmatpush.bf16.msrb.mxu0 %v5132_v43  ;;  %v7398_v43 = vld [vmem:[%s11740_s1 + $0x554] sm:$0xf0]  ;;  %v5467_v54 = vld [vmem:[%s11740_s1 + $0x4c0] sm:$0xf]  ;;  %v5604_v56 = vor.u32 %v7414_v45, %v5603_v44  ;;  %v7396_v59 = vld [vmem:[%s11740_s1 + $0x544] sm:$0xf0] }
  0x39   :  { %2521 = vmatpush.bf16.msrb.mxu1 %v5196_v47  ;;  %v5476_v47 = vor.u32 %v7382_v41, %v5475_v39  ;;  %v5595_v60 = vld [vmem:[%s11740_s1 + $0x5c0] sm:$0xf]  ;;  %v5468_v63 = vor.u32 %v7380_v57, %v5467_v54  ;;  %v5395_v1 = vld [vmem:[%s11740_s1 + $0x430] sm:$0xf]  ;;  %v7378_v5 = vld [vmem:[%s11740_s1 + $0x4b4] sm:$0xf0] }
  0x3a   :  { %2534 = vmatpush.bf16.msrb.mxu2 %v5260_v48  ;;  %v5540_v48 = vor.u32 %v7398_v43, %v5539_v42  ;;  %v5459_v3 = vld [vmem:[%s11740_s1 + $0x4b0] sm:$0xf]  ;;  %v7394_v7 = vld [vmem:[%s11740_s1 + $0x534] sm:$0xf0]  ;;  %v5451_v15 = vld [vmem:[%s11740_s1 + $0x4a0] sm:$0xf] }
  0x3b   :  { %2547 = vmatpush.bf16.msrb.mxu3 %v5324_v52  ;;  %v7364_v52 = vld [vmem:[%s11740_s1 + $0x444] sm:$0xf0]  ;;  %v5523_v6 = vld [vmem:[%s11740_s1 + $0x530] sm:$0xf]  ;;  %v5460_v11 = vor.u32 %v7378_v5, %v5459_v3  ;;  %v7358_v30 = vld [vmem:[%s11740_s1 + $0x414] sm:$0xf0] }
  0x3c   :  { %2509 = vmatpush.bf16.msrb.mxu0 %v5124_v58  ;;  %v5531_v58 = vld [vmem:[%s11740_s1 + $0x540] sm:$0xf]  ;;  %v5587_v8 = vld [vmem:[%s11740_s1 + $0x5b0] sm:$0xf]  ;;  %v5524_v12 = vor.u32 %v7394_v7, %v5523_v6  ;;  %v7408_v24 = vld [vmem:[%s11740_s1 + $0x5a4] sm:$0xf0] }
  0x3d   :  { %2522 = vmatpush.bf16.msrb.mxu1 %v5188_v61  ;;  %v7412_v61 = vld [vmem:[%s11740_s1 + $0x5c4] sm:$0xf0]  ;;  %v5532_v0 = vor.u32 %v7396_v59, %v5531_v58  ;;  %v5379_v29 = vld [vmem:[%s11740_s1 + $0x410] sm:$0xf]  ;;  %v7374_v33 = vld [vmem:[%s11740_s1 + $0x494] sm:$0xf0] }
  0x3e   :  { %2535 = vmatpush.bf16.msrb.mxu2 %v5252_v62  ;;  %v5404_v62 = vor.u32 %v7364_v52, %v5403_v49  ;;  %v5596_v4 = vor.u32 %v7412_v61, %v5595_v60  ;;  %v5443_v31 = vld [vmem:[%s11740_s1 + $0x490] sm:$0xf]  ;;  %v7406_v37 = vld [vmem:[%s11740_s1 + $0x594] sm:$0xf0]  ;;  %v5380_v38 = vor.u32 %v7358_v30, %v5379_v29  ;;  %v5371_v39 = vld [vmem:[%s11740_s1 + $0x400] sm:$0xf] }
  0x3f   :  { %2548 = vmatpush.bf16.msrb.mxu3 %v5316_v2  ;;  %v7362_v2 = vld [vmem:[%s11740_s1 + $0x434] sm:$0xf0]  ;;  %v5444_v41 = vor.u32 %v7374_v33, %v5443_v31  ;;  %v5435_v43 = vld [vmem:[%s11740_s1 + $0x480] sm:$0xf]  ;;  %v7372_v44 = vld [vmem:[%s11740_s1 + $0x484] sm:$0xf0] }
  0x40   :  { %2510 = vmatpush.bf16.msrb.mxu0 %v5116_v9  ;;  %v7410_v9 = vld [vmem:[%s11740_s1 + $0x5b4] sm:$0xf0]  ;;  %v5396_v10 = vor.u32 %v7362_v2, %v5395_v1  ;;  %v5499_v45 = vld [vmem:[%s11740_s1 + $0x500] sm:$0xf]  ;;  %v7404_v49 = vld [vmem:[%s11740_s1 + $0x584] sm:$0xf0]  ;;  %v5436_v61 = vor.u32 %v7372_v44, %v5435_v43 }
  0x41   :  { %2523 = vmatpush.bf16.msrb.mxu1 %v5180_v13  ;;  %v5387_v13 = vld [vmem:[%s11740_s1 + $0x420] sm:$0xf]  ;;  %v5588_v16 = vor.u32 %v7410_v9, %v5587_v8  ;;  %v5683_v52 = vld [vmem:[%s11740_s1 + $0x670] sm:$0xf]  ;;  %v7434_v54 = vld [vmem:[%s11740_s1 + $0x674] sm:$0xf0] }
  0x42   :  { %2536 = vmatpush.bf16.msrb.mxu2 %v5244_v14  ;;  %v7360_v14 = vld [vmem:[%s11740_s1 + $0x424] sm:$0xf0]  ;;  %v7450_v58 = vld [vmem:[%s11740_s1 + $0x6f4] sm:$0xf0]  ;;  %v5811_v59 = vld [vmem:[%s11740_s1 + $0x770] sm:$0xf]  ;;  %v5684_v2 = vor.u32 %v7434_v54, %v5683_v52 }
  0x43   :  { %2549 = vmatpush.bf16.msrb.mxu3 %v5308_v17  ;;  %2511 = vmatmul.bf16.vlgmr.msrb.gmra.mxu0 %v8296_v51  ;;  %v7376_v17 = vld [vmem:[%s11740_s1 + $0x4a4] sm:$0xf0]  ;;  %v5388_v25 = vor.u32 %v7360_v14, %v5387_v13  ;;  %v7466_v60 = vld [vmem:[%s11740_s1 + $0x774] sm:$0xf0]  ;;  %v5675_v5 = vld [vmem:[%s11740_s1 + $0x660] sm:$0xf] }
  0x44   :  { %2555 = vmatpush.bf16.msra.mxu0 %v5428_v18  ;;  %2524 = vmatmul.bf16.vlgmr.msrb.gmra.mxu1 %v8303_v55  ;;  %v5515_v18 = vld [vmem:[%s11740_s1 + $0x520] sm:$0xf]  ;;  %v5452_v27 = vor.u32 %v7376_v17, %v5451_v15  ;;  %v7432_v6 = vld [vmem:[%s11740_s1 + $0x664] sm:$0xf0]  ;;  %v8581_v15 = vld [vmem:[#allocation1 + $0x12] sm:$0xff] }
  0x45   :  { %2568 = vmatpush.bf16.msra.mxu1 %v5492_v19  ;;  %2537 = vmatmul.bf16.vlgmr.msrb.gmra.mxu2 %v8294_v50  ;;  %v7392_v19 = vld [vmem:[%s11740_s1 + $0x524] sm:$0xf0]  ;;  %v5739_v7 = vld [vmem:[%s11740_s1 + $0x6e0] sm:$0xf]  ;;  %v7446_v29 = vld [vmem:[%s11740_s1 + $0x6d4] sm:$0xf0] }
  0x46   :  { %2581 = vmatpush.bf16.msra.mxu2 %v5556_v23  ;;  %2550 = vmatmul.bf16.vlgmr.msrb.gmra.mxu3 %v8298_v53  ;;  %v5579_v23 = vld [vmem:[%s11740_s1 + $0x5a0] sm:$0xf]  ;;  %v7448_v9 = vld [vmem:[%s11740_s1 + $0x6e4] sm:$0xf0]  ;;  %v5795_v30 = vld [vmem:[%s11740_s1 + $0x750] sm:$0xf] }
  0x47   :  { %2594 = vmatpush.bf16.msra.mxu3 %v5620_v28  ;;  %v5516_v28 = vor.u32 %v7392_v19, %v5515_v18  ;;  %v5580_v32 = vor.u32 %v7408_v24, %v5579_v23  ;;  %v5867_v13 = vld [vmem:[%s11740_s1 + $0x7e0] sm:$0xf]  ;;  %v7480_v14 = vld [vmem:[%s11740_s1 + $0x7e4] sm:$0xf0]  ;;  %v5676_v18 = vor.u32 %v7432_v6, %v5675_v5  ;;  %v5740_v19 = vor.u32 %v7448_v9, %v5739_v7  ;;  %v5667_v24 = vld [vmem:[%s11740_s1 + $0x650] sm:$0xf] }
  0x48   :  { %2556 = vmatpush.bf16.msra.mxu0 %v5420_v34  ;;  %v5507_v34 = vld [vmem:[%s11740_s1 + $0x510] sm:$0xf]  ;;  %v8585_v17 = vld [vmem:[#allocation1 + $0x1b] sm:$0xff]  ;;  %v7460_v43 = vld [vmem:[%s11740_s1 + $0x744] sm:$0xf0] }
  0x49   :  { %2569 = vmatpush.bf16.msra.mxu1 %v5484_v35  ;;  %v7390_v35 = vld [vmem:[%s11740_s1 + $0x514] sm:$0xf0]  ;;  %v5851_v44 = vld [vmem:[%s11740_s1 + $0x7c0] sm:$0xf] }
  0x4a   :  { %2582 = vmatpush.bf16.msra.mxu2 %v5548_v36  ;;  %v5571_v36 = vld [vmem:[%s11740_s1 + $0x590] sm:$0xf]  ;;  %v5508_v42 = vor.u32 %v7390_v35, %v5507_v34  ;;  %v7462_v31 = vld [vmem:[%s11740_s1 + $0x754] sm:$0xf0]  ;;  %v5659_v35 = vld [vmem:[%s11740_s1 + $0x640] sm:$0xf] }
  0x4b   :  { %2595 = vmatpush.bf16.msra.mxu3 %v5612_v40  ;;  %v7356_v40 = vld [vmem:[%s11740_s1 + $0x404] sm:$0xf0]  ;;  %v7478_v33 = vld [vmem:[%s11740_s1 + $0x7d4] sm:$0xf0] }
  0x4c   :  { %2557 = vmatpush.bf16.msra.mxu0 %v5412_v46  ;;  %v5572_v46 = vor.u32 %v7406_v37, %v5571_v36  ;;  %v5372_v57 = vor.u32 %v7356_v40, %v5371_v39  ;;  %v5796_v37 = vor.u32 %v7462_v31, %v5795_v30  ;;  %v5723_v39 = vld [vmem:[%s11740_s1 + $0x6c0] sm:$0xf]  ;;  %v7444_v40 = vld [vmem:[%s11740_s1 + $0x6c4] sm:$0xf0] }
  0x4d   :  { %2570 = vmatpush.bf16.msra.mxu1 %v5476_v47  ;;  %v7388_v47 = vld [vmem:[%s11740_s1 + $0x504] sm:$0xf0] }
  0x4e   :  { %2583 = vmatpush.bf16.msra.mxu2 %v5540_v48  ;;  %v5563_v48 = vld [vmem:[%s11740_s1 + $0x580] sm:$0xf] }
  0x4f   :  { %2596 = vmatpush.bf16.msra.mxu3 %v5604_v56  ;;  %v5747_v56 = vld [vmem:[%s11740_s1 + $0x6f0] sm:$0xf]  ;;  %v5564_v1 = vor.u32 %v7404_v49, %v5563_v48 }
  0x50   :  { %2558 = vmatpush.bf16.msra.mxu0 %v5404_v62  ;;  %v5500_v62 = vor.u32 %v7388_v47, %v5499_v45  ;;  %v5748_v3 = vor.u32 %v7450_v58, %v5747_v56  ;;  %v7476_v45 = vld [vmem:[%s11740_s1 + $0x7c4] sm:$0xf0] }
  0x51   :  { %2571 = vmatpush.bf16.msra.mxu1 %v5468_v63  ;;  %v5875_v63 = vld [vmem:[%s11740_s1 + $0x7f0] sm:$0xf] }
  0x52   :  { %2584 = vmatpush.bf16.msra.mxu2 %v5532_v0  ;;  %v7482_v0 = vld [vmem:[%s11740_s1 + $0x7f4] sm:$0xf0] }
  0x53   :  { %2597 = vmatpush.bf16.msra.mxu3 %v5596_v4  ;;  %v5812_v4 = vor.u32 %v7466_v60, %v5811_v59  ;;  %v5876_v8 = vor.u32 %v7482_v0, %v5875_v63 }
  0x54   :  { %2559 = vmatpush.bf16.msra.mxu0 %v5396_v10  ;;  %v5803_v10 = vld [vmem:[%s11740_s1 + $0x760] sm:$0xf] }
  0x55   :  { %2572 = vmatpush.bf16.msra.mxu1 %v5460_v11  ;;  %v7464_v11 = vld [vmem:[%s11740_s1 + $0x764] sm:$0xf0] }
  0x56   :  { %2585 = vmatpush.bf16.msra.mxu2 %v5524_v12  ;;  %v8573_v12 = vld [vmem:[#allocation1] sm:$0xff]  ;;  %v5804_v23 = vor.u32 %v7464_v11, %v5803_v10 }
  0x57   :  { %2598 = vmatpush.bf16.msra.mxu3 %v5588_v16  ;;  %v8583_v16 = vld [vmem:[#allocation1 + $0x9] sm:$0xff] }
  0x58   :  { %2560 = vmatpush.bf16.msra.mxu0 %v5388_v25  ;;  %v7430_v25 = vld [vmem:[%s11740_s1 + $0x654] sm:$0xf0] }
  0x59   :  { %2573 = vmatpush.bf16.msra.mxu1 %v5452_v27  ;;  %v5731_v27 = vld [vmem:[%s11740_s1 + $0x6d0] sm:$0xf]  ;;  %v5668_v34 = vor.u32 %v7430_v25, %v5667_v24 }
  0x5a   :  { %2586 = vmatpush.bf16.msra.mxu2 %v5516_v28  ;;  %v5868_v28 = vor.u32 %v7480_v14, %v5867_v13  ;;  %v5732_v36 = vor.u32 %v7446_v29, %v5731_v27 }
  0x5b   :  { %2599 = vmatpush.bf16.msra.mxu3 %v5580_v32  ;;  %v5859_v32 = vld [vmem:[%s11740_s1 + $0x7d0] sm:$0xf] }
  0x5c   :  { %2561 = vmatpush.bf16.msra.mxu0 %v5380_v38  ;;  %v7428_v38 = vld [vmem:[%s11740_s1 + $0x644] sm:$0xf0] }
  0x5d   :  { %2574 = vmatpush.bf16.msra.mxu1 %v5444_v41  ;;  %v5860_v41 = vor.u32 %v7478_v33, %v5859_v32 }
  0x5e   :  { %2587 = vmatpush.bf16.msra.mxu2 %v5508_v42  ;;  %v5787_v42 = vld [vmem:[%s11740_s1 + $0x740] sm:$0xf] }
  0x5f   :  { %2600 = vmatpush.bf16.msra.mxu3 %v5572_v46 }
  0x60   :  { %2562 = vmatpush.bf16.msra.mxu0 %v5372_v57 }
  0x61   :  { %2575 = vmatpush.bf16.msra.mxu1 %v5436_v61 }
  0x62   :  { %2588 = vmatpush.bf16.msra.mxu2 %v5500_v62 }
  0x63   :  { %2601 = vmatpush.bf16.msra.mxu3 %v5564_v1  ;;  %2563 = vmatmul.bf16.vlgmr.msra.gmra.mxu0 %v8573_v12 }
  0x64   :  { %2607 = vmatpush.bf16.msrb.mxu0 %v5684_v2  ;;  %2576 = vmatmul.bf16.vlgmr.msra.gmra.mxu1 %v8583_v16 }
  0x65   :  { %2620 = vmatpush.bf16.msrb.mxu1 %v5748_v3  ;;  %2589 = vmatmul.bf16.vlgmr.msra.gmra.mxu2 %v8581_v15 }
  0x66   :  { %2633 = vmatpush.bf16.msrb.mxu2 %v5812_v4  ;;  %2602 = vmatmul.bf16.vlgmr.msra.gmra.mxu3 %v8585_v17 }
  0x67   :  { %2646 = vmatpush.bf16.msrb.mxu3 %v5876_v8 }
  0x68   :  { %2608 = vmatpush.bf16.msrb.mxu0 %v5676_v18 }
  0x69   :  { %2621 = vmatpush.bf16.msrb.mxu1 %v5740_v19 }
  0x6a   :  { %2634 = vmatpush.bf16.msrb.mxu2 %v5804_v23 }
  0x6b   :  { %2647 = vmatpush.bf16.msrb.mxu3 %v5868_v28 }
  0x6c   :  { %15 = vsyncpa [#allocation5], 0  ;;  %2609 = vmatpush.bf16.msrb.mxu0 %v5668_v34  ;;  %v5660_v46 = vor.u32 %v7428_v38, %v5659_v35  ;;  %v5724_v47 = vor.u32 %v7444_v40, %v5723_v39  ;;  %v5788_v48 = vor.u32 %v7460_v43, %v5787_v42  ;;  %v5651_v49 = vld [vmem:[%s11740_s1 + $0x630] sm:$0xf]  ;;  %v7426_v52 = vld [vmem:[%s11740_s1 + $0x634] sm:$0xf0]  ;;  %v5852_v56 = vor.u32 %v7476_v45, %v5851_v44 }
  0x6d   :  { %2622 = vmatpush.bf16.msrb.mxu1 %v5732_v36  ;;  %v5715_v54 = vld [vmem:[%s11740_s1 + $0x6b0] sm:$0xf]  ;;  %v7442_v57 = vld [vmem:[%s11740_s1 + $0x6b4] sm:$0xf0]  ;;  %v5652_v62 = vor.u32 %v7426_v52, %v5651_v49  ;;  %v5643_v1 = vld [vmem:[%s11740_s1 + $0x620] sm:$0xf] }
  0x6e   :  { %2635 = vmatpush.bf16.msrb.mxu2 %v5796_v37  ;;  %v5779_v58 = vld [vmem:[%s11740_s1 + $0x730] sm:$0xf]  ;;  %v7458_v59 = vld [vmem:[%s11740_s1 + $0x734] sm:$0xf0]  ;;  %v5716_v63 = vor.u32 %v7442_v57, %v5715_v54  ;;  %v7424_v2 = vld [vmem:[%s11740_s1 + $0x624] sm:$0xf0] }
  0x6f   :  { %2648 = vmatpush.bf16.msrb.mxu3 %v5860_v41  ;;  %v5843_v60 = vld [vmem:[%s11740_s1 + $0x7b0] sm:$0xf]  ;;  %v7474_v61 = vld [vmem:[%s11740_s1 + $0x7b4] sm:$0xf0]  ;;  %v5780_v0 = vor.u32 %v7458_v59, %v5779_v58  ;;  %v5707_v3 = vld [vmem:[%s11740_s1 + $0x6a0] sm:$0xf]  ;;  %v5644_v10 = vor.u32 %v7424_v2, %v5643_v1 }
  0x70   :  { %2610 = vmatpush.bf16.msrb.mxu0 %v5660_v46  ;;  %v5844_v4 = vor.u32 %v7474_v61, %v5843_v60  ;;  %v7440_v5 = vld [vmem:[%s11740_s1 + $0x6a4] sm:$0xf0]  ;;  %v5771_v6 = vld [vmem:[%s11740_s1 + $0x720] sm:$0xf]  ;;  %v5635_v11 = vld [vmem:[%s11740_s1 + $0x610] sm:$0xf] }
  0x71   :  { %2623 = vmatpush.bf16.msrb.mxu1 %v5724_v47  ;;  %v7456_v7 = vld [vmem:[%s11740_s1 + $0x724] sm:$0xf0]  ;;  %v5835_v8 = vld [vmem:[%s11740_s1 + $0x7a0] sm:$0xf]  ;;  %v5708_v13 = vor.u32 %v7440_v5, %v5707_v3  ;;  %v7422_v18 = vld [vmem:[%s11740_s1 + $0x614] sm:$0xf0] }
  0x72   :  { %2636 = vmatpush.bf16.msrb.mxu2 %v5788_v48  ;;  %v7472_v9 = vld [vmem:[%s11740_s1 + $0x7a4] sm:$0xf0]  ;;  %v5772_v14 = vor.u32 %v7456_v7, %v5771_v6  ;;  %v5699_v19 = vld [vmem:[%s11740_s1 + $0x690] sm:$0xf]  ;;  %v7438_v23 = vld [vmem:[%s11740_s1 + $0x694] sm:$0xf0]  ;;  %v5636_v32 = vor.u32 %v7422_v18, %v5635_v11 }
  0x73   :  { %2649 = vmatpush.bf16.msrb.mxu3 %v5852_v56  ;;  %v5836_v24 = vor.u32 %v7472_v9, %v5835_v8  ;;  %v5763_v25 = vld [vmem:[%s11740_s1 + $0x710] sm:$0xf]  ;;  %v7454_v27 = vld [vmem:[%s11740_s1 + $0x714] sm:$0xf0]  ;;  %v5627_v30 = vld [vmem:[%s11740_s1 + $0x600] sm:$0xf]  ;;  %v5700_v37 = vor.u32 %v7438_v23, %v5699_v19 }
  0x74   :  { %2611 = vmatpush.bf16.msrb.mxu0 %v5652_v62  ;;  %v5827_v28 = vld [vmem:[%s11740_s1 + $0x790] sm:$0xf]  ;;  %v7470_v29 = vld [vmem:[%s11740_s1 + $0x794] sm:$0xf0]  ;;  %v7420_v31 = vld [vmem:[%s11740_s1 + $0x604] sm:$0xf0]  ;;  %v5764_v38 = vor.u32 %v7454_v27, %v5763_v25 }
  0x75   :  { %2624 = vmatpush.bf16.msrb.mxu1 %v5716_v63  ;;  %v5691_v33 = vld [vmem:[%s11740_s1 + $0x680] sm:$0xf]  ;;  %v7436_v34 = vld [vmem:[%s11740_s1 + $0x684] sm:$0xf0]  ;;  %v5939_v41 = vld [vmem:[%s11740_s1 + $0x870] sm:$0xf]  ;;  %v5828_v43 = vor.u32 %v7470_v29, %v5827_v28  ;;  %v5628_v54 = vor.u32 %v7420_v31, %v5627_v30 }
  0x76   :  { %2637 = vmatpush.bf16.msrb.mxu2 %v5780_v0  ;;  %v5755_v35 = vld [vmem:[%s11740_s1 + $0x700] sm:$0xf]  ;;  %v7452_v36 = vld [vmem:[%s11740_s1 + $0x704] sm:$0xf0]  ;;  %v7498_v42 = vld [vmem:[%s11740_s1 + $0x874] sm:$0xf0]  ;;  %v5692_v58 = vor.u32 %v7436_v34, %v5691_v33 }
  0x77   :  { %2650 = vmatpush.bf16.msrb.mxu3 %v5844_v4  ;;  %v5819_v39 = vld [vmem:[%s11740_s1 + $0x780] sm:$0xf]  ;;  %v7468_v40 = vld [vmem:[%s11740_s1 + $0x784] sm:$0xf0]  ;;  %v6003_v44 = vld [vmem:[%s11740_s1 + $0x8f0] sm:$0xf]  ;;  %v5756_v59 = vor.u32 %v7452_v36, %v5755_v35  ;;  %v5940_v63 = vor.u32 %v7498_v42, %v5939_v41 }
  0x78   :  { %2612 = vmatpush.bf16.msrb.mxu0 %v5644_v10  ;;  %v7514_v45 = vld [vmem:[%s11740_s1 + $0x8f4] sm:$0xf0]  ;;  %v8747_v46 = vld [vmem:[#allocation1 + $0x24] sm:$0xff]  ;;  %v8751_v48 = vld [vmem:[#allocation1 + $0x2d] sm:$0xff]  ;;  %v5820_v62 = vor.u32 %v7468_v40, %v5819_v39  ;;  %vm2448_vm0 = vcmask 523264   ;;  %vm4757_vm1 = vcmask 1040384  }
  0x79   :  { %2625 = vmatpush.bf16.msrb.mxu1 %v5708_v13  ;;  %v8749_v47 = vld [vmem:[#allocation1 + $0x36] sm:$0xff]  ;;  %v8753_v49 = vld [vmem:[#allocation1 + $0x3f] sm:$0xff]  ;;  %v6067_v56 = vld [vmem:[%s11740_s1 + $0x970] sm:$0xf]  ;;  %v6004_v0 = vor.u32 %v7514_v45, %v6003_v44  ;;  %vm4761_vm2 = vcmask 1042434   ;;  %vm4765_vm3 = vcmask 1041408  }
  0x7a   :  { %2638 = vmatpush.bf16.msrb.mxu2 %v5772_v14  ;;  %v31_v52 = vld [vmem:[%s11739_s0 + $0x10] sm:$0xff]  ;;  %v7530_v57 = vld [vmem:[%s11740_s1 + $0x974] sm:$0xf0]  ;;  %v5931_v2 = vld [vmem:[%s11740_s1 + $0x860] sm:$0xf]  ;;  %vm4771_vm4 = vcmask 1046534  }
  0x7b   :  { %2651 = vmatpush.bf16.msrb.mxu3 %v5836_v24  ;;  %452 = vst [vmem:[#allocation1] ss:$9 sm:$0xff] %v31_v52  ;;  %v6131_v60 = vld [vmem:[%s11740_s1 + $0x9f0] sm:$0xf]  ;;  %v7546_v61 = vld [vmem:[%s11740_s1 + $0x9f4] sm:$0xf0]  ;;  %v6068_v1 = vor.u32 %v7530_v57, %v6067_v56 }
  0x7c   :  { %2613 = vmatpush.bf16.msrb.mxu0 %v5636_v32  ;;  %v7496_v3 = vld [vmem:[%s11740_s1 + $0x864] sm:$0xf0]  ;;  %v5995_v4 = vld [vmem:[%s11740_s1 + $0x8e0] sm:$0xf]  ;;  %v6132_v5 = vor.u32 %v7546_v61, %v6131_v60  ;;  %v5923_v18 = vld [vmem:[%s11740_s1 + $0x850] sm:$0xf] }
  0x7d   :  { %2626 = vmatpush.bf16.msrb.mxu1 %v5700_v37  ;;  %v7512_v6 = vld [vmem:[%s11740_s1 + $0x8e4] sm:$0xf0]  ;;  %v6059_v7 = vld [vmem:[%s11740_s1 + $0x960] sm:$0xf]  ;;  %v5932_v11 = vor.u32 %v7496_v3, %v5931_v2  ;;  %v7494_v19 = vld [vmem:[%s11740_s1 + $0x854] sm:$0xf0] }
  0x7e   :  { %2639 = vmatpush.bf16.msrb.mxu2 %v5764_v38  ;;  %v7528_v8 = vld [vmem:[%s11740_s1 + $0x964] sm:$0xf0]  ;;  %v6123_v9 = vld [vmem:[%s11740_s1 + $0x9e0] sm:$0xf]  ;;  %v5996_v13 = vor.u32 %v7512_v6, %v5995_v4  ;;  %v5987_v23 = vld [vmem:[%s11740_s1 + $0x8d0] sm:$0xf]  ;;  %v5924_v31 = vor.u32 %v7494_v19, %v5923_v18 }
  0x7f   :  { %2652 = vmatpush.bf16.msrb.mxu3 %v5828_v43  ;;  %v7544_v10 = vld [vmem:[%s11740_s1 + $0x9e4] sm:$0xf0]  ;;  %v6060_v14 = vor.u32 %v7528_v8, %v6059_v7  ;;  %v7510_v25 = vld [vmem:[%s11740_s1 + $0x8d4] sm:$0xf0]  ;;  %v6051_v27 = vld [vmem:[%s11740_s1 + $0x950] sm:$0xf] }
  0x80   :  { %2614 = vmatpush.bf16.msrb.mxu0 %v5628_v54  ;;  %v6124_v24 = vor.u32 %v7544_v10, %v6123_v9  ;;  %v7526_v28 = vld [vmem:[%s11740_s1 + $0x954] sm:$0xf0]  ;;  %v6115_v29 = vld [vmem:[%s11740_s1 + $0x9d0] sm:$0xf]  ;;  %v5988_v32 = vor.u32 %v7510_v25, %v5987_v23  ;;  %v5915_v34 = vld [vmem:[%s11740_s1 + $0x840] sm:$0xf] }
  0x81   :  { %2627 = vmatpush.bf16.msrb.mxu1 %v5692_v58  ;;  %v7542_v30 = vld [vmem:[%s11740_s1 + $0x9d4] sm:$0xf0]  ;;  %v6052_v33 = vor.u32 %v7526_v28, %v6051_v27  ;;  %v7492_v35 = vld [vmem:[%s11740_s1 + $0x844] sm:$0xf0]  ;;  %v5979_v36 = vld [vmem:[%s11740_s1 + $0x8c0] sm:$0xf] }
  0x82   :  { %2640 = vmatpush.bf16.msrb.mxu2 %v5756_v59  ;;  %v6116_v37 = vor.u32 %v7542_v30, %v6115_v29  ;;  %v7508_v38 = vld [vmem:[%s11740_s1 + $0x8c4] sm:$0xf0]  ;;  %v6043_v39 = vld [vmem:[%s11740_s1 + $0x940] sm:$0xf]  ;;  %v5916_v43 = vor.u32 %v7492_v35, %v5915_v34  ;;  %v5907_v52 = vld [vmem:[%s11740_s1 + $0x830] sm:$0xf] }
  0x83   :  { %2653 = vmatpush.bf16.msrb.mxu3 %v5820_v62  ;;  %2615 = vmatmul.bf16.vlgmr.msrb.gmra.mxu0 %v8747_v46  ;;  %v7524_v40 = vld [vmem:[%s11740_s1 + $0x944] sm:$0xf0]  ;;  %v6107_v41 = vld [vmem:[%s11740_s1 + $0x9c0] sm:$0xf]  ;;  %v5980_v44 = vor.u32 %v7508_v38, %v5979_v36  ;;  %v7490_v54 = vld [vmem:[%s11740_s1 + $0x834] sm:$0xf0] }
  0x84   :  { %2659 = vmatpush.bf16.msra.mxu0 %v5940_v63  ;;  %2628 = vmatmul.bf16.vlgmr.msrb.gmra.mxu1 %v8751_v48  ;;  %v7540_v42 = vld [vmem:[%s11740_s1 + $0x9c4] sm:$0xf0]  ;;  %v6044_v45 = vor.u32 %v7524_v40, %v6043_v39  ;;  %v5971_v56 = vld [vmem:[%s11740_s1 + $0x8b0] sm:$0xf]  ;;  %v7506_v58 = vld [vmem:[%s11740_s1 + $0x8b4] sm:$0xf0]  ;;  %v5908_v63 = vor.u32 %v7490_v54, %v5907_v52 }
  0x85   :  { %2672 = vmatpush.bf16.msra.mxu1 %v6004_v0  ;;  %2641 = vmatmul.bf16.vlgmr.msrb.gmra.mxu2 %v8749_v47  ;;  %v6108_v57 = vor.u32 %v7540_v42, %v6107_v41  ;;  %v6035_v59 = vld [vmem:[%s11740_s1 + $0x930] sm:$0xf]  ;;  %v7522_v60 = vld [vmem:[%s11740_s1 + $0x934] sm:$0xf0]  ;;  %v5972_v0 = vor.u32 %v7506_v58, %v5971_v56  ;;  %v5899_v2 = vld [vmem:[%s11740_s1 + $0x820] sm:$0xf] }
  0x86   :  { %2685 = vmatpush.bf16.msra.mxu2 %v6068_v1  ;;  %2654 = vmatmul.bf16.vlgmr.msrb.gmra.mxu3 %v8753_v49  ;;  %v6099_v61 = vld [vmem:[%s11740_s1 + $0x9b0] sm:$0xf]  ;;  %v7538_v62 = vld [vmem:[%s11740_s1 + $0x9b4] sm:$0xf0]  ;;  %v6036_v1 = vor.u32 %v7522_v60, %v6035_v59  ;;  %v7488_v3 = vld [vmem:[%s11740_s1 + $0x824] sm:$0xf0] }
  0x87   :  { %2698 = vmatpush.bf16.msra.mxu3 %v6132_v5  ;;  %v5963_v4 = vld [vmem:[%s11740_s1 + $0x8a0] sm:$0xf]  ;;  %v6100_v5 = vor.u32 %v7538_v62, %v6099_v61  ;;  %v7504_v6 = vld [vmem:[%s11740_s1 + $0x8a4] sm:$0xf0]  ;;  %v5891_v18 = vld [vmem:[%s11740_s1 + $0x810] sm:$0xf] }
  0x88   :  { %2660 = vmatpush.bf16.msra.mxu0 %v5932_v11  ;;  %v6027_v7 = vld [vmem:[%s11740_s1 + $0x920] sm:$0xf]  ;;  %v7520_v8 = vld [vmem:[%s11740_s1 + $0x924] sm:$0xf0]  ;;  %v5900_v11 = vor.u32 %v7488_v3, %v5899_v2  ;;  %v7486_v19 = vld [vmem:[%s11740_s1 + $0x814] sm:$0xf0] }
  0x89   :  { %2673 = vmatpush.bf16.msra.mxu1 %v5996_v13  ;;  %v6091_v9 = vld [vmem:[%s11740_s1 + $0x9a0] sm:$0xf]  ;;  %v7536_v10 = vld [vmem:[%s11740_s1 + $0x9a4] sm:$0xf0]  ;;  %v5964_v13 = vor.u32 %v7504_v6, %v5963_v4  ;;  %v5955_v23 = vld [vmem:[%s11740_s1 + $0x890] sm:$0xf] }
  0x8a   :  { %2686 = vmatpush.bf16.msra.mxu2 %v6060_v14  ;;  %v6028_v14 = vor.u32 %v7520_v8, %v6027_v7  ;;  %v7502_v25 = vld [vmem:[%s11740_s1 + $0x894] sm:$0xf0]  ;;  %v6019_v27 = vld [vmem:[%s11740_s1 + $0x910] sm:$0xf]  ;;  %v5947_v36 = vld [vmem:[%s11740_s1 + $0x880] sm:$0xf] }
  0x8b   :  { %2699 = vmatpush.bf16.msra.mxu3 %v6124_v24  ;;  %v6092_v24 = vor.u32 %v7536_v10, %v6091_v9  ;;  %v7518_v28 = vld [vmem:[%s11740_s1 + $0x914] sm:$0xf0]  ;;  %v6083_v29 = vld [vmem:[%s11740_s1 + $0x990] sm:$0xf]  ;;  %v5956_v34 = vor.u32 %v7502_v25, %v5955_v23  ;;  %v6011_v38 = vld [vmem:[%s11740_s1 + $0x900] sm:$0xf] }
  0x8c   :  { %2661 = vmatpush.bf16.msra.mxu0 %v5924_v31  ;;  %v7534_v30 = vld [vmem:[%s11740_s1 + $0x994] sm:$0xf0]  ;;  %v5892_v31 = vor.u32 %v7486_v19, %v5891_v18  ;;  %v6020_v35 = vor.u32 %v7518_v28, %v6019_v27  ;;  %v7516_v40 = vld [vmem:[%s11740_s1 + $0x904] sm:$0xf0]  ;;  %v6075_v41 = vld [vmem:[%s11740_s1 + $0x980] sm:$0xf] }
  0x8d   :  { %2674 = vmatpush.bf16.msra.mxu1 %v5988_v32  ;;  %v5883_v32 = vld [vmem:[%s11740_s1 + $0x800] sm:$0xf]  ;;  %v6084_v39 = vor.u32 %v7534_v30, %v6083_v29  ;;  %v7532_v42 = vld [vmem:[%s11740_s1 + $0x984] sm:$0xf0]  ;;  %v7578_v54 = vld [vmem:[%s11740_s1 + $0xaf4] sm:$0xf0]  ;;  %v6012_v59 = vor.u32 %v7516_v40, %v6011_v38 }
  0x8e   :  { %2687 = vmatpush.bf16.msra.mxu2 %v6052_v33  ;;  %v7484_v33 = vld [vmem:[%s11740_s1 + $0x804] sm:$0xf0]  ;;  %v6323_v56 = vld [vmem:[%s11740_s1 + $0xb70] sm:$0xf]  ;;  %v7610_v61 = vld [vmem:[%s11740_s1 + $0xbf4] sm:$0xf0]  ;;  %v6076_v62 = vor.u32 %v7532_v42, %v6075_v41 }
  0x8f   :  { %2700 = vmatpush.bf16.msra.mxu3 %v6116_v37  ;;  %v7500_v37 = vld [vmem:[%s11740_s1 + $0x884] sm:$0xf0]  ;;  %v5884_v52 = vor.u32 %v7484_v33, %v5883_v32  ;;  %v6387_v60 = vld [vmem:[%s11740_s1 + $0xbf0] sm:$0xf]  ;;  %v6187_v2 = vld [vmem:[%s11740_s1 + $0xa60] sm:$0xf] }
  0x90   :  { %2662 = vmatpush.bf16.msra.mxu0 %v5916_v43  ;;  %v6195_v43 = vld [vmem:[%s11740_s1 + $0xa70] sm:$0xf]  ;;  %v5948_v58 = vor.u32 %v7500_v37, %v5947_v36  ;;  %v7560_v3 = vld [vmem:[%s11740_s1 + $0xa64] sm:$0xf0]  ;;  %v6251_v4 = vld [vmem:[%s11740_s1 + $0xae0] sm:$0xf] }
  0x91   :  { %2675 = vmatpush.bf16.msra.mxu1 %v5980_v44  ;;  %v7562_v44 = vld [vmem:[%s11740_s1 + $0xa74] sm:$0xf0]  ;;  %v7576_v6 = vld [vmem:[%s11740_s1 + $0xae4] sm:$0xf0]  ;;  %v6315_v7 = vld [vmem:[%s11740_s1 + $0xb60] sm:$0xf]  ;;  %v6188_v19 = vor.u32 %v7560_v3, %v6187_v2 }
  0x92   :  { %2688 = vmatpush.bf16.msra.mxu2 %v6044_v45  ;;  %v6259_v45 = vld [vmem:[%s11740_s1 + $0xaf0] sm:$0xf]  ;;  %v7592_v8 = vld [vmem:[%s11740_s1 + $0xb64] sm:$0xf0]  ;;  %v8984_v9 = vld [vmem:[#allocation1] sm:$0xff]  ;;  %v6252_v23 = vor.u32 %v7576_v6, %v6251_v4  ;;  %vm4767_vm5 = vcmask 1044484  }
  0x93   :  { %2701 = vmatpush.bf16.msra.mxu3 %v6108_v57  ;;  %v7594_v57 = vld [vmem:[%s11740_s1 + $0xb74] sm:$0xf0]  ;;  %v6379_v10 = vld [vmem:[%s11740_s1 + $0xbe0] sm:$0xf]  ;;  %v6179_v25 = vld [vmem:[%s11740_s1 + $0xa50] sm:$0xf] }
  0x94   :  { %2663 = vmatpush.bf16.msra.mxu0 %v5908_v63  ;;  %v6196_v63 = vor.u32 %v7562_v44, %v6195_v43  ;;  %v8996_v18 = vld [vmem:[#allocation1 + $0x1b] sm:$0xff]  ;;  %v6243_v28 = vld [vmem:[%s11740_s1 + $0xad0] sm:$0xf]  ;;  %v7572_v41 = vld [vmem:[%s11740_s1 + $0xac4] sm:$0xf0]  ;;  %vm4775_vm6 = vcmask 1045508  }
  0x95   :  { %2676 = vmatpush.bf16.msra.mxu1 %v5972_v0  ;;  %v6260_v0 = vor.u32 %v7578_v54, %v6259_v45  ;;  %v7558_v27 = vld [vmem:[%s11740_s1 + $0xa54] sm:$0xf0]  ;;  %v6371_v33 = vld [vmem:[%s11740_s1 + $0xbd0] sm:$0xf]  ;;  %v6171_v36 = vld [vmem:[%s11740_s1 + $0xa40] sm:$0xf] }
  0x96   :  { %2689 = vmatpush.bf16.msra.mxu2 %v6036_v1  ;;  %v6324_v1 = vor.u32 %v7594_v57, %v6323_v56  ;;  %v7574_v30 = vld [vmem:[%s11740_s1 + $0xad4] sm:$0xf0]  ;;  %v6235_v40 = vld [vmem:[%s11740_s1 + $0xac0] sm:$0xf]  ;;  %v7588_v44 = vld [vmem:[%s11740_s1 + $0xb44] sm:$0xf0] }
  0x97   :  { %2702 = vmatpush.bf16.msra.mxu3 %v6100_v5  ;;  %v6388_v5 = vor.u32 %v7610_v61, %v6387_v60  ;;  %v7590_v32 = vld [vmem:[%s11740_s1 + $0xb54] sm:$0xf0]  ;;  %v6244_v37 = vor.u32 %v7574_v30, %v6243_v28  ;;  %v6299_v43 = vld [vmem:[%s11740_s1 + $0xb40] sm:$0xf]  ;;  %v6163_v54 = vld [vmem:[%s11740_s1 + $0xa30] sm:$0xf]  ;;  %v6236_v61 = vor.u32 %v7572_v41, %v6235_v40 }
  0x98   :  { %2664 = vmatpush.bf16.msra.mxu0 %v5900_v11  ;;  %v7608_v11 = vld [vmem:[%s11740_s1 + $0xbe4] sm:$0xf0]  ;;  %v6363_v45 = vld [vmem:[%s11740_s1 + $0xbc0] sm:$0xf]  ;;  %v7554_v56 = vld [vmem:[%s11740_s1 + $0xa34] sm:$0xf0] }
  0x99   :  { %2677 = vmatpush.bf16.msra.mxu1 %v5964_v13  ;;  %v8992_v13 = vld [vmem:[#allocation1 + $0x12] sm:$0xff]  ;;  %v6380_v29 = vor.u32 %v7608_v11, %v6379_v10  ;;  %v425_v3 = vld [vmem:[%s11741_s2] sm:$0x3]  ;;  %v9077_v4 = vld [vmem:[#allocation1 + $0x24] sm:$0xff]  ;;  %v6164_v10 = vor.u32 %v7554_v56, %v6163_v54  ;;  %vm4777_vm7 = vcmask 1043456   ;;  %s7878_s11 = smov [#allocation2]  }
  0x9a   :  { %2690 = vmatpush.bf16.msra.mxu2 %v6028_v14  ;;  %v8994_v14 = vld [vmem:[#allocation1 + $0x9] sm:$0xff]  ;;  %v6155_v11 = vld [vmem:[%s11740_s1 + $0xa20] sm:$0xf]  ;;  %v7598_v56 = vld [vmem:[%s11740_s1 + $0xb94] sm:$0xf0]  ;;  %s4826_s12 = sshll.u32 %s7878_s11, 4  ;;  %s4827_s12 = int_to_ptr.vmem [resolvable:$true] %s4826_s12 }
  0x9b   :  { %2703 = vmatpush.bf16.msra.mxu3 %v6092_v24  ;;  %v6316_v24 = vor.u32 %v7592_v8, %v6315_v7  ;;  %v6291_v60 = vld [vmem:[%s11740_s1 + $0xb30] sm:$0xf]  ;;  %v9083_v7 = vld [vmem:[#allocation1 + $0x3f] sm:$0xff]  ;;  %v32_v8 = vld [vmem:[%s11739_s0 + $0x18] sm:$0x1]  ;;  %s4828_s0 = sshll.u32 %s11745_s6, 4  ;;  %s4829_s0 = int_to_ptr.hbm [resolvable:$true] %s4828_s0 }
  0x9c   :  { %2665 = vmatpush.bf16.msra.mxu0 %v5892_v31  ;;  %v6307_v31 = vld [vmem:[%s11740_s1 + $0xb50] sm:$0xf]  ;;  %v6283_v30 = vld [vmem:[%s11740_s1 + $0xb20] sm:$0xf]  ;;  %s7879_s15 = smov [#allocation4]   ;;  %s4839_s18 = sshll.u32 %s11746_s7, 4  ;;  %s4840_s18 = int_to_ptr.hbm [resolvable:$true] %s4839_s18 }
  0x9d   :  { %2678 = vmatpush.bf16.msra.mxu1 %v5956_v34  ;;  %v7606_v34 = vld [vmem:[%s11740_s1 + $0xbd4] sm:$0xf0]  ;;  %v6308_v38 = vor.u32 %v7590_v32, %v6307_v31  ;;  %v9081_v6 = vld [vmem:[#allocation1 + $0x2d] sm:$0xff]  ;;  %v7584_v31 = vld [vmem:[%s11740_s1 + $0xb24] sm:$0xf0]  ;;  %s4837_s16 = sshll.u32 %s7879_s15, 4  ;;  %s4838_s16 = int_to_ptr.vmem [resolvable:$true] %s4837_s16 }
  0x9e   :  { %2691 = vmatpush.bf16.msra.mxu2 %v6020_v35  ;;  %v6180_v35 = vor.u32 %v7558_v27, %v6179_v25  ;;  %v6372_v42 = vor.u32 %v7606_v34, %v6371_v33  ;;  %v6219_v25 = vld [vmem:[%s11740_s1 + $0xaa0] sm:$0xf]  ;;  %v427_v27 = vperm.slane %v425_v3, 0  ;;  %v7600_v33 = vld [vmem:[%s11740_s1 + $0xba4] sm:$0xf0]  ;;  %vm4819_vm8 = vcmask 516096  }
  0x9f   :  { %2704 = vmatpush.bf16.msra.mxu3 %v6084_v39  ;;  %v7556_v39 = vld [vmem:[%s11740_s1 + $0xa44] sm:$0xf0]  ;;  %v6347_v32 = vld [vmem:[%s11740_s1 + $0xba0] sm:$0xf]  ;;  %v6211_v40 = vld [vmem:[%s11740_s1 + $0xa90] sm:$0xf] }
  0xa0   :  { %2666 = vmatpush.bf16.msra.mxu0 %v5884_v52  ;;  %v7604_v52 = vld [vmem:[%s11740_s1 + $0xbc4] sm:$0xf0]  ;;  %v6172_v57 = vor.u32 %v7556_v39, %v6171_v36  ;;  %v7550_v39 = vld [vmem:[%s11740_s1 + $0xa14] sm:$0xf0]  ;;  %v6339_v54 = vld [vmem:[%s11740_s1 + $0xb90] sm:$0xf] }
  0xa1   :  { %2679 = vmatpush.bf16.msra.mxu1 %v5948_v58  ;;  %v6227_v58 = vld [vmem:[%s11740_s1 + $0xab0] sm:$0xf]  ;;  %v6364_v2 = vor.u32 %v7604_v52, %v6363_v45  ;;  %v7582_v52 = vld [vmem:[%s11740_s1 + $0xb14] sm:$0xf0]  ;;  %v6340_v3 = vor.u32 %v7598_v56, %v6339_v54  ;;  %v4909_v54 = vld [vmem:[%s11740_s1 + $0x68] sm:$0xf0] }
  0xa2   :  { %2692 = vmatpush.bf16.msra.mxu2 %v6012_v59  ;;  %v7570_v59 = vld [vmem:[%s11740_s1 + $0xab4] sm:$0xf0]  ;;  %v6275_v45 = vld [vmem:[%s11740_s1 + $0xb10] sm:$0xf]  ;;  %v7255_v56 = vld [vmem:[%s11740_s1 + $0xe4] sm:$0xf] }
  0xa3   :  { %2705 = vmatpush.bf16.msra.mxu3 %v6076_v62  ;;  %2667 = vmatmul.bf16.vlgmr.msra.gmra.mxu0 %v8984_v9  ;;  %v6300_v62 = vor.u32 %v7588_v44, %v6299_v43  ;;  %v6348_v43 = vor.u32 %v7600_v33, %v6347_v32  ;;  %v7566_v44 = vld [vmem:[%s11740_s1 + $0xa94] sm:$0xf0] }
  0xa4   :  { %2711 = vmatpush.bf16.msrb.mxu0 %v6196_v63  ;;  %2680 = vmatmul.bf16.vlgmr.msra.gmra.mxu1 %v8994_v14  ;;  %v7586_v63 = vld [vmem:[%s11740_s1 + $0xb34] sm:$0xf0] }
  0xa5   :  { %2724 = vmatpush.bf16.msrb.mxu1 %v6260_v0  ;;  %2693 = vmatmul.bf16.vlgmr.msra.gmra.mxu2 %v8992_v13  ;;  %v6355_v0 = vld [vmem:[%s11740_s1 + $0xbb0] sm:$0xf] }
  0xa6   :  { %2737 = vmatpush.bf16.msrb.mxu2 %v6324_v1  ;;  %2706 = vmatmul.bf16.vlgmr.msra.gmra.mxu3 %v8996_v18  ;;  %v7602_v1 = vld [vmem:[%s11740_s1 + $0xbb4] sm:$0xf0] }
  0xa7   :  { %2750 = vmatpush.bf16.msrb.mxu3 %v6388_v5  ;;  %v9079_v5 = vld [vmem:[#allocation1 + $0x36] sm:$0xff]  ;;  %v6356_v28 = vor.u32 %v7602_v1, %v6355_v0  ;;  %v7564_v0 = vld [vmem:[%s11740_s1 + $0xa84] sm:$0xf0]  ;;  %v6267_v1 = vld [vmem:[%s11740_s1 + $0xb00] sm:$0xf] }
  0xa8   :  { %2712 = vmatpush.bf16.msrb.mxu0 %v6188_v19  ;;  %462 = vst [vmem:[#allocation1] ss:$9 sm:$0xff] %v32_v8  ;;  %v6228_v19 = vor.u32 %v7570_v59, %v6227_v58  ;;  %v6139_v59 = vld [vmem:[%s11740_s1 + $0xa00] sm:$0xf]  ;;  %v7580_v8 = vld [vmem:[%s11740_s1 + $0xb04] sm:$0xf0] }
  0xa9   :  { %2725 = vmatpush.bf16.msrb.mxu1 %v6252_v23  ;;  %v6292_v23 = vor.u32 %v7586_v63, %v6291_v60  ;;  %v7548_v60 = vld [vmem:[%s11740_s1 + $0xa04] sm:$0xf0]  ;;  %v6203_v63 = vld [vmem:[%s11740_s1 + $0xa80] sm:$0xf] }
  0xaa   :  { %2738 = vmatpush.bf16.msrb.mxu2 %v6316_v24  ;;  %v7552_v24 = vld [vmem:[%s11740_s1 + $0xa24] sm:$0xf0] }
  0xab   :  { %2751 = vmatpush.bf16.msrb.mxu3 %v6380_v29  ;;  %v7568_v29 = vld [vmem:[%s11740_s1 + $0xaa4] sm:$0xf0]  ;;  %v6156_v34 = vor.u32 %v7552_v24, %v6155_v11  ;;  %v6419_v24 = vld [vmem:[%s11740_s1 + $0xc30] sm:$0xf] }
  0xac   :  { %2713 = vmatpush.bf16.msrb.mxu0 %v6180_v35  ;;  %v2460_v35 = vpop.f32.mrf.mxu0  ;;  %v6220_v36 = vor.u32 %v7568_v29, %v6219_v25  ;;  %v7596_v11 = vld [vmem:[%s11740_s1 + $0xb84] sm:$0xf0]  ;;  %v7618_v25 = vld [vmem:[%s11740_s1 + $0xc34] sm:$0xf0]  ;;  %v4917_v29 = vld [vmem:[%s11740_s1 + $0x78] sm:$0xf0] }
  0xad   :  { %2726 = vmatpush.bf16.msrb.mxu1 %v6244_v37  ;;  %v6284_v37 = vor.u32 %v7584_v31, %v6283_v30  ;;  %v2461_v41 = vadd.f32 %v2460_v35, %v427_v27  ;;  %v7241_v27 = vld [vmem:[%s11740_s1 + $0x74] sm:$0xf]  ;;  %v4981_v31 = vld [vmem:[%s11740_s1 + $0xf8] sm:$0xf0]  ;;  %v6268_v35 = vor.u32 %v7580_v8, %v6267_v1  ;;  %v6403_v1 = vld [vmem:[%s11740_s1 + $0xc10] sm:$0xf] }
  0xae   :  { %2739 = vmatpush.bf16.msrb.mxu2 %v6308_v38  ;;  %v6147_v38 = vld [vmem:[%s11740_s1 + $0xa10] sm:$0xf]  ;;  %v7257_v30 = vld [vmem:[%s11740_s1 + $0xf4] sm:$0xf] }
  0xaf   :  { %2752 = vmatpush.bf16.msrb.mxu3 %v6372_v42  ;;  %v2473_v42 = vpop.f32.mrf.mxu1  ;;  %v6148_v58 = vor.u32 %v7550_v39, %v6147_v38 }
  0xb0   :  { %2714 = vmatpush.bf16.msrb.mxu0 %v6172_v57  ;;  %v2474_v57 = vadd.f32 %v2473_v42, %v2461_v41  ;;  %v4920_v41 = vor.u32 %v7241_v27, %v4917_v29  ;;  %v4984_v42 = vor.u32 %v7257_v30, %v4981_v31  ;;  %v6395_v27 = vld [vmem:[%s11740_s1 + $0xc00] sm:$0xf]  ;;  %v7612_v30 = vld [vmem:[%s11740_s1 + $0xc04] sm:$0xf0]  ;;  %v7235_v31 = vld [vmem:[%s11740_s1 + $0x44] sm:$0xf] }
  0xb1   :  { %2727 = vmatpush.bf16.msrb.mxu1 %v6236_v61  ;;  %v6212_v61 = vor.u32 %v7566_v44, %v6211_v40  ;;  %v6420_v40 = vor.u32 %v7618_v25, %v6419_v24  ;;  %v7616_v44 = vld [vmem:[%s11740_s1 + $0xc24] sm:$0xf0]  ;;  %v5029_v24 = vld [vmem:[%s11740_s1 + $0x158] sm:$0xf0] }
  0xb2   :  { %2740 = vmatpush.bf16.msrb.mxu2 %v6300_v62  ;;  %v6276_v62 = vor.u32 %v7582_v52, %v6275_v45  ;;  %v7239_v45 = vld [vmem:[%s11740_s1 + $0x64] sm:$0xf] }
  0xb3   :  { %2753 = vmatpush.bf16.msrb.mxu3 %v6364_v2  ;;  %v2486_v2 = vpop.f32.mrf.mxu2 }
  0xb4   :  { %2715 = vmatpush.bf16.msrb.mxu0 %v6164_v10  ;;  %v6331_v10 = vld [vmem:[%s11740_s1 + $0xb80] sm:$0xf]  ;;  %v2462_v33 = vpop.f32.mrf.mxu0 }
  0xb5   :  { %2728 = vmatpush.bf16.msrb.mxu1 %v6228_v19  ;;  %v2487_v19 = vadd.f32 %v2486_v2, %v2474_v57  ;;  %v6332_v39 = vor.u32 %v7596_v11, %v6331_v10  ;;  %v4973_v57 = vld [vmem:[%s11740_s1 + $0xe8] sm:$0xf0]  ;;  %v7614_v2 = vld [vmem:[%s11740_s1 + $0xc14] sm:$0xf0]  ;;  %v4901_v10 = vld [vmem:[%s11740_s1 + $0x58] sm:$0xf0] }
  0xb6   :  { %2741 = vmatpush.bf16.msrb.mxu2 %v6292_v23  ;;  %v2499_v23 = vpop.f32.mrf.mxu3  ;;  %v7253_v11 = vld [vmem:[%s11740_s1 + $0xd4] sm:$0xf]  ;;  %v6404_v25 = vor.u32 %v7614_v2, %v6403_v1  ;;  %v4893_v33 = vld [vmem:[%s11740_s1 + $0x48] sm:$0xf0] }
  0xb7   :  { %2754 = vmatpush.bf16.msrb.mxu3 %v6356_v28  ;;  %v6140_v28 = vor.u32 %v7548_v60, %v6139_v59  ;;  %v9178_v32 = vadd.f32 %v2499_v23, %v2487_v19  ;;  %v2475_v38 = vpop.f32.mrf.mxu1  ;;  %v5037_v59 = vld [vmem:[%s11740_s1 + $0x168] sm:$0xf0]  ;;  %v4965_v19 = vld [vmem:[%s11740_s1 + $0xd8] sm:$0xf0]  ;;  %v7269_v23 = vld [vmem:[%s11740_s1 + $0x154] sm:$0xf] }
  0xb8   :  { %2716 = vmatpush.bf16.msrb.mxu0 %v6156_v34  ;;  %v6204_v34 = vor.u32 %v7564_v0, %v6203_v63  ;;  %v4912_v63 = vor.u32 %v7239_v45, %v4909_v54  ;;  %v4976_v0 = vor.u32 %v7255_v56, %v4973_v57  ;;  %v4968_v29 = vor.u32 %v7253_v11, %v4965_v19  ;;  %v5021_v38 = vld [vmem:[%s11740_s1 + $0x148] sm:$0xf0]  ;;  %v4885_v54 = vld [vmem:[%s11740_s1 + $0x38] sm:$0xf0] }
  0xb9   :  { %2729 = vmatpush.bf16.msrb.mxu1 %v6220_v36  ;;  %v7273_v36 = vld [vmem:[%s11740_s1 + $0x174] sm:$0xf] }
  0xba   :  { %2742 = vmatpush.bf16.msrb.mxu2 %v6284_v37  ;;  %v5045_v37 = vld [vmem:[%s11740_s1 + $0x178] sm:$0xf0] }
  0xbb   :  { %2755 = vmatpush.bf16.msrb.mxu3 %v6348_v43  ;;  %v6411_v43 = vld [vmem:[%s11740_s1 + $0xc20] sm:$0xf]  ;;  %v5048_v52 = vor.u32 %v7273_v36, %v5045_v37  ;;  %v2488_v60 = vpop.f32.mrf.mxu2  ;;  %v4957_v36 = vld [vmem:[%s11740_s1 + $0xc8] sm:$0xf0]  ;;  %v7267_v37 = vld [vmem:[%s11740_s1 + $0x144] sm:$0xf] }
  0xbc   :  { %2717 = vmatpush.bf16.msrb.mxu0 %v6148_v58  ;;  %v7271_v58 = vld [vmem:[%s11740_s1 + $0x164] sm:$0xf]  ;;  %v5024_v57 = vor.u32 %v7267_v37, %v5021_v38  ;;  %v7265_v60 = vld [vmem:[%s11740_s1 + $0x134] sm:$0xf] }
  0xbd   :  { %2730 = vmatpush.bf16.msrb.mxu1 %v6212_v61  ;;  %v6412_v61 = vor.u32 %v7616_v44, %v6411_v43  ;;  %v5040_v8 = vor.u32 %v7271_v58, %v5037_v59  ;;  %v4896_v43 = vor.u32 %v7235_v31, %v4893_v33  ;;  %v7249_v59 = vld [vmem:[%s11740_s1 + $0xb4] sm:$0xf]  ;;  %v5093_v31 = vld [vmem:[%s11740_s1 + $0x1d8] sm:$0xf0]  ;;  %v463_v33 = vld [vmem:[#allocation1] sm:$0xff] }
  0xbe   :  { %2743 = vmatpush.bf16.msrb.mxu2 %v6276_v62  ;;  %v2501_v62 = vpop.f32.mrf.mxu3  ;;  %v7229_v38 = vld [vmem:[%s11740_s1 + $0x14] sm:$0xf] }
  0xbf   :  { %2756 = vmatpush.bf16.msrb.mxu3 %v6340_v3  ;;  %v7237_v3 = vld [vmem:[%s11740_s1 + $0x54] sm:$0xf] }
  0xc0   :  { %2718 = vmatpush.bf16.msrb.mxu0 %v6140_v28  ;;  %v4904_v28 = vor.u32 %v7237_v3, %v4901_v10  ;;  %v4877_v10 = vld [vmem:[%s11740_s1 + $0x28] sm:$0xf0] }
  0xc1   :  { %2731 = vmatpush.bf16.msrb.mxu1 %v6204_v34  ;;  %v5032_v34 = vor.u32 %v7269_v23, %v5029_v24  ;;  %v2525_v56 = vpop.f32.mrf.mxu1  ;;  %v7247_v24 = vld [vmem:[%s11740_s1 + $0xa4] sm:$0xf] }
  0xc2   :  { %2744 = vmatpush.bf16.msrb.mxu2 %v6268_v35  ;;  %v7251_v35 = vld [vmem:[%s11740_s1 + $0xc4] sm:$0xf] }
  0xc3   :  { %2757 = vmatpush.bf16.msrb.mxu3 %v6332_v39  ;;  %2719 = vmatmul.bf16.vlgmr.msrb.gmra.mxu0 %v9077_v4  ;;  %v7289_v39 = vld [vmem:[%s11740_s1 + $0x1f4] sm:$0xf]  ;;  %v4960_v44 = vor.u32 %v7251_v35, %v4957_v36 }
  0xc4   :  { %2767 = vmatpush.bf16.msra.mxu0 %v6420_v40  ;;  %2732 = vmatmul.bf16.vlgmr.msrb.gmra.mxu1 %v9081_v6  ;;  %v5109_v40 = vld [vmem:[%s11740_s1 + $0x1f8] sm:$0xf0] }
  0xc5   :  { %2776 = vmatpush.bf16.msra.mxu1 %v4920_v41  ;;  %2745 = vmatmul.bf16.vlgmr.msrb.gmra.mxu2 %v9079_v5  ;;  %v6396_v41 = vor.u32 %v7612_v30, %v6395_v27  ;;  %v5112_v58 = vor.u32 %v7289_v39, %v5109_v40  ;;  %v7263_v27 = vld [vmem:[%s11740_s1 + $0x124] sm:$0xf]  ;;  %v7285_v30 = vld [vmem:[%s11740_s1 + $0x1d4] sm:$0xf]  ;;  %v4869_v39 = vld [vmem:[%s11740_s1 + $0x18] sm:$0xf0] }
  0xc6   :  { %2789 = vmatpush.bf16.msra.mxu2 %v4984_v42  ;;  %2758 = vmatmul.bf16.vlgmr.msrb.gmra.mxu3 %v9083_v7  ;;  %v2512_v42 = vpop.f32.mrf.mxu0 }
  0xc7   :  { %2802 = vmatpush.bf16.msra.mxu3 %v5048_v52  ;;  %v2513_v45 = vadd.f32 %v2512_v42, %v9178_v32  ;;  %v7233_v52 = vld [vmem:[%s11740_s1 + $0x34] sm:$0xf]  ;;  %v4949_v32 = vld [vmem:[%s11740_s1 + $0xb8] sm:$0xf0]  ;;  %v5096_v42 = vor.u32 %v7285_v30, %v5093_v31 }
  0xc8   :  { %2768 = vmatpush.bf16.msra.mxu0 %v6412_v61  ;;  %v5013_v61 = vld [vmem:[%s11740_s1 + $0x138] sm:$0xf0]  ;;  %v4888_v1 = vor.u32 %v7233_v52, %v4885_v54  ;;  %v4952_v2 = vor.u32 %v7249_v59, %v4949_v32  ;;  %v2538_v3 = vpop.f32.mrf.mxu2  ;;  %v7283_v54 = vld [vmem:[%s11740_s1 + $0x1c4] sm:$0xf]  ;;  %v4861_v32 = vld [vmem:[%s11740_s1 + $0x8] sm:$0xf0] }
  0xc9   :  { %2777 = vmatpush.bf16.msra.mxu1 %v4912_v63  ;;  %v2526_v62 = vadd.f32 %v2525_v56, %v2513_v45  ;;  %v7287_v63 = vld [vmem:[%s11740_s1 + $0x1e4] sm:$0xf]  ;;  %v5016_v11 = vor.u32 %v7265_v60, %v5013_v61  ;;  %v2527_v40 = vpop.f32.mrf.mxu1  ;;  %v7261_v45 = vld [vmem:[%s11740_s1 + $0x114] sm:$0xf]  ;;  %v4997_v52 = vld [vmem:[%s11740_s1 + $0x118] sm:$0xf0] }
  0xca   :  { %2790 = vmatpush.bf16.msra.mxu2 %v4976_v0  ;;  %v5101_v0 = vld [vmem:[%s11740_s1 + $0x1e8] sm:$0xf0]  ;;  %v7227_v59 = vld [vmem:[%s11740_s1 + $0x4] sm:$0xf] }
  0xcb   :  { %2803 = vmatpush.bf16.msra.mxu3 %v5040_v8  ;;  %v7231_v8 = vld [vmem:[%s11740_s1 + $0x24] sm:$0xf]  ;;  %v5104_v19 = vor.u32 %v7287_v63, %v5101_v0  ;;  %v2539_v23 = vadd.f32 %v2538_v3, %v2526_v62  ;;  %v5085_v56 = vld [vmem:[%s11740_s1 + $0x1c8] sm:$0xf0]  ;;  %v5000_v62 = vor.u32 %v7261_v45, %v4997_v52 }
  0xcc   :  { %2769 = vmatpush.bf16.msra.mxu0 %v6404_v25  ;;  %v4941_v25 = vld [vmem:[%s11740_s1 + $0xa8] sm:$0xf0]  ;;  %v4880_v36 = vor.u32 %v7231_v8, %v4877_v10  ;;  %v7243_v60 = vld [vmem:[%s11740_s1 + $0x84] sm:$0xf]  ;;  %v5088_v63 = vor.u32 %v7283_v54, %v5085_v56  ;;  %v7281_v8 = vld [vmem:[%s11740_s1 + $0x1b4] sm:$0xf] }
  0xcd   :  { %2778 = vmatpush.bf16.msra.mxu1 %v4904_v28  ;;  %v2551_v28 = vpop.f32.mrf.mxu3  ;;  %v4944_v37 = vor.u32 %v7247_v24, %v4941_v25  ;;  %v4925_v0 = vld [vmem:[%s11740_s1 + $0x88] sm:$0xf0]  ;;  %v5077_v10 = vld [vmem:[%s11740_s1 + $0x1b8] sm:$0xf0]  ;;  %v4864_v25 = vor.u32 %v7227_v59, %v4861_v32  ;;  %v7277_v56 = vld [vmem:[%s11740_s1 + $0x194] sm:$0xf] }
  0xce   :  { %2791 = vmatpush.bf16.msra.mxu2 %v4968_v29  ;;  %v5005_v29 = vld [vmem:[%s11740_s1 + $0x128] sm:$0xf0]  ;;  %v2514_v35 = vpop.f32.mrf.mxu0  ;;  %v5237_v24 = vld [vmem:[%s11740_s1 + $0x2f8] sm:$0xf0]  ;;  %v5080_v31 = vor.u32 %v7281_v8, %v5077_v10  ;;  %v7315_v10 = vld [vmem:[%s11740_s1 + $0x2c4] sm:$0xf] }
  0xcf   :  { %2804 = vmatpush.bf16.msra.mxu3 %v5032_v34  ;;  %v9317_v34 = vadd.f32 %v2551_v28, %v2539_v23  ;;  %v7321_v23 = vld [vmem:[%s11740_s1 + $0x2f4] sm:$0xf]  ;;  %v5165_v40 = vld [vmem:[%s11740_s1 + $0x268] sm:$0xf0]  ;;  %v5157_v32 = vld [vmem:[%s11740_s1 + $0x258] sm:$0xf0] }
  0xd0   :  { %2770 = vmatpush.bf16.msra.mxu0 %v6396_v41  ;;  %v5008_v41 = vor.u32 %v7263_v27, %v5005_v29  ;;  %v2540_v61 = vpop.f32.mrf.mxu2  ;;  %v4928_v27 = vor.u32 %v7243_v60, %v4925_v0  ;;  %v7337_v28 = vld [vmem:[%s11740_s1 + $0x374] sm:$0xf]  ;;  %v5301_v29 = vld [vmem:[%s11740_s1 + $0x378] sm:$0xf0]  ;;  %v5240_v35 = vor.u32 %v7321_v23, %v5237_v24  ;;  %v5277_v24 = vld [vmem:[%s11740_s1 + $0x348] sm:$0xf0] }
  0xd1   :  { %2779 = vmatpush.bf16.msra.mxu1 %v4896_v43  ;;  %v7245_v43 = vld [vmem:[%s11740_s1 + $0x94] sm:$0xf]  ;;  %v5221_v61 = vld [vmem:[%s11740_s1 + $0x2d8] sm:$0xf0] }
  0xd2   :  { %2792 = vmatpush.bf16.msra.mxu2 %v4960_v44  ;;  %v4933_v44 = vld [vmem:[%s11740_s1 + $0x98] sm:$0xf0]  ;;  %v7317_v60 = vld [vmem:[%s11740_s1 + $0x2d4] sm:$0xf] }
  0xd3   :  { %2805 = vmatpush.bf16.msra.mxu3 %v5024_v57  ;;  %6425 = vmatmul.msk.bf16.vlgmr.msra.gmra.mxu0 %vm2448_vm0, %v463_v33  ;;  %v4872_v57 = vor.u32 %v7229_v38, %v4869_v39  ;;  %v7303_v38 = vld [vmem:[%s11740_s1 + $0x264] sm:$0xf]  ;;  %v5304_v39 = vor.u32 %v7337_v28, %v5301_v29 }
  0xd4   :  { %2815 = vmatpush.bf16.msrb.mxu0 %v5112_v58  ;;  %v4936_v58 = vor.u32 %v7245_v43, %v4933_v44  ;;  %v7335_v43 = vld [vmem:[%s11740_s1 + $0x364] sm:$0xf]  ;;  %v5293_v44 = vld [vmem:[%s11740_s1 + $0x368] sm:$0xf0]  ;;  %v5168_v52 = vor.u32 %v7303_v38, %v5165_v40  ;;  %v5205_v40 = vld [vmem:[%s11740_s1 + $0x2b8] sm:$0xf0] }
  0xd5   :  { %2780 = vmatpush.bf16.msra.mxu1 %v4888_v1  ;;  %v7259_v1 = vld [vmem:[%s11740_s1 + $0x104] sm:$0xf]  ;;  %v2553_v3 = vpop.f32.mrf.mxu3  ;;  %v5296_v59 = vor.u32 %v7335_v43, %v5293_v44  ;;  %v5357_v44 = vld [vmem:[%s11740_s1 + $0x3e8] sm:$0xf0] }
  0xd6   :  { %2793 = vmatpush.bf16.msra.mxu2 %v4952_v2  ;;  %v4989_v2 = vld [vmem:[%s11740_s1 + $0x108] sm:$0xf0]  ;;  %v7351_v43 = vld [vmem:[%s11740_s1 + $0x3e4] sm:$0xf] }
  0xd7   :  { %2806 = vmatpush.bf16.msra.mxu3 %v5016_v11  ;;  %v7305_v11 = vld [vmem:[%s11740_s1 + $0x274] sm:$0xf]  ;;  %v4992_v30 = vor.u32 %v7259_v1, %v4989_v2  ;;  %v7275_v1 = vld [vmem:[%s11740_s1 + $0x184] sm:$0xf]  ;;  %v5224_v2 = vor.u32 %v7317_v60, %v5221_v61  ;;  %v5053_v3 = vld [vmem:[%s11740_s1 + $0x188] sm:$0xf0] }
  0xd8   :  { %2816 = vmatpush.bf16.msrb.mxu0 %v5104_v19  ;;  %v5173_v19 = vld [vmem:[%s11740_s1 + $0x278] sm:$0xf0]  ;;  %v5056_v29 = vor.u32 %v7275_v1, %v5053_v3  ;;  %v5197_v60 = vld [vmem:[%s11740_s1 + $0x2a8] sm:$0xf0]  ;;  %v7327_v61 = vld [vmem:[%s11740_s1 + $0x324] sm:$0xf] }
  0xd9   :  { %2781 = vmatpush.bf16.msra.mxu1 %v4880_v36  ;;  %v5176_v33 = vor.u32 %v7305_v11, %v5173_v19  ;;  %v7279_v36 = vld [vmem:[%s11740_s1 + $0x1a4] sm:$0xf]  ;;  %v5213_v11 = vld [vmem:[%s11740_s1 + $0x2c8] sm:$0xf0]  ;;  %v7349_v1 = vld [vmem:[%s11740_s1 + $0x3d4] sm:$0xf] }
  0xda   :  { %2794 = vmatpush.bf16.msra.mxu2 %v4944_v37  ;;  %v5069_v37 = vld [vmem:[%s11740_s1 + $0x1a8] sm:$0xf0]  ;;  %v7331_v19 = vld [vmem:[%s11740_s1 + $0x344] sm:$0xf] }
  0xdb   :  { %2807 = vmatpush.bf16.msra.mxu3 %v5008_v41  ;;  %v7319_v41 = vld [vmem:[%s11740_s1 + $0x2e4] sm:$0xf]  ;;  %v5072_v45 = vor.u32 %v7279_v36, %v5069_v37  ;;  %v5141_v36 = vld [vmem:[%s11740_s1 + $0x238] sm:$0xf0]  ;;  %v5280_v37 = vor.u32 %v7331_v19, %v5277_v24 }
  0xdc   :  { %2817 = vmatpush.bf16.msrb.mxu0 %v5096_v42  ;;  %v5229_v42 = vld [vmem:[%s11740_s1 + $0x2e8] sm:$0xf0]  ;;  %v5189_v24 = vld [vmem:[%s11740_s1 + $0x298] sm:$0xf0] }
  0xdd   :  { %2782 = vmatpush.bf16.msra.mxu1 %v4872_v57  ;;  %v5232_v54 = vor.u32 %v7319_v41, %v5229_v42  ;;  %v5061_v57 = vld [vmem:[%s11740_s1 + $0x198] sm:$0xf0]  ;;  %v7329_v41 = vld [vmem:[%s11740_s1 + $0x334] sm:$0xf] }
  0xde   :  { %2795 = vmatpush.bf16.msra.mxu2 %v4936_v58  ;;  %v7301_v58 = vld [vmem:[%s11740_s1 + $0x254] sm:$0xf]  ;;  %v5064_v0 = vor.u32 %v7277_v56, %v5061_v57  ;;  %v5269_v42 = vld [vmem:[%s11740_s1 + $0x338] sm:$0xf0]  ;;  %v5133_v56 = vld [vmem:[%s11740_s1 + $0x228] sm:$0xf0] }
  0xdf   :  { %2808 = vmatpush.bf16.msra.mxu3 %v5000_v62  ;;  %v7333_v62 = vld [vmem:[%s11740_s1 + $0x354] sm:$0xf]  ;;  %v5272_v57 = vor.u32 %v7329_v41, %v5269_v42 }
  0xe0   :  { %2818 = vmatpush.bf16.msrb.mxu0 %v5088_v63  ;;  %v5285_v63 = vld [vmem:[%s11740_s1 + $0x358] sm:$0xf0]  ;;  %v2564_v23 = vpop.f32.mrf.mxu0  ;;  %v7345_v42 = vld [vmem:[%s11740_s1 + $0x3b4] sm:$0xf] }
  0xe1   :  { %2783 = vmatpush.bf16.msra.mxu1 %v4864_v25  ;;  %v5288_v8 = vor.u32 %v7333_v62, %v5285_v63  ;;  %v7353_v25 = vld [vmem:[%s11740_s1 + $0x3f4] sm:$0xf]  ;;  %v2565_v28 = vadd.f32 %v2564_v23, %v9317_v34 }
  0xe2   :  { %2796 = vmatpush.bf16.msra.mxu2 %v4928_v27  ;;  %v5365_v27 = vld [vmem:[%s11740_s1 + $0x3f8] sm:$0xf0]  ;;  %v7313_v34 = vld [vmem:[%s11740_s1 + $0x2b4] sm:$0xf] }
  0xe3   :  { %2809 = vmatpush.bf16.msra.mxu3 %v4992_v30  ;;  %v2577_v30 = vpop.f32.mrf.mxu1  ;;  %v7309_v23 = vld [vmem:[%s11740_s1 + $0x294] sm:$0xf] }
  0xe4   :  { %2819 = vmatpush.bf16.msrb.mxu0 %v5080_v31  ;;  %2784 = vmatmul.bf16.vlgmr.msra.gmra.mxu1 %v8230_v21  ;;  %v5149_v21 = vld [vmem:[%s11740_s1 + $0x248] sm:$0xf0]  ;;  %v2578_v38 = vadd.f32 %v2577_v30, %v2565_v28  ;;  %v7347_v28 = vld [vmem:[%s11740_s1 + $0x3c4] sm:$0xf] }
  0xe5   :  { %2828 = vmatpush.bf16.msrb.mxu1 %v5176_v33  ;;  %2797 = vmatmul.bf16.vlgmr.msra.gmra.mxu2 %v8241_v26  ;;  %v5160_v26 = vor.u32 %v7301_v58, %v5157_v32  ;;  %v5216_v33 = vor.u32 %v7315_v10, %v5213_v11  ;;  %v7311_v32 = vld [vmem:[%s11740_s1 + $0x2a4] sm:$0xf]  ;;  %v7293_v10 = vld [vmem:[%s11740_s1 + $0x214] sm:$0xf]  ;;  %v5125_v11 = vld [vmem:[%s11740_s1 + $0x218] sm:$0xf0] }
  0xe6   :  { %2841 = vmatpush.bf16.msrb.mxu2 %v5240_v35  ;;  %2810 = vmatmul.bf16.vlgmr.msra.gmra.mxu3 %v8228_v20  ;;  %v7299_v20 = vld [vmem:[%s11740_s1 + $0x244] sm:$0xf]  ;;  %v7297_v35 = vld [vmem:[%s11740_s1 + $0x234] sm:$0xf]  ;;  %v5128_v30 = vor.u32 %v7293_v10, %v5125_v11  ;;  %v5549_v11 = vld [vmem:[%s11740_s1 + $0x568] sm:$0xf0] }
  0xe7   :  { %2854 = vmatpush.bf16.msrb.mxu3 %v5304_v39  ;;  %v5152_v31 = vor.u32 %v7299_v20, %v5149_v21  ;;  %v5368_v39 = vor.u32 %v7353_v25, %v5365_v27  ;;  %v7325_v25 = vld [vmem:[%s11740_s1 + $0x314] sm:$0xf]  ;;  %v5253_v27 = vld [vmem:[%s11740_s1 + $0x318] sm:$0xf0]  ;;  %v7399_v10 = vld [vmem:[%s11740_s1 + $0x564] sm:$0xf] }
  0xe8   :  { %2820 = vmatpush.bf16.msrb.mxu0 %v5072_v45  ;;  %v5144_v45 = vor.u32 %v7297_v35, %v5141_v36  ;;  %v2590_v58 = vpop.f32.mrf.mxu2  ;;  %v5117_v35 = vld [vmem:[%s11740_s1 + $0x208] sm:$0xf0]  ;;  %v7307_v36 = vld [vmem:[%s11740_s1 + $0x284] sm:$0xf] }
  0xe9   :  { %2829 = vmatpush.bf16.msrb.mxu1 %v5168_v52  ;;  %v5208_v52 = vor.u32 %v7313_v34, %v5205_v40  ;;  %v2591_v62 = vadd.f32 %v2590_v58, %v2578_v38  ;;  %v2603_v63 = vpop.f32.mrf.mxu3  ;;  %v7323_v34 = vld [vmem:[%s11740_s1 + $0x304] sm:$0xf]  ;;  %v5245_v40 = vld [vmem:[%s11740_s1 + $0x308] sm:$0xf0] }
  0xea   :  { %2842 = vmatpush.bf16.msrb.mxu2 %v5232_v54  ;;  %v7295_v54 = vld [vmem:[%s11740_s1 + $0x224] sm:$0xf] }
  0xeb   :  { %2855 = vmatpush.bf16.msrb.mxu3 %v5296_v59  ;;  %v5360_v59 = vor.u32 %v7351_v43, %v5357_v44  ;;  %v2579_v3 = vpop.f32.mrf.mxu1  ;;  %v9517_v20 = vadd.f32 %v2603_v63, %v2591_v62  ;;  %v5136_v21 = vor.u32 %v7295_v54, %v5133_v56  ;;  %v5333_v43 = vld [vmem:[%s11740_s1 + $0x3b8] sm:$0xf0]  ;;  %v7369_v44 = vld [vmem:[%s11740_s1 + $0x474] sm:$0xf] }
  0xec   :  { %2821 = vmatpush.bf16.msrb.mxu0 %v5064_v0  ;;  %v5261_v0 = vld [vmem:[%s11740_s1 + $0x328] sm:$0xf0]  ;;  %v7385_v54 = vld [vmem:[%s11740_s1 + $0x4f4] sm:$0xf]  ;;  %v5493_v56 = vld [vmem:[%s11740_s1 + $0x4f8] sm:$0xf0] }
  0xed   :  { %2830 = vmatpush.bf16.msrb.mxu1 %v5160_v26  ;;  %v5349_v26 = vld [vmem:[%s11740_s1 + $0x3d8] sm:$0xf0]  ;;  %v5264_v19 = vor.u32 %v7327_v61, %v5261_v0  ;;  %v5336_v61 = vor.u32 %v7345_v42, %v5333_v43  ;;  %v5496_v63 = vor.u32 %v7385_v54, %v5493_v56  ;;  %v7343_v0 = vld [vmem:[%s11740_s1 + $0x3a4] sm:$0xf]  ;;  %v5421_v3 = vld [vmem:[%s11740_s1 + $0x468] sm:$0xf0] }
  0xee   :  { %2843 = vmatpush.bf16.msrb.mxu2 %v5224_v2  ;;  %v2566_v2 = vpop.f32.mrf.mxu0  ;;  %v7395_v42 = vld [vmem:[%s11740_s1 + $0x544] sm:$0xf] }
  0xef   :  { %2856 = vmatpush.bf16.msrb.mxu3 %v5288_v8  ;;  %v5200_v8 = vor.u32 %v7311_v32, %v5197_v60  ;;  %v5557_v32 = vld [vmem:[%s11740_s1 + $0x578] sm:$0xf0]  ;;  %v5248_v60 = vor.u32 %v7323_v34, %v5245_v40  ;;  %v7379_v40 = vld [vmem:[%s11740_s1 + $0x4c4] sm:$0xf] }
  0xf0   :  { %2822 = vmatpush.bf16.msrb.mxu0 %v5056_v29  ;;  %v5341_v29 = vld [vmem:[%s11740_s1 + $0x3c8] sm:$0xf0]  ;;  %v2592_v41 = vpop.f32.mrf.mxu2 }
  0xf1   :  { %2831 = vmatpush.bf16.msrb.mxu1 %v5152_v31  ;;  %v5192_v31 = vor.u32 %v7309_v23, %v5189_v24  ;;  %v5344_v38 = vor.u32 %v7347_v28, %v5341_v29  ;;  %v7341_v24 = vld [vmem:[%s11740_s1 + $0x394] sm:$0xf]  ;;  %v5552_v28 = vor.u32 %v7399_v10, %v5549_v11  ;;  %v5413_v29 = vld [vmem:[%s11740_s1 + $0x458] sm:$0xf0]  ;;  %v5469_v41 = vld [vmem:[%s11740_s1 + $0x4c8] sm:$0xf0] }
  0xf2   :  { %2844 = vmatpush.bf16.msrb.mxu2 %v5216_v33  ;;  %v7291_v33 = vld [vmem:[%s11740_s1 + $0x204] sm:$0xf]  ;;  %v5389_v10 = vld [vmem:[%s11740_s1 + $0x428] sm:$0xf0] }
  0xf3   :  { %2857 = vmatpush.bf16.msrb.mxu3 %v5280_v37  ;;  %2823 = vmatmul.bf16.vlgmr.msrb.gmra.mxu0 %v8232_v22  ;;  %v5352_v22 = vor.u32 %v7349_v1, %v5349_v26  ;;  %v5256_v37 = vor.u32 %v7325_v25, %v5253_v27  ;;  %v5325_v1 = vld [vmem:[%s11740_s1 + $0x3a8] sm:$0xf0]  ;;  %v7367_v26 = vld [vmem:[%s11740_s1 + $0x464] sm:$0xf]  ;;  %v5317_v25 = vld [vmem:[%s11740_s1 + $0x398] sm:$0xf0] }
  0xf4   :  { %2867 = vmatpush.bf16.msra.mxu0 %v5368_v39  ;;  %v5181_v39 = vld [vmem:[%s11740_s1 + $0x288] sm:$0xf0]  ;;  %v7365_v27 = vld [vmem:[%s11740_s1 + $0x454] sm:$0xf] }
  0xf5   :  { %2832 = vmatpush.bf16.msrb.mxu1 %v5144_v45  ;;  %v2605_v45 = vpop.f32.mrf.mxu3  ;;  %v5184_v58 = vor.u32 %v7307_v36, %v5181_v39  ;;  %v7339_v36 = vld [vmem:[%s11740_s1 + $0x384] sm:$0xf]  ;;  %v5405_v39 = vld [vmem:[%s11740_s1 + $0x448] sm:$0xf0] }
  0xf6   :  { %2845 = vmatpush.bf16.msrb.mxu2 %v5208_v52  ;;  %v5429_v52 = vld [vmem:[%s11740_s1 + $0x478] sm:$0xf0]  ;;  %v7417_v45 = vld [vmem:[%s11740_s1 + $0x5f4] sm:$0xf] }
  0xf7   :  { %2858 = vmatpush.bf16.msrb.mxu3 %v5272_v57  ;;  %v5120_v57 = vor.u32 %v7291_v33, %v5117_v35  ;;  %v5432_v62 = vor.u32 %v7369_v44, %v5429_v52  ;;  %v5541_v33 = vld [vmem:[%s11740_s1 + $0x558] sm:$0xf0]  ;;  %v5320_v35 = vor.u32 %v7341_v24, %v5317_v25  ;;  %v5533_v44 = vld [vmem:[%s11740_s1 + $0x548] sm:$0xf0]  ;;  %v7391_v25 = vld [vmem:[%s11740_s1 + $0x524] sm:$0xf] }
  0xf8   :  { %2868 = vmatpush.bf16.msra.mxu0 %v5360_v59  ;;  %v7401_v59 = vld [vmem:[%s11740_s1 + $0x574] sm:$0xf]  ;;  %v5621_v52 = vld [vmem:[%s11740_s1 + $0x5f8] sm:$0xf0]  ;;  %v5453_v24 = vld [vmem:[%s11740_s1 + $0x4a8] sm:$0xf0] }
  0xf9   :  { %2833 = vmatpush.bf16.msrb.mxu1 %v5136_v21  ;;  %v5560_v2 = vor.u32 %v7401_v59, %v5557_v32  ;;  %v7383_v21 = vld [vmem:[%s11740_s1 + $0x4e4] sm:$0xf]  ;;  %v7361_v59 = vld [vmem:[%s11740_s1 + $0x434] sm:$0xf]  ;;  %v5397_v32 = vld [vmem:[%s11740_s1 + $0x438] sm:$0xf0] }
  0xfa   :  { %2846 = vmatpush.bf16.msrb.mxu2 %v5200_v8  ;;  %v5485_v8 = vld [vmem:[%s11740_s1 + $0x4e8] sm:$0xf0] }
  0xfb   :  { %2859 = vmatpush.bf16.msrb.mxu3 %v5264_v19  ;;  %v5328_v19 = vor.u32 %v7343_v0, %v5325_v1  ;;  %v5488_v23 = vor.u32 %v7383_v21, %v5485_v8  ;;  %v7393_v0 = vld [vmem:[%s11740_s1 + $0x534] sm:$0xf]  ;;  %v5525_v1 = vld [vmem:[%s11740_s1 + $0x538] sm:$0xf0]  ;;  %v7359_v8 = vld [vmem:[%s11740_s1 + $0x424] sm:$0xf] }
  0xfc   :  { %2869 = vmatpush.bf16.msra.mxu0 %v5352_v22  ;;  %v5424_v22 = vor.u32 %v7367_v26, %v5421_v3  ;;  %v7415_v26 = vld [vmem:[%s11740_s1 + $0x5e4] sm:$0xf]  ;;  %v5400_v3 = vor.u32 %v7361_v59, %v5397_v32  ;;  %v5528_v11 = vor.u32 %v7393_v0, %v5525_v1  ;;  %v5437_v59 = vld [vmem:[%s11740_s1 + $0x488] sm:$0xf0]  ;;  %v7433_v0 = vld [vmem:[%s11740_s1 + $0x674] sm:$0xf] }
  0xfd   :  { %2834 = vmatpush.bf16.msrb.mxu1 %v5128_v30  ;;  %v7381_v30 = vld [vmem:[%s11740_s1 + $0x4d4] sm:$0xf]  ;;  %v7387_v32 = vld [vmem:[%s11740_s1 + $0x504] sm:$0xf] }
  0xfe   :  { %2847 = vmatpush.bf16.msrb.mxu2 %v5192_v31  ;;  %v5477_v31 = vld [vmem:[%s11740_s1 + $0x4d8] sm:$0xf0] }
  0xff   :  { %2860 = vmatpush.bf16.msrb.mxu3 %v5256_v37  ;;  %v5416_v37 = vor.u32 %v7365_v27, %v5413_v29  ;;  %v7413_v29 = vld [vmem:[%s11740_s1 + $0x5d4] sm:$0xf] }
 0x100   :  { %2870 = vmatpush.bf16.msra.mxu0 %v5344_v38  ;;  %v7363_v38 = vld [vmem:[%s11740_s1 + $0x444] sm:$0xf]  ;;  %v9657_v43 = vpop.f32.mrf.mxu0 }
 0x101   :  { %2835 = vmatpush.bf16.msrb.mxu1 %v5120_v57  ;;  %v9668_v56 = vpop.f32.mrf.mxu1  ;;  %v5408_v57 = vor.u32 %v7363_v38, %v5405_v39  ;;  %v5445_v38 = vld [vmem:[%s11740_s1 + $0x498] sm:$0xf0]  ;;  %v7389_v39 = vld [vmem:[%s11740_s1 + $0x514] sm:$0xf] }
 0x102   :  { %2848 = vmatpush.bf16.msrb.mxu2 %v5184_v58  ;;  %v5472_v58 = vor.u32 %v7379_v40, %v5469_v41  ;;  %v7411_v40 = vld [vmem:[%s11740_s1 + $0x5c4] sm:$0xf]  ;;  %v5597_v41 = vld [vmem:[%s11740_s1 + $0x5c8] sm:$0xf0] }
 0x103   :  { %2861 = vmatpush.bf16.msrb.mxu3 %v5248_v60  ;;  %v5536_v60 = vor.u32 %v7395_v42, %v5533_v44 }
 0x104   :  { %2871 = vmatpush.bf16.msra.mxu0 %v5336_v61  ;;  %2836 = vmatmul.bf16.vlgmr.msrb.gmra.mxu1 %v8296_v51  ;;  %v5309_v51 = vld [vmem:[%s11740_s1 + $0x388] sm:$0xf0]  ;;  %v5624_v61 = vor.u32 %v7417_v45, %v5621_v52  ;;  %v7355_v45 = vld [vmem:[%s11740_s1 + $0x404] sm:$0xf] }
 0x105   :  { %2880 = vmatpush.bf16.msra.mxu1 %v5432_v62  ;;  %2849 = vmatmul.bf16.vlgmr.msrb.gmra.mxu2 %v8303_v55  ;;  %v7397_v55 = vld [vmem:[%s11740_s1 + $0x554] sm:$0xf]  ;;  %v5312_v54 = vor.u32 %v7339_v36, %v5309_v51  ;;  %v5381_v36 = vld [vmem:[%s11740_s1 + $0x418] sm:$0xf0]  ;;  %v5373_v52 = vld [vmem:[%s11740_s1 + $0x408] sm:$0xf0] }
 0x106   :  { %2893 = vmatpush.bf16.msra.mxu2 %v5496_v63  ;;  %2862 = vmatmul.bf16.vlgmr.msrb.gmra.mxu3 %v8294_v50  ;;  %v5480_v50 = vor.u32 %v7381_v30, %v5477_v31  ;;  %v5544_v34 = vor.u32 %v7397_v55, %v5541_v33  ;;  %v7377_v62 = vld [vmem:[%s11740_s1 + $0x4b4] sm:$0xf]  ;;  %v5461_v63 = vld [vmem:[%s11740_s1 + $0x4b8] sm:$0xf0]  ;;  %v5392_v33 = vor.u32 %v7359_v8, %v5389_v10 }
 0x107   :  { %2906 = vmatpush.bf16.msra.mxu3 %v5560_v2  ;;  %v5613_v2 = vld [vmem:[%s11740_s1 + $0x5e8] sm:$0xf0]  ;;  %v5464_v21 = vor.u32 %v7377_v62, %v5461_v63  ;;  %v5605_v30 = vld [vmem:[%s11740_s1 + $0x5d8] sm:$0xf0]  ;;  %v7373_v51 = vld [vmem:[%s11740_s1 + $0x494] sm:$0xf] }
 0x108   :  { %2872 = vmatpush.bf16.msra.mxu0 %v5328_v19  ;;  %v9700_v19 = vpop.f32.mrf.mxu2  ;;  %v2618_v31 = vpop.f32.mrf.mxu0  ;;  %v5448_v44 = vor.u32 %v7373_v51, %v5445_v38  ;;  %v7409_v62 = vld [vmem:[%s11740_s1 + $0x5b4] sm:$0xf]  ;;  %v5589_v63 = vld [vmem:[%s11740_s1 + $0x5b8] sm:$0xf0] }
 0x109   :  { %2881 = vmatpush.bf16.msra.mxu1 %v5424_v22  ;;  %v5616_v22 = vor.u32 %v7415_v26, %v5613_v2  ;;  %v9712_v27 = vpop.f32.mrf.mxu3  ;;  %v2631_v55 = vpop.f32.mrf.mxu1  ;;  %v5685_v26 = vld [vmem:[%s11740_s1 + $0x678] sm:$0xf0]  ;;  %v7449_v2 = vld [vmem:[%s11740_s1 + $0x6f4] sm:$0xf] }
 0x10a   :  { %2894 = vmatpush.bf16.msra.mxu2 %v5488_v23  ;;  %v7375_v23 = vld [vmem:[%s11740_s1 + $0x4a4] sm:$0xf]  ;;  %v7465_v10 = vld [vmem:[%s11740_s1 + $0x774] sm:$0xf]  ;;  %v5677_v55 = vld [vmem:[%s11740_s1 + $0x668] sm:$0xf0] }
 0x10b   :  { %2907 = vmatpush.bf16.msra.mxu3 %v5552_v28  ;;  %v5517_v28 = vld [vmem:[%s11740_s1 + $0x528] sm:$0xf0]  ;;  %v7405_v38 = vld [vmem:[%s11740_s1 + $0x594] sm:$0xf] }
 0x10c   :  { %2873 = vmatpush.bf16.msra.mxu0 %v5320_v35  ;;  %v7357_v35 = vld [vmem:[%s11740_s1 + $0x414] sm:$0xf] }
 0x10d   :  { %2882 = vmatpush.bf16.msra.mxu1 %v5416_v37  ;;  %v5520_v37 = vor.u32 %v7391_v25, %v5517_v28  ;;  %v5384_v42 = vor.u32 %v7357_v35, %v5381_v36  ;;  %v7407_v28 = vld [vmem:[%s11740_s1 + $0x5a4] sm:$0xf]  ;;  %v5805_v36 = vld [vmem:[%s11740_s1 + $0x768] sm:$0xf0] }
 0x10e   :  { %2895 = vmatpush.bf16.msra.mxu2 %v5480_v50  ;;  %v5608_v50 = vor.u32 %v7413_v29, %v5605_v30  ;;  %v5581_v29 = vld [vmem:[%s11740_s1 + $0x5a8] sm:$0xf0]  ;;  %v7431_v30 = vld [vmem:[%s11740_s1 + $0x664] sm:$0xf] }
 0x10f   :  { %2908 = vmatpush.bf16.msra.mxu3 %v5544_v34  ;;  %v5509_v34 = vld [vmem:[%s11740_s1 + $0x518] sm:$0xf0]  ;;  %v7463_v35 = vld [vmem:[%s11740_s1 + $0x764] sm:$0xf] }
 0x110   :  { %2874 = vmatpush.bf16.msra.mxu0 %v5312_v54  ;;  %v7371_v54 = vld [vmem:[%s11740_s1 + $0x484] sm:$0xf] }
 0x111   :  { %2883 = vmatpush.bf16.msra.mxu1 %v5408_v57  ;;  %v5512_v57 = vor.u32 %v7389_v39, %v5509_v34  ;;  %v2657_v1 = vpop.f32.mrf.mxu3  ;;  %v5440_v8 = vor.u32 %v7371_v54, %v5437_v59  ;;  %v5573_v39 = vld [vmem:[%s11740_s1 + $0x598] sm:$0xf0]  ;;  %v7429_v34 = vld [vmem:[%s11740_s1 + $0x654] sm:$0xf]  ;;  %v7403_v54 = vld [vmem:[%s11740_s1 + $0x584] sm:$0xf] }
 0x112   :  { %2896 = vmatpush.bf16.msra.mxu2 %v5472_v58  ;;  %v5600_v58 = vor.u32 %v7411_v40, %v5597_v41  ;;  %v5808_v40 = vor.u32 %v7463_v35, %v5805_v36  ;;  %v5669_v41 = vld [vmem:[%s11740_s1 + $0x658] sm:$0xf0]  ;;  %v5661_v59 = vld [vmem:[%s11740_s1 + $0x648] sm:$0xf0]  ;;  %v7481_v1 = vld [vmem:[%s11740_s1 + $0x7f4] sm:$0xf] }
 0x113   :  { %2909 = vmatpush.bf16.msra.mxu3 %v5536_v60  ;;  %2875 = vmatmul.bf16.vlgmr.msra.gmra.mxu0 %v8298_v53  ;;  %v5456_v53 = vor.u32 %v7375_v23, %v5453_v24  ;;  %v5501_v60 = vld [vmem:[%s11740_s1 + $0x508] sm:$0xf0]  ;;  %v5592_v23 = vor.u32 %v7409_v62, %v5589_v63  ;;  %v5688_v24 = vor.u32 %v7433_v0, %v5685_v26  ;;  %v7459_v62 = vld [vmem:[%s11740_s1 + $0x744] sm:$0xf]  ;;  %v5877_v26 = vld [vmem:[%s11740_s1 + $0x7f8] sm:$0xf0] }
 0x114   :  { %2919 = vmatpush.bf16.msrb.mxu0 %v5624_v61  ;;  %v2644_v61 = vpop.f32.mrf.mxu2  ;;  %v5789_v0 = vld [vmem:[%s11740_s1 + $0x748] sm:$0xf0] }
 0x115   :  { %2884 = vmatpush.bf16.msra.mxu1 %v5400_v3  ;;  %v5749_v3 = vld [vmem:[%s11740_s1 + $0x6f8] sm:$0xf0]  ;;  %v5725_v61 = vld [vmem:[%s11740_s1 + $0x6c8] sm:$0xf0] }
 0x116   :  { %2897 = vmatpush.bf16.msra.mxu2 %v5464_v21  ;;  %v5376_v21 = vor.u32 %v7355_v45, %v5373_v52  ;;  %v5752_v25 = vor.u32 %v7449_v2, %v5749_v3  ;;  %v5797_v45 = vld [vmem:[%s11740_s1 + $0x758] sm:$0xf0]  ;;  %v5576_v52 = vor.u32 %v7405_v38, %v5573_v39  ;;  %v5645_v35 = vld [vmem:[%s11740_s1 + $0x628] sm:$0xf0]  ;;  %v7455_v39 = vld [vmem:[%s11740_s1 + $0x724] sm:$0xf] }
 0x117   :  { %2910 = vmatpush.bf16.msra.mxu3 %v5528_v11  ;;  %v5813_v11 = vld [vmem:[%s11740_s1 + $0x778] sm:$0xf0]  ;;  %v5709_v38 = vld [vmem:[%s11740_s1 + $0x6a8] sm:$0xf0] }
 0x118   :  { %2920 = vmatpush.bf16.msrb.mxu0 %v5616_v22  ;;  %v5504_v22 = vor.u32 %v7387_v32, %v5501_v60  ;;  %v5816_v31 = vor.u32 %v7465_v10, %v5813_v11  ;;  %v7443_v60 = vld [vmem:[%s11740_s1 + $0x6c4] sm:$0xf]  ;;  %v7425_v10 = vld [vmem:[%s11740_s1 + $0x634] sm:$0xf]  ;;  %v5653_v11 = vld [vmem:[%s11740_s1 + $0x638] sm:$0xf0] }
 0x119   :  { %2885 = vmatpush.bf16.msra.mxu1 %v5392_v33  ;;  %v7447_v33 = vld [vmem:[%s11740_s1 + $0x6e4] sm:$0xf] }
 0x11a   :  { %2898 = vmatpush.bf16.msra.mxu2 %v5456_v53  ;;  %v5741_v53 = vld [vmem:[%s11740_s1 + $0x6e8] sm:$0xf0] }
 0x11b   :  { %2911 = vmatpush.bf16.msra.mxu3 %v5520_v37  ;;  %v5584_v37 = vor.u32 %v7407_v28, %v5581_v29  ;;  %v5744_v51 = vor.u32 %v7447_v33, %v5741_v53  ;;  %v7457_v28 = vld [vmem:[%s11740_s1 + $0x734] sm:$0xf]  ;;  %v5781_v29 = vld [vmem:[%s11740_s1 + $0x738] sm:$0xf0]  ;;  %v7423_v53 = vld [vmem:[%s11740_s1 + $0x624] sm:$0xf] }
 0x11c   :  { %2921 = vmatpush.bf16.msrb.mxu0 %v5608_v50  ;;  %v5680_v50 = vor.u32 %v7431_v30, %v5677_v55  ;;  %v7479_v30 = vld [vmem:[%s11740_s1 + $0x7e4] sm:$0xf]  ;;  %v5656_v55 = vor.u32 %v7425_v10, %v5653_v11  ;;  %v5784_v36 = vor.u32 %v7457_v28, %v5781_v29  ;;  %v5757_v11 = vld [vmem:[%s11740_s1 + $0x708] sm:$0xf0]  ;;  %v7497_v28 = vld [vmem:[%s11740_s1 + $0x874] sm:$0xf] }
 0x11d   :  { %2886 = vmatpush.bf16.msra.mxu1 %v5384_v42  ;;  %v7445_v42 = vld [vmem:[%s11740_s1 + $0x6d4] sm:$0xf]  ;;  %v7451_v10 = vld [vmem:[%s11740_s1 + $0x704] sm:$0xf] }
 0x11e   :  { %2899 = vmatpush.bf16.msra.mxu2 %v5448_v44  ;;  %v5733_v44 = vld [vmem:[%s11740_s1 + $0x6d8] sm:$0xf0] }
 0x11f   :  { %2912 = vmatpush.bf16.msra.mxu3 %v5512_v57  ;;  %v5672_v57 = vor.u32 %v7429_v34, %v5669_v41  ;;  %v7477_v41 = vld [vmem:[%s11740_s1 + $0x7d4] sm:$0xf] }
 0x120   :  { %2922 = vmatpush.bf16.msrb.mxu0 %v5600_v58  ;;  %v7427_v58 = vld [vmem:[%s11740_s1 + $0x644] sm:$0xf]  ;;  %v9861_v63 = vpop.f32.mrf.mxu0 }
 0x121   :  { %2887 = vmatpush.bf16.msra.mxu1 %v5376_v21  ;;  %v9872_v3 = vpop.f32.mrf.mxu1  ;;  %v5664_v21 = vor.u32 %v7427_v58, %v5661_v59  ;;  %v5701_v58 = vld [vmem:[%s11740_s1 + $0x698] sm:$0xf0]  ;;  %v7453_v59 = vld [vmem:[%s11740_s1 + $0x714] sm:$0xf] }
 0x122   :  { %2900 = vmatpush.bf16.msra.mxu2 %v5440_v8  ;;  %v5728_v8 = vor.u32 %v7443_v60, %v5725_v61  ;;  %v5765_v60 = vld [vmem:[%s11740_s1 + $0x718] sm:$0xf0]  ;;  %v7475_v61 = vld [vmem:[%s11740_s1 + $0x7c4] sm:$0xf] }
 0x123   :  { %2913 = vmatpush.bf16.msra.mxu3 %v5504_v22  ;;  %v5792_v22 = vor.u32 %v7459_v62, %v5789_v0  ;;  %v5853_v62 = vld [vmem:[%s11740_s1 + $0x7c8] sm:$0xf0] }
 0x124   :  { %2923 = vmatpush.bf16.msrb.mxu0 %v5592_v23  ;;  %2888 = vmatmul.bf16.vlgmr.msra.gmra.mxu1 %v8573_v12  ;;  %v7461_v12 = vld [vmem:[%s11740_s1 + $0x754] sm:$0xf]  ;;  %v5880_v23 = vor.u32 %v7481_v1, %v5877_v26  ;;  %v7435_v26 = vld [vmem:[%s11740_s1 + $0x684] sm:$0xf] }
 0x125   :  { %2932 = vmatpush.bf16.msrb.mxu1 %v5688_v24  ;;  %2901 = vmatmul.bf16.vlgmr.msra.gmra.mxu2 %v8583_v16  ;;  %v5736_v16 = vor.u32 %v7445_v42, %v5733_v44  ;;  %v5800_v32 = vor.u32 %v7461_v12, %v5797_v45  ;;  %v7441_v24 = vld [vmem:[%s11740_s1 + $0x6b4] sm:$0xf]  ;;  %v5861_v42 = vld [vmem:[%s11740_s1 + $0x7d8] sm:$0xf0]  ;;  %v5648_v45 = vor.u32 %v7423_v53, %v5645_v35 }
 0x126   :  { %2945 = vmatpush.bf16.msrb.mxu2 %v5752_v25  ;;  %2914 = vmatmul.bf16.vlgmr.msra.gmra.mxu3 %v8581_v15  ;;  %v5565_v15 = vld [vmem:[%s11740_s1 + $0x588] sm:$0xf0]  ;;  %v5717_v25 = vld [vmem:[%s11740_s1 + $0x6b8] sm:$0xf0]  ;;  %v7529_v35 = vld [vmem:[%s11740_s1 + $0x974] sm:$0xf] }
 0x127   :  { %2958 = vmatpush.bf16.msrb.mxu3 %v5816_v31  ;;  %v5568_v2 = vor.u32 %v7403_v54, %v5565_v15  ;;  %v5869_v31 = vld [vmem:[%s11740_s1 + $0x7e8] sm:$0xf0]  ;;  %v5720_v33 = vor.u32 %v7441_v24, %v5717_v25  ;;  %v5637_v54 = vld [vmem:[%s11740_s1 + $0x618] sm:$0xf0]  ;;  %v7437_v15 = vld [vmem:[%s11740_s1 + $0x694] sm:$0xf] }
 0x128   :  { %2924 = vmatpush.bf16.msrb.mxu0 %v5584_v37  ;;  %v9904_v37 = vpop.f32.mrf.mxu2  ;;  %v2670_v44 = vpop.f32.mrf.mxu0  ;;  %v5704_v1 = vor.u32 %v7437_v15, %v5701_v58  ;;  %v7473_v24 = vld [vmem:[%s11740_s1 + $0x7b4] sm:$0xf]  ;;  %v5845_v25 = vld [vmem:[%s11740_s1 + $0x7b8] sm:$0xf0] }
 0x129   :  { %2933 = vmatpush.bf16.msrb.mxu1 %v5680_v50  ;;  %v5872_v50 = vor.u32 %v7479_v30, %v5869_v31  ;;  %v9916_v34 = vpop.f32.mrf.mxu3  ;;  %v2683_v12 = vpop.f32.mrf.mxu1  ;;  %v5941_v30 = vld [vmem:[%s11740_s1 + $0x878] sm:$0xf0]  ;;  %v5933_v44 = vld [vmem:[%s11740_s1 + $0x868] sm:$0xf0] }
 0x12a   :  { %2946 = vmatpush.bf16.msrb.mxu2 %v5744_v51  ;;  %v7439_v51 = vld [vmem:[%s11740_s1 + $0x6a4] sm:$0xf]  ;;  %v6005_v31 = vld [vmem:[%s11740_s1 + $0x8f8] sm:$0xf0] }
 0x12b   :  { %2959 = vmatpush.bf16.msrb.mxu3 %v5808_v40  ;;  %v5773_v40 = vld [vmem:[%s11740_s1 + $0x728] sm:$0xf0]  ;;  %v7511_v12 = vld [vmem:[%s11740_s1 + $0x8e4] sm:$0xf] }
 0x12c   :  { %2925 = vmatpush.bf16.msrb.mxu0 %v5576_v52  ;;  %v7421_v52 = vld [vmem:[%s11740_s1 + $0x614] sm:$0xf] }
 0x12d   :  { %2934 = vmatpush.bf16.msrb.mxu1 %v5672_v57  ;;  %v5776_v57 = vor.u32 %v7455_v39, %v5773_v40  ;;  %v5640_v0 = vor.u32 %v7421_v52, %v5637_v54  ;;  %v5837_v40 = vld [vmem:[%s11740_s1 + $0x7a8] sm:$0xf0]  ;;  %v7527_v52 = vld [vmem:[%s11740_s1 + $0x964] sm:$0xf] }
 0x12e   :  { %2947 = vmatpush.bf16.msrb.mxu2 %v5736_v16  ;;  %v5864_v16 = vor.u32 %v7477_v41, %v5861_v42  ;;  %v7495_v41 = vld [vmem:[%s11740_s1 + $0x864] sm:$0xf]  ;;  %v6061_v54 = vld [vmem:[%s11740_s1 + $0x968] sm:$0xf0] }
 0x12f   :  { %2960 = vmatpush.bf16.msrb.mxu3 %v5800_v32  ;;  %v2617_v32 = vadd.f32 %v9657_v43, %v9517_v20  ;;  %v7419_v20 = vld [vmem:[%s11740_s1 + $0x604] sm:$0xf]  ;;  %v5629_v43 = vld [vmem:[%s11740_s1 + $0x608] sm:$0xf0]  ;;  %v5936_v15 = vor.u32 %v7495_v41, %v5933_v44 }
 0x130   :  { %2926 = vmatpush.bf16.msrb.mxu0 %v5568_v2  ;;  %v5768_v2 = vor.u32 %v7453_v59, %v5765_v60  ;;  %v5829_v59 = vld [vmem:[%s11740_s1 + $0x798] sm:$0xf0]  ;;  %v5901_v44 = vld [vmem:[%s11740_s1 + $0x828] sm:$0xf0] }
 0x131   :  { %2935 = vmatpush.bf16.msrb.mxu1 %v5664_v21  ;;  %v5856_v21 = vor.u32 %v7475_v61, %v5853_v62  ;;  %v2709_v29 = vpop.f32.mrf.mxu3  ;;  %v5925_v60 = vld [vmem:[%s11740_s1 + $0x858] sm:$0xf0]  ;;  %v7509_v61 = vld [vmem:[%s11740_s1 + $0x8d4] sm:$0xf] }
 0x132   :  { %2948 = vmatpush.bf16.msrb.mxu2 %v5728_v8  ;;  %v5693_v8 = vld [vmem:[%s11740_s1 + $0x688] sm:$0xf0]  ;;  %v5989_v62 = vld [vmem:[%s11740_s1 + $0x8d8] sm:$0xf0] }
 0x133   :  { %2961 = vmatpush.bf16.msrb.mxu3 %v5792_v22  ;;  %2927 = vmatmul.bf16.vlgmr.msrb.gmra.mxu0 %v8585_v17  ;;  %v5712_v17 = vor.u32 %v7439_v51, %v5709_v38  ;;  %v2696_v22 = vpop.f32.mrf.mxu2  ;;  %v5696_v53 = vor.u32 %v7435_v26, %v5693_v8  ;;  %v5848_v51 = vor.u32 %v7473_v24, %v5845_v25  ;;  %v5821_v26 = vld [vmem:[%s11740_s1 + $0x788] sm:$0xf0]  ;;  %v7545_v25 = vld [vmem:[%s11740_s1 + $0x9f4] sm:$0xf] }
 0x134   :  { %2971 = vmatpush.bf16.msra.mxu0 %v5880_v23  ;;  %v2630_v23 = vadd.f32 %v9668_v56, %v2617_v32  ;;  %v7513_v56 = vld [vmem:[%s11740_s1 + $0x8f4] sm:$0xf]  ;;  %v5944_v38 = vor.u32 %v7497_v28, %v5941_v30  ;;  %v6045_v24 = vld [vmem:[%s11740_s1 + $0x948] sm:$0xf0]  ;;  %v6133_v28 = vld [vmem:[%s11740_s1 + $0x9f8] sm:$0xf0] }
 0x135   :  { %2936 = vmatpush.bf16.msrb.mxu1 %v5656_v55  ;;  %v6008_v39 = vor.u32 %v7513_v56, %v6005_v31  ;;  %v7493_v32 = vld [vmem:[%s11740_s1 + $0x854] sm:$0xf] }
 0x136   :  { %2949 = vmatpush.bf16.msrb.mxu2 %v5720_v33  ;;  %v2643_v55 = vadd.f32 %v9700_v19, %v2630_v23  ;;  %v5632_v33 = vor.u32 %v7419_v20, %v5629_v43  ;;  %v7471_v19 = vld [vmem:[%s11740_s1 + $0x7a4] sm:$0xf]  ;;  %v7489_v31 = vld [vmem:[%s11740_s1 + $0x834] sm:$0xf] }
 0x137   :  { %2962 = vmatpush.bf16.msrb.mxu3 %v5784_v36  ;;  %v6069_v36 = vld [vmem:[%s11740_s1 + $0x978] sm:$0xf0]  ;;  %v7467_v20 = vld [vmem:[%s11740_s1 + $0x784] sm:$0xf] }
 0x138   :  { %2972 = vmatpush.bf16.msra.mxu0 %v5872_v50  ;;  %v5760_v50 = vor.u32 %v7451_v10, %v5757_v11  ;;  %v6072_v42 = vor.u32 %v7529_v35, %v6069_v36  ;;  %v5981_v10 = vld [vmem:[%s11740_s1 + $0x8c8] sm:$0xf0]  ;;  %v7523_v11 = vld [vmem:[%s11740_s1 + $0x944] sm:$0xf]  ;;  %v5824_v29 = vor.u32 %v7467_v20, %v5821_v26  ;;  %v7505_v35 = vld [vmem:[%s11740_s1 + $0x8b4] sm:$0xf] }
 0x139   :  { %2937 = vmatpush.bf16.msrb.mxu1 %v5648_v45  ;;  %v5997_v45 = vld [vmem:[%s11740_s1 + $0x8e8] sm:$0xf0]  ;;  %v5973_v36 = vld [vmem:[%s11740_s1 + $0x8b8] sm:$0xf0]  ;;  %v7539_v26 = vld [vmem:[%s11740_s1 + $0x9c4] sm:$0xf] }
 0x13a   :  { %2950 = vmatpush.bf16.msrb.mxu2 %v5712_v17  ;;  %v2656_v17 = vadd.f32 %v9712_v27, %v2643_v55  ;;  %v6000_v58 = vor.u32 %v7511_v12, %v5997_v45  ;;  %v7469_v27 = vld [vmem:[%s11740_s1 + $0x794] sm:$0xf]  ;;  %v5909_v55 = vld [vmem:[%s11740_s1 + $0x838] sm:$0xf0] }
 0x13b   :  { %2963 = vmatpush.bf16.msrb.mxu3 %v5776_v57  ;;  %v5840_v57 = vor.u32 %v7471_v19, %v5837_v40  ;;  %v6125_v19 = vld [vmem:[%s11740_s1 + $0x9e8] sm:$0xf0]  ;;  %v5912_v41 = vor.u32 %v7489_v31, %v5909_v55  ;;  %v5957_v20 = vld [vmem:[%s11740_s1 + $0x898] sm:$0xf0]  ;;  %v7561_v31 = vld [vmem:[%s11740_s1 + $0xa74] sm:$0xf] }
 0x13c   :  { %2973 = vmatpush.bf16.msra.mxu0 %v5864_v16  ;;  %v2669_v16 = vadd.f32 %v9861_v63, %v2656_v17  ;;  %v6064_v63 = vor.u32 %v7527_v52, %v6061_v54  ;;  %v7503_v52 = vld [vmem:[%s11740_s1 + $0x8a4] sm:$0xf]  ;;  %v5965_v54 = vld [vmem:[%s11740_s1 + $0x8a8] sm:$0xf0] }
 0x13d   :  { %2938 = vmatpush.bf16.msrb.mxu1 %v5640_v0  ;;  %v6053_v0 = vld [vmem:[%s11740_s1 + $0x958] sm:$0xf0] }
 0x13e   :  { %2951 = vmatpush.bf16.msrb.mxu2 %v5704_v1  ;;  %v5832_v1 = vor.u32 %v7469_v27, %v5829_v59  ;;  %v2682_v43 = vadd.f32 %v9872_v3, %v2669_v16  ;;  %v7507_v3 = vld [vmem:[%s11740_s1 + $0x8c4] sm:$0xf]  ;;  %v7541_v27 = vld [vmem:[%s11740_s1 + $0x9d4] sm:$0xf]  ;;  %v6117_v59 = vld [vmem:[%s11740_s1 + $0x9d8] sm:$0xf0] }
 0x13f   :  { %2964 = vmatpush.bf16.msrb.mxu3 %v5768_v2  ;;  %v7491_v2 = vld [vmem:[%s11740_s1 + $0x844] sm:$0xf] }
 0x140   :  { %2974 = vmatpush.bf16.msra.mxu0 %v5856_v21  ;;  %v5917_v21 = vld [vmem:[%s11740_s1 + $0x848] sm:$0xf0]  ;;  %v2695_v22 = vadd.f32 %v9904_v37, %v2682_v43  ;;  %v2720_v23 = vpop.f32.mrf.mxu0  ;;  %v5984_v37 = vor.u32 %v7507_v3, %v5981_v10  ;;  %v7517_v43 = vld [vmem:[%s11740_s1 + $0x914] sm:$0xf]  ;;  %v7483_v3 = vld [vmem:[%s11740_s1 + $0x804] sm:$0xf] }
 0x141   :  { %2939 = vmatpush.bf16.msrb.mxu1 %v5632_v33  ;;  %v2733_v30 = vpop.f32.mrf.mxu1  ;;  %v5920_v56 = vor.u32 %v7491_v2, %v5917_v21  ;;  %v6048_v33 = vor.u32 %v7523_v11, %v6045_v24  ;;  %v6109_v2 = vld [vmem:[%s11740_s1 + $0x9c8] sm:$0xf0]  ;;  %v7499_v11 = vld [vmem:[%s11740_s1 + $0x884] sm:$0xf] }
 0x142   :  { %2952 = vmatpush.bf16.msrb.mxu2 %v5696_v53  ;;  %v6136_v53 = vor.u32 %v7545_v25, %v6133_v28  ;;  %v5885_v10 = vld [vmem:[%s11740_s1 + $0x808] sm:$0xf0]  ;;  %v7515_v25 = vld [vmem:[%s11740_s1 + $0x904] sm:$0xf] }
 0x143   :  { %2965 = vmatpush.bf16.msrb.mxu3 %v5760_v50  ;;  %v7521_v50 = vld [vmem:[%s11740_s1 + $0x934] sm:$0xf]  ;;  %v5949_v24 = vld [vmem:[%s11740_s1 + $0x888] sm:$0xf0] }
 0x144   :  { %2975 = vmatpush.bf16.msra.mxu0 %v5848_v51  ;;  %2940 = vmatmul.bf16.vlgmr.msrb.gmra.mxu1 %v8747_v46  ;;  %v7525_v46 = vld [vmem:[%s11740_s1 + $0x954] sm:$0xf]  ;;  %v2708_v51 = vadd.f32 %v9916_v34, %v2695_v22  ;;  %v7487_v34 = vld [vmem:[%s11740_s1 + $0x824] sm:$0xf]  ;;  %v6013_v28 = vld [vmem:[%s11740_s1 + $0x908] sm:$0xf0] }
 0x145   :  { %2984 = vmatpush.bf16.msra.mxu1 %v5944_v38  ;;  %2953 = vmatmul.bf16.vlgmr.msrb.gmra.mxu2 %v8751_v48  ;;  %v5928_v48 = vor.u32 %v7493_v32, %v5925_v60  ;;  %v6056_v8 = vor.u32 %v7525_v46, %v6053_v0  ;;  %v6037_v38 = vld [vmem:[%s11740_s1 + $0x938] sm:$0xf0]  ;;  %v5904_v60 = vor.u32 %v7487_v34, %v5901_v44 }
 0x146   :  { %2997 = vmatpush.bf16.msra.mxu2 %v6008_v39  ;;  %2966 = vmatmul.bf16.vlgmr.msrb.gmra.mxu3 %v8749_v47  ;;  %v5992_v47 = vor.u32 %v7509_v61, %v5989_v62  ;;  %v7543_v39 = vld [vmem:[%s11740_s1 + $0x9e4] sm:$0xf]  ;;  %v2721_v40 = vadd.f32 %v2720_v23, %v2708_v51  ;;  %v6040_v12 = vor.u32 %v7521_v50, %v6037_v38  ;;  %v7485_v61 = vld [vmem:[%s11740_s1 + $0x814] sm:$0xf]  ;;  %v5893_v62 = vld [vmem:[%s11740_s1 + $0x818] sm:$0xf0] }
 0x147   :  { %3010 = vmatpush.bf16.msra.mxu3 %v6072_v42  ;;  %v5976_v42 = vor.u32 %v7505_v35, %v5973_v36  ;;  %v6128_v17 = vor.u32 %v7543_v39, %v6125_v19  ;;  %v6120_v0 = vor.u32 %v7541_v27, %v6117_v59  ;;  %v5896_v21 = vor.u32 %v7485_v61, %v5893_v62  ;;  %v7577_v35 = vld [vmem:[%s11740_s1 + $0xaf4] sm:$0xf]  ;;  %v6261_v36 = vld [vmem:[%s11740_s1 + $0xaf8] sm:$0xf0] }
 0x148   :  { %2976 = vmatpush.bf16.msra.mxu0 %v5840_v57  ;;  %v2746_v45 = vpop.f32.mrf.mxu2  ;;  %v7519_v57 = vld [vmem:[%s11740_s1 + $0x924] sm:$0xf]  ;;  %v2722_v16 = vpop.f32.mrf.mxu0  ;;  %v6112_v23 = vor.u32 %v7539_v26, %v6109_v2  ;;  %v5888_v51 = vor.u32 %v7483_v3, %v5885_v10  ;;  %v5952_v38 = vor.u32 %v7499_v11, %v5949_v24  ;;  %v7593_v39 = vld [vmem:[%s11740_s1 + $0xb74] sm:$0xf]  ;;  %v6325_v19 = vld [vmem:[%s11740_s1 + $0xb78] sm:$0xf0]  ;;  %v6264_v44 = vor.u32 %v7577_v35, %v6261_v36 }
 0x149   :  { %2985 = vmatpush.bf16.msra.mxu1 %v5936_v15  ;;  %v2759_v15 = vpop.f32.mrf.mxu3  ;;  %v2735_v32 = vpop.f32.mrf.mxu1  ;;  %v7591_v16 = vld [vmem:[%s11740_s1 + $0xb64] sm:$0xf]  ;;  %v6181_v61 = vld [vmem:[%s11740_s1 + $0xa58] sm:$0xf0]  ;;  %v7573_v62 = vld [vmem:[%s11740_s1 + $0xad4] sm:$0xf] }
 0x14a   :  { %2998 = vmatpush.bf16.msra.mxu2 %v6000_v58  ;;  %v6029_v58 = vld [vmem:[%s11740_s1 + $0x928] sm:$0xf0]  ;;  %v7533_v32 = vld [vmem:[%s11740_s1 + $0x994] sm:$0xf]  ;;  %v7571_v2 = vld [vmem:[%s11740_s1 + $0xac4] sm:$0xf] }
 0x14b   :  { %3011 = vmatpush.bf16.msra.mxu3 %v6064_v63  ;;  %v2734_v63 = vadd.f32 %v2733_v30, %v2721_v40  ;;  %v6032_v46 = vor.u32 %v7519_v57, %v6029_v58  ;;  %v6016_v40 = vor.u32 %v7515_v25, %v6013_v28  ;;  %v6253_v57 = vld [vmem:[%s11740_s1 + $0xae8] sm:$0xf0]  ;;  %v7587_v3 = vld [vmem:[%s11740_s1 + $0xb44] sm:$0xf]  ;;  %v7824_v10 = vld [vmem:[%s11741_s2] sm:$0x3] }
 0x14c   :  { %2977 = vmatpush.bf16.msra.mxu0 %v5832_v1  ;;  %v7501_v1 = vld [vmem:[%s11740_s1 + $0x894] sm:$0xf]  ;;  %v6173_v26 = vld [vmem:[%s11740_s1 + $0xa48] sm:$0xf0]  ;;  %v428_v11 = vperm.slane %v7824_v10, 1 }
 0x14d   :  { %2986 = vmatpush.bf16.msra.mxu1 %v5928_v48  ;;  %v2747_v48 = vadd.f32 %v2746_v45, %v2734_v63  ;;  %v7559_v45 = vld [vmem:[%s11740_s1 + $0xa64] sm:$0xf]  ;;  %v6085_v63 = vld [vmem:[%s11740_s1 + $0x998] sm:$0xf0]  ;;  %v7585_v35 = vld [vmem:[%s11740_s1 + $0xb34] sm:$0xf] }
 0x14e   :  { %2999 = vmatpush.bf16.msra.mxu2 %v5992_v47  ;;  %v6021_v47 = vld [vmem:[%s11740_s1 + $0x918] sm:$0xf0]  ;;  %v6205_v10 = vld [vmem:[%s11740_s1 + $0xa88] sm:$0xf0] }
 0x14f   :  { %3012 = vmatpush.bf16.msra.mxu3 %v6056_v8  ;;  %v5960_v8 = vor.u32 %v7501_v1, %v5957_v20  ;;  %v6024_v22 = vor.u32 %v7517_v43, %v6021_v47  ;;  %v2760_v30 = vadd.f32 %v2759_v15, %v2747_v48  ;;  %v6317_v15 = vld [vmem:[%s11740_s1 + $0xb68] sm:$0xf0]  ;;  %v6309_v1 = vld [vmem:[%s11740_s1 + $0xb58] sm:$0xf0]  ;;  %v6088_v20 = vor.u32 %v7533_v32, %v6085_v63  ;;  %v7531_v43 = vld [vmem:[%s11740_s1 + $0x984] sm:$0xf] }
 0x150   :  { %2978 = vmatpush.bf16.msra.mxu0 %v5824_v29  ;;  %v2748_v29 = vpop.f32.mrf.mxu2  ;;  %v7555_v47 = vld [vmem:[%s11740_s1 + $0xa44] sm:$0xf]  ;;  %v6389_v24 = vld [vmem:[%s11740_s1 + $0xbf8] sm:$0xf0] }
 0x151   :  { %2987 = vmatpush.bf16.msra.mxu1 %v5920_v56  ;;  %v7537_v56 = vld [vmem:[%s11740_s1 + $0x9b4] sm:$0xf]  ;;  %v2761_v55 = vpop.f32.mrf.mxu3  ;;  %v6176_v29 = vor.u32 %v7555_v47, %v6173_v26  ;;  %v6141_v47 = vld [vmem:[%s11740_s1 + $0xa08] sm:$0xf0] }
 0x152   :  { %3000 = vmatpush.bf16.msra.mxu2 %v5984_v37  ;;  %v6101_v37 = vld [vmem:[%s11740_s1 + $0x9b8] sm:$0xf0] }
 0x153   :  { %3013 = vmatpush.bf16.msra.mxu3 %v6048_v33  ;;  %2979 = vmatmul.bf16.vlgmr.msra.gmra.mxu0 %v8753_v49  ;;  %v5968_v49 = vor.u32 %v7503_v52, %v5965_v54  ;;  %v2772_v33 = vpop.f32.mrf.mxu0  ;;  %v6189_v52 = vld [vmem:[%s11740_s1 + $0xa68] sm:$0xf0]  ;;  %v7575_v54 = vld [vmem:[%s11740_s1 + $0xae4] sm:$0xf] }
 0x154   :  { %3023 = vmatpush.bf16.msrb.mxu0 %v6136_v53  ;;  %v6197_v53 = vld [vmem:[%s11740_s1 + $0xa78] sm:$0xf0]  ;;  %v10192_v50 = vadd.f32 %v2772_v33, %v2760_v30  ;;  %v6192_v27 = vor.u32 %v7559_v45, %v6189_v52  ;;  %v6256_v59 = vor.u32 %v7575_v54, %v6253_v57  ;;  %v7569_v33 = vld [vmem:[%s11740_s1 + $0xab4] sm:$0xf]  ;;  %v7567_v45 = vld [vmem:[%s11740_s1 + $0xaa4] sm:$0xf] }
 0x155   :  { %2988 = vmatpush.bf16.msra.mxu1 %v5912_v41  ;;  %v6104_v41 = vor.u32 %v7537_v56, %v6101_v37  ;;  %v6200_v34 = vor.u32 %v7561_v31, %v6197_v53  ;;  %v7553_v56 = vld [vmem:[%s11740_s1 + $0xa34] sm:$0xf]  ;;  %v6165_v37 = vld [vmem:[%s11740_s1 + $0xa38] sm:$0xf0]  ;;  %v7583_v52 = vld [vmem:[%s11740_s1 + $0xb24] sm:$0xf] }
 0x156   :  { %3001 = vmatpush.bf16.msra.mxu2 %v5976_v42  ;;  %v7535_v42 = vld [vmem:[%s11740_s1 + $0x9a4] sm:$0xf]  ;;  %4707 = vst [vmem:[#allocation2] sm:$0x3] %v10192_v50  ;;  %v6229_v53 = vld [vmem:[%s11740_s1 + $0xab8] sm:$0xf0] }
 0x157   :  { %3014 = vmatpush.bf16.msra.mxu3 %v6040_v12  ;;  %v6093_v12 = vld [vmem:[%s11740_s1 + $0x9a8] sm:$0xf0]  ;;  %4831 = dma.vmem_to_hbm [thread:$0]  %s4827_s12, 32, %s4829_s0, [#allocation3]  }
 0x158   :  { %3024 = vmatpush.bf16.msrb.mxu0 %v6128_v17  ;;  %v6328_v17 = vor.u32 %v7593_v39, %v6325_v19  ;;  %v6096_v58 = vor.u32 %v7535_v42, %v6093_v12  ;;  %v6381_v39 = vld [vmem:[%s11740_s1 + $0xbe8] sm:$0xf0]  ;;  %v6168_v19 = vor.u32 %v7553_v56, %v6165_v37 }
 0x159   :  { %2989 = vmatpush.bf16.msra.mxu1 %v5904_v60  ;;  %v7557_v60 = vld [vmem:[%s11740_s1 + $0xa54] sm:$0xf]  ;;  %v6157_v42 = vld [vmem:[%s11740_s1 + $0xa28] sm:$0xf0] }
 0x15a   :  { %3002 = vmatpush.bf16.msra.mxu2 %v5968_v49  ;;  %v6320_v49 = vor.u32 %v7591_v16, %v6317_v15  ;;  %v6285_v16 = vld [vmem:[%s11740_s1 + $0xb28] sm:$0xf0]  ;;  %v7605_v15 = vld [vmem:[%s11740_s1 + $0xbd4] sm:$0xf] }
 0x15b   :  { %3015 = vmatpush.bf16.msra.mxu3 %v6032_v46  ;;  %v6245_v46 = vld [vmem:[%s11740_s1 + $0xad8] sm:$0xf0] }
 0x15c   :  { %3025 = vmatpush.bf16.msrb.mxu0 %v6120_v0  ;;  %v2774_v0 = vpop.f32.mrf.mxu0  ;;  %v6248_v48 = vor.u32 %v7573_v62, %v6245_v46  ;;  %v7565_v62 = vld [vmem:[%s11740_s1 + $0xa94] sm:$0xf]  ;;  %v6213_v46 = vld [vmem:[%s11740_s1 + $0xa98] sm:$0xf0] }
 0x15d   :  { %2990 = vmatpush.bf16.msra.mxu1 %v5896_v21  ;;  %v7581_v0 = vld [vmem:[%s11740_s1 + $0xb14] sm:$0xf] }
 0x15e   :  { %3003 = vmatpush.bf16.msra.mxu2 %v5960_v8  ;;  %v6237_v8 = vld [vmem:[%s11740_s1 + $0xac8] sm:$0xf0] }
 0x15f   :  { %3016 = vmatpush.bf16.msra.mxu3 %v6024_v22  ;;  %v6301_v22 = vld [vmem:[%s11740_s1 + $0xb48] sm:$0xf0]  ;;  %v6240_v30 = vor.u32 %v7571_v2, %v6237_v8 }
 0x160   :  { %3026 = vmatpush.bf16.msrb.mxu0 %v6112_v23  ;;  %v7609_v23 = vld [vmem:[%s11740_s1 + $0xbf4] sm:$0xf]  ;;  %v6304_v31 = vor.u32 %v7587_v3, %v6301_v22  ;;  %v7563_v3 = vld [vmem:[%s11740_s1 + $0xa84] sm:$0xf] }
 0x161   :  { %2991 = vmatpush.bf16.msra.mxu1 %v5888_v51  ;;  %v2785_v28 = vpop.f32.mrf.mxu1  ;;  %v6392_v55 = vor.u32 %v7609_v23, %v6389_v24  ;;  %v6293_v51 = vld [vmem:[%s11740_s1 + $0xb38] sm:$0xf0]  ;;  %v6269_v23 = vld [vmem:[%s11740_s1 + $0xb08] sm:$0xf0]  ;;  %v7601_v24 = vld [vmem:[%s11740_s1 + $0xbb4] sm:$0xf]  ;;  %v6208_v56 = vor.u32 %v7563_v3, %v6205_v10 }
 0x162   :  { %3004 = vmatpush.bf16.msra.mxu2 %v5952_v38  ;;  %v2786_v36 = vadd.f32 %v2785_v28, %v428_v11  ;;  %v7607_v38 = vld [vmem:[%s11740_s1 + $0xbe4] sm:$0xf]  ;;  %v7617_v28 = vld [vmem:[%s11740_s1 + $0xc34] sm:$0xf]  ;;  %v7131_v3 = vld [vmem:[%s11743_s4 + $0x5dc] sm:$0xf0] }
 0x163   :  { %3017 = vmatpush.bf16.msra.mxu3 %v6016_v40  ;;  %v6232_v40 = vor.u32 %v7569_v33, %v6229_v53  ;;  %v6384_v12 = vor.u32 %v7607_v38, %v6381_v39  ;;  %v7579_v11 = vld [vmem:[%s11740_s1 + $0xb04] sm:$0xf]  ;;  %v6349_v53 = vld [vmem:[%s11740_s1 + $0xba8] sm:$0xf0]  ;;  %v7137_v10 = vld [vmem:[%s11743_s4 + $0x580] sm:$0xf] }
 0x164   :  { %3027 = vmatpush.bf16.msrb.mxu0 %v6104_v41  ;;  %2992 = vmatmul.bf16.vlgmr.msra.gmra.mxu1 %v8984_v9  ;;  %v7589_v9 = vld [vmem:[%s11740_s1 + $0xb54] sm:$0xf]  ;;  %v7551_v41 = vld [vmem:[%s11740_s1 + $0xa24] sm:$0xf]  ;;  %v6272_v37 = vor.u32 %v7579_v11, %v6269_v23 }
 0x165   :  { %3036 = vmatpush.bf16.msrb.mxu1 %v6200_v34  ;;  %3005 = vmatmul.bf16.vlgmr.msra.gmra.mxu2 %v8994_v14  ;;  %v6077_v14 = vld [vmem:[%s11740_s1 + $0x988] sm:$0xf0]  ;;  %v6312_v21 = vor.u32 %v7589_v9, %v6309_v1  ;;  %v6160_v32 = vor.u32 %v7551_v41, %v6157_v42  ;;  %v6277_v9 = vld [vmem:[%s11740_s1 + $0xb18] sm:$0xf0]  ;;  %v7603_v1 = vld [vmem:[%s11740_s1 + $0xbc4] sm:$0xf] }
 0x166   :  { %3049 = vmatpush.bf16.msrb.mxu2 %v6264_v44  ;;  %3018 = vmatmul.bf16.vlgmr.msra.gmra.mxu3 %v8992_v13  ;;  %v6184_v13 = vor.u32 %v7557_v60, %v6181_v61  ;;  %v6080_v25 = vor.u32 %v7531_v43, %v6077_v14  ;;  %v6296_v44 = vor.u32 %v7585_v35, %v6293_v51  ;;  %v6149_v60 = vld [vmem:[%s11740_s1 + $0xa18] sm:$0xf0]  ;;  %v7599_v33 = vld [vmem:[%s11740_s1 + $0xba4] sm:$0xf]  ;;  %v7613_v41 = vld [vmem:[%s11740_s1 + $0xc14] sm:$0xf] }
 0x167   :  { %3062 = vmatpush.bf16.msrb.mxu3 %v6328_v17  ;;  %v6221_v17 = vld [vmem:[%s11740_s1 + $0xaa8] sm:$0xf0]  ;;  %v7615_v35 = vld [vmem:[%s11740_s1 + $0xc24] sm:$0xf]  ;;  %v6352_v38 = vor.u32 %v7599_v33, %v6349_v53  ;;  %v6405_v42 = vld [vmem:[%s11740_s1 + $0xc18] sm:$0xf0] }
 0x168   :  { %3028 = vmatpush.bf16.msrb.mxu0 %v6096_v58  ;;  %v2798_v34 = vpop.f32.mrf.mxu2  ;;  %v6373_v58 = vld [vmem:[%s11740_s1 + $0xbd8] sm:$0xf0]  ;;  %v6224_v63 = vor.u32 %v7567_v45, %v6221_v17  ;;  %v7807_v11 = vld [vmem:[%s11743_s4 + $0x5e0] sm:$0xf0]  ;;  %v7031_v53 = vld [vmem:[%s11743_s4 + $0x514] sm:$0xf0] }
 0x169   :  { %3037 = vmatpush.bf16.msrb.mxu1 %v6192_v27  ;;  %v2799_v54 = vadd.f32 %v2798_v34, %v2786_v36  ;;  %v2811_v57 = vpop.f32.mrf.mxu3  ;;  %v6376_v61 = vor.u32 %v7605_v15, %v6373_v58  ;;  %v6413_v36 = vld [vmem:[%s11740_s1 + $0xc28] sm:$0xf0]  ;;  %v7138_v23 = vor.u32 %v7807_v11, %v7137_v10  ;;  %v7681_v10 = vld [vmem:[%s11743_s4 + $0x1f0] sm:$0xf0] }
 0x16a   :  { %3050 = vmatpush.bf16.msrb.mxu2 %v6256_v59  ;;  %v2787_v59 = vpop.f32.mrf.mxu1  ;;  %v6416_v39 = vor.u32 %v7615_v35, %v6413_v36  ;;  %v7037_v35 = vld [vmem:[%s11743_s4 + $0x4b8] sm:$0xf]  ;;  %v7782_v36 = vld [vmem:[%s11743_s4 + $0x518] sm:$0xf0]  ;;  %v7669_v11 = vld [vmem:[%s11743_s4 + $0x194] sm:$0xf] }
 0x16b   :  { %3063 = vmatpush.bf16.msrb.mxu3 %v6320_v49  ;;  %v2812_v27 = vadd.f32 %v2811_v57, %v2799_v54  ;;  %v6288_v49 = vor.u32 %v7583_v52, %v6285_v16  ;;  %v7825_v59 = vld [vmem:[#allocation1] sm:$0xff] }
 0x16c   :  { %3029 = vmatpush.bf16.msrb.mxu0 %v6088_v20  ;;  %v6365_v20 = vld [vmem:[%s11740_s1 + $0xbc8] sm:$0xf0] }
 0x16d   :  { %3038 = vmatpush.bf16.msrb.mxu1 %v6184_v13  ;;  %v6216_v13 = vor.u32 %v7565_v62, %v6213_v46  ;;  %v6368_v8 = vor.u32 %v7603_v1, %v6365_v20 }
 0x16e   :  { %3051 = vmatpush.bf16.msrb.mxu2 %v6248_v48  ;;  %v7547_v48 = vld [vmem:[%s11740_s1 + $0xa04] sm:$0xf] }
 0x16f   :  { %3064 = vmatpush.bf16.msrb.mxu3 %v6312_v21  ;;  %v6280_v21 = vor.u32 %v7581_v0, %v6277_v9 }
 0x170   :  { %3030 = vmatpush.bf16.msrb.mxu0 %v6080_v25  ;;  %v2824_v43 = vpop.f32.mrf.mxu0  ;;  %v2800_v2 = vpop.f32.mrf.mxu2  ;;  %v6357_v25 = vld [vmem:[%s11740_s1 + $0xbb8] sm:$0xf0] }
 0x171   :  { %3039 = vmatpush.bf16.msrb.mxu1 %v6176_v29  ;;  %v2825_v26 = vadd.f32 %v2824_v43, %v2812_v27  ;;  %v2813_v22 = vpop.f32.mrf.mxu3  ;;  %v6421_v29 = vld [vmem:[%s11740_s1 + $0xc38] sm:$0xf0] }
 0x172   :  { %3052 = vmatpush.bf16.msrb.mxu2 %v6240_v30  ;;  %v6144_v30 = vor.u32 %v7547_v48, %v6141_v47  ;;  %v7806_v2 = vld [vmem:[%s11743_s4 + $0x5d8] sm:$0xf0] }
 0x173   :  { %3065 = vmatpush.bf16.msrb.mxu3 %v6304_v31  ;;  %3031 = vmatmul.bf16.vlgmr.msrb.gmra.mxu0 %v8996_v18  ;;  %v7549_v18 = vld [vmem:[%s11740_s1 + $0xa14] sm:$0xf]  ;;  %v6360_v31 = vor.u32 %v7601_v24, %v6357_v25  ;;  %v7795_v24 = vld [vmem:[%s11743_s4 + $0x584] sm:$0xf]  ;;  %v7139_v25 = vld [vmem:[%s11743_s4 + $0x5e4] sm:$0xf0] }
 0x174   :  { %3075 = vmatpush.bf16.msra.mxu0 %v6392_v55  ;;  %v6152_v14 = vor.u32 %v7549_v18, %v6149_v60  ;;  %v6424_v55 = vor.u32 %v7617_v28, %v6421_v29 }
 0x175   :  { %3040 = vmatpush.bf16.msrb.mxu1 %v6168_v19  ;;  %v7597_v19 = vld [vmem:[%s11740_s1 + $0xb94] sm:$0xf] }
 0x176   :  { %3053 = vmatpush.bf16.msrb.mxu2 %v6232_v40  ;;  %v6341_v40 = vld [vmem:[%s11740_s1 + $0xb98] sm:$0xf0] }
 0x177   :  { %3066 = vmatpush.bf16.msrb.mxu3 %v6296_v44  ;;  %v6344_v34 = vor.u32 %v7597_v19, %v6341_v40  ;;  %v6408_v44 = vor.u32 %v7613_v41, %v6405_v42  ;;  %v7039_v19 = vld [vmem:[%s11743_s4 + $0x51c] sm:$0xf0]  ;;  %v6929_v41 = vld [vmem:[%s11743_s4 + $0x3e8] sm:$0xf]  ;;  %v7756_v42 = vld [vmem:[%s11743_s4 + $0x448] sm:$0xf0] }
 0x178   :  { %3076 = vmatpush.bf16.msra.mxu0 %v6384_v12  ;;  %v2826_v51 = vpop.f32.mrf.mxu0  ;;  %v7611_v12 = vld [vmem:[%s11740_s1 + $0xc04] sm:$0xf] }
 0x179   :  { %3041 = vmatpush.bf16.msrb.mxu1 %v6160_v32 }
 0x17a   :  { %3054 = vmatpush.bf16.msrb.mxu2 %v6224_v63 }
 0x17b   :  { %3067 = vmatpush.bf16.msrb.mxu3 %v6288_v49 }
 0x17c   :  { %3077 = vmatpush.bf16.msra.mxu0 %v6376_v61 }
 0x17d   :  { %3042 = vmatpush.bf16.msrb.mxu1 %v6152_v14 }
 0x17e   :  { %3055 = vmatpush.bf16.msrb.mxu2 %v6216_v13 }
 0x17f   :  { %3068 = vmatpush.bf16.msrb.mxu3 %v6280_v21  ;;  %v7794_v21 = vld [vmem:[%s11743_s4 + $0x57c] sm:$0xf] }
 0x180   :  { %3078 = vmatpush.bf16.msra.mxu0 %v6368_v8  ;;  %v7134_v22 = vor.u32 %v7794_v21, %v7131_v3  ;;  %v6629_v3 = vld [vmem:[%s11743_s4 + $0x190] sm:$0xf] }
 0x181   :  { %3043 = vmatpush.bf16.msrb.mxu1 %v6144_v30  ;;  %v2837_v17 = vpop.f32.mrf.mxu1  ;;  %v7142_v30 = vor.u32 %v7795_v24, %v7139_v25  ;;  %v6631_v24 = vld [vmem:[%s11743_s4 + $0x1f4] sm:$0xf0] }
 0x182   :  { %3056 = vmatpush.bf16.msrb.mxu2 %v6208_v56  ;;  %v2838_v54 = vadd.f32 %v2837_v17, %v2825_v26  ;;  %v7129_v26 = vld [vmem:[%s11743_s4 + $0x578] sm:$0xf] }
 0x183   :  { %3069 = vmatpush.bf16.msrb.mxu3 %v6272_v37  ;;  %v7130_v8 = vor.u32 %v7806_v2, %v7129_v26  ;;  %v7029_v37 = vld [vmem:[%s11743_s4 + $0x4b0] sm:$0xf]  ;;  %v7695_v26 = vld [vmem:[%s11743_s4 + $0x264] sm:$0xf]  ;;  %v6739_v2 = vld [vmem:[%s11743_s4 + $0x2c4] sm:$0xf0] }
 0x184   :  { %3079 = vmatpush.bf16.msra.mxu0 %v6360_v31  ;;  %3044 = vmatmul.bf16.vlgmr.msrb.gmra.mxu1 %v9077_v4  ;;  %v7595_v4 = vld [vmem:[%s11740_s1 + $0xb84] sm:$0xf]  ;;  %v7781_v31 = vld [vmem:[%s11743_s4 + $0x510] sm:$0xf0]  ;;  %v6637_v25 = vld [vmem:[%s11743_s4 + $0x198] sm:$0xf] }
 0x185   :  { %3092 = vmatpush.bf16.msra.mxu1 %v6424_v55  ;;  %3057 = vmatmul.bf16.vlgmr.msrb.gmra.mxu2 %v9081_v6  ;;  %v6333_v6 = vld [vmem:[%s11740_s1 + $0xb88] sm:$0xf0]  ;;  %v7769_v55 = vld [vmem:[%s11743_s4 + $0x4b4] sm:$0xf]  ;;  %v7030_v33 = vor.u32 %v7781_v31, %v7029_v37  ;;  %v6639_v37 = vld [vmem:[%s11743_s4 + $0x1fc] sm:$0xf0]  ;;  %v6630_v31 = vor.u32 %v7681_v10, %v6629_v3 }
 0x186   :  { %3070 = vmatmul.bf16.vlgmr.msrb.gmra.mxu3 %v9079_v5  ;;  %v6397_v5 = vld [vmem:[%s11740_s1 + $0xc08] sm:$0xf0]  ;;  %v6336_v45 = vor.u32 %v7595_v4, %v6333_v6  ;;  %4382 = vmatpush.bf16.msra.mxu2 %v7130_v8  ;;  %v7034_v51 = vor.u32 %v7769_v55, %v7031_v53  ;;  %v6930_v4 = vor.u32 %v7756_v42, %v6929_v41  ;;  %v6931_v6 = vld [vmem:[%s11743_s4 + $0x44c] sm:$0xf0]  ;;  %v7047_v3 = vld [vmem:[%s11743_s4 + $0x524] sm:$0xf0] }
 0x187   :  { %v6400_v52 = vor.u32 %v7611_v12, %v6397_v5  ;;  %4395 = vmatpush.bf16.msra.mxu3 %v7134_v22  ;;  %v6937_v12 = vld [vmem:[%s11743_s4 + $0x3f0] sm:$0xf]  ;;  %v7757_v5 = vld [vmem:[%s11743_s4 + $0x450] sm:$0xf0]  ;;  %v6634_v55 = vor.u32 %v7669_v11, %v6631_v24  ;;  %v7053_v10 = vld [vmem:[%s11743_s4 + $0x4c8] sm:$0xf] }
 0x188   :  { %3080 = vmatpush.bf16.msra.mxu0 %v6352_v38  ;;  %v2850_v57 = vpop.f32.mrf.mxu2  ;;  %v7038_v38 = vor.u32 %v7782_v36, %v7037_v35  ;;  %v6938_v17 = vor.u32 %v7757_v5, %v6937_v12  ;;  %v6529_v35 = vld [vmem:[%s11743_s4 + $0xc8] sm:$0xf]  ;;  %v7656_v36 = vld [vmem:[%s11743_s4 + $0x128] sm:$0xf0]  ;;  %v6429_v5 = vld [vmem:[%s11743_s4] sm:$0xf] }
 0x189   :  { %3093 = vmatpush.bf16.msra.mxu1 %v6416_v39  ;;  %v2851_v16 = vadd.f32 %v2850_v57, %v2838_v54  ;;  %v2863_v15 = vpop.f32.mrf.mxu3  ;;  %v2839_v27 = vpop.f32.mrf.mxu1  ;;  %v7770_v39 = vld [vmem:[%s11743_s4 + $0x4bc] sm:$0xf]  ;;  %v6939_v54 = vld [vmem:[%s11743_s4 + $0x454] sm:$0xf0]  ;;  %v6829_v57 = vld [vmem:[%s11743_s4 + $0x320] sm:$0xf] }
 0x18a   :  { %4383 = vmatpush.bf16.msra.mxu2 %v7030_v33  ;;  %v7042_v40 = vor.u32 %v7770_v39, %v7039_v19  ;;  %v7731_v27 = vld [vmem:[%s11743_s4 + $0x380] sm:$0xf0]  ;;  %v6531_v39 = vld [vmem:[%s11743_s4 + $0x12c] sm:$0xf0] }
 0x18b   :  { %v2864_v58 = vadd.f32 %v2863_v15, %v2851_v16  ;;  %4396 = vmatpush.bf16.msra.mxu3 %v7034_v51  ;;  %v7644_v51 = vld [vmem:[%s11743_s4 + $0xcc] sm:$0xf]  ;;  %v6537_v19 = vld [vmem:[%s11743_s4 + $0xd0] sm:$0xf] }
 0x18c   :  { %3081 = vmatpush.bf16.msra.mxu0 %v6344_v34  ;;  %v7744_v34 = vld [vmem:[%s11743_s4 + $0x3ec] sm:$0xf]  ;;  %v6534_v42 = vor.u32 %v7644_v51, %v6531_v39  ;;  %v7055_v24 = vld [vmem:[%s11743_s4 + $0x52c] sm:$0xf0]  ;;  %v7747_v39 = vld [vmem:[%s11743_s4 + $0x404] sm:$0xf] }
 0x18d   :  { %3094 = vmatpush.bf16.msra.mxu1 %v6408_v44 }
 0x18e   :  { %4384 = vmatpush.bf16.msra.mxu2 %v6930_v4  ;;  %v7645_v4 = vld [vmem:[%s11743_s4 + $0xd4] sm:$0xf] }
 0x190   :  { %3082 = vmatpush.bf16.msra.mxu0 %v6336_v45  ;;  %v2876_v32 = vpop.f32.mrf.mxu0  ;;  %v2852_v18 = vpop.f32.mrf.mxu2  ;;  %v6934_v45 = vor.u32 %v7744_v34, %v6931_v6  ;;  %v6539_v6 = vld [vmem:[%s11743_s4 + $0x134] sm:$0xf0] }
 0x191   :  { %3095 = vmatpush.bf16.msra.mxu1 %v6400_v52  ;;  %v2877_v63 = vadd.f32 %v2876_v32, %v2864_v58  ;;  %v2865_v60 = vpop.f32.mrf.mxu3  ;;  %v7745_v52 = vld [vmem:[%s11743_s4 + $0x3f4] sm:$0xf]  ;;  %v6831_v32 = vld [vmem:[%s11743_s4 + $0x384] sm:$0xf0]  ;;  %v6542_v12 = vor.u32 %v7645_v4, %v6539_v6  ;;  %v6845_v4 = vld [vmem:[%s11743_s4 + $0x330] sm:$0xf] }
 0x192   :  { %v6942_v58 = vor.u32 %v7745_v52, %v6939_v54  ;;  %4397 = vmatpush.bf16.msra.mxu3 %v6934_v45  ;;  %v6837_v60 = vld [vmem:[%s11743_s4 + $0x328] sm:$0xf]  ;;  %v7631_v45 = vld [vmem:[%s11743_s4 + $0x60] sm:$0xf0]  ;;  %v7733_v6 = vld [vmem:[%s11743_s4 + $0x390] sm:$0xf0] }
 0x193   :  { %3083 = vmatmul.bf16.vlgmr.msra.gmra.mxu0 %v9083_v7  ;;  %v6430_v52 = vor.u32 %v7631_v45, %v6429_v5  ;;  %v6431_v54 = vld [vmem:[%s11743_s4 + $0x64] sm:$0xf0]  ;;  %v6846_v5 = vor.u32 %v7733_v6, %v6845_v4  ;;  %v7721_v45 = vld [vmem:[%s11743_s4 + $0x334] sm:$0xf]  ;;  %v6447_v4 = vld [vmem:[%s11743_s4 + $0x74] sm:$0xf0] }
 0x194   :  { %6426 = vmatmul.msk.bf16.vlgmr.msra.gmra.mxu1 %vm2448_vm0, %v7825_v59  ;;  %4408 = vmatpush.bf16.msrb.mxu0 %v7138_v23  ;;  %v7719_v59 = vld [vmem:[%s11743_s4 + $0x324] sm:$0xf]  ;;  %v6742_v23 = vor.u32 %v7695_v26, %v6739_v2  ;;  %v6453_v6 = vld [vmem:[%s11743_s4 + $0x18] sm:$0xf] }
 0x195   :  { %4421 = vmatpush.bf16.msrb.mxu1 %v7142_v30  ;;  %v6834_v18 = vor.u32 %v7719_v59, %v6831_v32  ;;  %v7682_v30 = vld [vmem:[%s11743_s4 + $0x1f8] sm:$0xf0]  ;;  %v6439_v59 = vld [vmem:[%s11743_s4 + $0x6c] sm:$0xf0]  ;;  %v7145_v32 = vld [vmem:[%s11743_s4 + $0x588] sm:$0xf] }
 0x196   :  { %v6638_v33 = vor.u32 %v7682_v30, %v6637_v25 }
 0x197   :  { %4398 = vmatpush.bf16.msra.mxu3 %v6834_v18  ;;  %v7808_v18 = vld [vmem:[%s11743_s4 + $0x5e8] sm:$0xf0] }
 0x198   :  { %v2878_v49 = vpop.f32.mrf.mxu0  ;;  %4409 = vmatpush.bf16.msrb.mxu0 %v7038_v38  ;;  %v6530_v38 = vor.u32 %v7656_v36, %v6529_v35  ;;  %v7759_v35 = vld [vmem:[%s11743_s4 + $0x460] sm:$0xf0] }
 0x199   :  { %4422 = vmatpush.bf16.msrb.mxu1 %v7042_v40  ;;  %v7732_v49 = vld [vmem:[%s11743_s4 + $0x388] sm:$0xf0]  ;;  %v7657_v40 = vld [vmem:[%s11743_s4 + $0x130] sm:$0xf0] }
 0x19a   :  { %v6538_v34 = vor.u32 %v7657_v40, %v6537_v19  ;;  %v6955_v19 = vld [vmem:[%s11743_s4 + $0x464] sm:$0xf0] }
 0x19b   :  { %v6958_v40 = vor.u32 %v7747_v39, %v6955_v19  ;;  %v6445_v39 = vld [vmem:[%s11743_s4 + $0x10] sm:$0xf]  ;;  %v7633_v19 = vld [vmem:[%s11743_s4 + $0x70] sm:$0xf0] }
 0x19c   :  { %4410 = vmatpush.bf16.msrb.mxu0 %v6938_v17  ;;  %v7619_v17 = vld [vmem:[%s11743_s4 + $0x4] sm:$0xf] }
 0x19d   :  { %4423 = vmatpush.bf16.msrb.mxu1 %v6942_v58 }
 0x1a1   :  { %v2889_v61 = vpop.f32.mrf.mxu1 }
 0x1a2   :  { %v2890_v62 = vadd.f32 %v2889_v61, %v2877_v63  ;;  %v6830_v63 = vor.u32 %v7731_v27, %v6829_v57  ;;  %v7720_v61 = vld [vmem:[%s11743_s4 + $0x32c] sm:$0xf]  ;;  %v6437_v57 = vld [vmem:[%s11743_s4 + $0x8] sm:$0xf] }
 0x1a3   :  { %v7620_v27 = vld [vmem:[%s11743_s4 + $0xc] sm:$0xf] }
 0x1a4   :  { %4385 = vmatpush.bf16.msra.mxu2 %v6830_v63  ;;  %v6442_v63 = vor.u32 %v7620_v27, %v6439_v59  ;;  %v6745_v27 = vld [vmem:[%s11743_s4 + $0x268] sm:$0xf]  ;;  %v7708_v59 = vld [vmem:[%s11743_s4 + $0x2c8] sm:$0xf0] }
 0x1a8   :  { %v2902_v46 = vpop.f32.mrf.mxu2 }
 0x1a9   :  { %v2915_v0 = vpop.f32.mrf.mxu3  ;;  %v2903_v9 = vadd.f32 %v2902_v46, %v2890_v62  ;;  %v2891_v1 = vpop.f32.mrf.mxu1  ;;  %v6838_v62 = vor.u32 %v7732_v49, %v6837_v60  ;;  %v6839_v46 = vld [vmem:[%s11743_s4 + $0x38c] sm:$0xf0]  ;;  %v7796_v60 = vld [vmem:[%s11743_s4 + $0x58c] sm:$0xf] }
 0x1aa   :  { %v6842_v1 = vor.u32 %v7720_v61, %v6839_v46  ;;  %v7147_v49 = vld [vmem:[%s11743_s4 + $0x5ec] sm:$0xf0]  ;;  %v7146_v61 = vor.u32 %v7808_v18, %v7145_v32  ;;  %v7696_v32 = vld [vmem:[%s11743_s4 + $0x26c] sm:$0xf] }
 0x1ab   :  { %v2916_v20 = vadd.f32 %v2915_v0, %v2903_v9  ;;  %v6729_v0 = vld [vmem:[%s11743_s4 + $0x258] sm:$0xf]  ;;  %v7706_v9 = vld [vmem:[%s11743_s4 + $0x2b8] sm:$0xf0]  ;;  %4411 = vmatpush.bf16.msrb.mxu0 %v6838_v62  ;;  %v7150_v62 = vor.u32 %v7796_v60, %v7147_v49  ;;  %v7153_v46 = vld [vmem:[%s11743_s4 + $0x590] sm:$0xf] }
 0x1ac   :  { %4424 = vmatpush.bf16.msrb.mxu1 %v6842_v1  ;;  %v6753_v18 = vld [vmem:[%s11743_s4 + $0x270] sm:$0xf]  ;;  %v7709_v60 = vld [vmem:[%s11743_s4 + $0x2d0] sm:$0xf0] }
 0x1b0   :  { %v2928_v43 = vpop.f32.mrf.mxu0  ;;  %v2904_v7 = vpop.f32.mrf.mxu2  ;;  %4425 = vmatpush.bf16.msrb.mxu1 %v6742_v23  ;;  %v7772_v23 = vld [vmem:[%s11743_s4 + $0x4cc] sm:$0xf] }
 0x1b1   :  { %v10429_v14 = vadd.f32 %v2928_v43, %v2916_v20  ;;  %v2917_v13 = vpop.f32.mrf.mxu3  ;;  %v7694_v20 = vld [vmem:[%s11743_s4 + $0x25c] sm:$0xf]  ;;  %v6731_v43 = vld [vmem:[%s11743_s4 + $0x2bc] sm:$0xf0]  ;;  %v7058_v30 = vor.u32 %v7772_v23, %v7055_v24  ;;  %v6545_v24 = vld [vmem:[%s11743_s4 + $0xd8] sm:$0xf] }
 0x1b2   :  { %v6737_v7 = vld [vmem:[%s11743_s4 + $0x260] sm:$0xf]  ;;  %v6730_v13 = vor.u32 %v7706_v9, %v6729_v0  ;;  %v6734_v21 = vor.u32 %v7694_v20, %v6731_v43  ;;  %v7809_v0 = vld [vmem:[%s11743_s4 + $0x5f0] sm:$0xf0] }
 0x1b3   :  { %v7797_v9 = vld [vmem:[%s11743_s4 + $0x594] sm:$0xf]  ;;  %v7154_v43 = vor.u32 %v7809_v0, %v7153_v46  ;;  %v6755_v0 = vld [vmem:[%s11743_s4 + $0x2d4] sm:$0xf0] }
 0x1b4   :  { %4386 = vmatpush.bf16.msra.mxu2 %v6730_v13  ;;  %4399 = vmatpush.bf16.msra.mxu3 %v6734_v21  ;;  %v7045_v13 = vld [vmem:[%s11743_s4 + $0x4c0] sm:$0xf]  ;;  %v7697_v46 = vld [vmem:[%s11743_s4 + $0x274] sm:$0xf] }
 0x1b8   :  { %v2930_v48 = vpop.f32.mrf.mxu0  ;;  %4387 = vmatpush.bf16.msra.mxu2 %v6630_v31  ;;  %4400 = vmatpush.bf16.msra.mxu3 %v6634_v55  ;;  %v7746_v31 = vld [vmem:[%s11743_s4 + $0x3fc] sm:$0xf] }
 0x1b9   :  { %v7707_v48 = vld [vmem:[%s11743_s4 + $0x2c0] sm:$0xf0] }
 0x1ba   :  { %v6738_v8 = vor.u32 %v7707_v48, %v6737_v7  ;;  %v7155_v7 = vld [vmem:[%s11743_s4 + $0x5f4] sm:$0xf0]  ;;  %v7783_v48 = vld [vmem:[%s11743_s4 + $0x520] sm:$0xf0] }
 0x1bb   :  { %v7158_v2 = vor.u32 %v7797_v9, %v7155_v7  ;;  %v7046_v21 = vor.u32 %v7783_v48, %v7045_v13  ;;  %v6645_v7 = vld [vmem:[%s11743_s4 + $0x1a0] sm:$0xf]  ;;  %v7683_v13 = vld [vmem:[%s11743_s4 + $0x200] sm:$0xf0] }
 0x1bc   :  { %4412 = vmatpush.bf16.msrb.mxu0 %v6738_v8  ;;  %4388 = vmatpush.bf16.msra.mxu2 %v6530_v38  ;;  %v7771_v8 = vld [vmem:[%s11743_s4 + $0x4c4] sm:$0xf] }
 0x1bd   :  { %4401 = vmatpush.bf16.msra.mxu3 %v6534_v42  ;;  %v7050_v11 = vor.u32 %v7771_v8, %v7047_v3  ;;  %v7671_v48 = vld [vmem:[%s11743_s4 + $0x1a4] sm:$0xf]  ;;  %v7684_v8 = vld [vmem:[%s11743_s4 + $0x208] sm:$0xf0] }
 0x1c0   :  { %4413 = vmatpush.bf16.msrb.mxu0 %v6638_v33  ;;  %4389 = vmatpush.bf16.msra.mxu2 %v6430_v52  ;;  %v6947_v33 = vld [vmem:[%s11743_s4 + $0x45c] sm:$0xf0]  ;;  %v6853_v52 = vld [vmem:[%s11743_s4 + $0x338] sm:$0xf] }
 0x1c1   :  { %v10431_v47 = vpop.f32.mrf.mxu1  ;;  %v6950_v51 = vor.u32 %v7746_v31, %v6947_v33  ;;  %v6553_v31 = vld [vmem:[%s11743_s4 + $0xe0] sm:$0xf] }
 0x1c4   :  { %4414 = vmatpush.bf16.msrb.mxu0 %v6538_v34  ;;  %4434 = vmatpush.bf16.msrb.mxu2 %v7146_v61 }
 0x1c8   :  { %v10457_v28 = vpop.f32.mrf.mxu2  ;;  %4435 = vmatpush.bf16.msrb.mxu2 %v7046_v21  ;;  %v6653_v21 = vld [vmem:[%s11743_s4 + $0x1a8] sm:$0xf] }
 0x1c9   :  { %v10459_v29 = vpop.f32.mrf.mxu3  ;;  %v2943_v56 = vpop.f32.mrf.mxu1 }
 0x1ca   :  { %v7670_v56 = vld [vmem:[%s11743_s4 + $0x19c] sm:$0xf] }
 0x1cb   :  { %v6642_v53 = vor.u32 %v7670_v56, %v6639_v37  ;;  %v6945_v56 = vld [vmem:[%s11743_s4 + $0x3f8] sm:$0xf]  ;;  %v7758_v37 = vld [vmem:[%s11743_s4 + $0x458] sm:$0xf0] }
 0x1cc   :  { %v6946_v55 = vor.u32 %v7758_v37, %v6945_v56 }
 0x1cd   :  { %4426 = vmatpush.bf16.msrb.mxu1 %v6642_v53  ;;  %v6953_v53 = vld [vmem:[%s11743_s4 + $0x400] sm:$0xf] }
 0x1ce   :  { %v6954_v38 = vor.u32 %v7759_v35, %v6953_v53  ;;  %4436 = vmatpush.bf16.msrb.mxu2 %v6946_v55  ;;  %v7659_v55 = vld [vmem:[%s11743_s4 + $0x140] sm:$0xf0]  ;;  %v6555_v35 = vld [vmem:[%s11743_s4 + $0x144] sm:$0xf0] }
 0x1cf   :  { %v6554_v53 = vor.u32 %v7659_v55, %v6553_v31  ;;  %v6961_v55 = vld [vmem:[%s11743_s4 + $0x408] sm:$0xf] }
 0x1d0   :  { %v10494_v44 = vpop.f32.mrf.mxu0  ;;  %v2956_v16 = vpop.f32.mrf.mxu2 }
 0x1d1   :  { %v2969_v15 = vpop.f32.mrf.mxu3  ;;  %4427 = vmatpush.bf16.msrb.mxu1 %v6542_v12  ;;  %v7632_v16 = vld [vmem:[%s11743_s4 + $0x68] sm:$0xf0]  ;;  %v2942_v12 = vadd.f32 %v10431_v47, %v10429_v14  ;;  %v7734_v14 = vld [vmem:[%s11743_s4 + $0x398] sm:$0xf0] }
 0x1d2   :  { %v6434_v15 = vor.u32 %v7619_v17, %v6431_v54  ;;  %v6438_v58 = vor.u32 %v7632_v16, %v6437_v57  ;;  %v6847_v17 = vld [vmem:[%s11743_s4 + $0x394] sm:$0xf0]  ;;  %v7722_v47 = vld [vmem:[%s11743_s4 + $0x33c] sm:$0xf]  ;;  %v6855_v57 = vld [vmem:[%s11743_s4 + $0x39c] sm:$0xf0]  ;;  %4437 = vmatpush.bf16.msrb.mxu2 %v6846_v5 }
 0x1d3   :  { %v6850_v54 = vor.u32 %v7721_v45, %v6847_v17  ;;  %v2955_v16 = vadd.f32 %v10457_v28, %v2942_v12  ;;  %v6747_v28 = vld [vmem:[%s11743_s4 + $0x2cc] sm:$0xf0]  ;;  %v7634_v12 = vld [vmem:[%s11743_s4 + $0x78] sm:$0xf0]  ;;  %v6455_v17 = vld [vmem:[%s11743_s4 + $0x7c] sm:$0xf0] }
 0x1d4   :  { %4402 = vmatpush.bf16.msra.mxu3 %v6434_v15  ;;  %4415 = vmatpush.bf16.msrb.mxu0 %v6438_v58  ;;  %v6854_v15 = vor.u32 %v7734_v14, %v6853_v52  ;;  %v6858_v58 = vor.u32 %v7722_v47, %v6855_v57  ;;  %v6750_v61 = vor.u32 %v7696_v32, %v6747_v28 }
 0x1d5   :  { %4428 = vmatpush.bf16.msrb.mxu1 %v6442_v63  ;;  %v6746_v63 = vor.u32 %v7708_v59, %v6745_v27  ;;  %v2968_v9 = vadd.f32 %v10459_v29, %v2955_v16  ;;  %v6647_v29 = vld [vmem:[%s11743_s4 + $0x204] sm:$0xf0]  ;;  %v6454_v45 = vor.u32 %v7634_v12, %v6453_v6  ;;  %v7735_v6 = vld [vmem:[%s11743_s4 + $0x3a0] sm:$0xf0] }
 0x1d6   :  { %v6650_v3 = vor.u32 %v7671_v48, %v6647_v29  ;;  %v7169_v48 = vld [vmem:[%s11743_s4 + $0x5a0] sm:$0xf]  ;;  %v7799_v29 = vld [vmem:[%s11743_s4 + $0x5a4] sm:$0xf] }
 0x1d7   :  { %4438 = vmatpush.bf16.msrb.mxu2 %v6746_v63 }
 0x1d8   :  { %v2982_v22 = vpop.f32.mrf.mxu0  ;;  %4447 = vmatpush.bf16.msrb.mxu3 %v7150_v62  ;;  %4460 = vmatpush.bf16.msra.mxu0 %v7154_v43  ;;  %v6754_v62 = vor.u32 %v7709_v60, %v6753_v18  ;;  %v6758_v43 = vor.u32 %v7697_v46, %v6755_v0 }
 0x1d9   :  { %v7784_v22 = vld [vmem:[%s11743_s4 + $0x528] sm:$0xf0]  ;;  %4473 = vmatpush.bf16.msra.mxu1 %v7158_v2  ;;  %v6646_v2 = vor.u32 %v7683_v13, %v6645_v7  ;;  %v7798_v7 = vld [vmem:[%s11743_s4 + $0x59c] sm:$0xf]  ;;  %v7163_v13 = vld [vmem:[%s11743_s4 + $0x5fc] sm:$0xf0] }
 0x1da   :  { %v7054_v25 = vor.u32 %v7784_v22, %v7053_v10  ;;  %v6654_v10 = vor.u32 %v7684_v8, %v6653_v21  ;;  %v7171_v21 = vld [vmem:[%s11743_s4 + $0x604] sm:$0xf0] }
 0x1db   :  { %4439 = vmatpush.bf16.msrb.mxu2 %v6646_v2  ;;  %v7811_v2 = vld [vmem:[%s11743_s4 + $0x600] sm:$0xf0] }
 0x1dc   :  { %4448 = vmatpush.bf16.msrb.mxu3 %v7050_v11  ;;  %4461 = vmatpush.bf16.msra.mxu0 %v7054_v25  ;;  %v6655_v11 = vld [vmem:[%s11743_s4 + $0x20c] sm:$0xf0]  ;;  %v7658_v25 = vld [vmem:[%s11743_s4 + $0x138] sm:$0xf0] }
 0x1dd   :  { %4474 = vmatpush.bf16.msra.mxu1 %v7058_v30  ;;  %v7646_v30 = vld [vmem:[%s11743_s4 + $0xdc] sm:$0xf]  ;;  %v6546_v37 = vor.u32 %v7658_v25, %v6545_v24  ;;  %v7063_v24 = vld [vmem:[%s11743_s4 + $0x534] sm:$0xf0] }
 0x1de   :  { %v7069_v25 = vld [vmem:[%s11743_s4 + $0x4d8] sm:$0xf] }
 0x1df   :  { %4440 = vmatpush.bf16.msrb.mxu2 %v6546_v37  ;;  %v7071_v37 = vld [vmem:[%s11743_s4 + $0x53c] sm:$0xf0] }
 0x1e0   :  { %4449 = vmatpush.bf16.msrb.mxu3 %v6950_v51  ;;  %4462 = vmatpush.bf16.msra.mxu0 %v6954_v38 }
 0x1e1   :  { %v10601_v41 = vpop.f32.mrf.mxu1  ;;  %4475 = vmatpush.bf16.msra.mxu1 %v6958_v40  ;;  %v7621_v40 = vld [vmem:[%s11743_s4 + $0x14] sm:$0xf] }
 0x1e2   :  { %v6450_v5 = vor.u32 %v7621_v40, %v6447_v4  ;;  %v6971_v40 = vld [vmem:[%s11743_s4 + $0x474] sm:$0xf0]  ;;  %v6861_v4 = vld [vmem:[%s11743_s4 + $0x340] sm:$0xf] }
 0x1e4   :  { %4450 = vmatpush.bf16.msrb.mxu3 %v6850_v54  ;;  %4463 = vmatpush.bf16.msra.mxu0 %v6854_v15 }
 0x1e5   :  { %4476 = vmatpush.bf16.msra.mxu1 %v6858_v58 }
 0x1e8   :  { %v10654_v1 = vpop.f32.mrf.mxu2  ;;  %4451 = vmatpush.bf16.msrb.mxu3 %v6750_v61  ;;  %4464 = vmatpush.bf16.msra.mxu0 %v6754_v62  ;;  %v3101_v62 = vld [vmem:[%s11742_s3] sm:$0x3] }
 0x1e9   :  { %v10656_v20 = vpop.f32.mrf.mxu3  ;;  %v2995_v26 = vpop.f32.mrf.mxu1  ;;  %4477 = vmatpush.bf16.msra.mxu1 %v6758_v43  ;;  %v7810_v43 = vld [vmem:[%s11743_s4 + $0x5f8] sm:$0xf0] }
 0x1ea   :  { %v2981_v26 = vadd.f32 %v10494_v44, %v2968_v9  ;;  %v7672_v44 = vld [vmem:[%s11743_s4 + $0x1ac] sm:$0xf]  ;;  %v7161_v9 = vld [vmem:[%s11743_s4 + $0x598] sm:$0xf] }
 0x1eb   :  { %v6658_v23 = vor.u32 %v7672_v44, %v6655_v11  ;;  %v7785_v44 = vld [vmem:[%s11743_s4 + $0x530] sm:$0xf0]  ;;  %v7170_v11 = vor.u32 %v7811_v2, %v7169_v48  ;;  %v7674_v48 = vld [vmem:[%s11743_s4 + $0x1bc] sm:$0xf] }
 0x1ec   :  { %v2994_v22 = vadd.f32 %v10601_v41, %v2981_v26  ;;  %4452 = vmatpush.bf16.msrb.mxu3 %v6650_v3  ;;  %v6547_v41 = vld [vmem:[%s11743_s4 + $0x13c] sm:$0xf0]  ;;  %4465 = vmatpush.bf16.msra.mxu0 %v6654_v10  ;;  %v7162_v3 = vor.u32 %v7810_v43, %v7161_v9  ;;  %v7166_v10 = vor.u32 %v7798_v7, %v7163_v13  ;;  %v7673_v9 = vld [vmem:[%s11743_s4 + $0x1b4] sm:$0xf]  ;;  %v6663_v43 = vld [vmem:[%s11743_s4 + $0x214] sm:$0xf0] }
 0x1ed   :  { %v6550_v33 = vor.u32 %v7646_v30, %v6547_v41  ;;  %4478 = vmatpush.bf16.msra.mxu1 %v6658_v23  ;;  %v7773_v23 = vld [vmem:[%s11743_s4 + $0x4d4] sm:$0xf]  ;;  %v7786_v30 = vld [vmem:[%s11743_s4 + $0x538] sm:$0xf0]  ;;  %v6669_v7 = vld [vmem:[%s11743_s4 + $0x1b8] sm:$0xf] }
 0x1ee   :  { %v3007_v56 = vadd.f32 %v10654_v1, %v2994_v22  ;;  %v7647_v1 = vld [vmem:[%s11743_s4 + $0xe4] sm:$0xf]  ;;  %v7174_v22 = vor.u32 %v7799_v29, %v7171_v21  ;;  %v7066_v31 = vor.u32 %v7773_v23, %v7063_v24  ;;  %v7686_v13 = vld [vmem:[%s11743_s4 + $0x218] sm:$0xf0]  ;;  %v6666_v29 = vor.u32 %v7673_v9, %v6663_v43  ;;  %v6561_v21 = vld [vmem:[%s11743_s4 + $0xe8] sm:$0xf] }
 0x1ef   :  { %v6558_v38 = vor.u32 %v7647_v1, %v6555_v35  ;;  %v7748_v35 = vld [vmem:[%s11743_s4 + $0x40c] sm:$0xf]  ;;  %v7661_v23 = vld [vmem:[%s11743_s4 + $0x150] sm:$0xf0]  ;;  %v7763_v9 = vld [vmem:[%s11743_s4 + $0x480] sm:$0xf0] }
 0x1f0   :  { %v10703_v36 = vpop.f32.mrf.mxu0  ;;  %v3008_v42 = vpop.f32.mrf.mxu2  ;;  %4453 = vmatpush.bf16.msrb.mxu3 %v6550_v33  ;;  %4466 = vmatpush.bf16.msra.mxu0 %v6554_v53  ;;  %v7760_v33 = vld [vmem:[%s11743_s4 + $0x468] sm:$0xf0]  ;;  %v7070_v53 = vor.u32 %v7786_v30, %v7069_v25  ;;  %v7649_v24 = vld [vmem:[%s11743_s4 + $0xf4] sm:$0xf]  ;;  %v6571_v25 = vld [vmem:[%s11743_s4 + $0x154] sm:$0xf0] }
 0x1f1   :  { %v3021_v34 = vpop.f32.mrf.mxu3  ;;  %v3020_v42 = vadd.f32 %v10656_v20, %v3007_v56  ;;  %v7622_v20 = vld [vmem:[%s11743_s4 + $0x1c] sm:$0xf]  ;;  %4479 = vmatpush.bf16.msra.mxu1 %v6558_v38  ;;  %v6969_v38 = vld [vmem:[%s11743_s4 + $0x410] sm:$0xf]  ;;  %v6461_v30 = vld [vmem:[%s11743_s4 + $0x20] sm:$0xf] }
 0x1f2   :  { %v6446_v34 = vor.u32 %v7633_v19, %v6445_v39  ;;  %v6458_v54 = vor.u32 %v7622_v20, %v6455_v17  ;;  %v7774_v56 = vld [vmem:[%s11743_s4 + $0x4dc] sm:$0xf]  ;;  %v7761_v39 = vld [vmem:[%s11743_s4 + $0x470] sm:$0xf0]  ;;  %v6863_v20 = vld [vmem:[%s11743_s4 + $0x3a4] sm:$0xf0] }
 0x1f3   :  { %v3033_v52 = vadd.f32 %v10703_v36, %v3020_v42  ;;  %v7074_v1 = vor.u32 %v7774_v56, %v7071_v37  ;;  %v7749_v19 = vld [vmem:[%s11743_s4 + $0x414] sm:$0xf]  ;;  %v6962_v42 = vor.u32 %v7760_v33, %v6961_v55  ;;  %v6970_v12 = vor.u32 %v7761_v39, %v6969_v38  ;;  %v6869_v17 = vld [vmem:[%s11743_s4 + $0x348] sm:$0xf]  ;;  %v6471_v38 = vld [vmem:[%s11743_s4 + $0x8c] sm:$0xf0] }
 0x1f4   :  { %4441 = vmatpush.bf16.msrb.mxu2 %v6446_v34  ;;  %4454 = vmatpush.bf16.msrb.mxu3 %v6450_v5  ;;  %v6974_v5 = vor.u32 %v7749_v19, %v6971_v40  ;;  %v6463_v55 = vld [vmem:[%s11743_s4 + $0x84] sm:$0xf0]  ;;  %v7812_v19 = vld [vmem:[%s11743_s4 + $0x608] sm:$0xf0]  ;;  %v7751_v43 = vld [vmem:[%s11743_s4 + $0x424] sm:$0xf] }
 0x1f5   :  { %4467 = vmatpush.bf16.msra.mxu0 %v6454_v45  ;;  %4480 = vmatpush.bf16.msra.mxu1 %v6458_v54  ;;  %v7723_v45 = vld [vmem:[%s11743_s4 + $0x344] sm:$0xf]  ;;  %v7724_v54 = vld [vmem:[%s11743_s4 + $0x34c] sm:$0xf]  ;;  %v7177_v39 = vld [vmem:[%s11743_s4 + $0x5a8] sm:$0xf] }
 0x1f6   :  { %v7800_v40 = vld [vmem:[%s11743_s4 + $0x5ac] sm:$0xf] }
 0x1f8   :  { %v3034_v49 = vpop.f32.mrf.mxu0 }
 0x201   :  { %v3045_v51 = vpop.f32.mrf.mxu1 }
 0x202   :  { %v3046_v14 = vadd.f32 %v3045_v51, %v3033_v52  ;;  %v6963_v51 = vld [vmem:[%s11743_s4 + $0x46c] sm:$0xf0]  ;;  %v7736_v52 = vld [vmem:[%s11743_s4 + $0x3a8] sm:$0xf0] }
 0x203   :  { %v6966_v34 = vor.u32 %v7748_v35, %v6963_v51  ;;  %v7636_v35 = vld [vmem:[%s11743_s4 + $0x88] sm:$0xf0] }
 0x204   :  { %v7624_v51 = vld [vmem:[%s11743_s4 + $0x2c] sm:$0xf] }
 0x208   :  { %v3058_v47 = vpop.f32.mrf.mxu2 }
 0x209   :  { %v3071_v57 = vpop.f32.mrf.mxu3  ;;  %v3059_v16 = vadd.f32 %v3058_v47, %v3046_v14  ;;  %v3047_v15 = vpop.f32.mrf.mxu1  ;;  %v6871_v14 = vld [vmem:[%s11743_s4 + $0x3ac] sm:$0xf0]  ;;  %v6862_v47 = vor.u32 %v7735_v6, %v6861_v4 }
 0x20a   :  { %v7710_v15 = vld [vmem:[%s11743_s4 + $0x2d8] sm:$0xf0] }
 0x20b   :  { %v3072_v58 = vadd.f32 %v3071_v57, %v3059_v16  ;;  %v6866_v57 = vor.u32 %v7723_v45, %v6863_v20  ;;  %v6761_v16 = vld [vmem:[%s11743_s4 + $0x278] sm:$0xf] }
 0x20c   :  { %v7187_v45 = vld [vmem:[%s11743_s4 + $0x614] sm:$0xf0] }
 0x210   :  { %v3084_v27 = vpop.f32.mrf.mxu0  ;;  %v3060_v32 = vpop.f32.mrf.mxu2 }
 0x211   :  { %v3085_v59 = vadd.f32 %v3084_v27, %v3072_v58  ;;  %v3073_v63 = vpop.f32.mrf.mxu3  ;;  %v3097_v28 = vpop.f32.mrf.mxu1  ;;  %v6870_v58 = vor.u32 %v7736_v52, %v6869_v17  ;;  %v6874_v27 = vor.u32 %v7724_v54, %v6871_v14  ;;  %v6763_v32 = vld [vmem:[%s11743_s4 + $0x2dc] sm:$0xf0]  ;;  %v6474_v17 = vor.u32 %v7624_v51, %v6471_v38 }
 0x212   :  { %v6769_v63 = vld [vmem:[%s11743_s4 + $0x280] sm:$0xf]  ;;  %v7178_v52 = vor.u32 %v7812_v19, %v7177_v39  ;;  %v7687_v39 = vld [vmem:[%s11743_s4 + $0x220] sm:$0xf0] }
 0x213   :  { %v3098_v18 = vadd.f32 %v3097_v28, %v3085_v59  ;;  %v7698_v59 = vld [vmem:[%s11743_s4 + $0x27c] sm:$0xf]  ;;  %v7711_v28 = vld [vmem:[%s11743_s4 + $0x2e0] sm:$0xf0]  ;;  %v7077_v14 = vld [vmem:[%s11743_s4 + $0x4e0] sm:$0xf] }
 0x214   :  { %v6677_v38 = vld [vmem:[%s11743_s4 + $0x1c0] sm:$0xf] }
 0x215   :  { %v3102_v60 = vmul.f32 0.5, %v3098_v18  ;;  %4708 = vst [vmem:[#allocation4] sm:$0x3] %v3098_v18  ;;  %v7699_v18 = vld [vmem:[%s11743_s4 + $0x284] sm:$0xf] }
 0x216   :  { %4842 = dma.vmem_to_hbm [thread:$0]  %s4838_s16, 32, %s4840_s18, [#allocation5]  }
 0x217   :  { %v3103_v36 = vmul.f32 1.442695, %v3102_v60  ;;  %v6771_v60 = vld [vmem:[%s11743_s4 + $0x2e4] sm:$0xf0] }
 0x218   :  { %v3086_v49 = vpop.f32.mrf.mxu0 }
 0x219   :  { %7822 = vpow2.f32 %v3103_v36  ;;  %v3099_v61 = vpop.f32.mrf.mxu1  ;;  %v6762_v36 = vor.u32 %v7710_v15, %v6761_v16  ;;  %v6766_v49 = vor.u32 %v7698_v59, %v6763_v32  ;;  %v7775_v15 = vld [vmem:[%s11743_s4 + $0x4e4] sm:$0xf]  ;;  %v7788_v59 = vld [vmem:[%s11743_s4 + $0x548] sm:$0xf0] }
 0x21a   :  { %v6661_v61 = vld [vmem:[%s11743_s4 + $0x1b0] sm:$0xf]  ;;  %v7776_v32 = vld [vmem:[%s11743_s4 + $0x4ec] sm:$0xf] }
 0x21f   :  { %v7823_v46 = vpop.eup %7822 }
 0x220   :  { %v3105_v0 = vmul.f32 %v7823_v46, %v3101_v62  ;;  %v7685_v62 = vld [vmem:[%s11743_s4 + $0x210] sm:$0xf0]  ;;  %v6770_v46 = vor.u32 %v7711_v28, %v6769_v63  ;;  %v7087_v63 = vld [vmem:[%s11743_s4 + $0x54c] sm:$0xf0] }
 0x221   :  { %v6662_v2 = vor.u32 %v7685_v62, %v6661_v61  ;;  %v7090_v61 = vor.u32 %v7776_v32, %v7087_v63  ;;  %v7750_v62 = vld [vmem:[%s11743_s4 + $0x41c] sm:$0xf] }
 0x222   :  { %v3106_v26 = vadd.f32 %v3105_v0, %v10192_v50  ;;  %v7061_v50 = vld [vmem:[%s11743_s4 + $0x4d0] sm:$0xf]  ;;  %v6774_v0 = vor.u32 %v7699_v18, %v6771_v60  ;;  %v6977_v60 = vld [vmem:[%s11743_s4 + $0x418] sm:$0xf] }
 0x223   :  { %v7062_v41 = vor.u32 %v7785_v44, %v7061_v50  ;;  %v7648_v44 = vld [vmem:[%s11743_s4 + $0xec] sm:$0xf] }
 0x224   :  { %v10868_v8 = vpack.c.bf16 %v3106_v26, %v3106_v26  ;;  %v6671_v26 = vld [vmem:[%s11743_s4 + $0x21c] sm:$0xf0] }
 0x225   :  { %v6674_v50 = vor.u32 %v7674_v48, %v6671_v26  ;;  %v6877_v26 = vld [vmem:[%s11743_s4 + $0x350] sm:$0xf] }
 0x226   :  { %4390 = vmatmul.bf16.vlgmr.msra.gmra.mxu2 %v10868_v8  ;;  %4403 = vmatmul.bf16.vlgmr.msra.gmra.mxu3 %v10868_v8 }
 0x227   :  { %4416 = vmatmul.bf16.vlgmr.msrb.gmra.mxu0 %v10868_v8  ;;  %4429 = vmatmul.bf16.vlgmr.msrb.gmra.mxu1 %v10868_v8 }
 0x228   :  { %4486 = vmatpush.bf16.msra.mxu2 %v7162_v3  ;;  %4499 = vmatpush.bf16.msra.mxu3 %v7166_v10  ;;  %v7660_v3 = vld [vmem:[%s11743_s4 + $0x148] sm:$0xf0]  ;;  %v6670_v10 = vor.u32 %v7686_v13, %v6669_v7  ;;  %v6987_v7 = vld [vmem:[%s11743_s4 + $0x484] sm:$0xf0] }
 0x229   :  { %4512 = vmatpush.bf16.msrb.mxu0 %v7170_v11  ;;  %4525 = vmatpush.bf16.msrb.mxu1 %v7174_v22  ;;  %v6563_v11 = vld [vmem:[%s11743_s4 + $0x14c] sm:$0xf0]  ;;  %v6562_v56 = vor.u32 %v7660_v3, %v6561_v21  ;;  %v6990_v21 = vor.u32 %v7751_v43, %v6987_v7  ;;  %v7725_v3 = vld [vmem:[%s11743_s4 + $0x354] sm:$0xf]  ;;  %v7814_v43 = vld [vmem:[%s11743_s4 + $0x618] sm:$0xf0] }
 0x22a   :  { %v6569_v22 = vld [vmem:[%s11743_s4 + $0xf0] sm:$0xf]  ;;  %v6566_v37 = vor.u32 %v7648_v44, %v6563_v11  ;;  %v7738_v44 = vld [vmem:[%s11743_s4 + $0x3b8] sm:$0xf0] }
 0x22b   :  { %v6570_v33 = vor.u32 %v7661_v23, %v6569_v22  ;;  %v7726_v11 = vld [vmem:[%s11743_s4 + $0x35c] sm:$0xf]  ;;  %v6887_v22 = vld [vmem:[%s11743_s4 + $0x3bc] sm:$0xf0] }
 0x22c   :  { %4487 = vmatpush.bf16.msra.mxu2 %v7062_v41  ;;  %4500 = vmatpush.bf16.msra.mxu3 %v7066_v31  ;;  %v7635_v41 = vld [vmem:[%s11743_s4 + $0x80] sm:$0xf0]  ;;  %v7802_v7 = vld [vmem:[%s11743_s4 + $0x5bc] sm:$0xf] }
 0x22d   :  { %4513 = vmatpush.bf16.msrb.mxu0 %v7070_v53  ;;  %4526 = vmatpush.bf16.msrb.mxu1 %v7074_v1  ;;  %v7623_v31 = vld [vmem:[%s11743_s4 + $0x24] sm:$0xf]  ;;  %v6574_v53 = vor.u32 %v7649_v24, %v6571_v25  ;;  %v6469_v1 = vld [vmem:[%s11743_s4 + $0x28] sm:$0xf]  ;;  %v6462_v4 = vor.u32 %v7635_v41, %v6461_v30  ;;  %v7712_v30 = vld [vmem:[%s11743_s4 + $0x2e8] sm:$0xf0] }
 0x22e   :  { %v6466_v6 = vor.u32 %v7623_v31, %v6463_v55  ;;  %v6470_v20 = vor.u32 %v7636_v35, %v6469_v1  ;;  %v6777_v25 = vld [vmem:[%s11743_s4 + $0x288] sm:$0xf]  ;;  %v7700_v41 = vld [vmem:[%s11743_s4 + $0x28c] sm:$0xf]  ;;  %v6779_v31 = vld [vmem:[%s11743_s4 + $0x2ec] sm:$0xf0] }
 0x22f   :  { %v6785_v55 = vld [vmem:[%s11743_s4 + $0x290] sm:$0xf]  ;;  %v6787_v1 = vld [vmem:[%s11743_s4 + $0x2f4] sm:$0xf0]  ;;  %v6778_v35 = vor.u32 %v7712_v30, %v6777_v25  ;;  %v6782_v51 = vor.u32 %v7700_v41, %v6779_v31  ;;  %v7777_v30 = vld [vmem:[%s11743_s4 + $0x4f4] sm:$0xf] }
 0x230   :  { %4488 = vmatpush.bf16.msra.mxu2 %v6962_v42  ;;  %4501 = vmatpush.bf16.msra.mxu3 %v6966_v34  ;;  %v7179_v42 = vld [vmem:[%s11743_s4 + $0x60c] sm:$0xf0]  ;;  %v7790_v41 = vld [vmem:[%s11743_s4 + $0x558] sm:$0xf0] }
 0x231   :  { %4514 = vmatpush.bf16.msrb.mxu0 %v6970_v12  ;;  %4527 = vmatpush.bf16.msrb.mxu1 %v6974_v5  ;;  %v7185_v34 = vld [vmem:[%s11743_s4 + $0x5b0] sm:$0xf]  ;;  %v7813_v12 = vld [vmem:[%s11743_s4 + $0x610] sm:$0xf0]  ;;  %v7182_v54 = vor.u32 %v7800_v40, %v7179_v42  ;;  %v7675_v42 = vld [vmem:[%s11743_s4 + $0x1c4] sm:$0xf] }
 0x232   :  { %v7801_v5 = vld [vmem:[%s11743_s4 + $0x5b4] sm:$0xf]  ;;  %v7778_v31 = vld [vmem:[%s11743_s4 + $0x4fc] sm:$0xf] }
 0x233   :  { %v7190_v16 = vor.u32 %v7801_v5, %v7187_v45  ;;  %v6687_v5 = vld [vmem:[%s11743_s4 + $0x22c] sm:$0xf0]  ;;  %v6678_v45 = vor.u32 %v7687_v39, %v6677_v38  ;;  %v7752_v39 = vld [vmem:[%s11743_s4 + $0x42c] sm:$0xf] }
 0x234   :  { %4489 = vmatpush.bf16.msra.mxu2 %v6862_v47  ;;  %4502 = vmatpush.bf16.msra.mxu3 %v6866_v57  ;;  %v7787_v47 = vld [vmem:[%s11743_s4 + $0x540] sm:$0xf0]  ;;  %v7186_v57 = vor.u32 %v7813_v12, %v7185_v34  ;;  %v6679_v34 = vld [vmem:[%s11743_s4 + $0x224] sm:$0xf0]  ;;  %v7676_v12 = vld [vmem:[%s11743_s4 + $0x1cc] sm:$0xf] }
 0x235   :  { %4515 = vmatpush.bf16.msrb.mxu0 %v6870_v58  ;;  %4528 = vmatpush.bf16.msrb.mxu1 %v6874_v27  ;;  %v7079_v58 = vld [vmem:[%s11743_s4 + $0x544] sm:$0xf0]  ;;  %v7078_v28 = vor.u32 %v7787_v47, %v7077_v14  ;;  %v6690_v14 = vor.u32 %v7676_v12, %v6687_v5  ;;  %v7650_v47 = vld [vmem:[%s11743_s4 + $0xfc] sm:$0xf]  ;;  %v6893_v5 = vld [vmem:[%s11743_s4 + $0x360] sm:$0xf] }
 0x236   :  { %4442 = vmatmul.bf16.vlgmr.msrb.gmra.mxu2 %v10868_v8  ;;  %4455 = vmatmul.bf16.vlgmr.msrb.gmra.mxu3 %v10868_v8  ;;  %v7085_v27 = vld [vmem:[%s11743_s4 + $0x4e8] sm:$0xf]  ;;  %v7082_v18 = vor.u32 %v7775_v15, %v7079_v58  ;;  %v7663_v15 = vld [vmem:[%s11743_s4 + $0x160] sm:$0xf0] }
 0x237   :  { %4468 = vmatmul.bf16.vlgmr.msra.gmra.mxu0 %v10868_v8  ;;  %4481 = vmatmul.bf16.vlgmr.msra.gmra.mxu1 %v10868_v8  ;;  %v7651_v58 = vld [vmem:[%s11743_s4 + $0x104] sm:$0xf] }
 0x238   :  { %4490 = vmatpush.bf16.msra.mxu2 %v6762_v36  ;;  %4503 = vmatpush.bf16.msra.mxu3 %v6766_v49  ;;  %v7762_v36 = vld [vmem:[%s11743_s4 + $0x478] sm:$0xf0]  ;;  %v7086_v49 = vor.u32 %v7788_v59, %v7085_v27  ;;  %v6587_v27 = vld [vmem:[%s11743_s4 + $0x164] sm:$0xf0]  ;;  %v6477_v59 = vld [vmem:[%s11743_s4 + $0x30] sm:$0xf] }
 0x239   :  { %4516 = vmatpush.bf16.msrb.mxu0 %v6770_v46  ;;  %4529 = vmatpush.bf16.msrb.mxu1 %v6774_v0  ;;  %v6979_v46 = vld [vmem:[%s11743_s4 + $0x47c] sm:$0xf0]  ;;  %v6978_v13 = vor.u32 %v7762_v36, %v6977_v60  ;;  %v6479_v60 = vld [vmem:[%s11743_s4 + $0x94] sm:$0xf0] }
 0x23a   :  { %v6985_v0 = vld [vmem:[%s11743_s4 + $0x420] sm:$0xf]  ;;  %v6982_v48 = vor.u32 %v7750_v62, %v6979_v46  ;;  %v7638_v62 = vld [vmem:[%s11743_s4 + $0x98] sm:$0xf0] }
 0x23b   :  { %v7626_v46 = vld [vmem:[%s11743_s4 + $0x3c] sm:$0xf] }
 0x23c   :  { %4491 = vmatpush.bf16.msra.mxu2 %v6662_v2  ;;  %4504 = vmatpush.bf16.msra.mxu3 %v6666_v29  ;;  %v7737_v2 = vld [vmem:[%s11743_s4 + $0x3b0] sm:$0xf0]  ;;  %v6986_v29 = vor.u32 %v7763_v9, %v6985_v0  ;;  %v6487_v0 = vld [vmem:[%s11743_s4 + $0x9c] sm:$0xf0]  ;;  %v7193_v9 = vld [vmem:[%s11743_s4 + $0x5b8] sm:$0xf] }
 0x23d   :  { %4517 = vmatpush.bf16.msrb.mxu0 %v6670_v10  ;;  %4530 = vmatpush.bf16.msrb.mxu1 %v6674_v50  ;;  %v6879_v10 = vld [vmem:[%s11743_s4 + $0x3b4] sm:$0xf0]  ;;  %v6878_v23 = vor.u32 %v7737_v2, %v6877_v26 }
 0x23e   :  { %v6885_v50 = vld [vmem:[%s11743_s4 + $0x358] sm:$0xf]  ;;  %v6882_v24 = vor.u32 %v7725_v3, %v6879_v10  ;;  %v7203_v3 = vld [vmem:[%s11743_s4 + $0x624] sm:$0xf0] }
 0x240   :  { %4492 = vmatpush.bf16.msra.mxu2 %v6562_v56  ;;  %4505 = vmatpush.bf16.msra.mxu3 %v6566_v37  ;;  %v6886_v56 = vor.u32 %v7738_v44, %v6885_v50  ;;  %v6890_v37 = vor.u32 %v7726_v11, %v6887_v22  ;;  %v6490_v50 = vor.u32 %v7626_v46, %v6487_v0  ;;  %v7093_v22 = vld [vmem:[%s11743_s4 + $0x4f0] sm:$0xf] }
 0x241   :  { %4518 = vmatpush.bf16.msrb.mxu0 %v6570_v33  ;;  %4531 = vmatpush.bf16.msrb.mxu1 %v6574_v53  ;;  %v7713_v33 = vld [vmem:[%s11743_s4 + $0x2f0] sm:$0xf0]  ;;  %v7194_v44 = vor.u32 %v7814_v43, %v7193_v9  ;;  %v6693_v0 = vld [vmem:[%s11743_s4 + $0x1d0] sm:$0xf] }
 0x242   :  { %v7701_v53 = vld [vmem:[%s11743_s4 + $0x294] sm:$0xf]  ;;  %v6786_v19 = vor.u32 %v7713_v33, %v6785_v55  ;;  %v7103_v55 = vld [vmem:[%s11743_s4 + $0x55c] sm:$0xf0] }
 0x243   :  { %v6790_v40 = vor.u32 %v7701_v53, %v6787_v1  ;;  %v6993_v1 = vld [vmem:[%s11743_s4 + $0x428] sm:$0xf]  ;;  %v7106_v38 = vor.u32 %v7778_v31, %v7103_v55  ;;  %v7689_v9 = vld [vmem:[%s11743_s4 + $0x230] sm:$0xf0] }
 0x244   :  { %4493 = vmatpush.bf16.msra.mxu2 %v6462_v4  ;;  %4506 = vmatpush.bf16.msra.mxu3 %v6466_v6  ;;  %v6685_v4 = vld [vmem:[%s11743_s4 + $0x1c8] sm:$0xf]  ;;  %v7688_v6 = vld [vmem:[%s11743_s4 + $0x228] sm:$0xf0] }
 0x245   :  { %4519 = vmatpush.bf16.msrb.mxu0 %v6470_v20  ;;  %4532 = vmatpush.bf16.msrb.mxu1 %v6474_v17  ;;  %v6682_v20 = vor.u32 %v7675_v42, %v6679_v34  ;;  %v6577_v17 = vld [vmem:[%s11743_s4 + $0xf8] sm:$0xf]  ;;  %v7765_v42 = vld [vmem:[%s11743_s4 + $0x490] sm:$0xf0] }
 0x246   :  { %v7753_v34 = vld [vmem:[%s11743_s4 + $0x434] sm:$0xf] }
 0x247   :  { %4494 = vmatmul.bf16.vlgmr.msra.gmra.mxu2 %v10868_v8  ;;  %4507 = vmatmul.bf16.vlgmr.msra.gmra.mxu3 %v10868_v8 }
 0x248   :  { %4538 = vmatpush.bf16.msrb.mxu2 %v7178_v52  ;;  %4551 = vmatpush.bf16.msrb.mxu3 %v7182_v54  ;;  %v7662_v52 = vld [vmem:[%s11743_s4 + $0x158] sm:$0xf0]  ;;  %v6686_v54 = vor.u32 %v7688_v6, %v6685_v4  ;;  %v7003_v4 = vld [vmem:[%s11743_s4 + $0x494] sm:$0xf0] }
 0x249   :  { %4564 = vmatpush.bf16.msra.mxu0 %v7186_v57  ;;  %4577 = vmatpush.bf16.msra.mxu1 %v7190_v16  ;;  %v6579_v57 = vld [vmem:[%s11743_s4 + $0x15c] sm:$0xf0]  ;;  %v6578_v32 = vor.u32 %v7662_v52, %v6577_v17  ;;  %v7006_v17 = vor.u32 %v7753_v34, %v7003_v4  ;;  %v7727_v52 = vld [vmem:[%s11743_s4 + $0x364] sm:$0xf]  ;;  %v7816_v34 = vld [vmem:[%s11743_s4 + $0x628] sm:$0xf0] }
 0x24a   :  { %4520 = vmatmul.bf16.vlgmr.msrb.gmra.mxu0 %v10868_v8  ;;  %4533 = vmatmul.bf16.vlgmr.msrb.gmra.mxu1 %v10868_v8  ;;  %v6585_v16 = vld [vmem:[%s11743_s4 + $0x100] sm:$0xf]  ;;  %v6582_v63 = vor.u32 %v7650_v47, %v6579_v57  ;;  %v7740_v47 = vld [vmem:[%s11743_s4 + $0x3c8] sm:$0xf0] }
 0x24b   :  { %v6586_v36 = vor.u32 %v7663_v15, %v6585_v16  ;;  %v7728_v57 = vld [vmem:[%s11743_s4 + $0x36c] sm:$0xf]  ;;  %v6903_v16 = vld [vmem:[%s11743_s4 + $0x3cc] sm:$0xf0] }
 0x24c   :  { %4539 = vmatpush.bf16.msrb.mxu2 %v7078_v28  ;;  %4552 = vmatpush.bf16.msrb.mxu3 %v7082_v18  ;;  %v7637_v28 = vld [vmem:[%s11743_s4 + $0x90] sm:$0xf0]  ;;  %v7804_v4 = vld [vmem:[%s11743_s4 + $0x5cc] sm:$0xf] }
 0x24d   :  { %4565 = vmatpush.bf16.msra.mxu0 %v7086_v49  ;;  %4578 = vmatpush.bf16.msra.mxu1 %v7090_v61  ;;  %v7625_v18 = vld [vmem:[%s11743_s4 + $0x34] sm:$0xf]  ;;  %v6590_v49 = vor.u32 %v7651_v58, %v6587_v27  ;;  %v6485_v61 = vld [vmem:[%s11743_s4 + $0x38] sm:$0xf]  ;;  %v6478_v26 = vor.u32 %v7637_v28, %v6477_v59  ;;  %v7714_v59 = vld [vmem:[%s11743_s4 + $0x2f8] sm:$0xf0] }
 0x24e   :  { %v6482_v2 = vor.u32 %v7625_v18, %v6479_v60  ;;  %v6486_v10 = vor.u32 %v7638_v62, %v6485_v61  ;;  %v6793_v27 = vld [vmem:[%s11743_s4 + $0x298] sm:$0xf]  ;;  %v7702_v28 = vld [vmem:[%s11743_s4 + $0x29c] sm:$0xf]  ;;  %v6795_v18 = vld [vmem:[%s11743_s4 + $0x2fc] sm:$0xf0] }
 0x24f   :  { %v6801_v60 = vld [vmem:[%s11743_s4 + $0x2a0] sm:$0xf]  ;;  %v6803_v61 = vld [vmem:[%s11743_s4 + $0x304] sm:$0xf0]  ;;  %v6794_v62 = vor.u32 %v7714_v59, %v6793_v27  ;;  %v6798_v46 = vor.u32 %v7702_v28, %v6795_v18  ;;  %v7779_v59 = vld [vmem:[%s11743_s4 + $0x504] sm:$0xf] }
 0x250   :  { %4540 = vmatpush.bf16.msrb.mxu2 %v6978_v13  ;;  %4553 = vmatpush.bf16.msrb.mxu3 %v6982_v48  ;;  %v7195_v13 = vld [vmem:[%s11743_s4 + $0x61c] sm:$0xf0]  ;;  %v7792_v28 = vld [vmem:[%s11743_s4 + $0x568] sm:$0xf0] }
 0x251   :  { %4566 = vmatpush.bf16.msra.mxu0 %v6986_v29  ;;  %4579 = vmatpush.bf16.msra.mxu1 %v6990_v21  ;;  %v7201_v48 = vld [vmem:[%s11743_s4 + $0x5c0] sm:$0xf]  ;;  %v7815_v29 = vld [vmem:[%s11743_s4 + $0x620] sm:$0xf0]  ;;  %v7198_v11 = vor.u32 %v7802_v7, %v7195_v13  ;;  %v7677_v13 = vld [vmem:[%s11743_s4 + $0x1d4] sm:$0xf] }
 0x252   :  { %v7803_v21 = vld [vmem:[%s11743_s4 + $0x5c4] sm:$0xf]  ;;  %v7780_v18 = vld [vmem:[%s11743_s4 + $0x50c] sm:$0xf] }
 0x253   :  { %v7206_v25 = vor.u32 %v7803_v21, %v7203_v3  ;;  %v6703_v21 = vld [vmem:[%s11743_s4 + $0x23c] sm:$0xf0]  ;;  %v6694_v3 = vor.u32 %v7689_v9, %v6693_v0  ;;  %v7754_v9 = vld [vmem:[%s11743_s4 + $0x43c] sm:$0xf] }
 0x254   :  { %4541 = vmatpush.bf16.msrb.mxu2 %v6878_v23  ;;  %4554 = vmatpush.bf16.msrb.mxu3 %v6882_v24  ;;  %v7789_v23 = vld [vmem:[%s11743_s4 + $0x550] sm:$0xf0]  ;;  %v7202_v24 = vor.u32 %v7815_v29, %v7201_v48  ;;  %v6695_v48 = vld [vmem:[%s11743_s4 + $0x234] sm:$0xf0]  ;;  %v7678_v29 = vld [vmem:[%s11743_s4 + $0x1dc] sm:$0xf] }
 0x255   :  { %4567 = vmatpush.bf16.msra.mxu0 %v6886_v56  ;;  %4580 = vmatpush.bf16.msra.mxu1 %v6890_v37  ;;  %v7095_v56 = vld [vmem:[%s11743_s4 + $0x554] sm:$0xf0]  ;;  %v7094_v33 = vor.u32 %v7789_v23, %v7093_v22  ;;  %v6706_v22 = vor.u32 %v7678_v29, %v6703_v21  ;;  %v7652_v23 = vld [vmem:[%s11743_s4 + $0x10c] sm:$0xf]  ;;  %v6909_v21 = vld [vmem:[%s11743_s4 + $0x370] sm:$0xf] }
 0x256   :  { %v7101_v37 = vld [vmem:[%s11743_s4 + $0x4f8] sm:$0xf]  ;;  %v7098_v53 = vor.u32 %v7777_v30, %v7095_v56  ;;  %v7665_v30 = vld [vmem:[%s11743_s4 + $0x170] sm:$0xf0] }
 0x257   :  { %v7653_v56 = vld [vmem:[%s11743_s4 + $0x114] sm:$0xf] }
 0x258   :  { %4542 = vmatpush.bf16.msrb.mxu2 %v6778_v35  ;;  %4555 = vmatpush.bf16.msrb.mxu3 %v6782_v51  ;;  %v7764_v35 = vld [vmem:[%s11743_s4 + $0x488] sm:$0xf0]  ;;  %v7102_v51 = vor.u32 %v7790_v41, %v7101_v37  ;;  %v6603_v37 = vld [vmem:[%s11743_s4 + $0x174] sm:$0xf0]  ;;  %v6493_v41 = vld [vmem:[%s11743_s4 + $0x40] sm:$0xf] }
 0x259   :  { %4568 = vmatpush.bf16.msra.mxu0 %v6786_v19  ;;  %4581 = vmatpush.bf16.msra.mxu1 %v6790_v40  ;;  %v6995_v19 = vld [vmem:[%s11743_s4 + $0x48c] sm:$0xf0]  ;;  %v6994_v6 = vor.u32 %v7764_v35, %v6993_v1  ;;  %v6495_v1 = vld [vmem:[%s11743_s4 + $0xa4] sm:$0xf0] }
 0x25a   :  { %v7001_v40 = vld [vmem:[%s11743_s4 + $0x430] sm:$0xf]  ;;  %v6998_v12 = vor.u32 %v7752_v39, %v6995_v19  ;;  %v7640_v39 = vld [vmem:[%s11743_s4 + $0xa8] sm:$0xf0] }
 0x25b   :  { %v7628_v19 = vld [vmem:[%s11743_s4 + $0x4c] sm:$0xf] }
 0x25c   :  { %4543 = vmatpush.bf16.msrb.mxu2 %v6678_v45  ;;  %4556 = vmatpush.bf16.msrb.mxu3 %v6682_v20  ;;  %v7739_v45 = vld [vmem:[%s11743_s4 + $0x3c0] sm:$0xf0]  ;;  %v7002_v20 = vor.u32 %v7765_v42, %v7001_v40  ;;  %v6503_v40 = vld [vmem:[%s11743_s4 + $0xac] sm:$0xf0]  ;;  %v7209_v42 = vld [vmem:[%s11743_s4 + $0x5c8] sm:$0xf] }
 0x25d   :  { %4569 = vmatpush.bf16.msra.mxu0 %v6686_v54  ;;  %4582 = vmatpush.bf16.msra.mxu1 %v6690_v14  ;;  %v6895_v54 = vld [vmem:[%s11743_s4 + $0x3c4] sm:$0xf0]  ;;  %v6894_v15 = vor.u32 %v7739_v45, %v6893_v5 }
 0x25e   :  { %v6901_v14 = vld [vmem:[%s11743_s4 + $0x368] sm:$0xf]  ;;  %v6898_v58 = vor.u32 %v7727_v52, %v6895_v54  ;;  %v7219_v52 = vld [vmem:[%s11743_s4 + $0x634] sm:$0xf0] }
 0x260   :  { %4544 = vmatpush.bf16.msrb.mxu2 %v6578_v32  ;;  %4557 = vmatpush.bf16.msrb.mxu3 %v6582_v63  ;;  %v6902_v32 = vor.u32 %v7740_v47, %v6901_v14  ;;  %v6906_v63 = vor.u32 %v7728_v57, %v6903_v16  ;;  %v6506_v14 = vor.u32 %v7628_v19, %v6503_v40  ;;  %v7109_v16 = vld [vmem:[%s11743_s4 + $0x500] sm:$0xf] }
 0x261   :  { %4570 = vmatpush.bf16.msra.mxu0 %v6586_v36  ;;  %4583 = vmatpush.bf16.msra.mxu1 %v6590_v49  ;;  %v7715_v36 = vld [vmem:[%s11743_s4 + $0x300] sm:$0xf0]  ;;  %v7210_v47 = vor.u32 %v7816_v34, %v7209_v42  ;;  %v6709_v40 = vld [vmem:[%s11743_s4 + $0x1e0] sm:$0xf] }
 0x262   :  { %v7703_v49 = vld [vmem:[%s11743_s4 + $0x2a4] sm:$0xf]  ;;  %v6802_v43 = vor.u32 %v7715_v36, %v6801_v60  ;;  %v7119_v60 = vld [vmem:[%s11743_s4 + $0x56c] sm:$0xf0] }
 0x263   :  { %v6806_v7 = vor.u32 %v7703_v49, %v6803_v61  ;;  %v7009_v61 = vld [vmem:[%s11743_s4 + $0x438] sm:$0xf]  ;;  %v7122_v0 = vor.u32 %v7780_v18, %v7119_v60  ;;  %v7691_v42 = vld [vmem:[%s11743_s4 + $0x240] sm:$0xf0]  ;;  %v6509_v60 = vld [vmem:[%s11743_s4 + $0x50] sm:$0xf] }
 0x264   :  { %4545 = vmatpush.bf16.msrb.mxu2 %v6478_v26  ;;  %4558 = vmatpush.bf16.msrb.mxu3 %v6482_v2  ;;  %v6701_v26 = vld [vmem:[%s11743_s4 + $0x1d8] sm:$0xf]  ;;  %v7690_v2 = vld [vmem:[%s11743_s4 + $0x238] sm:$0xf0] }
 0x265   :  { %4571 = vmatpush.bf16.msra.mxu0 %v6486_v10  ;;  %4584 = vmatpush.bf16.msra.mxu1 %v6490_v50  ;;  %v6698_v10 = vor.u32 %v7677_v13, %v6695_v48  ;;  %v6593_v50 = vld [vmem:[%s11743_s4 + $0x108] sm:$0xf]  ;;  %v7767_v13 = vld [vmem:[%s11743_s4 + $0x4a0] sm:$0xf0] }
 0x266   :  { %v7755_v48 = vld [vmem:[%s11743_s4 + $0x444] sm:$0xf] }
 0x267   :  { %4546 = vmatmul.bf16.vlgmr.msrb.gmra.mxu2 %v10868_v8  ;;  %4559 = vmatmul.bf16.vlgmr.msrb.gmra.mxu3 %v10868_v8 }
 0x268   :  { %4590 = vmatpush.bf16.msra.mxu2 %v7194_v44  ;;  %4603 = vmatpush.bf16.msra.mxu3 %v7198_v11  ;;  %v7664_v44 = vld [vmem:[%s11743_s4 + $0x168] sm:$0xf0]  ;;  %v6702_v11 = vor.u32 %v7690_v2, %v6701_v26  ;;  %v7019_v26 = vld [vmem:[%s11743_s4 + $0x4a4] sm:$0xf0] }
 0x269   :  { %4616 = vmatpush.bf16.msrb.mxu0 %v7202_v24  ;;  %4629 = vmatpush.bf16.msrb.mxu1 %v7206_v25  ;;  %v6595_v24 = vld [vmem:[%s11743_s4 + $0x16c] sm:$0xf0]  ;;  %v6594_v31 = vor.u32 %v7664_v44, %v6593_v50  ;;  %v7022_v50 = vor.u32 %v7755_v48, %v7019_v26  ;;  %v7729_v44 = vld [vmem:[%s11743_s4 + $0x374] sm:$0xf]  ;;  %v7818_v48 = vld [vmem:[%s11743_s4 + $0x638] sm:$0xf0] }
 0x26a   :  { %4572 = vmatmul.bf16.vlgmr.msra.gmra.mxu0 %v10868_v8  ;;  %4585 = vmatmul.bf16.vlgmr.msra.gmra.mxu1 %v10868_v8  ;;  %v6601_v25 = vld [vmem:[%s11743_s4 + $0x110] sm:$0xf]  ;;  %v6598_v55 = vor.u32 %v7652_v23, %v6595_v24  ;;  %v7742_v23 = vld [vmem:[%s11743_s4 + $0x3d8] sm:$0xf0] }
 0x26b   :  { %v6602_v35 = vor.u32 %v7665_v30, %v6601_v25  ;;  %v7730_v24 = vld [vmem:[%s11743_s4 + $0x37c] sm:$0xf]  ;;  %v6919_v25 = vld [vmem:[%s11743_s4 + $0x3dc] sm:$0xf0] }
 0x26c   :  { %4591 = vmatpush.bf16.msra.mxu2 %v7094_v33  ;;  %4604 = vmatpush.bf16.msra.mxu3 %v7098_v53  ;;  %v7639_v33 = vld [vmem:[%s11743_s4 + $0xa0] sm:$0xf0] }
 0x26d   :  { %4617 = vmatpush.bf16.msrb.mxu0 %v7102_v51  ;;  %4630 = vmatpush.bf16.msrb.mxu1 %v7106_v38  ;;  %v7627_v53 = vld [vmem:[%s11743_s4 + $0x44] sm:$0xf]  ;;  %v6606_v51 = vor.u32 %v7653_v56, %v6603_v37  ;;  %v6501_v38 = vld [vmem:[%s11743_s4 + $0x48] sm:$0xf]  ;;  %v6494_v5 = vor.u32 %v7639_v33, %v6493_v41  ;;  %v7716_v41 = vld [vmem:[%s11743_s4 + $0x308] sm:$0xf0] }
 0x26e   :  { %v6498_v45 = vor.u32 %v7627_v53, %v6495_v1  ;;  %v6502_v54 = vor.u32 %v7640_v39, %v6501_v38  ;;  %v6809_v37 = vld [vmem:[%s11743_s4 + $0x2a8] sm:$0xf]  ;;  %v7704_v33 = vld [vmem:[%s11743_s4 + $0x2ac] sm:$0xf]  ;;  %v6811_v53 = vld [vmem:[%s11743_s4 + $0x30c] sm:$0xf0] }
 0x26f   :  { %v6817_v1 = vld [vmem:[%s11743_s4 + $0x2b0] sm:$0xf]  ;;  %v6819_v38 = vld [vmem:[%s11743_s4 + $0x314] sm:$0xf0]  ;;  %v6810_v39 = vor.u32 %v7716_v41, %v6809_v37  ;;  %v6814_v19 = vor.u32 %v7704_v33, %v6811_v53  ;;  %v7718_v33 = vld [vmem:[%s11743_s4 + $0x318] sm:$0xf0] }
 0x270   :  { %4592 = vmatpush.bf16.msra.mxu2 %v6994_v6  ;;  %4605 = vmatpush.bf16.msra.mxu3 %v6998_v12  ;;  %v7211_v6 = vld [vmem:[%s11743_s4 + $0x62c] sm:$0xf0]  ;;  %v3316_v53 = vld [vmem:[%s11744_s5] sm:$0xff] }
 0x271   :  { %4618 = vmatpush.bf16.msrb.mxu0 %v7002_v20  ;;  %4631 = vmatpush.bf16.msrb.mxu1 %v7006_v17  ;;  %v7217_v12 = vld [vmem:[%s11743_s4 + $0x5d0] sm:$0xf]  ;;  %v7817_v20 = vld [vmem:[%s11743_s4 + $0x630] sm:$0xf0]  ;;  %v7214_v57 = vor.u32 %v7804_v4, %v7211_v6  ;;  %v7679_v6 = vld [vmem:[%s11743_s4 + $0x1e4] sm:$0xf] }
 0x272   :  { %v7805_v17 = vld [vmem:[%s11743_s4 + $0x5d4] sm:$0xf] }
 0x273   :  { %v7222_v27 = vor.u32 %v7805_v17, %v7219_v52  ;;  %v6719_v17 = vld [vmem:[%s11743_s4 + $0x24c] sm:$0xf0]  ;;  %v6710_v52 = vor.u32 %v7691_v42, %v6709_v40  ;;  %v3325_v40 = vperm.slane %v3316_v53, 1  ;;  %v3326_v42 = vperm.slane %v3316_v53, 2 }
 0x274   :  { %4593 = vmatpush.bf16.msra.mxu2 %v6894_v15  ;;  %4606 = vmatpush.bf16.msra.mxu3 %v6898_v58  ;;  %v7791_v15 = vld [vmem:[%s11743_s4 + $0x560] sm:$0xf0]  ;;  %v7218_v58 = vor.u32 %v7817_v20, %v7217_v12  ;;  %v6711_v12 = vld [vmem:[%s11743_s4 + $0x244] sm:$0xf0]  ;;  %v7680_v20 = vld [vmem:[%s11743_s4 + $0x1ec] sm:$0xf] }
 0x275   :  { %4619 = vmatpush.bf16.msrb.mxu0 %v6902_v32  ;;  %4632 = vmatpush.bf16.msrb.mxu1 %v6906_v63  ;;  %v7111_v32 = vld [vmem:[%s11743_s4 + $0x564] sm:$0xf0]  ;;  %v7110_v36 = vor.u32 %v7791_v15, %v7109_v16  ;;  %v6722_v16 = vor.u32 %v7680_v20, %v6719_v17  ;;  %v7654_v15 = vld [vmem:[%s11743_s4 + $0x11c] sm:$0xf]  ;;  %v3330_v20 = vperm.slane %v3316_v53, 6  ;;  %v3331_v17 = vperm.slane %v3316_v53, 7 }
 0x276   :  { %v7117_v63 = vld [vmem:[%s11743_s4 + $0x508] sm:$0xf]  ;;  %v7114_v49 = vor.u32 %v7779_v59, %v7111_v32  ;;  %v7667_v59 = vld [vmem:[%s11743_s4 + $0x180] sm:$0xf0] }
 0x277   :  { %v7655_v32 = vld [vmem:[%s11743_s4 + $0x124] sm:$0xf] }
 0x278   :  { %4594 = vmatpush.bf16.msra.mxu2 %v6794_v62  ;;  %4607 = vmatpush.bf16.msra.mxu3 %v6798_v46  ;;  %v7766_v62 = vld [vmem:[%s11743_s4 + $0x498] sm:$0xf0]  ;;  %v7118_v46 = vor.u32 %v7792_v28, %v7117_v63  ;;  %v6619_v63 = vld [vmem:[%s11743_s4 + $0x184] sm:$0xf0] }
 0x279   :  { %4620 = vmatpush.bf16.msrb.mxu0 %v6802_v43  ;;  %4633 = vmatpush.bf16.msrb.mxu1 %v6806_v7  ;;  %v7011_v43 = vld [vmem:[%s11743_s4 + $0x49c] sm:$0xf0]  ;;  %v7010_v2 = vor.u32 %v7766_v62, %v7009_v61  ;;  %v6622_v61 = vor.u32 %v7655_v32, %v6619_v63  ;;  %v7629_v62 = vld [vmem:[%s11743_s4 + $0x54] sm:$0xf]  ;;  %v7643_v32 = vld [vmem:[%s11743_s4 + $0xc0] sm:$0xf0] }
 0x27a   :  { %v7017_v7 = vld [vmem:[%s11743_s4 + $0x440] sm:$0xf]  ;;  %v7014_v29 = vor.u32 %v7754_v9, %v7011_v43  ;;  %v7642_v9 = vld [vmem:[%s11743_s4 + $0xb8] sm:$0xf0] }
 0x27b   :  { %v7630_v43 = vld [vmem:[%s11743_s4 + $0x5c] sm:$0xf] }
 0x27c   :  { %4595 = vmatpush.bf16.msra.mxu2 %v6694_v3  ;;  %4608 = vmatpush.bf16.msra.mxu3 %v6698_v10  ;;  %v7741_v3 = vld [vmem:[%s11743_s4 + $0x3d0] sm:$0xf0]  ;;  %v7018_v10 = vor.u32 %v7767_v13, %v7017_v7  ;;  %v6519_v7 = vld [vmem:[%s11743_s4 + $0xbc] sm:$0xf0]  ;;  %v7225_v13 = vld [vmem:[%s11743_s4 + $0x5d8] sm:$0xf] }
 0x27d   :  { %4621 = vmatpush.bf16.msrb.mxu0 %v6702_v11  ;;  %4634 = vmatpush.bf16.msrb.mxu1 %v6706_v22  ;;  %v6911_v11 = vld [vmem:[%s11743_s4 + $0x3d4] sm:$0xf0]  ;;  %v6910_v30 = vor.u32 %v7741_v3, %v6909_v21  ;;  %v6522_v21 = vor.u32 %v7630_v43, %v6519_v7  ;;  %v7226_v3 = vor.u32 %v7818_v48, %v7225_v13 }
 0x27e   :  { %v6917_v22 = vld [vmem:[%s11743_s4 + $0x378] sm:$0xf]  ;;  %v6914_v56 = vor.u32 %v7729_v44, %v6911_v11  ;;  %v7025_v11 = vld [vmem:[%s11743_s4 + $0x448] sm:$0xf] }
 0x280   :  { %4596 = vmatpush.bf16.msra.mxu2 %v6594_v31  ;;  %4609 = vmatpush.bf16.msra.mxu3 %v6598_v55  ;;  %v6918_v31 = vor.u32 %v7742_v23, %v6917_v22  ;;  %v6922_v55 = vor.u32 %v7730_v24, %v6919_v25  ;;  %v7768_v22 = vld [vmem:[%s11743_s4 + $0x4a8] sm:$0xf0] }
 0x281   :  { %4622 = vmatpush.bf16.msrb.mxu0 %v6602_v35  ;;  %4635 = vmatpush.bf16.msrb.mxu1 %v6606_v51  ;;  %v7717_v35 = vld [vmem:[%s11743_s4 + $0x310] sm:$0xf0]  ;;  %v7026_v23 = vor.u32 %v7768_v22, %v7025_v11 }
 0x282   :  { %v7705_v51 = vld [vmem:[%s11743_s4 + $0x2b4] sm:$0xf]  ;;  %v6818_v34 = vor.u32 %v7717_v35, %v6817_v1 }
 0x283   :  { %v6822_v4 = vor.u32 %v7705_v51, %v6819_v38  ;;  %v6725_v38 = vld [vmem:[%s11743_s4 + $0x1f0] sm:$0xf] }
 0x284   :  { %4597 = vmatpush.bf16.msra.mxu2 %v6494_v5  ;;  %4610 = vmatpush.bf16.msra.mxu3 %v6498_v45  ;;  %v6717_v5 = vld [vmem:[%s11743_s4 + $0x1e8] sm:$0xf]  ;;  %v7692_v45 = vld [vmem:[%s11743_s4 + $0x248] sm:$0xf0] }
 0x285   :  { %4623 = vmatpush.bf16.msrb.mxu0 %v6502_v54  ;;  %4636 = vmatpush.bf16.msrb.mxu1 %v6506_v14  ;;  %v6714_v54 = vor.u32 %v7679_v6, %v6711_v12  ;;  %v6609_v14 = vld [vmem:[%s11743_s4 + $0x118] sm:$0xf] }
 0x287   :  { %4598 = vmatmul.bf16.vlgmr.msra.gmra.mxu2 %v10868_v8  ;;  %4611 = vmatmul.bf16.vlgmr.msra.gmra.mxu3 %v10868_v8 }
 0x288   :  { %4642 = vmatpush.bf16.msrb.mxu2 %v7210_v47  ;;  %4655 = vmatpush.bf16.msrb.mxu3 %v7214_v57  ;;  %v7666_v47 = vld [vmem:[%s11743_s4 + $0x178] sm:$0xf0]  ;;  %v6718_v57 = vor.u32 %v7692_v45, %v6717_v5  ;;  %v6625_v5 = vld [vmem:[%s11743_s4 + $0x128] sm:$0xf]  ;;  %v7668_v45 = vld [vmem:[%s11743_s4 + $0x188] sm:$0xf0] }
 0x289   :  { %4668 = vmatpush.bf16.msra.mxu0 %v7218_v58  ;;  %4681 = vmatpush.bf16.msra.mxu1 %v7222_v27  ;;  %v6611_v58 = vld [vmem:[%s11743_s4 + $0x17c] sm:$0xf0]  ;;  %v6610_v28 = vor.u32 %v7666_v47, %v6609_v14 }
 0x28a   :  { %4624 = vmatmul.bf16.vlgmr.msrb.gmra.mxu0 %v10868_v8  ;;  %4637 = vmatmul.bf16.vlgmr.msrb.gmra.mxu1 %v10868_v8  ;;  %v6617_v27 = vld [vmem:[%s11743_s4 + $0x120] sm:$0xf]  ;;  %v6614_v18 = vor.u32 %v7654_v15, %v6611_v58 }
 0x28c   :  { %4643 = vmatpush.bf16.msrb.mxu2 %v7110_v36  ;;  %4656 = vmatpush.bf16.msrb.mxu3 %v7114_v49  ;;  %v7641_v36 = vld [vmem:[%s11743_s4 + $0xb0] sm:$0xf0]  ;;  %v6618_v49 = vor.u32 %v7667_v59, %v6617_v27  ;;  %v6525_v59 = vld [vmem:[%s11743_s4 + $0x60] sm:$0xf] }
 0x28d   :  { %4669 = vmatpush.bf16.msra.mxu0 %v7118_v46  ;;  %4682 = vmatpush.bf16.msra.mxu1 %v7122_v0  ;;  %v6511_v46 = vld [vmem:[%s11743_s4 + $0xb4] sm:$0xf0]  ;;  %v6510_v26 = vor.u32 %v7641_v36, %v6509_v60 }
 0x28e   :  { %v6517_v0 = vld [vmem:[%s11743_s4 + $0x58] sm:$0xf] }
 0x290   :  { %4644 = vmatpush.bf16.msrb.mxu2 %v7010_v2  ;;  %4657 = vmatpush.bf16.msrb.mxu3 %v7014_v29  ;;  %v6514_v2 = vor.u32 %v7629_v62, %v6511_v46  ;;  %v6518_v29 = vor.u32 %v7642_v9, %v6517_v0 }
 0x291   :  { %4670 = vmatpush.bf16.msra.mxu0 %v7018_v10  ;;  %4683 = vmatpush.bf16.msra.mxu1 %v7022_v50  ;;  %v7125_v10 = vld [vmem:[%s11743_s4 + $0x510] sm:$0xf]  ;;  %v7793_v50 = vld [vmem:[%s11743_s4 + $0x570] sm:$0xf0] }
 0x292   :  { %v7126_v44 = vor.u32 %v7793_v50, %v7125_v10 }
 0x294   :  { %4645 = vmatpush.bf16.msrb.mxu2 %v6910_v30  ;;  %4658 = vmatpush.bf16.msrb.mxu3 %v6914_v56  ;;  %v6925_v30 = vld [vmem:[%s11743_s4 + $0x380] sm:$0xf]  ;;  %v7743_v56 = vld [vmem:[%s11743_s4 + $0x3e0] sm:$0xf0] }
 0x295   :  { %4671 = vmatpush.bf16.msra.mxu0 %v6918_v31  ;;  %4684 = vmatpush.bf16.msra.mxu1 %v6922_v55  ;;  %v6926_v37 = vor.u32 %v7743_v56, %v6925_v30  ;;  %v6825_v55 = vld [vmem:[%s11743_s4 + $0x2b8] sm:$0xf] }
 0x296   :  { %v6826_v1 = vor.u32 %v7718_v33, %v6825_v55 }
 0x298   :  { %4646 = vmatpush.bf16.msrb.mxu2 %v6810_v39  ;;  %4659 = vmatpush.bf16.msrb.mxu3 %v6814_v19  ;;  %v7693_v39 = vld [vmem:[%s11743_s4 + $0x250] sm:$0xf0]  ;;  %v3324_v19 = vperm.slane %v3316_v53, 0 }
 0x299   :  { %4672 = vmatpush.bf16.msra.mxu0 %v6818_v34  ;;  %4685 = vmatpush.bf16.msra.mxu1 %v6822_v4  ;;  %v3327_v34 = vperm.slane %v3316_v53, 3  ;;  %v6726_v4 = vor.u32 %v7693_v39, %v6725_v38 }
 0x29c   :  { %4647 = vmatpush.bf16.msrb.mxu2 %v6710_v52  ;;  %4660 = vmatpush.bf16.msrb.mxu3 %v6714_v54 }
 0x29d   :  { %4673 = vmatpush.bf16.msra.mxu0 %v6718_v57  ;;  %4686 = vmatpush.bf16.msra.mxu1 %v6722_v16  ;;  %v6626_v57 = vor.u32 %v7668_v45, %v6625_v5 }
 0x2a0   :  { %4648 = vmatpush.bf16.msrb.mxu2 %v6610_v28  ;;  %4661 = vmatpush.bf16.msrb.mxu3 %v6614_v18  ;;  %v3328_v28 = vperm.slane %v3316_v53, 4  ;;  %v3329_v18 = vperm.slane %v3316_v53, 5 }
 0x2a1   :  { %4674 = vmatpush.bf16.msra.mxu0 %v6618_v49  ;;  %4687 = vmatpush.bf16.msra.mxu1 %v6622_v61  ;;  %v6526_v49 = vor.u32 %v7643_v32, %v6525_v59 }
 0x2a4   :  { %4649 = vmatpush.bf16.msrb.mxu2 %v6510_v26  ;;  %4662 = vmatpush.bf16.msrb.mxu3 %v6514_v2  ;;  %v4417_v24 = vpop.f32.mrf.mxu0  ;;  %v4430_v25 = vpop.f32.mrf.mxu1 }
 0x2a5   :  { %4675 = vmatpush.bf16.msra.mxu0 %v6518_v29  ;;  %4688 = vmatpush.bf16.msra.mxu1 %v6522_v21  ;;  %v4418_v14 = vadd.f32 %v4417_v24, %v3326_v42  ;;  %v4431_v47 = vadd.f32 %v4430_v25, %v3327_v34 }
 0x2a7   :  { %4650 = vmatmul.bf16.vlgmr.msrb.gmra.mxu2 %v10868_v8  ;;  %4663 = vmatmul.bf16.vlgmr.msrb.gmra.mxu3 %v10868_v8  ;;  %v4710_v60 = vpack.c.bf16 %v4431_v47, %v4418_v14 }
 0x2a8   :  { %4694 = vmatpush.bf16.msra.mxu2 %v7226_v3  ;;  %4676 = vmatmul.bf16.vlgmr.msra.gmra.mxu0 %v10868_v8 }
 0x2a9   :  { %4689 = vmatmul.bf16.vlgmr.msra.gmra.mxu1 %v10868_v8  ;;  %v4391_v41 = vpop.f32.mrf.mxu2  ;;  %v4404_v31 = vpop.f32.mrf.mxu3  ;;  %v4736_v43 = vrot.slane %v4710_v60, 6  ;;  %v4737_v7 = vrot.slane %v4710_v60, 1 }
 0x2aa   :  { %v4392_v52 = vadd.f32 %v4391_v41, %v3324_v19  ;;  %v4405_v54 = vadd.f32 %v4404_v31, %v3325_v40 }
 0x2ab   :  { %v4764_v50 = vsel %vm4761_vm2, %v4736_v43, %v4737_v7 }
 0x2ac   :  { %4695 = vmatpush.bf16.msra.mxu2 %v7126_v44  ;;  %v4419_v35 = vpop.f32.mrf.mxu0  ;;  %v4432_v51 = vpop.f32.mrf.mxu1  ;;  %v4709_v63 = vpack.c.bf16 %v4405_v54, %v4392_v52 }
 0x2ae   :  { %v4735_v46 = vrot.slane %v4709_v63, 3 }
 0x2b0   :  { %4696 = vmatpush.bf16.msra.mxu2 %v7026_v23  ;;  %v4760_v21 = vsel %vm4757_vm1, %v4709_v63, %v4735_v46 }
 0x2b1   :  { %v4393_v6 = vpop.f32.mrf.mxu2  ;;  %v4406_v12 = vpop.f32.mrf.mxu3  ;;  %v4766_v22 = vsel %vm4765_vm3, %v4760_v21, %v4764_v50 }
 0x2b4   :  { %4697 = vmatpush.bf16.msra.mxu2 %v6926_v37  ;;  %v4469_v16 = vpop.f32.mrf.mxu0  ;;  %v4482_v15 = vpop.f32.mrf.mxu1 }
 0x2b5   :  { %v4470_v58 = vadd.f32 %v4469_v16, %v3330_v20  ;;  %v4483_v27 = vadd.f32 %v4482_v15, %v3331_v17 }
 0x2b7   :  { %v4712_v36 = vpack.c.bf16 %v4483_v27, %v4470_v58 }
 0x2b8   :  { %4698 = vmatpush.bf16.msra.mxu2 %v6826_v1  ;;  %v3317_v1 = vld [vmem:[%s11744_s5 + $0x8] sm:$0xff] }
 0x2b9   :  { %v4443_v61 = vpop.f32.mrf.mxu2  ;;  %v4456_v62 = vpop.f32.mrf.mxu3  ;;  %v4740_v13 = vrot.slane %v4712_v36, 2  ;;  %v4741_v48 = vrot.slane %v4712_v36, 5  ;;  %v3332_v35 = vperm.slane %v3317_v1, 0  ;;  %v3333_v51 = vperm.slane %v3317_v1, 1 }
 0x2ba   :  { %v4444_v0 = vadd.f32 %v4443_v61, %v3328_v28  ;;  %v4457_v9 = vadd.f32 %v4456_v62, %v3329_v18  ;;  %v3334_v38 = vperm.slane %v3317_v1, 2  ;;  %v3335_v39 = vperm.slane %v3317_v1, 3 }
 0x2bb   :  { %v4774_v44 = vsel %vm4771_vm4, %v4740_v13, %v4741_v48  ;;  %v3338_v19 = vperm.slane %v3317_v1, 6  ;;  %v3339_v40 = vperm.slane %v3317_v1, 7  ;;  %v3336_v52 = vperm.slane %v3317_v1, 4 }
 0x2bc   :  { %4699 = vmatpush.bf16.msra.mxu2 %v6726_v4  ;;  %v4711_v26 = vpack.c.bf16 %v4457_v9, %v4444_v0  ;;  %v4471_v2 = vpop.f32.mrf.mxu0  ;;  %v4484_v29 = vpop.f32.mrf.mxu1  ;;  %v3337_v54 = vperm.slane %v3317_v1, 5 }
 0x2be   :  { %v4738_v3 = vrot.slane %v4711_v26, 4  ;;  %v4739_v10 = vrot.slane %v4711_v26, 7 }
 0x2c0   :  { %4700 = vmatpush.bf16.msra.mxu2 %v6626_v57  ;;  %v4770_v11 = vsel %vm4767_vm5, %v4738_v3, %v4739_v10 }
 0x2c1   :  { %v4776_v23 = vsel %vm4775_vm6, %v4770_v11, %v4774_v44  ;;  %v4445_v24 = vpop.f32.mrf.mxu2  ;;  %v4458_v25 = vpop.f32.mrf.mxu3 }
 0x2c2   :  { %v4778_v30 = vsel %vm4777_vm7, %v4766_v22, %v4776_v23  ;;  %v3318_v22 = vld [vmem:[%s11744_s5 + $0x10] sm:$0xff] }
 0x2c3   :  { %4816 = vst [vmem:[%s11747_s8] sm:$0xff] %v4778_v30  ;;  %v3340_v23 = vperm.slane %v3318_v22, 0  ;;  %v3341_v24 = vperm.slane %v3318_v22, 1  ;;  %v3342_v25 = vperm.slane %v3318_v22, 2  ;;  %v3343_v30 = vperm.slane %v3318_v22, 3 }
 0x2c4   :  { %4701 = vmatpush.bf16.msra.mxu2 %v6526_v49 }
 0x2c7   :  { %4702 = vmatmul.bf16.vlgmr.msra.gmra.mxu2 %v10868_v8  ;;  %v4521_v56 = vpop.f32.mrf.mxu0  ;;  %v4534_v8 = vpop.f32.mrf.mxu1 }
 0x2c8   :  { %v4522_v4 = vadd.f32 %v4521_v56, %v3334_v38  ;;  %v4535_v6 = vadd.f32 %v4534_v8, %v3335_v39  ;;  %v3346_v56 = vperm.slane %v3318_v22, 6  ;;  %v3347_v8 = vperm.slane %v3318_v22, 7 }
 0x2c9   :  { %v3344_v38 = vperm.slane %v3318_v22, 4  ;;  %v3345_v39 = vperm.slane %v3318_v22, 5 }
 0x2ca   :  { %v4495_v37 = vpop.f32.mrf.mxu2  ;;  %v4508_v41 = vpop.f32.mrf.mxu3  ;;  %v4714_v14 = vpack.c.bf16 %v4535_v6, %v4522_v4 }
 0x2cb   :  { %v4496_v42 = vadd.f32 %v4495_v37, %v3332_v35  ;;  %v4509_v34 = vadd.f32 %v4508_v41, %v3333_v51 }
 0x2cc   :  { %v4743_v59 = vrot.slane %v4714_v14, 6  ;;  %v4744_v32 = vrot.slane %v4714_v14, 1 }
 0x2cd   :  { %v4713_v17 = vpack.c.bf16 %v4509_v34, %v4496_v42 }
 0x2ce   :  { %v4784_v46 = vsel %vm4761_vm2, %v4743_v59, %v4744_v32 }
 0x2cf   :  { %v4523_v31 = vpop.f32.mrf.mxu0  ;;  %v4536_v55 = vpop.f32.mrf.mxu1  ;;  %v4742_v15 = vrot.slane %v4713_v17, 3 }
 0x2d1   :  { %v4781_v49 = vsel %vm4757_vm1, %v4713_v17, %v4742_v15 }
 0x2d2   :  { %v4497_v33 = vpop.f32.mrf.mxu2  ;;  %v4510_v53 = vpop.f32.mrf.mxu3  ;;  %v4785_v43 = vsel %vm4765_vm3, %v4781_v49, %v4784_v46 }
 0x2e7   :  { %v4573_v12 = vpop.f32.mrf.mxu0  ;;  %v4586_v5 = vpop.f32.mrf.mxu1 }
 0x2e8   :  { %v4574_v45 = vadd.f32 %v4573_v12, %v3338_v19  ;;  %v4587_v20 = vadd.f32 %v4586_v5, %v3339_v40 }
 0x2ea   :  { %v4716_v47 = vpack.c.bf16 %v4587_v20, %v4574_v45  ;;  %v4547_v57 = vpop.f32.mrf.mxu2  ;;  %v4560_v16 = vpop.f32.mrf.mxu3 }
 0x2eb   :  { %v4548_v58 = vadd.f32 %v4547_v57, %v3336_v52  ;;  %v4561_v27 = vadd.f32 %v4560_v16, %v3337_v54 }
 0x2ec   :  { %v4747_v63 = vrot.slane %v4716_v47, 2  ;;  %v4748_v28 = vrot.slane %v4716_v47, 5 }
 0x2ed   :  { %v4715_v18 = vpack.c.bf16 %v4561_v27, %v4548_v58 }
 0x2ee   :  { %v4791_v0 = vsel %vm4771_vm4, %v4747_v63, %v4748_v28 }
 0x2ef   :  { %v4575_v60 = vpop.f32.mrf.mxu0  ;;  %v4588_v36 = vpop.f32.mrf.mxu1  ;;  %v4745_v61 = vrot.slane %v4715_v18, 4  ;;  %v4746_v62 = vrot.slane %v4715_v18, 7 }
 0x2f0   :  { %v7821_v60 = vld [vmem:[%s11744_s5 + $0x18] ss:$0 sm:$0xff] }
 0x2f1   :  { %v4788_v9 = vsel %vm4767_vm5, %v4745_v61, %v4746_v62 }
 0x2f2   :  { %v4792_v7 = vsel %vm4775_vm6, %v4788_v9, %v4791_v0  ;;  %v4549_v13 = vpop.f32.mrf.mxu2  ;;  %v4562_v48 = vpop.f32.mrf.mxu3 }
 0x2f3   :  { %v4793_v26 = vsel %vm4777_vm7, %v4785_v43, %v4792_v7 }
 0x2f4   :  { %4817 = vst [vmem:[%s11747_s8 + $0x8] sm:$0xff] %v4793_v26 }
 0x307   :  { %v4625_v2 = vpop.f32.mrf.mxu0  ;;  %v4638_v29 = vpop.f32.mrf.mxu1 }
 0x308   :  { %v4626_v31 = vadd.f32 %v4625_v2, %v3342_v25  ;;  %v4639_v55 = vadd.f32 %v4638_v29, %v3343_v30 }
 0x30a   :  { %v4599_v21 = vpop.f32.mrf.mxu2  ;;  %v4612_v3 = vpop.f32.mrf.mxu3  ;;  %v4718_v19 = vpack.c.bf16 %v4639_v55, %v4626_v31 }
 0x30b   :  { %v4600_v37 = vadd.f32 %v4599_v21, %v3340_v23  ;;  %v4613_v41 = vadd.f32 %v4612_v3, %v3341_v24 }
 0x30c   :  { %v4750_v5 = vrot.slane %v4718_v19, 6  ;;  %v4751_v45 = vrot.slane %v4718_v19, 1 }
 0x30d   :  { %v4717_v51 = vpack.c.bf16 %v4613_v41, %v4600_v37 }
 0x30e   :  { %v4799_v15 = vsel %vm4761_vm2, %v4750_v5, %v4751_v45 }
 0x30f   :  { %v4627_v10 = vpop.f32.mrf.mxu0  ;;  %v4640_v50 = vpop.f32.mrf.mxu1  ;;  %v4749_v4 = vrot.slane %v4717_v51, 3 }
 0x311   :  { %v4796_v47 = vsel %vm4757_vm1, %v4717_v51, %v4749_v4 }
 0x312   :  { %v4601_v44 = vpop.f32.mrf.mxu2  ;;  %v4614_v11 = vpop.f32.mrf.mxu3  ;;  %v4800_v59 = vsel %vm4765_vm3, %v4796_v47, %v4799_v15 }
 0x325   :  { %v4677_v33 = vpop.f32.mrf.mxu0 }
 0x326   :  { %v4690_v53 = vpop.f32.mrf.mxu1  ;;  %v4678_v1 = vadd.f32 %v4677_v33, %v3346_v56 }
 0x327   :  { %v4691_v35 = vadd.f32 %v4690_v53, %v3347_v8 }
 0x329   :  { %v4720_v40 = vpack.c.bf16 %v4691_v35, %v4678_v1 }
 0x32a   :  { %v4651_v42 = vpop.f32.mrf.mxu2  ;;  %v4664_v34 = vpop.f32.mrf.mxu3 }
 0x32b   :  { %v4652_v6 = vadd.f32 %v4651_v42, %v3344_v38  ;;  %v4665_v12 = vadd.f32 %v4664_v34, %v3345_v39  ;;  %v4754_v20 = vrot.slane %v4720_v40, 2  ;;  %v4755_v17 = vrot.slane %v4720_v40, 5 }
 0x32d   :  { %v4719_v52 = vpack.c.bf16 %v4665_v12, %v4652_v6  ;;  %v4679_v54 = vpop.f32.mrf.mxu0  ;;  %v4806_v58 = vsel %vm4771_vm4, %v4754_v20, %v4755_v17 }
 0x32e   :  { %v4692_v14 = vpop.f32.mrf.mxu1 }
 0x32f   :  { %v4752_v57 = vrot.slane %v4719_v52, 4  ;;  %v4753_v16 = vrot.slane %v4719_v52, 7 }
 0x331   :  { %v4803_v27 = vsel %vm4767_vm5, %v4752_v57, %v4753_v16 }
 0x332   :  { %v4807_v32 = vsel %vm4775_vm6, %v4803_v27, %v4806_v58  ;;  %v4653_v63 = vpop.f32.mrf.mxu2  ;;  %v4666_v28 = vpop.f32.mrf.mxu3 }
 0x333   :  { %v4808_v18 = vsel %vm4777_vm7, %v4800_v59, %v4807_v32 }
 0x334   :  { %4818 = vst [vmem:[%s11747_s8 + $0x10] sm:$0xff] %v4808_v18 }
 0x34a   :  { %v4703_v36 = vpop.f32.mrf.mxu2 }
 0x34b   :  { %v4704_v49 = vadd.f32 %v7821_v60, %v4703_v36 }
 0x34d   :  { %v4721_v61 = vpack.c.bf16 %v4704_v49, %v4704_v49 }
 0x34f   :  { %v4756_v62 = vrot.slane %v4721_v61, 3 }
 0x351   :  { %v4811_v46 = vsel %vm4757_vm1, %v4721_v61, %v4756_v62 }
 0x352   :  { %4820 = vst.msk [vmem:[%s11747_s8 + $0x18] sm:$0x1] %vm4819_vm8, %v4811_v46  ;;  %v4705_v0 = vpop.f32.mrf.mxu2 }
 0x353   :  { %7874 = dma.done.wait [#allocation3], 32  }
 0x354   :  { %7875 = vsyncadd [#allocation3], 4294967264 }
 0x355   :  { %7876 = dma.done.wait [#allocation5], 32  }
 0x356   :  { %7877 = vsyncadd [#allocation5], 4294967264 }
 0x357   :  { %4855 = vsyncpa [#allocation3], 1 }
 0x358   :  { %4856 = vsyncpa [#allocation5], 1 }

// kernel: cnn_vae_forward.9
= control target key start
LH: loop header
LB: loop body
LE: loop exit
PB: predicated region body
PF: predicated region fallthrough
CT: control target
= control target key end

     0   :  { %vm1346_vm5 = vcmask 31744   ;;  %s3126_s1 = inlined_call_operand.vmem [shape: bf16[128,4], index: 1, kind: input, shape index: {}]   ;;  %s3127_s2 = inlined_call_operand.vmem [shape: f32[1,4], index: 2, kind: input, shape index: {}]   ;;  %s3128_s3 = inlined_call_operand.vmem [shape: f32[1,4], index: 3, kind: input, shape index: {}]   ;;  %s3129_s0 = inlined_call_operand.vmem [shape: bf16[392,128], index: 0, kind: input, shape index: {}]   ;;  %s3130_s4 = inlined_call_operand.vmem [shape: f32[392,4], index: 4, kind: output, shape index: {}]  }
   0x1   :  { %v1559_v0 = vld [vmem:[%s3126_s1 + $0x38] sm:$0xff]  ;;  %v1558_v1 = vld [vmem:[%s3126_s1 + $0x30] sm:$0xff]  ;;  %v1557_v2 = vld [vmem:[%s3126_s1 + $0x28] sm:$0xff] }
   0x2   :  { %1561 = vmatpush.bf16.msra.mxu2 %v1559_v0  ;;  %282 = vmatpush.bf16.msra.mxu0 %v1559_v0  ;;  %v1556_v3 = vld [vmem:[%s3126_s1 + $0x20] sm:$0xff]  ;;  %v1555_v4 = vld [vmem:[%s3126_s1 + $0x18] sm:$0xff]  ;;  %v1554_v5 = vld [vmem:[%s3126_s1 + $0x10] sm:$0xff] }
   0x3   :  { %1560 = vmatpush.bf16.msra.mxu1 %v1559_v0  ;;  %1562 = vmatpush.bf16.msra.mxu3 %v1559_v0  ;;  %v1553_v6 = vld [vmem:[%s3126_s1 + $0x8] sm:$0xff]  ;;  %v1552_v7 = vld [vmem:[%s3126_s1] sm:$0xff]  ;;  %v1534_v10 = vld [vmem:[%s3129_s0 + $0x30] sm:$0xff] }
   0x4   :  { %v1540_v8 = vld [vmem:[%s3129_s0 + $0x60] sm:$0xff]  ;;  %v1547_v11 = vld [vmem:[%s3129_s0 + $0x98] sm:$0xff]  ;;  %v1541_v12 = vld [vmem:[%s3129_s0 + $0x68] sm:$0xff] }
   0x5   :  { %v1528_v9 = vld [vmem:[%s3129_s0] sm:$0xff]  ;;  %v1529_v13 = vld [vmem:[%s3129_s0 + $0x8] sm:$0xff]  ;;  %v1535_v14 = vld [vmem:[%s3129_s0 + $0x38] sm:$0xff] }
   0x6   :  { %1564 = vmatpush.bf16.msra.mxu2 %v1558_v1  ;;  %283 = vmatpush.bf16.msra.mxu0 %v1558_v1  ;;  %v1548_v15 = vld [vmem:[%s3129_s0 + $0xa0] sm:$0xff]  ;;  %v1542_v16 = vld [vmem:[%s3129_s0 + $0x70] sm:$0xff]  ;;  %v1549_v19 = vld [vmem:[%s3129_s0 + $0xa8] sm:$0xff] }
   0x7   :  { %1563 = vmatpush.bf16.msra.mxu1 %v1558_v1  ;;  %1565 = vmatpush.bf16.msra.mxu3 %v1558_v1  ;;  %v1530_v17 = vld [vmem:[%s3129_s0 + $0x10] sm:$0xff]  ;;  %v1536_v18 = vld [vmem:[%s3129_s0 + $0x40] sm:$0xff]  ;;  %v1543_v20 = vld [vmem:[%s3129_s0 + $0x78] sm:$0xff] }
   0x8   :  { %v1531_v21 = vld [vmem:[%s3129_s0 + $0x18] sm:$0xff]  ;;  %v1537_v22 = vld [vmem:[%s3129_s0 + $0x48] sm:$0xff]  ;;  %v1550_v23 = vld [vmem:[%s3129_s0 + $0xb0] sm:$0xff] }
   0x9   :  { %v1544_v24 = vld [vmem:[%s3129_s0 + $0x80] sm:$0xff]  ;;  %v1538_v26 = vld [vmem:[%s3129_s0 + $0x50] sm:$0xff]  ;;  %v1551_v27 = vld [vmem:[%s3129_s0 + $0xb8] sm:$0xff] }
   0xa   :  { %1567 = vmatpush.bf16.msra.mxu2 %v1557_v2  ;;  %284 = vmatpush.bf16.msra.mxu0 %v1557_v2  ;;  %v1532_v25 = vld [vmem:[%s3129_s0 + $0x20] sm:$0xff]  ;;  %v1545_v30 = vld [vmem:[%s3129_s0 + $0x88] sm:$0xff]  ;;  %v1539_v32 = vld [vmem:[%s3129_s0 + $0x58] sm:$0xff] }
   0xb   :  { %1566 = vmatpush.bf16.msra.mxu1 %v1557_v2  ;;  %1568 = vmatpush.bf16.msra.mxu3 %v1557_v2  ;;  %v65_v28 = vld [vmem:[%s3129_s0 + $0xc0] sm:$0xf]  ;;  %v1533_v31 = vld [vmem:[%s3129_s0 + $0x28] sm:$0xff]  ;;  %v1546_v34 = vld [vmem:[%s3129_s0 + $0x90] sm:$0xff] }
   0xc   :  { %v183_v29 = vunpack.c.l.b16 %v65_v28  ;;  %v1909_v35 = vld [vmem:[%s3128_s3] ss:$0 sm:$0xff] }
   0xe   :  { %1570 = vmatpush.bf16.msra.mxu2 %v1556_v3  ;;  %285 = vmatpush.bf16.msra.mxu0 %v1556_v3  ;;  %v208_v33 = vpack.c.b16 %v183_v29, %v183_v29 }
   0xf   :  { %1569 = vmatpush.bf16.msra.mxu1 %v1556_v3  ;;  %1571 = vmatpush.bf16.msra.mxu3 %v1556_v3 }
  0x12   :  { %1573 = vmatpush.bf16.msra.mxu2 %v1555_v4  ;;  %286 = vmatpush.bf16.msra.mxu0 %v1555_v4 }
  0x13   :  { %1572 = vmatpush.bf16.msra.mxu1 %v1555_v4  ;;  %1574 = vmatpush.bf16.msra.mxu3 %v1555_v4 }
  0x16   :  { %1576 = vmatpush.bf16.msra.mxu2 %v1554_v5  ;;  %287 = vmatpush.bf16.msra.mxu0 %v1554_v5 }
  0x17   :  { %1575 = vmatpush.bf16.msra.mxu1 %v1554_v5  ;;  %1577 = vmatpush.bf16.msra.mxu3 %v1554_v5 }
  0x1a   :  { %1579 = vmatpush.bf16.msra.mxu2 %v1553_v6  ;;  %288 = vmatpush.bf16.msra.mxu0 %v1553_v6 }
  0x1b   :  { %1578 = vmatpush.bf16.msra.mxu1 %v1553_v6  ;;  %1580 = vmatpush.bf16.msra.mxu3 %v1553_v6 }
  0x1e   :  { %1582 = vmatpush.bf16.msra.mxu2 %v1552_v7  ;;  %289 = vmatpush.bf16.msra.mxu0 %v1552_v7 }
  0x1f   :  { %1581 = vmatpush.bf16.msra.mxu1 %v1552_v7  ;;  %1583 = vmatpush.bf16.msra.mxu3 %v1552_v7 }
  0x21   :  { %350 = vmatmul.bf16.vlgmr.msra.gmra.mxu2 %v1540_v8  ;;  %290 = vmatmul.bf16.vlgmr.msra.gmra.mxu0 %v1528_v9 }
  0x22   :  { %320 = vmatmul.bf16.vlgmr.msra.gmra.mxu1 %v1534_v10  ;;  %385 = vmatmul.bf16.vlgmr.msra.gmra.mxu3 %v1547_v11 }
  0x31   :  { %355 = vmatmul.bf16.gmra.mxu2 %v1541_v12  ;;  %295 = vmatmul.bf16.gmra.mxu0 %v1529_v13 }
  0x32   :  { %325 = vmatmul.bf16.gmra.mxu1 %v1535_v14  ;;  %390 = vmatmul.bf16.gmra.mxu3 %v1548_v15 }
  0x41   :  { %360 = vmatmul.bf16.gmra.mxu2 %v1542_v16  ;;  %300 = vmatmul.bf16.gmra.mxu0 %v1530_v17 }
  0x42   :  { %330 = vmatmul.bf16.gmra.mxu1 %v1536_v18  ;;  %395 = vmatmul.bf16.gmra.mxu3 %v1549_v19 }
  0x51   :  { %365 = vmatmul.bf16.gmra.mxu2 %v1543_v20  ;;  %305 = vmatmul.bf16.gmra.mxu0 %v1531_v21 }
  0x52   :  { %335 = vmatmul.bf16.gmra.mxu1 %v1537_v22  ;;  %400 = vmatmul.bf16.gmra.mxu3 %v1550_v23 }
  0x61   :  { %370 = vmatmul.bf16.gmra.mxu2 %v1544_v24  ;;  %310 = vmatmul.bf16.gmra.mxu0 %v1532_v25 }
  0x62   :  { %340 = vmatmul.bf16.gmra.mxu1 %v1538_v26  ;;  %405 = vmatmul.bf16.gmra.mxu3 %v1551_v27 }
  0x71   :  { %375 = vmatmul.bf16.gmra.mxu2 %v1545_v30  ;;  %315 = vmatmul.bf16.gmra.mxu0 %v1533_v31 }
  0x72   :  { %345 = vmatmul.bf16.gmra.mxu1 %v1539_v32  ;;  %410 = vmatmul.bf16.gmra.mxu3 %v208_v33 }
  0x81   :  { %380 = vmatmul.bf16.gmra.mxu2 %v1546_v34 }
  0x9e   :  { %v291_v36 = vpop.f32.mrf.mxu0 }
  0x9f   :  { %v292_v37 = vadd.f32 %v1909_v35, %v291_v36  ;;  %v321_v38 = vpop.f32.mrf.mxu1 }
  0xa0   :  { %v322_v39 = vadd.f32 %v1909_v35, %v321_v38 }
  0xa1   :  { %v415_v40 = vsub.f32 0.0, %v292_v37 }
  0xa2   :  { %v427_v41 = vsub.f32 0.0, %v322_v39 }
  0xa3   :  { %v464_v42 = vmul.f32 1.442695, %v415_v40 }
  0xa4   :  { %v488_v43 = vmul.f32 1.442695, %v427_v41  ;;  %v351_v44 = vpop.f32.mrf.mxu2 }
  0xa5   :  { %1585 = vpow2.f32 %v464_v42  ;;  %v352_v45 = vadd.f32 %v1909_v35, %v351_v44  ;;  %v386_v46 = vpop.f32.mrf.mxu3 }
  0xa6   :  { %1587 = vpow2.f32 %v488_v43  ;;  %v293_v47 = vpop.f32.mrf.mxu0  ;;  %v387_v48 = vadd.f32 %v1909_v35, %v386_v46 }
  0xa7   :  { %v439_v49 = vsub.f32 0.0, %v352_v45  ;;  %v294_v50 = vadd.f32 %v1909_v35, %v293_v47  ;;  %v323_v51 = vpop.f32.mrf.mxu1 }
  0xa8   :  { %v324_v52 = vadd.f32 %v1909_v35, %v323_v51  ;;  %v453_v53 = vsub.f32 0.0, %v387_v48 }
  0xa9   :  { %v512_v54 = vmul.f32 1.442695, %v439_v49  ;;  %v416_v55 = vsub.f32 0.0, %v294_v50 }
  0xaa   :  { %v428_v56 = vsub.f32 0.0, %v324_v52  ;;  %v540_v57 = vmul.f32 1.442695, %v453_v53 }
  0xab   :  { %v1586_v58 = vpop.eup %1585  ;;  %1589 = vpow2.f32 %v512_v54  ;;  %v466_v59 = vmul.f32 1.442695, %v416_v55 }
  0xac   :  { %v1588_v60 = vpop.eup %1587  ;;  %v562_v61 = vadd.f32 1.0, %v1586_v58  ;;  %v490_v62 = vmul.f32 1.442695, %v428_v56  ;;  %1591 = vpow2.f32 %v540_v57  ;;  %v353_v63 = vpop.f32.mrf.mxu2 }
  0xad   :  { %v1917_v0 = vadd.f32 1.0, %v1588_v60  ;;  %1593 = vpow2.f32 %v466_v59  ;;  %v354_v1 = vadd.f32 %v1909_v35, %v353_v63  ;;  %v388_v11 = vpop.f32.mrf.mxu3 }
  0xae   :  { %1595 = vrcp.f32 %v562_v61  ;;  %v620_v2 = vand.u32 2147483647, %v562_v61  ;;  %v622_v3 = vand.u32 2147483648, %v562_v61  ;;  %v296_v7 = vpop.f32.mrf.mxu0  ;;  %vm616_vm0 = vweird.f32 %v562_v61 }
  0xaf   :  { %1597 = vrcp.f32 %v1917_v0  ;;  %v802_v4 = vand.u32 2147483648, %v1917_v0  ;;  %v800_v5 = vand.u32 2147483647, %v1917_v0  ;;  %v440_v6 = vsub.f32 0.0, %v354_v1  ;;  %v326_v10 = vpop.f32.mrf.mxu1 }
  0xb0   :  { %1599 = vpow2.f32 %v490_v62  ;;  %v1924_v9 = vadd.f32 %v1909_v35, %v296_v7  ;;  %vm796_vm1 = vweird.f32 %v1917_v0  ;;  %v1930_v14 = vadd.f32 %v1909_v35, %v326_v10 }
  0xb1   :  { %v1590_v8 = vpop.eup %1589  ;;  %vm1932_vm2 = vcmp.eq.f32.partialorder %v620_v2, 8.507059e+37  ;;  %v623_v17 = vor.u32 1.1754944e-38, %v622_v3  ;;  %v803_v18 = vor.u32 1.1754944e-38, %v802_v4  ;;  %vm1938_vm3 = vcmp.eq.f32.partialorder %v800_v5, 8.507059e+37 }
  0xb2   :  { %v1592_v12 = vpop.eup %1591  ;;  %v1927_v13 = vadd.f32 1.0, %v1590_v8  ;;  %v1944_v23 = vmul.f32 1.442695, %v440_v6  ;;  %v1947_v24 = vadd.f32 %v1909_v35, %v388_v11  ;;  %v417_v28 = vsub.f32 0.0, %v1924_v9 }
  0xb3   :  { %v1594_v15 = vpop.eup %1593  ;;  %v1936_v19 = vadd.f32 1.0, %v1592_v12  ;;  %v429_v32 = vsub.f32 0.0, %v1930_v14 }
  0xb4   :  { %v1596_v20 = vpop.eup %1595  ;;  %1601 = vrcp.f32 %v1927_v13  ;;  %v982_v22 = vand.u32 2147483648, %v1927_v13  ;;  %v1949_v27 = vadd.f32 1.0, %v1594_v15  ;;  %v980_v31 = vand.u32 2147483647, %v1927_v13  ;;  %v356_v9 = vpop.f32.mrf.mxu2 }
  0xb5   :  { %v1598_v25 = vpop.eup %1597  ;;  %v612_v26 = vmul.f32 %v1596_v20, %v562_v61  ;;  %1603 = vrcp.f32 %v1936_v19  ;;  %vm617_vm4 = vweird.f32 %v1596_v20  ;;  %vm976_vm7 = vweird.f32 %v1927_v13 }
  0xb6   :  { %v1600_v29 = vpop.eup %1599  ;;  %v792_v30 = vmul.f32 %v1598_v25, %v1917_v0  ;;  %vm797_vm6 = vweird.f32 %v1598_v25  ;;  %v1956_v34 = vor.u32 1.1754944e-38, %v982_v22  ;;  %1605 = vrcp.f32 %v1949_v27  ;;  %vm1969_vm10 = vmor %vm616_vm0, %vm617_vm4 }
  0xb7   :  { %v613_v33 = vsub.f32 1.0, %v612_v26  ;;  %v635_v37 = vand.u32 2147483647, %v1949_v27  ;;  %v637_v38 = vand.u32 2147483648, %v1949_v27  ;;  %v1962_v39 = vadd.f32 1.0, %v1600_v29  ;;  %vm1982_vm11 = vmor %vm796_vm1, %vm797_vm6 }
  0xb8   :  { %v793_v36 = vsub.f32 1.0, %v792_v30  ;;  %vm631_vm8 = vweird.f32 %v1949_v27  ;;  %vm1186_vm9 = vweird.f32 %v1936_v19  ;;  %v1190_v41 = vand.u32 2147483647, %v1936_v19 }
  0xb9   :  { %v614_v40 = vmul.f32 %v1596_v20, %v613_v33  ;;  %v1973_v45 = vor.u32 1.1754944e-38, %v637_v38  ;;  %1607 = vrcp.f32 %v1962_v39  ;;  %v1192_v46 = vand.u32 2147483648, %v1936_v19 }
  0xba   :  { %v1602_v42 = vpop.eup %1601  ;;  %v794_v44 = vmul.f32 %v1598_v25, %v793_v36  ;;  %vm1987_vm12 = vcmp.eq.f32.partialorder %v980_v31, 8.507059e+37  ;;  %vm811_vm13 = vweird.f32 %v1962_v39  ;;  %v815_v52 = vand.u32 2147483647, %v1962_v39 }
  0xbb   :  { %v1977_v47 = vpop.eup %1603  ;;  %v615_v48 = vadd.f32 %v1596_v20, %v614_v40  ;;  %v972_v50 = vmul.f32 %v1602_v42, %v1927_v13  ;;  %vm977_vm14 = vweird.f32 %v1602_v42  ;;  %vm1993_vm15 = vcmp.eq.f32.partialorder %v635_v37, 8.507059e+37 }
  0xbc   :  { %v795_v53 = vadd.f32 %v1598_v25, %v794_v44  ;;  %v817_v55 = vand.u32 2147483648, %v1962_v39  ;;  %v1182_v56 = vmul.f32 %v1977_v47, %v1936_v19  ;;  %v1606_v57 = vpop.eup %1605  ;;  %vm1187_vm0 = vweird.f32 %v1977_v47  ;;  %v391_v44 = vpop.f32.mrf.mxu3 }
  0xbd   :  { %v619_v58 = vsel %vm1969_vm10, %v1596_v20, %v615_v48  ;;  %v973_v59 = vsub.f32 1.0, %v972_v50  ;;  %vm2003_vm1 = vcmp.eq.f32.partialorder %v1190_v41, 8.507059e+37  ;;  %v627_v63 = vmul.f32 %v1606_v57, %v1949_v27  ;;  %vm2040_vm10 = vmor %vm1186_vm9, %vm1187_vm0 }
  0xbe   :  { %v624_v61 = vsel %vm1932_vm2, %v623_v17, %v619_v58  ;;  %v799_v62 = vsel %vm1982_vm11, %v1598_v25, %v795_v53  ;;  %vm632_vm4 = vweird.f32 %v1606_v57  ;;  %vm2018_vm6 = vcmp.eq.f32.partialorder %v815_v52, 8.507059e+37  ;;  %vm2030_vm2 = vmor %vm976_vm7, %vm977_vm14  ;;  %v328_v25 = vpop.f32.mrf.mxu1 }
  0xbf   :  { %1347 = vst.msk [vmem:[%s3130_s4] sm:$0xff] %vm1346_vm5, %v624_v61  ;;  %v804_v0 = vsel %vm1938_vm3, %v803_v18, %v799_v62  ;;  %v974_v1 = vmul.f32 %v1602_v42, %v973_v59  ;;  %v818_v3 = vor.u32 1.1754944e-38, %v817_v55  ;;  %v1183_v4 = vsub.f32 1.0, %v1182_v56  ;;  %v1608_v5 = vpop.eup %1607  ;;  %v298_v18 = vpop.f32.mrf.mxu0  ;;  %vm2050_vm7 = vmor %vm631_vm8, %vm632_vm4 }
  0xc0   :  { %1359 = vst.msk [vmem:[%s3130_s4 + $0x60] sm:$0xff] %vm1346_vm5, %v804_v0  ;;  %v628_v6 = vsub.f32 1.0, %v627_v63  ;;  %v1193_v7 = vor.u32 1.1754944e-38, %v1192_v46  ;;  %1609 = vpow2.f32 %v1944_v23  ;;  %v468_v8 = vmul.f32 1.442695, %v417_v28  ;;  %v358_v56 = vpop.f32.mrf.mxu2 }
  0xc1   :  { %v975_v10 = vadd.f32 %v1602_v42, %v974_v1  ;;  %v807_v12 = vmul.f32 %v1608_v5, %v1962_v39  ;;  %vm812_vm3 = vweird.f32 %v1608_v5  ;;  %v1184_v14 = vmul.f32 %v1977_v47, %v1183_v4 }
  0xc2   :  { %v629_v15 = vmul.f32 %v1606_v57, %v628_v6  ;;  %1611 = vpow2.f32 %v468_v8  ;;  %v492_v13 = vmul.f32 1.442695, %v429_v32  ;;  %v454_v17 = vsub.f32 0.0, %v1947_v24  ;;  %vm2072_vm8 = vmor %vm811_vm13, %vm812_vm3 }
  0xc3   :  { %v979_v20 = vsel %vm2030_vm2, %v1602_v42, %v975_v10  ;;  %v808_v19 = vsub.f32 1.0, %v807_v12  ;;  %v1185_v22 = vadd.f32 %v1977_v47, %v1184_v14  ;;  %v357_v23 = vadd.f32 %v1909_v35, %v356_v9 }
  0xc4   :  { %v984_v24 = vsel %vm1987_vm12, %v1956_v34, %v979_v20  ;;  %v630_v26 = vadd.f32 %v1606_v57, %v629_v15  ;;  %1613 = vpow2.f32 %v492_v13  ;;  %v542_v28 = vmul.f32 1.442695, %v454_v17 }
  0xc5   :  { %1371 = vst.msk [vmem:[%s3130_s4 + $0xc0] sm:$0xff] %vm1346_vm5, %v984_v24  ;;  %v809_v27 = vmul.f32 %v1608_v5, %v808_v19  ;;  %v1189_v29 = vsel %vm2040_vm10, %v1977_v47, %v1185_v22  ;;  %v441_v30 = vsub.f32 0.0, %v357_v23  ;;  %v299_v31 = vadd.f32 %v1909_v35, %v298_v18 }
  0xc6   :  { %v1610_v32 = vpop.eup %1609  ;;  %v634_v33 = vsel %vm2050_vm7, %v1606_v57, %v630_v26  ;;  %v1194_v36 = vsel %vm2003_vm1, %v1193_v7, %v1189_v29  ;;  %1615 = vpow2.f32 %v542_v28  ;;  %v329_v37 = vadd.f32 %v1909_v35, %v328_v25 }
  0xc7   :  { %v639_v38 = vsel %vm1993_vm15, %v1973_v45, %v634_v33  ;;  %v810_v40 = vadd.f32 %v1608_v5, %v809_v27  ;;  %1385 = vst.msk [vmem:[%s3130_s4 + $0x130] sm:$0xff] %vm1346_vm5, %v1194_v36  ;;  %v2086_v39 = vadd.f32 1.0, %v1610_v32  ;;  %v516_v41 = vmul.f32 1.442695, %v441_v30  ;;  %v301_v20 = vpop.f32.mrf.mxu0 }
  0xc8   :  { %v1612_v42 = vpop.eup %1611  ;;  %1348 = vst.msk [vmem:[%s3130_s4 + $0x8] sm:$0xff] %vm1346_vm5, %v639_v38  ;;  %v418_v43 = vsub.f32 0.0, %v299_v31  ;;  %v392_v46 = vadd.f32 %v1909_v35, %v391_v44  ;;  %v430_v53 = vsub.f32 0.0, %v329_v37  ;;  %v2118_v2 = vadd.f32 %v1909_v35, %v358_v56 }
  0xc9   :  { %v814_v45 = vsel %vm2072_vm8, %v1608_v5, %v810_v40  ;;  %1617 = vrcp.f32 %v2086_v39  ;;  %v2098_v49 = vadd.f32 1.0, %v1612_v42  ;;  %v997_v50 = vand.u32 2147483648, %v2086_v39 }
  0xca   :  { %v1614_v47 = vpop.eup %1613  ;;  %v819_v48 = vsel %vm2018_vm6, %v818_v3, %v814_v45  ;;  %1619 = vpow2.f32 %v516_v41  ;;  %v470_v52 = vmul.f32 1.442695, %v418_v43  ;;  %v995_v55 = vand.u32 2147483647, %v2086_v39 }
  0xcb   :  { %1360 = vst.msk [vmem:[%s3130_s4 + $0x68] sm:$0xff] %vm1346_vm5, %v819_v48  ;;  %v2105_v51 = vadd.f32 1.0, %v1614_v47  ;;  %1621 = vrcp.f32 %v2098_v49  ;;  %v650_v57 = vand.u32 2147483647, %v2098_v49  ;;  %v652_v58 = vand.u32 2147483648, %v2098_v49 }
  0xcc   :  { %v1616_v54 = vpop.eup %1615  ;;  %v455_v59 = vsub.f32 0.0, %v392_v46  ;;  %vm991_vm9 = vweird.f32 %v2086_v39  ;;  %v998_v0 = vor.u32 1.1754944e-38, %v997_v50  ;;  %v494_v1 = vmul.f32 1.442695, %v430_v53 }
  0xcd   :  { %1623 = vrcp.f32 %v2105_v51  ;;  %v830_v60 = vand.u32 2147483647, %v2105_v51  ;;  %v832_v61 = vand.u32 2147483648, %v2105_v51  ;;  %v2114_v62 = vadd.f32 1.0, %v1616_v54 }
  0xce   :  { %1625 = vpow2.f32 %v470_v52  ;;  %vm2121_vm11 = vcmp.eq.f32.partialorder %v995_v55, 8.507059e+37  ;;  %vm646_vm12 = vweird.f32 %v2098_v49  ;;  %vm826_vm13 = vweird.f32 %v2105_v51 }
  0xcf   :  { %v1618_v63 = vpop.eup %1617  ;;  %1627 = vrcp.f32 %v2114_v62  ;;  %vm2128_vm15 = vcmp.eq.f32.partialorder %v650_v57, 8.507059e+37  ;;  %v653_v7 = vor.u32 1.1754944e-38, %v652_v58  ;;  %v544_v9 = vmul.f32 1.442695, %v455_v59  ;;  %v331_v58 = vpop.f32.mrf.mxu1 }
  0xd0   :  { %v1620_v3 = vpop.eup %1619  ;;  %v987_v4 = vmul.f32 %v1618_v63, %v2086_v39  ;;  %vm992_vm14 = vweird.f32 %v1618_v63  ;;  %vm2134_vm0 = vcmp.eq.f32.partialorder %v830_v60, 8.507059e+37  ;;  %v833_v14 = vor.u32 1.1754944e-38, %v832_v61 }
  0xd1   :  { %v2132_v8 = vadd.f32 1.0, %v1620_v3  ;;  %v1622_v10 = vpop.eup %1621  ;;  %vm1201_vm1 = vweird.f32 %v2114_v62  ;;  %1629 = vpow2.f32 %v494_v1  ;;  %v1205_v13 = vand.u32 2147483647, %v2114_v62  ;;  %vm993_vm2 = vmor %vm991_vm9, %vm992_vm14 }
  0xd2   :  { %v988_v11 = vsub.f32 1.0, %v987_v4  ;;  %v642_v16 = vmul.f32 %v1622_v10, %v2098_v49  ;;  %v1207_v17 = vand.u32 2147483648, %v2114_v62  ;;  %v442_v18 = vsub.f32 0.0, %v2118_v2 }
  0xd3   :  { %v1624_v15 = vpop.eup %1623  ;;  %1631 = vrcp.f32 %v2132_v8  ;;  %v2146_v23 = vadd.f32 %v1909_v35, %v301_v20  ;;  %vm647_vm4 = vweird.f32 %v1622_v10  ;;  %v1012_v24 = vand.u32 2147483648, %v2132_v8 }
  0xd4   :  { %v1626_v21 = vpop.eup %1625  ;;  %v989_v19 = vmul.f32 %v1618_v63, %v988_v11  ;;  %v822_v22 = vmul.f32 %v1624_v15, %v2105_v51  ;;  %v643_v25 = vsub.f32 1.0, %v642_v16  ;;  %vm827_vm6 = vweird.f32 %v1624_v15  ;;  %vm2163_vm10 = vmor %vm646_vm12, %vm647_vm4 }
  0xd5   :  { %v1628_v26 = vpop.eup %1627  ;;  %v2149_v29 = vadd.f32 1.0, %v1626_v21  ;;  %1633 = vpow2.f32 %v544_v9  ;;  %vm2155_vm3 = vcmp.eq.f32.partialorder %v1205_v13, 8.507059e+37  ;;  %v1010_v33 = vand.u32 2147483647, %v2132_v8  ;;  %vm2173_vm7 = vmor %vm826_vm13, %vm827_vm6  ;;  %v361_v9 = vpop.f32.mrf.mxu2 }
  0xd6   :  { %v990_v28 = vadd.f32 %v1618_v63, %v989_v19  ;;  %v823_v27 = vsub.f32 1.0, %v822_v22  ;;  %v644_v30 = vmul.f32 %v1622_v10, %v643_v25  ;;  %v1197_v31 = vmul.f32 %v1628_v26, %v2114_v62 }
  0xd7   :  { %v1630_v34 = vpop.eup %1629  ;;  %v1208_v40 = vor.u32 1.1754944e-38, %v1207_v17  ;;  %1635 = vrcp.f32 %v2149_v29  ;;  %vm1202_vm8 = vweird.f32 %v1628_v26  ;;  %vm1006_vm9 = vweird.f32 %v2132_v8 }
  0xd8   :  { %v994_v36 = vsel %vm993_vm2, %v1618_v63, %v990_v28  ;;  %v824_v38 = vmul.f32 %v1624_v15, %v823_v27  ;;  %v645_v41 = vadd.f32 %v1622_v10, %v644_v30  ;;  %v1198_v43 = vsub.f32 1.0, %v1197_v31  ;;  %vm2199_vm12 = vmor %vm1201_vm1, %vm1202_vm8 }
  0xd9   :  { %v999_v39 = vsel %vm2121_vm11, %v998_v0, %v994_v36  ;;  %v1632_v44 = vpop.eup %1631  ;;  %v1013_v46 = vor.u32 1.1754944e-38, %v1012_v24  ;;  %v2182_v47 = vadd.f32 1.0, %v1630_v34  ;;  %vm2187_vm11 = vcmp.eq.f32.partialorder %v1010_v33, 8.507059e+37  ;;  %v303_v24 = vpop.f32.mrf.mxu0 }
  0xda   :  { %1372 = vst.msk [vmem:[%s3130_s4 + $0xc8] sm:$0xff] %vm1346_vm5, %v999_v39  ;;  %v825_v45 = vadd.f32 %v1624_v15, %v824_v38  ;;  %v649_v48 = vsel %vm2163_vm10, %v1622_v10, %v645_v41  ;;  %v1199_v49 = vmul.f32 %v1628_v26, %v1198_v43  ;;  %v1002_v50 = vmul.f32 %v1632_v44, %v2132_v8  ;;  %v333_v36 = vpop.f32.mrf.mxu1 }
  0xdb   :  { %v665_v52 = vand.u32 2147483647, %v2149_v29  ;;  %v1634_v53 = vpop.eup %1633  ;;  %v654_v54 = vsel %vm2128_vm15, %v653_v7, %v649_v48  ;;  %vm661_vm13 = vweird.f32 %v2149_v29  ;;  %v667_v57 = vand.u32 2147483648, %v2149_v29  ;;  %v393_v7 = vpop.f32.mrf.mxu3 }
  0xdc   :  { %v829_v55 = vsel %vm2173_vm7, %v1624_v15, %v825_v45  ;;  %1349 = vst.msk [vmem:[%s3130_s4 + $0x10] sm:$0xff] %vm1346_vm5, %v654_v54  ;;  %v1200_v60 = vadd.f32 %v1628_v26, %v1199_v49  ;;  %v1003_v61 = vsub.f32 1.0, %v1002_v50  ;;  %1637 = vrcp.f32 %v2182_v47 }
  0xdd   :  { %v834_v59 = vsel %vm2134_vm0, %v833_v14, %v829_v55  ;;  %v1636_v62 = vpop.eup %1635  ;;  %vm1007_vm14 = vweird.f32 %v1632_v44  ;;  %v845_v63 = vand.u32 2147483647, %v2182_v47  ;;  %v847_v0 = vand.u32 2147483648, %v2182_v47  ;;  %v363_v50 = vpop.f32.mrf.mxu2 }
  0xde   :  { %1361 = vst.msk [vmem:[%s3130_s4 + $0x70] sm:$0xff] %vm1346_vm5, %v834_v59  ;;  %v2218_v1 = vadd.f32 1.0, %v1634_v53  ;;  %v1204_v3 = vsel %vm2199_vm12, %v1628_v26, %v1200_v60  ;;  %v1004_v4 = vmul.f32 %v1632_v44, %v1003_v61  ;;  %v657_v5 = vmul.f32 %v1636_v62, %v2149_v29  ;;  %vm1008_vm4 = vmor %vm1006_vm9, %vm1007_vm14 }
  0xdf   :  { %vm2223_vm15 = vcmp.eq.f32.partialorder %v665_v52, 8.507059e+37  ;;  %v1209_v10 = vsel %vm2155_vm3, %v1208_v40, %v1204_v3  ;;  %v668_v11 = vor.u32 1.1754944e-38, %v667_v57  ;;  %vm841_vm0 = vweird.f32 %v2182_v47 }
  0xe0   :  { %1639 = vrcp.f32 %v2218_v1  ;;  %1386 = vst.msk [vmem:[%s3130_s4 + $0x138] sm:$0xff] %vm1346_vm5, %v1209_v10  ;;  %v1005_v12 = vadd.f32 %v1632_v44, %v1004_v4  ;;  %v658_v14 = vsub.f32 1.0, %v657_v5  ;;  %vm662_vm1 = vweird.f32 %v1636_v62 }
  0xe1   :  { %v848_v15 = vor.u32 1.1754944e-38, %v847_v0  ;;  %vm2238_vm6 = vcmp.eq.f32.partialorder %v845_v63, 8.507059e+37  ;;  %vm1216_vm2 = vweird.f32 %v2218_v1  ;;  %v518_v13 = vmul.f32 1.442695, %v442_v18  ;;  %vm2254_vm3 = vmor %vm661_vm13, %vm662_vm1 }
  0xe2   :  { %v419_v17 = vsub.f32 0.0, %v2146_v23  ;;  %v332_v20 = vadd.f32 %v1909_v35, %v331_v58  ;;  %v1638_v21 = vpop.eup %1637  ;;  %v1009_v19 = vsel %vm1008_vm4, %v1632_v44, %v1005_v12  ;;  %v659_v22 = vmul.f32 %v1636_v62, %v658_v14 }
  0xe3   :  { %v1220_v25 = vand.u32 2147483647, %v2218_v1  ;;  %v394_v8 = vadd.f32 %v1909_v35, %v393_v7  ;;  %v1014_v26 = vsel %vm2187_vm11, %v1013_v46, %v1009_v19  ;;  %v837_v18 = vmul.f32 %v1638_v21, %v2182_v47  ;;  %v396_v49 = vpop.f32.mrf.mxu3 }
  0xe4   :  { %vm842_vm10 = vweird.f32 %v1638_v21  ;;  %v1222_v23 = vand.u32 2147483648, %v2218_v1  ;;  %1373 = vst.msk [vmem:[%s3130_s4 + $0xd0] sm:$0xff] %vm1346_vm5, %v1014_v26  ;;  %v660_v28 = vadd.f32 %v1636_v62, %v659_v22  ;;  %1641 = vpow2.f32 %v518_v13 }
  0xe5   :  { %v472_v27 = vmul.f32 1.442695, %v419_v17  ;;  %v431_v30 = vsub.f32 0.0, %v332_v20  ;;  %v838_v29 = vsub.f32 1.0, %v837_v18  ;;  %v456_v32 = vsub.f32 0.0, %v394_v8  ;;  %vm2278_vm8 = vmor %vm841_vm0, %vm842_vm10 }
  0xe6   :  { %v1640_v31 = vpop.eup %1639  ;;  %v362_v33 = vadd.f32 %v1909_v35, %v361_v9  ;;  %v304_v34 = vadd.f32 %v1909_v35, %v303_v24  ;;  %v664_v37 = vsel %vm2254_vm3, %v1636_v62, %v660_v28  ;;  %v334_v48 = vadd.f32 %v1909_v35, %v333_v36 }
  0xe7   :  { %v1212_v38 = vmul.f32 %v1640_v31, %v2218_v1  ;;  %vm1217_vm7 = vweird.f32 %v1640_v31  ;;  %1643 = vpow2.f32 %v472_v27  ;;  %v669_v40 = vsel %vm2223_vm15, %v668_v11, %v664_v37 }
  0xe8   :  { %v839_v39 = vmul.f32 %v1638_v21, %v838_v29  ;;  %v496_v41 = vmul.f32 1.442695, %v431_v30  ;;  %v546_v42 = vmul.f32 1.442695, %v456_v32  ;;  %1350 = vst.msk [vmem:[%s3130_s4 + $0x18] sm:$0xff] %vm1346_vm5, %v669_v40  ;;  %v443_v45 = vsub.f32 0.0, %v362_v33  ;;  %vm2289_vm9 = vmor %vm1216_vm2, %vm1217_vm7 }
  0xe9   :  { %v1213_v44 = vsub.f32 1.0, %v1212_v38  ;;  %v420_v46 = vsub.f32 0.0, %v304_v34  ;;  %v1223_v52 = vor.u32 1.1754944e-38, %v1222_v23  ;;  %v397_v53 = vadd.f32 %v1909_v35, %v396_v49  ;;  %v306_v23 = vpop.f32.mrf.mxu0 }
  0xea   :  { %v840_v51 = vadd.f32 %v1638_v21, %v839_v39  ;;  %1645 = vpow2.f32 %v496_v41  ;;  %v1642_v54 = vpop.eup %1641  ;;  %v520_v47 = vmul.f32 1.442695, %v443_v45  ;;  %v432_v60 = vsub.f32 0.0, %v334_v48 }
  0xeb   :  { %v1214_v55 = vmul.f32 %v1640_v31, %v1213_v44  ;;  %1647 = vpow2.f32 %v546_v42  ;;  %v474_v56 = vmul.f32 1.442695, %v420_v46  ;;  %v2293_v59 = vadd.f32 1.0, %v1642_v54 }
  0xec   :  { %v844_v57 = vsel %vm2278_vm8, %v1638_v21, %v840_v51  ;;  %v364_v61 = vadd.f32 %v1909_v35, %v363_v50  ;;  %vm1221_vm11 = vcmp.eq.f32.partialorder %v1220_v25, 8.507059e+37  ;;  %1649 = vpow2.f32 %v520_v47 }
  0xed   :  { %v1644_v62 = vpop.eup %1643  ;;  %v849_v63 = vsel %vm2238_vm6, %v848_v15, %v844_v57  ;;  %v1215_v0 = vadd.f32 %v1640_v31, %v1214_v55  ;;  %1651 = vrcp.f32 %v2293_v59  ;;  %v1027_v1 = vand.u32 2147483648, %v2293_v59 }
  0xee   :  { %1362 = vst.msk [vmem:[%s3130_s4 + $0x78] sm:$0xff] %vm1346_vm5, %v849_v63  ;;  %v457_v3 = vsub.f32 0.0, %v397_v53  ;;  %v2306_v5 = vadd.f32 1.0, %v1644_v62  ;;  %1653 = vpow2.f32 %v474_v56  ;;  %v498_v6 = vmul.f32 1.442695, %v432_v60 }
  0xef   :  { %v1219_v4 = vsel %vm2289_vm9, %v1640_v31, %v1215_v0  ;;  %v444_v10 = vsub.f32 0.0, %v364_v61  ;;  %v1025_v12 = vand.u32 2147483647, %v2293_v59  ;;  %vm1021_vm12 = vweird.f32 %v2293_v59 }
  0xf0   :  { %v1646_v7 = vpop.eup %1645  ;;  %v1224_v9 = vsel %vm1221_vm11, %v1223_v52, %v1219_v4  ;;  %1655 = vrcp.f32 %v2306_v5  ;;  %v682_v14 = vand.u32 2147483648, %v2306_v5  ;;  %v680_v15 = vand.u32 2147483647, %v2306_v5 }
  0xf1   :  { %v1648_v11 = vpop.eup %1647  ;;  %1387 = vst.msk [vmem:[%s3130_s4 + $0x140] sm:$0xff] %vm1346_vm5, %v1224_v9  ;;  %v2316_v16 = vadd.f32 1.0, %v1646_v7  ;;  %v548_v17 = vmul.f32 1.442695, %v457_v3  ;;  %v1028_v21 = vor.u32 1.1754944e-38, %v1027_v1  ;;  %1657 = vpow2.f32 %v498_v6 }
  0xf2   :  { %v2318_v13 = vadd.f32 1.0, %v1648_v11  ;;  %v1650_v20 = vpop.eup %1649  ;;  %vm676_vm13 = vweird.f32 %v2306_v5  ;;  %v2322_v22 = vor.u32 1.1754944e-38, %v682_v14  ;;  %v522_v25 = vmul.f32 1.442695, %v444_v10 }
  0xf3   :  { %v1652_v19 = vpop.eup %1651  ;;  %1659 = vrcp.f32 %v2316_v16  ;;  %vm2326_vm14 = vcmp.eq.f32.partialorder %v1025_v12, 8.507059e+37  ;;  %v860_v2 = vand.u32 2147483647, %v2316_v16  ;;  %v862_v18 = vand.u32 2147483648, %v2316_v16 }
  0xf4   :  { %v1654_v8 = vpop.eup %1653  ;;  %v1017_v24 = vmul.f32 %v1652_v19, %v2293_v59  ;;  %1661 = vrcp.f32 %v2318_v13  ;;  %vm2333_vm15 = vcmp.eq.f32.partialorder %v680_v15, 8.507059e+37  ;;  %vm856_vm0 = vweird.f32 %v2316_v16 }
  0xf5   :  { %v1235_v27 = vand.u32 2147483647, %v2318_v13  ;;  %1663 = vpow2.f32 %v548_v17  ;;  %v2340_v30 = vadd.f32 %v1909_v35, %v306_v23  ;;  %v1237_v32 = vand.u32 2147483648, %v2318_v13 }
  0xf6   :  { %v1656_v31 = vpop.eup %1655  ;;  %v1018_v29 = vsub.f32 1.0, %v1017_v24  ;;  %v2343_v33 = vadd.f32 1.0, %v1650_v20  ;;  %v2345_v34 = vadd.f32 1.0, %v1654_v8  ;;  %vm1022_vm1 = vweird.f32 %v1652_v19  ;;  %v336_v20 = vpop.f32.mrf.mxu1 }
  0xf7   :  { %v672_v36 = vmul.f32 %v1656_v31, %v2306_v5  ;;  %vm1231_vm4 = vweird.f32 %v2318_v13  ;;  %1665 = vpow2.f32 %v522_v25  ;;  %v1658_v37 = vpop.eup %1657  ;;  %vm2349_vm6 = vcmp.eq.f32.partialorder %v860_v2, 8.507059e+37  ;;  %vm1023_vm10 = vmor %vm1021_vm12, %vm1022_vm1  ;;  %v366_v25 = vpop.f32.mrf.mxu2 }
  0xf8   :  { %v1019_v38 = vmul.f32 %v1652_v19, %v1018_v29  ;;  %v863_v39 = vor.u32 1.1754944e-38, %v862_v18  ;;  %1667 = vrcp.f32 %v2343_v33  ;;  %vm677_vm2 = vweird.f32 %v1656_v31 }
  0xf9   :  { %v1660_v41 = vpop.eup %1659  ;;  %v673_v42 = vsub.f32 1.0, %v672_v36  ;;  %vm2354_vm3 = vcmp.eq.f32.partialorder %v1235_v27, 8.507059e+37  ;;  %1669 = vrcp.f32 %v2345_v34  ;;  %v1238_v48 = vor.u32 1.1754944e-38, %v1237_v32  ;;  %vm2370_vm8 = vmor %vm676_vm13, %vm677_vm2  ;;  %v398_v27 = vpop.f32.mrf.mxu3 }
  0xfa   :  { %v1662_v44 = vpop.eup %1661  ;;  %v1020_v45 = vadd.f32 %v1652_v19, %v1019_v38  ;;  %v852_v46 = vmul.f32 %v1660_v41, %v2316_v16  ;;  %v1042_v49 = vand.u32 2147483648, %v2343_v33  ;;  %v1040_v53 = vand.u32 2147483647, %v2343_v33 }
  0xfb   :  { %v1664_v50 = vpop.eup %1663  ;;  %v674_v51 = vmul.f32 %v1656_v31, %v673_v42  ;;  %v1227_v52 = vmul.f32 %v1662_v44, %v2318_v13  ;;  %vm691_vm7 = vweird.f32 %v2345_v34  ;;  %vm857_vm9 = vweird.f32 %v1660_v41 }
  0xfc   :  { %v1024_v54 = vsel %vm1023_vm10, %v1652_v19, %v1020_v45  ;;  %v853_v47 = vsub.f32 1.0, %v852_v46  ;;  %vm1232_vm11 = vweird.f32 %v1662_v44  ;;  %vm1036_vm12 = vweird.f32 %v2343_v33  ;;  %vm2390_vm13 = vmor %vm856_vm0, %vm857_vm9 }
  0xfd   :  { %v1666_v56 = vpop.eup %1665  ;;  %v1029_v57 = vsel %vm2326_vm14, %v1028_v21, %v1024_v54  ;;  %v675_v58 = vadd.f32 %v1656_v31, %v674_v51  ;;  %v1228_v59 = vsub.f32 1.0, %v1227_v52  ;;  %v2377_v60 = vadd.f32 1.0, %v1658_v37  ;;  %vm2407_vm0 = vmor %vm1231_vm4, %vm1232_vm11 }
  0xfe   :  { %v1668_v61 = vpop.eup %1667  ;;  %1374 = vst.msk [vmem:[%s3130_s4 + $0xd8] sm:$0xff] %vm1346_vm5, %v1029_v57  ;;  %v854_v62 = vmul.f32 %v1660_v41, %v853_v47  ;;  %v1043_v63 = vor.u32 1.1754944e-38, %v1042_v49  ;;  %v695_v0 = vand.u32 2147483647, %v2345_v34  ;;  %v697_v1 = vand.u32 2147483648, %v2345_v34 }
  0xff   :  { %v1670_v3 = vpop.eup %1669  ;;  %v679_v4 = vsel %vm2370_vm8, %v1656_v31, %v675_v58  ;;  %v1229_v6 = vmul.f32 %v1662_v44, %v1228_v59  ;;  %v1032_v7 = vmul.f32 %v1668_v61, %v2343_v33  ;;  %vm2395_vm14 = vcmp.eq.f32.partialorder %v1040_v53, 8.507059e+37 }
 0x100   :  { %v2399_v10 = vadd.f32 1.0, %v1664_v50  ;;  %v684_v11 = vsel %vm2333_vm15, %v2322_v22, %v679_v4  ;;  %v855_v12 = vadd.f32 %v1660_v41, %v854_v62  ;;  %vm1037_vm1 = vweird.f32 %v1668_v61 }
 0x101   :  { %v687_v15 = vmul.f32 %v1670_v3, %v2345_v34  ;;  %1351 = vst.msk [vmem:[%s3130_s4 + $0x20] sm:$0xff] %vm1346_vm5, %v684_v11  ;;  %v1230_v16 = vadd.f32 %v1662_v44, %v1229_v6  ;;  %v1033_v17 = vsub.f32 1.0, %v1032_v7  ;;  %vm692_vm2 = vweird.f32 %v1670_v3  ;;  %v401_v11 = vpop.f32.mrf.mxu3 }
 0x102   :  { %1671 = vrcp.f32 %v2377_v60  ;;  %v859_v13 = vsel %vm2390_vm13, %v1660_v41, %v855_v12  ;;  %v875_v19 = vand.u32 2147483647, %v2377_v60  ;;  %v877_v22 = vand.u32 2147483648, %v2377_v60  ;;  %vm2443_vm4 = vmor %vm691_vm7, %vm692_vm2 }
 0x103   :  { %v688_v21 = vsub.f32 1.0, %v687_v15  ;;  %v864_v8 = vsel %vm2349_vm6, %v863_v39, %v859_v13  ;;  %v1234_v24 = vsel %vm2407_vm0, %v1662_v44, %v1230_v16  ;;  %v1034_v26 = vmul.f32 %v1668_v61, %v1033_v17 }
 0x104   :  { %1673 = vrcp.f32 %v2399_v10  ;;  %1363 = vst.msk [vmem:[%s3130_s4 + $0x80] sm:$0xff] %vm1346_vm5, %v864_v8  ;;  %v1239_v2 = vsel %vm2354_vm3, %v1238_v48, %v1234_v24  ;;  %vm2432_vm15 = vcmp.eq.f32.partialorder %v695_v0, 8.507059e+37  ;;  %v698_v28 = vor.u32 1.1754944e-38, %v697_v1  ;;  %vm1038_vm3 = vmor %vm1036_vm12, %vm1037_vm1  ;;  %v308_v48 = vpop.f32.mrf.mxu0 }
 0x105   :  { %v689_v18 = vmul.f32 %v1670_v3, %v688_v21  ;;  %1388 = vst.msk [vmem:[%s3130_s4 + $0x148] sm:$0xff] %vm1346_vm5, %v1239_v2  ;;  %v1035_v31 = vadd.f32 %v1668_v61, %v1034_v26  ;;  %vm871_vm6 = vweird.f32 %v2377_v60  ;;  %v1250_v32 = vand.u32 2147483647, %v2399_v10 }
 0x106   :  { %v1252_v36 = vand.u32 2147483648, %v2399_v10  ;;  %vm2453_vm10 = vcmp.eq.f32.partialorder %v875_v19, 8.507059e+37  ;;  %v878_v34 = vor.u32 1.1754944e-38, %v877_v22  ;;  %v2457_v40 = vadd.f32 1.0, %v1666_v56  ;;  %v338_v56 = vpop.f32.mrf.mxu1 }
 0x107   :  { %v690_v37 = vadd.f32 %v1670_v3, %v689_v18  ;;  %v1039_v41 = vsel %vm1038_vm3, %v1668_v61, %v1035_v31  ;;  %v421_v42 = vsub.f32 0.0, %v2340_v30  ;;  %v337_v43 = vadd.f32 %v1909_v35, %v336_v20  ;;  %v2489_v61 = vld [vmem:[%s3128_s3] ss:$0 sm:$0xff] }
 0x108   :  { %v1672_v39 = vpop.eup %1671  ;;  %v399_v44 = vadd.f32 %v1909_v35, %v398_v27  ;;  %v1044_v33 = vsel %vm2395_vm14, %v1043_v63, %v1039_v41  ;;  %vm1246_vm7 = vweird.f32 %v2399_v10  ;;  %vm2474_vm8 = vcmp.eq.f32.partialorder %v1250_v32, 8.507059e+37  ;;  %v368_v63 = vpop.f32.mrf.mxu2 }
 0x109   :  { %v694_v45 = vsel %vm2443_vm4, %v1670_v3, %v690_v37  ;;  %v867_v46 = vmul.f32 %v1672_v39, %v2377_v60  ;;  %1375 = vst.msk [vmem:[%s3130_s4 + $0xe0] sm:$0xff] %vm1346_vm5, %v1044_v33  ;;  %v1253_v50 = vor.u32 1.1754944e-38, %v1252_v36  ;;  %1675 = vrcp.f32 %v2457_v40 }
 0x10a   :  { %v1674_v49 = vpop.eup %1673  ;;  %v699_v35 = vsel %vm2432_vm15, %v698_v28, %v694_v45  ;;  %vm872_vm9 = vweird.f32 %v1672_v39  ;;  %v1055_v53 = vand.u32 2147483647, %v2457_v40  ;;  %v476_v54 = vmul.f32 1.442695, %v421_v42 }
 0x10b   :  { %1352 = vst.msk [vmem:[%s3130_s4 + $0x28] sm:$0xff] %vm1346_vm5, %v699_v35  ;;  %v868_v51 = vsub.f32 1.0, %v867_v46  ;;  %v1242_v52 = vmul.f32 %v1674_v49, %v2399_v10  ;;  %vm1247_vm11 = vweird.f32 %v1674_v49  ;;  %v433_v55 = vsub.f32 0.0, %v337_v43  ;;  %vm2494_vm12 = vmor %vm871_vm6, %vm872_vm9 }
 0x10c   :  { %v458_v47 = vsub.f32 0.0, %v399_v44  ;;  %v1057_v59 = vand.u32 2147483648, %v2457_v40  ;;  %v367_v62 = vadd.f32 %v2489_v61, %v366_v25  ;;  %1677 = vpow2.f32 %v476_v54  ;;  %vm2503_vm13 = vmor %vm1246_vm7, %vm1247_vm11  ;;  %v311_v26 = vpop.f32.mrf.mxu0 }
 0x10d   :  { %v869_v57 = vmul.f32 %v1672_v39, %v868_v51  ;;  %v1243_v58 = vsub.f32 1.0, %v1242_v52  ;;  %v500_v1 = vmul.f32 1.442695, %v433_v55  ;;  %v309_v4 = vadd.f32 %v2489_v61, %v308_v48 }
 0x10e   :  { %v550_v3 = vmul.f32 1.442695, %v458_v47  ;;  %v445_v7 = vsub.f32 0.0, %v367_v62  ;;  %v339_v9 = vadd.f32 %v2489_v61, %v338_v56  ;;  %v402_v15 = vadd.f32 %v2489_v61, %v401_v11 }
 0x10f   :  { %v870_v5 = vadd.f32 %v1672_v39, %v869_v57  ;;  %v1244_v6 = vmul.f32 %v1674_v49, %v1243_v58  ;;  %v1676_v12 = vpop.eup %1675  ;;  %1679 = vpow2.f32 %v500_v1  ;;  %v422_v14 = vsub.f32 0.0, %v309_v4 }
 0x110   :  { %v369_v16 = vadd.f32 %v2489_v61, %v368_v63  ;;  %v1047_v13 = vmul.f32 %v1676_v12, %v2457_v40  ;;  %vm1052_vm14 = vweird.f32 %v1676_v12  ;;  %1681 = vpow2.f32 %v550_v3 }
 0x111   :  { %v874_v17 = vsel %vm2494_vm12, %v1672_v39, %v870_v5  ;;  %v1245_v20 = vadd.f32 %v1674_v49, %v1244_v6  ;;  %v524_v21 = vmul.f32 1.442695, %v445_v7  ;;  %v478_v19 = vmul.f32 1.442695, %v422_v14 }
 0x112   :  { %v879_v10 = vsel %vm2453_vm10, %v878_v34, %v874_v17  ;;  %v1048_v25 = vsub.f32 1.0, %v1047_v13  ;;  %v434_v8 = vsub.f32 0.0, %v339_v9  ;;  %v459_v24 = vsub.f32 0.0, %v402_v15  ;;  %v1678_v2 = vpop.eup %1677 }
 0x113   :  { %1364 = vst.msk [vmem:[%s3130_s4 + $0x88] sm:$0xff] %vm1346_vm5, %v879_v10  ;;  %v1249_v22 = vsel %vm2503_vm13, %v1674_v49, %v1245_v20  ;;  %1683 = vpow2.f32 %v524_v21  ;;  %v446_v23 = vsub.f32 0.0, %v369_v16  ;;  %v312_v28 = vadd.f32 %v2489_v61, %v311_v26 }
 0x114   :  { %v1254_v18 = vsel %vm2474_vm8, %v1253_v50, %v1249_v22  ;;  %v1049_v27 = vmul.f32 %v1676_v12, %v1048_v25  ;;  %v2527_v31 = vadd.f32 1.0, %v1678_v2  ;;  %1685 = vpow2.f32 %v478_v19 }
 0x115   :  { %1389 = vst.msk [vmem:[%s3130_s4 + $0x150] sm:$0xff] %vm1346_vm5, %v1254_v18  ;;  %v502_v29 = vmul.f32 1.442695, %v434_v8  ;;  %v1680_v32 = vpop.eup %1679  ;;  %vm1051_vm0 = vweird.f32 %v2457_v40  ;;  %vm1056_vm1 = vcmp.eq.f32.partialorder %v1055_v53, 8.507059e+37  ;;  %v1058_v37 = vor.u32 1.1754944e-38, %v1057_v59  ;;  %v341_v40 = vpop.f32.mrf.mxu1 }
 0x116   :  { %v1050_v36 = vadd.f32 %v1676_v12, %v1049_v27  ;;  %1687 = vrcp.f32 %v2527_v31  ;;  %v1682_v38 = vpop.eup %1681  ;;  %vm1053_vm2 = vmor %vm1051_vm0, %vm1052_vm14  ;;  %v2532_v34 = vadd.f32 1.0, %v1680_v32  ;;  %v552_v39 = vmul.f32 1.442695, %v459_v24 }
 0x117   :  { %v526_v41 = vmul.f32 1.442695, %v446_v23  ;;  %v423_v42 = vsub.f32 0.0, %v312_v28  ;;  %v710_v44 = vand.u32 2147483647, %v2527_v31  ;;  %v2535_v33 = vadd.f32 1.0, %v1682_v38 }
 0x118   :  { %v1054_v43 = vsel %vm1053_vm2, %v1676_v12, %v1050_v36  ;;  %1689 = vpow2.f32 %v502_v29  ;;  %v712_v48 = vand.u32 2147483648, %v2527_v31  ;;  %v2540_v49 = vadd.f32 %v2489_v61, %v341_v40 }
 0x119   :  { %v1684_v45 = vpop.eup %1683  ;;  %v1059_v46 = vsel %vm1056_vm1, %v1058_v37, %v1054_v43  ;;  %1691 = vrcp.f32 %v2532_v34  ;;  %vm706_vm15 = vweird.f32 %v2527_v31  ;;  %v890_v30 = vand.u32 2147483647, %v2532_v34 }
 0x11a   :  { %v1686_v35 = vpop.eup %1685  ;;  %1376 = vst.msk [vmem:[%s3130_s4 + $0xe8] sm:$0xff] %vm1346_vm5, %v1059_v46  ;;  %v892_v50 = vand.u32 2147483648, %v2532_v34  ;;  %1693 = vrcp.f32 %v2535_v33  ;;  %v2550_v51 = vadd.f32 1.0, %v1684_v45  ;;  %v480_v53 = vmul.f32 1.442695, %v423_v42 }
 0x11b   :  { %v2552_v52 = vadd.f32 1.0, %v1686_v35  ;;  %1695 = vpow2.f32 %v552_v39  ;;  %vm2554_vm4 = vcmp.eq.f32.partialorder %v710_v44, 8.507059e+37  ;;  %v1265_v47 = vand.u32 2147483647, %v2535_v33 }
 0x11c   :  { %v1688_v54 = vpop.eup %1687  ;;  %v1267_v56 = vand.u32 2147483648, %v2535_v33  ;;  %1697 = vpow2.f32 %v526_v41  ;;  %v713_v58 = vor.u32 1.1754944e-38, %v712_v48  ;;  %vm886_vm6 = vweird.f32 %v2532_v34  ;;  %v371_v48 = vpop.f32.mrf.mxu2 }
 0x11d   :  { %v702_v57 = vmul.f32 %v1688_v54, %v2527_v31  ;;  %vm1261_vm3 = vweird.f32 %v2535_v33  ;;  %vm2563_vm10 = vcmp.eq.f32.partialorder %v890_v30, 8.507059e+37  ;;  %v893_v63 = vor.u32 1.1754944e-38, %v892_v50 }
 0x11e   :  { %v1690_v59 = vpop.eup %1689  ;;  %1699 = vrcp.f32 %v2550_v51  ;;  %v435_v0 = vsub.f32 0.0, %v2540_v49  ;;  %vm707_vm7 = vweird.f32 %v1688_v54  ;;  %v1072_v4 = vand.u32 2147483648, %v2550_v51 }
 0x11f   :  { %v1692_v1 = vpop.eup %1691  ;;  %v703_v3 = vsub.f32 1.0, %v702_v57  ;;  %1701 = vrcp.f32 %v2552_v52  ;;  %vm2572_vm8 = vcmp.eq.f32.partialorder %v1265_v47, 8.507059e+37  ;;  %v1268_v9 = vor.u32 1.1754944e-38, %v1267_v56  ;;  %vm2582_vm11 = vmor %vm706_vm15, %vm707_vm7 }
 0x120   :  { %v1694_v5 = vpop.eup %1693  ;;  %v882_v6 = vmul.f32 %v1692_v1, %v2532_v34  ;;  %v725_v11 = vand.u32 2147483647, %v2552_v52  ;;  %v1070_v15 = vand.u32 2147483647, %v2550_v51  ;;  %vm721_vm9 = vweird.f32 %v2552_v52 }
 0x121   :  { %v1696_v12 = vpop.eup %1695  ;;  %v704_v60 = vmul.f32 %v1688_v54, %v703_v3  ;;  %v1257_v14 = vmul.f32 %v1694_v5, %v2535_v33  ;;  %vm887_vm12 = vweird.f32 %v1692_v1  ;;  %v727_v13 = vand.u32 2147483648, %v2552_v52 }
 0x122   :  { %v1698_v16 = vpop.eup %1697  ;;  %v883_v20 = vsub.f32 1.0, %v882_v6  ;;  %v2587_v10 = vadd.f32 1.0, %v1690_v59  ;;  %vm1262_vm13 = vweird.f32 %v1694_v5  ;;  %vm1066_vm14 = vweird.f32 %v2550_v51  ;;  %vm2604_vm1 = vmor %vm886_vm6, %vm887_vm12 }
 0x123   :  { %v705_v21 = vadd.f32 %v1688_v54, %v704_v60  ;;  %v1258_v19 = vsub.f32 1.0, %v1257_v14  ;;  %v1073_v22 = vor.u32 1.1754944e-38, %v1072_v4  ;;  %vm2590_vm0 = vcmp.eq.f32.partialorder %v725_v11, 8.507059e+37  ;;  %vm2618_vm15 = vmor %vm1261_vm3, %vm1262_vm13  ;;  %v313_v14 = vpop.f32.mrf.mxu0 }
 0x124   :  { %v1700_v25 = vpop.eup %1699  ;;  %v884_v8 = vmul.f32 %v1692_v1, %v883_v20  ;;  %1703 = vrcp.f32 %v2587_v10  ;;  %v2595_v26 = vadd.f32 1.0, %v1696_v12  ;;  %v2597_v2 = vadd.f32 1.0, %v1698_v16  ;;  %v373_v49 = vpop.f32.mrf.mxu2 }
 0x125   :  { %v1702_v18 = vpop.eup %1701  ;;  %v709_v23 = vsel %vm2582_vm11, %v1688_v54, %v705_v21  ;;  %v1259_v27 = vmul.f32 %v1694_v5, %v1258_v19  ;;  %v1062_v31 = vmul.f32 %v1700_v25, %v2550_v51  ;;  %vm2609_vm2 = vcmp.eq.f32.partialorder %v1070_v15, 8.507059e+37  ;;  %v343_v15 = vpop.f32.mrf.mxu1 }
 0x126   :  { %1705 = vpow2.f32 %v480_v53  ;;  %v714_v32 = vsel %vm2554_vm4, %v713_v58, %v709_v23  ;;  %v885_v36 = vadd.f32 %v1692_v1, %v884_v8  ;;  %v717_v38 = vmul.f32 %v1702_v18, %v2552_v52  ;;  %v403_v58 = vpop.f32.mrf.mxu3 }
 0x127   :  { %v728_v34 = vor.u32 1.1754944e-38, %v727_v13  ;;  %1353 = vst.msk [vmem:[%s3130_s4 + $0x30] sm:$0xff] %vm1346_vm5, %v714_v32  ;;  %v1260_v39 = vadd.f32 %v1694_v5, %v1259_v27  ;;  %v1063_v41 = vsub.f32 1.0, %v1062_v31  ;;  %vm722_vm6 = vweird.f32 %v1702_v18 }
 0x128   :  { %v905_v42 = vand.u32 2147483647, %v2587_v10  ;;  %v889_v43 = vsel %vm2604_vm1, %v1692_v1, %v885_v36  ;;  %v718_v44 = vsub.f32 1.0, %v717_v38  ;;  %v907_v33 = vand.u32 2147483648, %v2587_v10 }
 0x129   :  { %1707 = vrcp.f32 %v2595_v26  ;;  %v894_v40 = vsel %vm2563_vm10, %v893_v63, %v889_v43  ;;  %v1264_v45 = vsel %vm2618_vm15, %v1694_v5, %v1260_v39  ;;  %v1064_v46 = vmul.f32 %v1700_v25, %v1063_v41  ;;  %vm2651_vm10 = vmor %vm721_vm9, %vm722_vm6 }
 0x12a   :  { %vm1067_vm4 = vweird.f32 %v1700_v25  ;;  %v1704_v35 = vpop.eup %1703  ;;  %1365 = vst.msk [vmem:[%s3130_s4 + $0x90] sm:$0xff] %vm1346_vm5, %v894_v40  ;;  %v1269_v30 = vsel %vm2572_vm8, %v1268_v9, %v1264_v45  ;;  %v719_v50 = vmul.f32 %v1702_v18, %v718_v44  ;;  %vm901_vm3 = vweird.f32 %v2587_v10 }
 0x12b   :  { %v1280_v53 = vand.u32 2147483647, %v2595_v26  ;;  %1390 = vst.msk [vmem:[%s3130_s4 + $0x158] sm:$0xff] %vm1346_vm5, %v1269_v30  ;;  %v1065_v55 = vadd.f32 %v1700_v25, %v1064_v46  ;;  %v897_v56 = vmul.f32 %v1704_v35, %v2587_v10  ;;  %vm2656_vm7 = vcmp.eq.f32.partialorder %v905_v42, 8.507059e+37  ;;  %vm1068_vm11 = vmor %vm1066_vm14, %vm1067_vm4  ;;  %v316_v47 = vpop.f32.mrf.mxu0 }
 0x12c   :  { %v1706_v54 = vpop.eup %1705  ;;  %vm1276_vm8 = vweird.f32 %v2595_v26  ;;  %v720_v59 = vadd.f32 %v1702_v18, %v719_v50  ;;  %v908_v62 = vor.u32 1.1754944e-38, %v907_v33  ;;  %v1282_v52 = vand.u32 2147483648, %v2595_v26 }
 0x12d   :  { %1709 = vrcp.f32 %v2597_v2  ;;  %v1069_v63 = vsel %vm1068_vm11, %v1700_v25, %v1065_v55  ;;  %v898_v1 = vsub.f32 1.0, %v897_v56  ;;  %vm902_vm9 = vweird.f32 %v1704_v35  ;;  %v346_v56 = vpop.f32.mrf.mxu1 }
 0x12e   :  { %vm2666_vm12 = vcmp.eq.f32.partialorder %v1280_v53, 8.507059e+37  ;;  %v1074_v5 = vsel %vm2609_vm2, %v1073_v22, %v1069_v63  ;;  %v724_v51 = vsel %vm2651_vm10, %v1702_v18, %v720_v59  ;;  %v1087_v6 = vand.u32 2147483648, %v2597_v2  ;;  %vm2692_vm13 = vmor %vm901_vm3, %vm902_vm9  ;;  %v406_v39 = vpop.f32.mrf.mxu3 }
 0x12f   :  { %v1708_v4 = vpop.eup %1707  ;;  %v2675_v7 = vadd.f32 1.0, %v1706_v54  ;;  %1377 = vst.msk [vmem:[%s3130_s4 + $0xf0] sm:$0xff] %vm1346_vm5, %v1074_v5  ;;  %v729_v9 = vsel %vm2590_vm0, %v728_v34, %v724_v51  ;;  %v899_v11 = vmul.f32 %v1704_v35, %v898_v1  ;;  %v1085_v60 = vand.u32 2147483647, %v2597_v2 }
 0x130   :  { %v1272_v12 = vmul.f32 %v1708_v4, %v2595_v26  ;;  %1354 = vst.msk [vmem:[%s3130_s4 + $0x38] sm:$0xff] %vm1346_vm5, %v729_v9  ;;  %vm1277_vm14 = vweird.f32 %v1708_v4  ;;  %v1283_v17 = vor.u32 1.1754944e-38, %v1282_v52  ;;  %v1088_v20 = vor.u32 1.1754944e-38, %v1087_v6 }
 0x131   :  { %1711 = vrcp.f32 %v2675_v7  ;;  %v900_v13 = vadd.f32 %v1704_v35, %v899_v11  ;;  %vm1081_vm0 = vweird.f32 %v2597_v2  ;;  %vm736_vm1 = vweird.f32 %v2675_v7  ;;  %vm2718_vm15 = vmor %vm1276_vm8, %vm1277_vm14 }
 0x132   :  { %v1273_v21 = vsub.f32 1.0, %v1272_v12  ;;  %v742_v19 = vand.u32 2147483648, %v2675_v7  ;;  %v504_v10 = vmul.f32 1.442695, %v435_v0  ;;  %v404_v25 = vadd.f32 %v2489_v61, %v403_v58 }
 0x133   :  { %v1710_v22 = vpop.eup %1709  ;;  %v372_v8 = vadd.f32 %v2489_v61, %v371_v48  ;;  %v314_v24 = vadd.f32 %v2489_v61, %v313_v14  ;;  %v904_v18 = vsel %vm2692_vm13, %v1704_v35, %v900_v13  ;;  %vm2708_vm2 = vcmp.eq.f32.partialorder %v1085_v60, 8.507059e+37 }
 0x134   :  { %v1274_v23 = vmul.f32 %v1708_v4, %v1273_v21  ;;  %v1077_v28 = vmul.f32 %v1710_v22, %v2597_v2  ;;  %v740_v31 = vand.u32 2147483647, %v2675_v7  ;;  %v909_v0 = vsel %vm2656_vm7, %v908_v62, %v904_v18 }
 0x135   :  { %vm1082_vm6 = vweird.f32 %v1710_v22  ;;  %v743_v32 = vor.u32 1.1754944e-38, %v742_v19  ;;  %1713 = vpow2.f32 %v504_v10  ;;  %1366 = vst.msk [vmem:[%s3130_s4 + $0x98] sm:$0xff] %vm1346_vm5, %v909_v0  ;;  %v460_v38 = vsub.f32 0.0, %v404_v25 }
 0x136   :  { %v1275_v36 = vadd.f32 %v1708_v4, %v1274_v23  ;;  %v1078_v37 = vsub.f32 1.0, %v1077_v28  ;;  %v447_v34 = vsub.f32 0.0, %v372_v8  ;;  %v424_v42 = vsub.f32 0.0, %v314_v24  ;;  %vm1083_vm3 = vmor %vm1081_vm0, %vm1082_vm6  ;;  %v408_v13 = vpop.f32.mrf.mxu3 }
 0x137   :  { %v1712_v41 = vpop.eup %1711  ;;  %v344_v26 = vadd.f32 %v2489_v61, %v343_v15  ;;  %v407_v43 = vadd.f32 %v2489_v61, %v406_v39  ;;  %v374_v44 = vadd.f32 %v2489_v61, %v373_v49  ;;  %v554_v48 = vmul.f32 1.442695, %v460_v38  ;;  %v348_v49 = vpop.f32.mrf.mxu1 }
 0x138   :  { %v1279_v33 = vsel %vm2718_vm15, %v1708_v4, %v1275_v36  ;;  %v1079_v40 = vmul.f32 %v1710_v22, %v1078_v37  ;;  %v732_v45 = vmul.f32 %v1712_v41, %v2675_v7  ;;  %vm737_vm4 = vweird.f32 %v1712_v41 }
 0x139   :  { %v1284_v46 = vsel %vm2666_vm12, %v1283_v17, %v1279_v33  ;;  %v528_v35 = vmul.f32 1.442695, %v447_v34  ;;  %v482_v30 = vmul.f32 1.442695, %v424_v42  ;;  %v436_v54 = vsub.f32 0.0, %v344_v26  ;;  %vm2750_vm10 = vmor %vm736_vm1, %vm737_vm4 }
 0x13a   :  { %1391 = vst.msk [vmem:[%s3130_s4 + $0x160] sm:$0xff] %vm1346_vm5, %v1284_v46  ;;  %v1080_v50 = vadd.f32 %v1710_v22, %v1079_v40  ;;  %v733_v53 = vsub.f32 1.0, %v732_v45  ;;  %v461_v55 = vsub.f32 0.0, %v407_v43  ;;  %1715 = vpow2.f32 %v554_v48 }
 0x13b   :  { %v1714_v57 = vpop.eup %1713  ;;  %v448_v58 = vsub.f32 0.0, %v374_v44  ;;  %v317_v59 = vadd.f32 %v2489_v61, %v316_v47  ;;  %v347_v62 = vadd.f32 %v2489_v61, %v346_v56  ;;  %1717 = vpow2.f32 %v528_v35 }
 0x13c   :  { %v1084_v52 = vsel %vm1083_vm3, %v1710_v22, %v1080_v50  ;;  %v734_v63 = vmul.f32 %v1712_v41, %v733_v53  ;;  %v2743_v1 = vadd.f32 1.0, %v1714_v57  ;;  %1719 = vpow2.f32 %v482_v30  ;;  %v376_v22 = vpop.f32.mrf.mxu2 }
 0x13d   :  { %v1089_v3 = vsel %vm2708_vm2, %v1088_v20, %v1084_v52  ;;  %v506_v4 = vmul.f32 1.442695, %v436_v54  ;;  %v556_v5 = vmul.f32 1.442695, %v461_v55  ;;  %vm741_vm7 = vcmp.eq.f32.partialorder %v740_v31, 8.507059e+37  ;;  %v318_v31 = vpop.f32.mrf.mxu0 }
 0x13e   :  { %1378 = vst.msk [vmem:[%s3130_s4 + $0xf8] sm:$0xff] %vm1346_vm5, %v1089_v3  ;;  %v735_v51 = vadd.f32 %v1712_v41, %v734_v63  ;;  %1721 = vrcp.f32 %v2743_v1  ;;  %v920_v6 = vand.u32 2147483647, %v2743_v1  ;;  %v530_v7 = vmul.f32 1.442695, %v448_v58  ;;  %v2818_v50 = vpop.f32.mrf.mxu3 }
 0x13f   :  { %1723 = vpow2.f32 %v506_v4  ;;  %v425_v9 = vsub.f32 0.0, %v317_v59  ;;  %v922_v12 = vand.u32 2147483648, %v2743_v1  ;;  %v437_v60 = vsub.f32 0.0, %v347_v62 }
 0x140   :  { %v739_v11 = vsel %vm2750_vm10, %v1712_v41, %v735_v51  ;;  %1725 = vpow2.f32 %v556_v5  ;;  %v1716_v14 = vpop.eup %1715  ;;  %vm916_vm8 = vweird.f32 %v2743_v1  ;;  %vm2772_vm11 = vcmp.eq.f32.partialorder %v920_v6, 8.507059e+37 }
 0x141   :  { %v744_v15 = vsel %vm741_vm7, %v743_v32, %v739_v11  ;;  %1727 = vpow2.f32 %v530_v7  ;;  %v1718_v16 = vpop.eup %1717  ;;  %v2767_v17 = vadd.f32 1.0, %v1716_v14  ;;  %v484_v20 = vmul.f32 1.442695, %v425_v9 }
 0x142   :  { %1355 = vst.msk [vmem:[%s3130_s4 + $0x40] sm:$0xff] %vm1346_vm5, %v744_v15  ;;  %v1720_v21 = vpop.eup %1719  ;;  %v2770_v19 = vadd.f32 1.0, %v1718_v16  ;;  %v923_v8 = vor.u32 1.1754944e-38, %v922_v12  ;;  %v508_v24 = vmul.f32 1.442695, %v437_v60  ;;  %v2783_v32 = vadd.f32 %v2489_v61, %v408_v13 }
 0x143   :  { %1729 = vrcp.f32 %v2767_v17  ;;  %v1295_v28 = vand.u32 2147483647, %v2767_v17  ;;  %v1297_v27 = vand.u32 2147483648, %v2767_v17  ;;  %v2786_v36 = vadd.f32 %v2489_v61, %v376_v22 }
 0x144   :  { %v1722_v10 = vpop.eup %1721  ;;  %1731 = vrcp.f32 %v2770_v19  ;;  %v1102_v29 = vand.u32 2147483648, %v2770_v19  ;;  %v2788_v34 = vadd.f32 1.0, %v1720_v21  ;;  %vm1291_vm12 = vweird.f32 %v2767_v17  ;;  %v2833_v63 = vpop.f32.mrf.mxu2 }
 0x145   :  { %v1724_v18 = vpop.eup %1723  ;;  %v912_v23 = vmul.f32 %v1722_v10, %v2743_v1  ;;  %1733 = vpow2.f32 %v484_v20  ;;  %vm917_vm9 = vweird.f32 %v1722_v10  ;;  %v1100_v41 = vand.u32 2147483647, %v2770_v19 }
 0x146   :  { %v1726_v0 = vpop.eup %1725  ;;  %v2790_v39 = vadd.f32 1.0, %v1724_v18  ;;  %v2795_v42 = vadd.f32 %v2489_v61, %v318_v31  ;;  %v2798_v26 = vadd.f32 %v2489_v61, %v348_v49  ;;  %vm2800_vm13 = vcmp.eq.f32.partialorder %v1295_v28, 8.507059e+37  ;;  %vm2809_vm14 = vmor %vm916_vm8, %vm917_vm9 }
 0x147   :  { %v1728_v37 = vpop.eup %1727  ;;  %v913_v38 = vsub.f32 1.0, %v912_v23  ;;  %v1298_v33 = vor.u32 1.1754944e-38, %v1297_v27  ;;  %1735 = vrcp.f32 %v2788_v34  ;;  %v2805_v40 = vadd.f32 1.0, %v1726_v0 }
 0x148   :  { %vm1096_vm0 = vweird.f32 %v2770_v19  ;;  %v1103_v48 = vor.u32 1.1754944e-38, %v1102_v29  ;;  %v755_v35 = vand.u32 2147483647, %v2788_v34  ;;  %1737 = vrcp.f32 %v2790_v39 }
 0x149   :  { %v914_v43 = vmul.f32 %v1722_v10, %v913_v38  ;;  %v1730_v45 = vpop.eup %1729  ;;  %v2816_v30 = vadd.f32 1.0, %v1728_v37  ;;  %v757_v47 = vand.u32 2147483648, %v2788_v34  ;;  %1739 = vpow2.f32 %v508_v24 }
 0x14a   :  { %v1732_v53 = vpop.eup %1731  ;;  %v1287_v55 = vmul.f32 %v1730_v45, %v2767_v17  ;;  %vm2823_vm1 = vcmp.eq.f32.partialorder %v1100_v41, 8.507059e+37  ;;  %vm751_vm2 = vweird.f32 %v2788_v34  ;;  %vm931_vm15 = vweird.f32 %v2790_v39 }
 0x14b   :  { %v915_v54 = vadd.f32 %v1722_v10, %v914_v43  ;;  %v1734_v56 = vpop.eup %1733  ;;  %v1092_v57 = vmul.f32 %v1732_v53, %v2770_v19  ;;  %v935_v59 = vand.u32 2147483647, %v2790_v39  ;;  %vm1292_vm6 = vweird.f32 %v1730_v45 }
 0x14c   :  { %v1288_v52 = vsub.f32 1.0, %v1287_v55  ;;  %1741 = vrcp.f32 %v2805_v40  ;;  %vm2837_vm4 = vcmp.eq.f32.partialorder %v755_v35, 8.507059e+37  ;;  %v937_v4 = vand.u32 2147483648, %v2790_v39  ;;  %vm2849_vm10 = vmor %vm1291_vm12, %vm1292_vm6 }
 0x14d   :  { %v919_v62 = vsel %vm2809_vm14, %v1722_v10, %v915_v54  ;;  %v1093_v3 = vsub.f32 1.0, %v1092_v57  ;;  %v1736_v5 = vpop.eup %1735  ;;  %vm1097_vm3 = vweird.f32 %v1732_v53  ;;  %v758_v6 = vor.u32 1.1754944e-38, %v757_v47  ;;  %v413_v10 = vpop.f32.mrf.mxu3 }
 0x14e   :  { %v924_v1 = vsel %vm2772_vm11, %v923_v8, %v919_v62  ;;  %v1289_v51 = vmul.f32 %v1730_v45, %v1288_v52  ;;  %1743 = vrcp.f32 %v2816_v30  ;;  %v1738_v7 = vpop.eup %1737  ;;  %v747_v12 = vmul.f32 %v1736_v5, %v2788_v34  ;;  %vm1098_vm9 = vmor %vm1096_vm0, %vm1097_vm3 }
 0x14f   :  { %1367 = vst.msk [vmem:[%s3130_s4 + $0xa0] sm:$0xff] %vm1346_vm5, %v924_v1  ;;  %v1094_v11 = vmul.f32 %v1732_v53, %v1093_v3  ;;  %vm2854_vm7 = vcmp.eq.f32.partialorder %v935_v59, 8.507059e+37  ;;  %vm1306_vm8 = vweird.f32 %v2805_v40  ;;  %v1740_v14 = vpop.eup %1739  ;;  %v927_v16 = vmul.f32 %v1738_v7, %v2790_v39 }
 0x150   :  { %v1290_v15 = vadd.f32 %v1730_v45, %v1289_v51  ;;  %v1310_v20 = vand.u32 2147483647, %v2805_v40  ;;  %v1312_v17 = vand.u32 2147483648, %v2805_v40  ;;  %v748_v21 = vsub.f32 1.0, %v747_v12 }
 0x151   :  { %v1095_v13 = vadd.f32 %v1732_v53, %v1094_v11  ;;  %vm752_vm11 = vweird.f32 %v1736_v5  ;;  %v938_v22 = vor.u32 1.1754944e-38, %v937_v4  ;;  %v928_v24 = vsub.f32 1.0, %v927_v16 }
 0x152   :  { %v1742_v25 = vpop.eup %1741  ;;  %v1294_v8 = vsel %vm2849_vm10, %v1730_v45, %v1290_v15  ;;  %vm932_vm12 = vweird.f32 %v1738_v7  ;;  %v2867_v18 = vadd.f32 1.0, %v1734_v56  ;;  %v749_v27 = vmul.f32 %v1736_v5, %v748_v21  ;;  %vm2881_vm14 = vmor %vm751_vm2, %vm752_vm11 }
 0x153   :  { %v1299_v23 = vsel %vm2800_vm13, %v1298_v33, %v1294_v8  ;;  %v1099_v28 = vsel %vm1098_vm9, %v1732_v53, %v1095_v13  ;;  %v1302_v31 = vmul.f32 %v1742_v25, %v2805_v40  ;;  %v929_v29 = vmul.f32 %v1738_v7, %v928_v24  ;;  %vm2896_vm0 = vmor %vm931_vm15, %vm932_vm12 }
 0x154   :  { %v1744_v49 = vpop.eup %1743  ;;  %1392 = vst.msk [vmem:[%s3130_s4 + $0x168] sm:$0xff] %vm1346_vm5, %v1299_v23  ;;  %v1104_v19 = vsel %vm2823_vm1, %v1103_v48, %v1099_v28  ;;  %vm2885_vm13 = vcmp.eq.f32.partialorder %v1310_v20, 8.507059e+37  ;;  %v1313_v38 = vor.u32 1.1754944e-38, %v1312_v17  ;;  %v750_v41 = vadd.f32 %v1736_v5, %v749_v27  ;;  %v381_v48 = vpop.f32.mrf.mxu2 }
 0x155   :  { %1379 = vst.msk [vmem:[%s3130_s4 + $0x100] sm:$0xff] %vm1346_vm5, %v1104_v19  ;;  %v1303_v43 = vsub.f32 1.0, %v1302_v31  ;;  %vm1307_vm1 = vweird.f32 %v1742_v25  ;;  %v1107_v44 = vmul.f32 %v1744_v49, %v2816_v30  ;;  %v930_v33 = vadd.f32 %v1738_v7, %v929_v29 }
 0x156   :  { %v1115_v45 = vand.u32 2147483647, %v2816_v30  ;;  %v1117_v46 = vand.u32 2147483648, %v2816_v30  ;;  %1745 = vrcp.f32 %v2867_v18  ;;  %v754_v35 = vsel %vm2881_vm14, %v1736_v5, %v750_v41  ;;  %vm2912_vm15 = vmor %vm1306_vm8, %vm1307_vm1 }
 0x157   :  { %v1304_v39 = vmul.f32 %v1742_v25, %v1303_v43  ;;  %v1108_v53 = vsub.f32 1.0, %v1107_v44  ;;  %vm1112_vm2 = vweird.f32 %v1744_v49  ;;  %v759_v54 = vsel %vm2837_vm4, %v758_v6, %v754_v35 }
 0x158   :  { %v934_v55 = vsel %vm2896_vm0, %v1738_v7, %v930_v33  ;;  %v770_v56 = vand.u32 2147483647, %v2867_v18  ;;  %v2917_v57 = vadd.f32 1.0, %v1740_v14  ;;  %1356 = vst.msk [vmem:[%s3130_s4 + $0x48] sm:$0xff] %vm1346_vm5, %v759_v54  ;;  %v772_v40 = vand.u32 2147483648, %v2867_v18 }
 0x159   :  { %v939_v58 = vsel %vm2854_vm7, %v938_v22, %v934_v55  ;;  %v1305_v59 = vadd.f32 %v1742_v25, %v1304_v39  ;;  %v1109_v62 = vmul.f32 %v1744_v49, %v1108_v53  ;;  %vm1111_vm6 = vweird.f32 %v2816_v30 }
 0x15a   :  { %1368 = vst.msk [vmem:[%s3130_s4 + $0xa8] sm:$0xff] %vm1346_vm5, %v939_v58  ;;  %vm2931_vm4 = vcmp.eq.f32.partialorder %v1115_v45, 8.507059e+37  ;;  %v1118_v1 = vor.u32 1.1754944e-38, %v1117_v46  ;;  %1747 = vrcp.f32 %v2917_v57  ;;  %vm766_vm3 = vweird.f32 %v2867_v18  ;;  %vm1113_vm10 = vmor %vm1111_vm6, %vm1112_vm2 }
 0x15b   :  { %v1309_v3 = vsel %vm2912_vm15, %v1742_v25, %v1305_v59  ;;  %v1110_v2 = vadd.f32 %v1744_v49, %v1109_v62  ;;  %v462_v4 = vsub.f32 0.0, %v2783_v32  ;;  %vm2943_vm7 = vcmp.eq.f32.partialorder %v770_v56, 8.507059e+37 }
 0x15c   :  { %v1746_v5 = vpop.eup %1745  ;;  %v1314_v51 = vsel %vm2885_vm13, %v1313_v38, %v1309_v3  ;;  %v449_v6 = vsub.f32 0.0, %v2786_v36  ;;  %v426_v7 = vsub.f32 0.0, %v2795_v42  ;;  %v773_v11 = vor.u32 1.1754944e-38, %v772_v40  ;;  %v383_v22 = vpop.f32.mrf.mxu2 }
 0x15d   :  { %1393 = vst.msk [vmem:[%s3130_s4 + $0x170] sm:$0xff] %vm1346_vm5, %v1314_v51  ;;  %v1114_v32 = vsel %vm1113_vm10, %v1744_v49, %v1110_v2  ;;  %v762_v9 = vmul.f32 %v1746_v5, %v2867_v18  ;;  %vm767_vm8 = vweird.f32 %v1746_v5  ;;  %v558_v60 = vmul.f32 1.442695, %v462_v4 }
 0x15e   :  { %v1119_v12 = vsel %vm2931_vm4, %v1118_v1, %v1114_v32  ;;  %v532_v14 = vmul.f32 1.442695, %v449_v6  ;;  %v486_v15 = vmul.f32 1.442695, %v426_v7  ;;  %v438_v42 = vsub.f32 0.0, %v2798_v26  ;;  %vm2973_vm9 = vmor %vm766_vm3, %vm767_vm8 }
 0x15f   :  { %1380 = vst.msk [vmem:[%s3130_s4 + $0x108] sm:$0xff] %vm1346_vm5, %v1119_v12  ;;  %v763_v36 = vsub.f32 1.0, %v762_v9  ;;  %v379_v16 = vadd.f32 %v2489_v61, %v2833_v63  ;;  %v412_v20 = vadd.f32 %v2489_v61, %v2818_v50  ;;  %vm946_vm11 = vweird.f32 %v2917_v57 }
 0x160   :  { %v1748_v17 = vpop.eup %1747  ;;  %v950_v13 = vand.u32 2147483647, %v2917_v57  ;;  %1749 = vpow2.f32 %v558_v60  ;;  %v382_v21 = vadd.f32 %v2489_v61, %v381_v48  ;;  %v952_v26 = vand.u32 2147483648, %v2917_v57 }
 0x161   :  { %v764_v10 = vmul.f32 %v1746_v5, %v763_v36  ;;  %v942_v25 = vmul.f32 %v1748_v17, %v2917_v57  ;;  %1751 = vpow2.f32 %v532_v14  ;;  %v510_v63 = vmul.f32 1.442695, %v438_v42 }
 0x162   :  { %1753 = vpow2.f32 %v486_v15  ;;  %v450_v8 = vsub.f32 0.0, %v379_v16  ;;  %v463_v24 = vsub.f32 0.0, %v412_v20  ;;  %vm947_vm12 = vweird.f32 %v1748_v17 }
 0x163   :  { %v765_v23 = vadd.f32 %v1746_v5, %v764_v10  ;;  %v943_v28 = vsub.f32 1.0, %v942_v25  ;;  %v384_v27 = vadd.f32 %v2489_v61, %v383_v22  ;;  %1755 = vpow2.f32 %v510_v63  ;;  %vm2984_vm14 = vmor %vm946_vm11, %vm947_vm12 }
 0x164   :  { %v534_v31 = vmul.f32 1.442695, %v450_v8  ;;  %v560_v49 = vmul.f32 1.442695, %v463_v24  ;;  %v451_v19 = vsub.f32 0.0, %v382_v21  ;;  %v953_v41 = vor.u32 1.1754944e-38, %v952_v26 }
 0x165   :  { %v769_v18 = vsel %vm2973_vm9, %v1746_v5, %v765_v23  ;;  %v944_v0 = vmul.f32 %v1748_v17, %v943_v28  ;;  %vm951_vm13 = vcmp.eq.f32.partialorder %v950_v13, 8.507059e+37  ;;  %v452_v46 = vsub.f32 0.0, %v384_v27 }
 0x166   :  { %v1750_v29 = vpop.eup %1749  ;;  %v774_v37 = vsel %vm2943_vm7, %v773_v11, %v769_v18  ;;  %1757 = vpow2.f32 %v534_v31  ;;  %v536_v45 = vmul.f32 1.442695, %v451_v19 }
 0x167   :  { %v1752_v61 = vpop.eup %1751  ;;  %1357 = vst.msk [vmem:[%s3130_s4 + $0x50] sm:$0xff] %vm1346_vm5, %v774_v37  ;;  %v945_v34 = vadd.f32 %v1748_v17, %v944_v0  ;;  %v609_v43 = vadd.f32 1.0, %v1750_v29  ;;  %1759 = vpow2.f32 %v560_v49  ;;  %v538_v57 = vmul.f32 1.442695, %v452_v46 }
 0x168   :  { %v1754_v44 = vpop.eup %1753  ;;  %v2992_v33 = vadd.f32 1.0, %v1752_v61 }
 0x169   :  { %v949_v48 = vsel %vm2984_vm14, %v1748_v17, %v945_v34  ;;  %1761 = vrcp.f32 %v609_v43  ;;  %v1756_v35 = vpop.eup %1755  ;;  %v1325_v53 = vand.u32 2147483647, %v609_v43  ;;  %v3001_v54 = vadd.f32 1.0, %v1754_v44 }
 0x16a   :  { %v954_v39 = vsel %vm951_vm13, %v953_v41, %v949_v48  ;;  %1763 = vrcp.f32 %v2992_v33  ;;  %v1327_v47 = vand.u32 2147483648, %v609_v43  ;;  %v3003_v56 = vadd.f32 1.0, %v1756_v35 }
 0x16b   :  { %1369 = vst.msk [vmem:[%s3130_s4 + $0xb0] sm:$0xff] %vm1346_vm5, %v954_v39  ;;  %1765 = vpow2.f32 %v536_v45  ;;  %v1130_v59 = vand.u32 2147483647, %v2992_v33  ;;  %v1132_v62 = vand.u32 2147483648, %v2992_v33  ;;  %vm1321_vm0 = vweird.f32 %v609_v43 }
 0x16c   :  { %v1758_v55 = vpop.eup %1757  ;;  %1767 = vrcp.f32 %v3001_v54  ;;  %vm3009_vm1 = vcmp.eq.f32.partialorder %v1325_v53, 8.507059e+37  ;;  %vm1126_vm2 = vweird.f32 %v2992_v33  ;;  %v785_v1 = vand.u32 2147483647, %v3001_v54 }
 0x16d   :  { %v1760_v58 = vpop.eup %1759  ;;  %1769 = vrcp.f32 %v3003_v56  ;;  %v3015_v3 = vadd.f32 1.0, %v1758_v55  ;;  %v1328_v51 = vor.u32 1.1754944e-38, %v1327_v47  ;;  %v787_v30 = vand.u32 2147483648, %v3001_v54 }
 0x16e   :  { %v3017_v2 = vadd.f32 1.0, %v1760_v58  ;;  %1771 = vpow2.f32 %v538_v57  ;;  %vm3021_vm15 = vcmp.eq.f32.partialorder %v1130_v59, 8.507059e+37  ;;  %v1133_v32 = vor.u32 1.1754944e-38, %v1132_v62 }
 0x16f   :  { %v1762_v40 = vpop.eup %1761  ;;  %v965_v9 = vand.u32 2147483647, %v3003_v56  ;;  %v967_v11 = vand.u32 2147483648, %v3003_v56  ;;  %vm781_vm4 = vweird.f32 %v3001_v54  ;;  %1773 = vrcp.f32 %v3015_v3 }
 0x170   :  { %v1764_v4 = vpop.eup %1763  ;;  %v1317_v5 = vmul.f32 %v1762_v40, %v609_v43  ;;  %vm1322_vm6 = vweird.f32 %v1762_v40  ;;  %vm3029_vm3 = vcmp.eq.f32.partialorder %v785_v1, 8.507059e+37  ;;  %vm961_vm10 = vweird.f32 %v3003_v56 }
 0x171   :  { %v1122_v6 = vmul.f32 %v1764_v4, %v2992_v33  ;;  %v1766_v12 = vpop.eup %1765  ;;  %1775 = vrcp.f32 %v3017_v2  ;;  %vm1127_vm7 = vweird.f32 %v1764_v4  ;;  %v788_v17 = vor.u32 1.1754944e-38, %v787_v30  ;;  %vm3037_vm8 = vmor %vm1321_vm0, %vm1322_vm6 }
 0x172   :  { %v1318_v60 = vsub.f32 1.0, %v1317_v5  ;;  %v1768_v14 = vpop.eup %1767  ;;  %vm3042_vm11 = vcmp.eq.f32.partialorder %v965_v9, 8.507059e+37  ;;  %v968_v25 = vor.u32 1.1754944e-38, %v967_v11  ;;  %v1145_v8 = vand.u32 2147483647, %v3015_v3  ;;  %vm1128_vm14 = vmor %vm1126_vm2, %vm1127_vm7 }
 0x173   :  { %v1123_v15 = vsub.f32 1.0, %v1122_v6  ;;  %v1770_v42 = vpop.eup %1769  ;;  %v777_v20 = vmul.f32 %v1768_v14, %v3001_v54  ;;  %vm782_vm9 = vweird.f32 %v1768_v14  ;;  %v3047_v28 = vadd.f32 1.0, %v1766_v12 }
 0x174   :  { %v1319_v16 = vmul.f32 %v1762_v40, %v1318_v60  ;;  %v957_v22 = vmul.f32 %v1770_v42, %v3003_v56  ;;  %v1772_v26 = vpop.eup %1771  ;;  %vm962_vm12 = vweird.f32 %v1770_v42  ;;  %v1147_v19 = vand.u32 2147483648, %v3015_v3  ;;  %vm3061_vm0 = vmor %vm781_vm4, %vm782_vm9 }
 0x175   :  { %v1124_v21 = vmul.f32 %v1764_v4, %v1123_v15  ;;  %v778_v63 = vsub.f32 1.0, %v777_v20  ;;  %v1774_v27 = vpop.eup %1773  ;;  %vm1336_vm13 = vweird.f32 %v3017_v2  ;;  %v599_v33 = vadd.f32 1.0, %v1772_v26 }
 0x176   :  { %v1320_v50 = vadd.f32 %v1762_v40, %v1319_v16  ;;  %v958_v23 = vsub.f32 1.0, %v957_v22  ;;  %v1137_v41 = vmul.f32 %v1774_v27, %v3015_v3  ;;  %v1342_v48 = vand.u32 2147483648, %v3017_v2 }
 0x177   :  { %v1125_v24 = vadd.f32 %v1764_v4, %v1124_v21  ;;  %v779_v49 = vmul.f32 %v1768_v14, %v778_v63  ;;  %v1776_v18 = vpop.eup %1775  ;;  %1777 = vrcp.f32 %v3047_v28  ;;  %v1340_v53 = vand.u32 2147483647, %v3017_v2 }
 0x178   :  { %v1324_v31 = vsel %vm3037_vm8, %v1762_v40, %v1320_v50  ;;  %v959_v38 = vmul.f32 %v1770_v42, %v958_v23  ;;  %v1332_v44 = vmul.f32 %v1776_v18, %v3017_v2  ;;  %v1138_v46 = vsub.f32 1.0, %v1137_v41 }
 0x179   :  { %v1329_v0 = vsel %vm3009_vm1, %v1328_v51, %v1324_v31  ;;  %v1129_v29 = vsel %vm1128_vm14, %v1764_v4, %v1125_v24  ;;  %v780_v34 = vadd.f32 %v1768_v14, %v779_v49  ;;  %vm3075_vm1 = vmor %vm961_vm10, %vm962_vm12  ;;  %vm1337_vm2 = vweird.f32 %v1776_v18 }
 0x17a   :  { %1394 = vst.msk [vmem:[%s3130_s4 + $0x178] sm:$0xff] %vm1346_vm5, %v1329_v0  ;;  %v1134_v61 = vsel %vm3021_vm15, %v1133_v32, %v1129_v29  ;;  %v960_v45 = vadd.f32 %v1770_v42, %v959_v38  ;;  %v1333_v39 = vsub.f32 1.0, %v1332_v44  ;;  %v1139_v47 = vmul.f32 %v1774_v27, %v1138_v46  ;;  %vm1338_vm4 = vmor %vm1336_vm13, %vm1337_vm2 }
 0x17b   :  { %1381 = vst.msk [vmem:[%s3130_s4 + $0x110] sm:$0xff] %vm1346_vm5, %v1134_v61  ;;  %v784_v35 = vsel %vm3061_vm0, %v1768_v14, %v780_v34  ;;  %vm1142_vm15 = vweird.f32 %v1774_v27  ;;  %1779 = vrcp.f32 %v599_v33  ;;  %vm1141_vm6 = vweird.f32 %v3015_v3 }
 0x17c   :  { %v789_v54 = vsel %vm3029_vm3, %v788_v17, %v784_v35  ;;  %v964_v55 = vsel %vm3075_vm1, %v1770_v42, %v960_v45  ;;  %v1334_v57 = vmul.f32 %v1776_v18, %v1333_v39  ;;  %v1140_v58 = vadd.f32 %v1774_v27, %v1139_v47  ;;  %vm1143_vm3 = vmor %vm1141_vm6, %vm1142_vm15 }
 0x17d   :  { %1358 = vst.msk [vmem:[%s3130_s4 + $0x58] sm:$0xff] %vm1346_vm5, %v789_v54  ;;  %v969_v56 = vsel %vm3042_vm11, %v968_v25, %v964_v55  ;;  %v1343_v59 = vor.u32 1.1754944e-38, %v1342_v48  ;;  %v1148_v62 = vor.u32 1.1754944e-38, %v1147_v19  ;;  %vm1341_vm10 = vcmp.eq.f32.partialorder %v1340_v53, 8.507059e+37  ;;  %v1778_v52 = vpop.eup %1777 }
 0x17e   :  { %1370 = vst.msk [vmem:[%s3130_s4 + $0xb8] sm:$0xff] %vm1346_vm5, %v969_v56  ;;  %v1335_v40 = vadd.f32 %v1776_v18, %v1334_v57  ;;  %v1144_v1 = vsel %vm1143_vm3, %v1774_v27, %v1140_v58  ;;  %vm1146_vm7 = vcmp.eq.f32.partialorder %v1145_v8, 8.507059e+37  ;;  %v1152_v51 = vmul.f32 %v1778_v52, %v3047_v28 }
 0x17f   :  { %v1149_v4 = vsel %vm1146_vm7, %v1148_v62, %v1144_v1  ;;  %v1162_v6 = vand.u32 2147483648, %v3047_v28  ;;  %vm1157_vm8 = vweird.f32 %v1778_v52  ;;  %v1160_v9 = vand.u32 2147483647, %v3047_v28 }
 0x180   :  { %v1339_v5 = vsel %vm1338_vm4, %v1776_v18, %v1335_v40  ;;  %1382 = vst.msk [vmem:[%s3130_s4 + $0x118] sm:$0xff] %vm1346_vm5, %v1149_v4  ;;  %v1153_v30 = vsub.f32 1.0, %v1152_v51  ;;  %vm1156_vm11 = vweird.f32 %v3047_v28  ;;  %v1177_v60 = vand.u32 2147483648, %v599_v33 }
 0x181   :  { %v1344_v3 = vsel %vm1341_vm10, %v1343_v59, %v1339_v5  ;;  %v1780_v2 = vpop.eup %1779  ;;  %vm1158_vm9 = vmor %vm1156_vm11, %vm1157_vm8  ;;  %v1163_v14 = vor.u32 1.1754944e-38, %v1162_v6  ;;  %v1175_v36 = vand.u32 2147483647, %v599_v33  ;;  %vm1161_vm14 = vcmp.eq.f32.partialorder %v1160_v9, 8.507059e+37 }
 0x182   :  { %1395 = vst.msk [vmem:[%s3130_s4 + $0x180] sm:$0xff] %vm1346_vm5, %v1344_v3  ;;  %v1167_v7 = vmul.f32 %v1780_v2, %v599_v33  ;;  %v1154_v32 = vmul.f32 %v1778_v52, %v1153_v30  ;;  %vm1172_vm12 = vweird.f32 %v1780_v2  ;;  %vm1171_vm13 = vweird.f32 %v599_v33 }
 0x183   :  { %vm1173_vm0 = vmor %vm1171_vm13, %vm1172_vm12  ;;  %v1178_v17 = vor.u32 1.1754944e-38, %v1177_v60  ;;  %vm1176_vm1 = vcmp.eq.f32.partialorder %v1175_v36, 8.507059e+37 }
 0x184   :  { %v1168_v11 = vsub.f32 1.0, %v1167_v7  ;;  %v1155_v12 = vadd.f32 %v1778_v52, %v1154_v32 }
 0x186   :  { %v1169_v15 = vmul.f32 %v1780_v2, %v1168_v11  ;;  %v1159_v42 = vsel %vm1158_vm9, %v1778_v52, %v1155_v12 }
 0x187   :  { %v1164_v16 = vsel %vm1161_vm14, %v1163_v14, %v1159_v42 }
 0x188   :  { %v1170_v20 = vadd.f32 %v1780_v2, %v1169_v15  ;;  %1383 = vst.msk [vmem:[%s3130_s4 + $0x120] sm:$0xff] %vm1346_vm5, %v1164_v16 }
 0x18a   :  { %v1174_v13 = vsel %vm1173_vm0, %v1780_v2, %v1170_v20 }
 0x18b   :  { %v1179_v21 = vsel %vm1176_vm1, %v1178_v17, %v1174_v13 }
 0x18c   :  { %1384 = vst.msk [vmem:[%s3130_s4 + $0x128] sm:$0xff] %vm1346_vm5, %v1179_v21 }

</bundles_post_ra>
